<compile_context>
chip_gen: v7x
topology: tpu7x:2x2x1
jax: 0.10.0
libtpu: 0.0.40
codegen_flags: <defaults>
</compile_context>

<pallas_src>
import functools

import jax
import jax.numpy as jnp
from jax.experimental import pallas as pl
from jax.experimental.pallas import tpu as pltpu

EPS = 1e-5
LANE = 128
# Safe on v5e/v6e/v7x at these tile sizes; re-derive (and raise) per generation for big tiles.
_VMEM_LIMIT = 32 * 1024 * 1024


# ----------------------------------------------------------------------------
# small helpers (all XLA glue)
# ----------------------------------------------------------------------------
def _round_up(x, m):
    return ((x + m - 1) // m) * m


def _pick_band(h):
    # Row-band height: whole image if small, otherwise 16/8-row bands (must divide h).
    for tb in (16, 8):
        if h > tb and h % tb == 0:
            return tb
    return h


def _pad_last(x, cp):
    c = x.shape[-1]
    if cp == c:
        return x
    return jnp.pad(x, [(0, 0)] * (x.ndim - 1) + [(0, cp - c)])


def _pad_vec(v, cp):
    return _pad_last(v.astype(jnp.float32).reshape(1, -1), cp)  # (1, cp) f32


def _band_rows(x, tb):
    """(..., H, W, C) -> (..., nb, (tb+2)*(W+2)+2, C).

    Overlapping row bands of the spatially zero-padded image, flattened over
    (rows, padded width) so the in-kernel 3x3 taps are contiguous 2-D row slices.
    """
    lead = x.shape[:-3]
    h, w, c = x.shape[-3:]
    nb = h // tb
    xp = jnp.pad(x, [(0, 0)] * len(lead) + [(1, 1), (1, 1), (0, 0)])
    bands = jnp.stack(
        [xp[..., i * tb:i * tb + tb + 2, :, :] for i in range(nb)], axis=len(lead))
    flat = bands.reshape(lead + (nb, (tb + 2) * (w + 2), c))
    # +2 slack rows so the (ki=2, kj=2) tap slice for the last wrap column stays in bounds.
    return jnp.pad(flat, [(0, 0)] * (len(lead) + 1) + [(0, 2), (0, 0)])


def _prep_conv_w(w, cin_p, cout_p):
    # (3, 3, Cin, Cout) HWIO -> (9, cin_p, cout_p) bf16, zero padded
    kh, kw, cin, cout = w.shape
    wp = jnp.zeros((kh * kw, cin_p, cout_p), jnp.float32)
    wp = wp.at[:, :cin, :cout].set(w.astype(jnp.float32).reshape(kh * kw, cin, cout))
    return wp.astype(jnp.bfloat16)


def _prep_deconv_w(w, cp):
    # torch ConvTranspose2d layout (Cin, Cout, 2, 2) -> (cp, 4*cp) bf16, tap-major (kh, kw, Cout)
    cin, cout, kh, kw = w.shape
    wt = jnp.transpose(w.astype(jnp.float32), (0, 2, 3, 1))     # (Cin, kh, kw, Cout)
    wp = jnp.zeros((cp, kh, kw, cp), jnp.float32)
    wp = wp.at[:cin, :, :, :cout].set(wt)
    return wp.reshape(cp, kh * kw * cp).astype(jnp.bfloat16)


# ----------------------------------------------------------------------------
# Pallas kernel 1: fused Conv3x3 + bias + BatchNorm(batch stats) + ReLU + deconv taps
# ----------------------------------------------------------------------------
def _branch_kernel(x_ref, mask_ref, cw_ref, cb_ref, g_ref, be_ref, dw_ref,
                   taps_ref, sum_ref, sq_ref, *, rows_out, wpad, inv_n, eps):
    """grid = (branch, phase, band).

    phase 0: accumulate per-channel sum / sumsq of conv output (valid pixels only).
    phase 1: recompute the conv band, normalize, ReLU, ConvTranspose2d(2) channel matmul.
    """
    phase = pl.program_id(1)
    band = pl.program_id(2)
    cp = cw_ref.shape[1]

    def conv_bias():
        acc = jnp.zeros((rows_out, cp), jnp.float32)
        for ki in range(3):
            for kj in range(3):
                s = ki * wpad + kj
                patch = x_ref[s:s + rows_out, :]                       # bf16 (rows_out, cp)
                acc = acc + jnp.dot(patch, cw_ref[ki * 3 + kj],
                                    preferred_element_type=jnp.float32)
        return acc + cb_ref[...]

    @pl.when(phase == 0)
    def _():
        @pl.when(band == 0)
        def _():
            sum_ref[...] = jnp.zeros_like(sum_ref)
            sq_ref[...] = jnp.zeros_like(sq_ref)

        y = conv_bias()
        m = mask_ref[...]                         # 1 for real pixels, 0 for wrap columns
        sum_ref[...] += jnp.sum(y * m, axis=0, keepdims=True)
        sq_ref[...] += jnp.sum(y * y * m, axis=0, keepdims=True)
        taps_ref[...] = jnp.zeros_like(taps_ref)  # deterministic placeholder (overwritten)

    @pl.when(phase == 1)
    def _():
        y = conv_bias()
        mean = sum_ref[...] * inv_n
        var = sq_ref[...] * inv_n - mean * mean
        yn = (y - mean) * jax.lax.rsqrt(var + eps) * g_ref[...] + be_ref[...]
        yr = jnp.maximum(yn, 0.0).astype(dw_ref.dtype)
        taps_ref[...] = jnp.dot(yr, dw_ref[...], preferred_element_type=jnp.float32)


def _branch_conv_deconv(xs, prm, stride, cp):
    """xs: (B, N, h, w, C) -> (B, N, h*stride, w*stride, cp) upsampled branch output (f32)."""
    B, N, h, w, _ = xs.shape
    tb = _pick_band(h)
    nb = h // tb
    nbt = N * nb
    wpad = w + 2
    rows_out = tb * wpad
    rows_in = (tb + 2) * wpad + 2

    xb = _band_rows(_pad_last(xs.astype(jnp.float32), cp), tb)
    xb = xb.reshape(B, nbt, rows_in, cp).astype(jnp.bfloat16)
    mask = (jnp.arange(rows_out) % wpad < w).astype(jnp.float32).reshape(rows_out, 1)

    cw = _prep_conv_w(prm["cw"], cp, cp)
    cb = _pad_vec(prm["cb"], cp)
    g = _pad_vec(prm["gamma"], cp)
    be = _pad_vec(prm["beta"], cp)
    dw = _prep_deconv_w(prm["dw"], cp)

    kernel = functools.partial(_branch_kernel, rows_out=rows_out, wpad=wpad,
                               inv_n=1.0 / float(N * h * w), eps=EPS)

    taps = pl.pallas_call(
        kernel,
        out_shape=jax.ShapeDtypeStruct((B, nbt, rows_out, 4 * cp), jnp.float32),
        grid=(B, 2, nbt),
        in_specs=[
            pl.BlockSpec((None, None, rows_in, cp), lambda b, p, m: (b, m, 0, 0)),
            pl.BlockSpec((rows_out, 1), lambda b, p, m: (0, 0)),
            pl.BlockSpec((9, cp, cp), lambda b, p, m: (0, 0, 0)),
            pl.BlockSpec((1, cp), lambda b, p, m: (0, 0)),
            pl.BlockSpec((1, cp), lambda b, p, m: (0, 0)),
            pl.BlockSpec((1, cp), lambda b, p, m: (0, 0)),
            pl.BlockSpec((cp, 4 * cp), lambda b, p, m: (0, 0)),
        ],
        out_specs=pl.BlockSpec((None, None, rows_out, 4 * cp),
                               lambda b, p, m: (b, m, 0, 0)),
        scratch_shapes=[pltpu.VMEM((1, cp), jnp.float32),
                        pltpu.VMEM((1, cp), jnp.float32)],
        compiler_params=pltpu.CompilerParams(
            # all axes carry the BN-stat scratch dependency -> sequential
            dimension_semantics=("arbitrary", "arbitrary", "arbitrary"),
            vmem_limit_bytes=_VMEM_LIMIT),
    )(xb, mask, cw, cb, g, be, dw)

    # Drop wrap columns, scatter taps into the (mostly zero) upsampled map, add deconv bias.
    taps = taps.reshape(B, N, nb, tb, wpad, 2, 2, cp)[:, :, :, :, :w]
    taps = taps.reshape(B, N, h, w, 2, 2, cp)                 # (B, N, i, j, kh, kw, c)
    up = jnp.zeros((B, N, h, stride, w, stride, cp), jnp.float32)
    up = up.at[:, :, :, :2, :, :2, :].set(jnp.transpose(taps, (0, 1, 2, 4, 3, 5, 6)))
    up = up.reshape(B, N, h * stride, w * stride, cp)
    return up + _pad_vec(prm["db"], cp).reshape(1, 1, 1, 1, cp)


# ----------------------------------------------------------------------------
# Pallas kernel 2: final 3x3 conv over the 6-way concat (reduction over branches)
# ----------------------------------------------------------------------------
def _final_kernel(y_ref, w_ref, b_ref, o_ref, acc_ref, *, rows_out, wpad):
    """grid = (row-band [parallel], branch [reduction]); acc_ref holds the f32 partial sum."""
    k = pl.program_id(1)

    @pl.when(k == 0)
    def _():
        acc_ref[...] = jnp.zeros_like(acc_ref)

    acc = acc_ref[...]
    for ki in range(3):
        for kj in range(3):
            s = ki * wpad + kj
            acc = acc + jnp.dot(y_ref[s:s + rows_out, :], w_ref[ki * 3 + kj],
                                preferred_element_type=jnp.float32)
    acc_ref[...] = acc

    @pl.when(k == pl.num_programs(1) - 1)
    def _():
        o_ref[...] = acc_ref[...] + b_ref[...]


def _final_conv(ystack, fw, fb, c_in, c_out, cp, cop):
    nbr, N, H, W, _ = ystack.shape
    tb = _pick_band(H)
    nb = H // tb
    nbt = N * nb
    wpad = W + 2
    rows_out = tb * wpad
    rows_in = (tb + 2) * wpad + 2

    yb = _band_rows(ystack, tb).reshape(nbr, nbt, rows_in, cp).astype(jnp.bfloat16)

    fwr = fw.astype(jnp.float32).reshape(3, 3, nbr, c_in, c_out)
    fwp = jnp.zeros((3, 3, nbr, cp, cop), jnp.float32)
    fwp = fwp.at[:, :, :, :c_in, :c_out].set(fwr)
    fwp = jnp.transpose(fwp, (2, 0, 1, 3, 4)).reshape(nbr, 9, cp, cop).astype(jnp.bfloat16)
    fbp = _pad_vec(fb, cop)

    kernel = functools.partial(_final_kernel, rows_out=rows_out, wpad=wpad)
    out = pl.pallas_call(
        kernel,
        out_shape=jax.ShapeDtypeStruct((nbt, rows_out, cop), jnp.float32),
        grid=(nbt, nbr),
        in_specs=[
            pl.BlockSpec((None, None, rows_in, cp), lambda m, k: (k, m, 0, 0)),
            pl.BlockSpec((None, 9, cp, cop), lambda m, k: (k, 0, 0, 0)),
            pl.BlockSpec((1, cop), lambda m, k: (0, 0)),
        ],
        out_specs=pl.BlockSpec((None, rows_out, cop), lambda m, k: (m, 0, 0)),
        scratch_shapes=[pltpu.VMEM((rows_out, cop), jnp.float32)],
        compiler_params=pltpu.CompilerParams(
            dimension_semantics=("parallel", "arbitrary"),
            vmem_limit_bytes=_VMEM_LIMIT),
    )(yb, fwp, fbp)

    out = out.reshape(N, nb, tb, wpad, cop)[:, :, :, :W, :]    # drop wrap columns
    return out.reshape(N, H, W, cop)[..., :c_out]


# ----------------------------------------------------------------------------
# MSC forward
# ----------------------------------------------------------------------------
def msc_forward(x1, x2, x3, x4, x5, x6, p):
    N, Hf, Wf, C = x6.shape
    out_c = p["fb"].shape[0]
    cp = _round_up(C, LANE)
    cop = _round_up(out_c, LANE)

    # x1, x2, x3 share conv_deconv8 weights -> one merged call, per-branch BN stats.
    y8 = _branch_conv_deconv(jnp.stack([x1, x2, x3], axis=0), p["cd8"], 8, cp)
    y4 = _branch_conv_deconv(x4[None], p["cd4"], 4, cp)
    y2 = _branch_conv_deconv(x5[None], p["cd2"], 2, cp)
    x6p = _pad_last(x6.astype(jnp.float32), cp)[None]
    ystack = jnp.concatenate([y8, y4, y2, x6p], axis=0)        # (6, N, Hf, Wf, cp)
    return _final_conv(ystack, p["fw"], p["fb"], C, out_c, cp, cop)


# ----------------------------------------------------------------------------
# Deterministic parameter init (synthetic, mirrors the PyTorch module shapes)
# ----------------------------------------------------------------------------
def init_params(key, C, out_channels):
    ks = jax.random.split(key, 5)

    def branch(k):
        k1, k2, k3, k4, k5, k6 = jax.random.split(k, 6)
        return dict(
            cw=0.1 * jax.random.normal(k1, (3, 3, C, C), jnp.float32),
            cb=0.1 * jax.random.normal(k2, (C,), jnp.float32),
            gamma=1.0 + 0.1 * jax.random.normal(k3, (C,), jnp.float32),
            beta=0.1 * jax.random.normal(k4, (C,), jnp.float32),
            dw=0.1 * jax.random.normal(k5, (C, C, 2, 2), jnp.float32),
            db=0.1 * jax.random.normal(k6, (C,), jnp.float32),
        )

    return dict(
        cd2=branch(ks[0]),
        cd4=branch(ks[1]),
        cd8=branch(ks[2]),
        fw=0.1 * jax.random.normal(ks[3], (3, 3, 6 * C, out_channels), jnp.float32),
        fb=0.1 * jax.random.normal(ks[4], (out_channels,), jnp.float32),
    )


if __name__ == "__main__":
    key = jax.random.PRNGKey(0)
    kp, k1, k2, k3, k4, k5, k6 = jax.random.split(key, 7)

    N, C, OUT_C, H = 2, 4, 4, 16   # full-resolution spatial = 16
    params = init_params(kp, C, OUT_C)

    # NHWC inputs (PyTorch NCHW equivalents: x1..x3 (2,4,2,2), x4 (2,4,4,4),
    # x5 (2,4,8,8), x6 (2,4,16,16))
    x1 = jax.random.normal(k1, (N, H // 8, H // 8, C), jnp.float32)
    x2 = jax.random.normal(k2, (N, H // 8, H // 8, C), jnp.float32)
    x3 = jax.random.normal(k3, (N, H // 8, H // 8, C), jnp.float32)
    x4 = jax.random.normal(k4, (N, H // 4, H // 4, C), jnp.float32)
    x5 = jax.random.normal(k5, (N, H // 2, H // 2, C), jnp.float32)
    x6 = jax.random.normal(k6, (N, H, H, C), jnp.float32)

    out = jax.jit(msc_forward)(x1, x2, x3, x4, x5, x6, params)
    out = jax.block_until_ready(out)
    assert out.shape == (N, H, H, OUT_C), out.shape
    assert jnp.all(jnp.isfinite(out))
    print("KERNEL_OK")
</pallas_src>

<mosaic_0001>
module attributes {stable_mosaic.version = 11 : i64} {
  func.func @_branch_kernel(%arg0: i32, %arg1: i32, %arg2: i32, %arg3: memref<1x1x18x128xbf16, #tpu.memory_space<vmem>>, %arg4: memref<8x1xf32, #tpu.memory_space<vmem>>, %arg5: memref<9x128x128xbf16, #tpu.memory_space<vmem>>, %arg6: memref<1x128xf32, #tpu.memory_space<vmem>>, %arg7: memref<1x128xf32, #tpu.memory_space<vmem>>, %arg8: memref<1x128xf32, #tpu.memory_space<vmem>>, %arg9: memref<128x512xbf16, #tpu.memory_space<vmem>>, %arg10: memref<1x1x8x512xf32, #tpu.memory_space<vmem>>, %arg11: memref<1x128xf32, #tpu.memory_space<vmem>>, %arg12: memref<1x128xf32, #tpu.memory_space<vmem>>) attributes {dimension_semantics = [#tpu.dimension_semantics<arbitrary>, #tpu.dimension_semantics<arbitrary>, #tpu.dimension_semantics<arbitrary>], iteration_bounds = array<i64: 3, 2, 2>, scalar_prefetch = 0 : i64, scratch_operands = 2 : i64, tpu.core_type = #tpu.core_type<tc>, window_params = [{transform_indices = @transform_0, window_bounds = array<i64: 1, 1, 18, 128>}, {pipeline_mode = #tpu.pipeline_mode<synchronous>, transform_indices = @transform_1, window_bounds = array<i64: 8, 1>}, {pipeline_mode = #tpu.pipeline_mode<synchronous>, transform_indices = @transform_2, window_bounds = array<i64: 9, 128, 128>}, {pipeline_mode = #tpu.pipeline_mode<synchronous>, transform_indices = @transform_3, window_bounds = array<i64: 1, 128>}, {pipeline_mode = #tpu.pipeline_mode<synchronous>, transform_indices = @transform_4, window_bounds = array<i64: 1, 128>}, {pipeline_mode = #tpu.pipeline_mode<synchronous>, transform_indices = @transform_5, window_bounds = array<i64: 1, 128>}, {pipeline_mode = #tpu.pipeline_mode<synchronous>, transform_indices = @transform_6, window_bounds = array<i64: 128, 512>}, {transform_indices = @transform_7, window_bounds = array<i64: 1, 1, 8, 512>}]} {
    %c0_i32 = arith.constant 0 : i32
    %0 = arith.cmpi eq, %arg1, %c0_i32 : i32
    %1 = arith.extui %0 : i1 to i32
    %c0_i32_0 = arith.constant 0 : i32
    %2 = arith.cmpi ne, %1, %c0_i32_0 : i32
    scf.if %2 {
      %c0_i32_2 = arith.constant 0 : i32
      %6 = arith.cmpi eq, %arg2, %c0_i32_2 : i32
      %7 = arith.extui %6 : i1 to i32
      %c0_i32_3 = arith.constant 0 : i32
      %8 = arith.cmpi ne, %7, %c0_i32_3 : i32
      scf.if %8 {
        %cst_84 = arith.constant 0.000000e+00 : f32
        %87 = vector.broadcast %cst_84 : f32 to vector<1x128xf32>
        %c0_85 = arith.constant 0 : index
        %c0_86 = arith.constant 0 : index
        %88 = vector.load %arg11[%c0_85, %c0_86] : memref<1x128xf32, #tpu.memory_space<vmem>>, vector<1x128xf32>
        tpu.vector_store %arg11[%c0_85, %c0_86], %87 {strides = array<i32>} : memref<1x128xf32, #tpu.memory_space<vmem>>, vector<1x128xf32>,
        %cst_87 = arith.constant 0.000000e+00 : f32
        %89 = vector.broadcast %cst_87 : f32 to vector<1x128xf32>
        %c0_88 = arith.constant 0 : index
        %c0_89 = arith.constant 0 : index
        %90 = vector.load %arg12[%c0_88, %c0_89] : memref<1x128xf32, #tpu.memory_space<vmem>>, vector<1x128xf32>
        tpu.vector_store %arg12[%c0_88, %c0_89], %89 {strides = array<i32>} : memref<1x128xf32, #tpu.memory_space<vmem>>, vector<1x128xf32>,
      } else {
      }
      %cst = arith.constant 0.000000e+00 : f32
      %9 = vector.broadcast %cst : f32 to vector<8x128xf32>
      %c0 = arith.constant 0 : index
      %c0_4 = arith.constant 0 : index
      %c0_5 = arith.constant 0 : index
      %c0_6 = arith.constant 0 : index
      %10 = vector.load %arg3[%c0, %c0_4, %c0_5, %c0_6] : memref<1x1x18x128xbf16, #tpu.memory_space<vmem>>, vector<1x1x8x128xbf16>
      %11 = vector.shape_cast %10 : vector<1x1x8x128xbf16> to vector<8x128xbf16>
      %c0_7 = arith.constant 0 : index
      %c0_8 = arith.constant 0 : index
      %c0_9 = arith.constant 0 : index
      %12 = vector.load %arg5[%c0_7, %c0_8, %c0_9] : memref<9x128x128xbf16, #tpu.memory_space<vmem>>, vector<1x128x128xbf16>
      %13 = vector.shape_cast %12 : vector<1x128x128xbf16> to vector<128x128xbf16>
      %cst_10 = arith.constant dense<0.000000e+00> : vector<8x128xf32>
      %14 = tpu.matmul %11, %13, %cst_10 {dimension_numbers = #tpu.dot_dimension_numbers<[1], [0], [0], [1], [0, 0, 1, 1], [], []>} : vector<8x128xbf16>, vector<128x128xbf16>, vector<8x128xf32> -> vector<8x128xf32>
      %15 = arith.addf %9, %14 : vector<8x128xf32>
      %c0_11 = arith.constant 0 : index
      %c0_12 = arith.constant 0 : index
      %c1 = arith.constant 1 : index
      %c0_13 = arith.constant 0 : index
      %16 = vector.load %arg3[%c0_11, %c0_12, %c1, %c0_13] : memref<1x1x18x128xbf16, #tpu.memory_space<vmem>>, vector<1x1x8x128xbf16>
      %17 = vector.shape_cast %16 : vector<1x1x8x128xbf16> to vector<8x128xbf16>
      %c1_14 = arith.constant 1 : index
      %c0_15 = arith.constant 0 : index
      %c0_16 = arith.constant 0 : index
      %18 = vector.load %arg5[%c1_14, %c0_15, %c0_16] : memref<9x128x128xbf16, #tpu.memory_space<vmem>>, vector<1x128x128xbf16>
      %19 = vector.shape_cast %18 : vector<1x128x128xbf16> to vector<128x128xbf16>
      %cst_17 = arith.constant dense<0.000000e+00> : vector<8x128xf32>
      %20 = tpu.matmul %17, %19, %cst_17 {dimension_numbers = #tpu.dot_dimension_numbers<[1], [0], [0], [1], [0, 0, 1, 1], [], []>} : vector<8x128xbf16>, vector<128x128xbf16>, vector<8x128xf32> -> vector<8x128xf32>
      %21 = arith.addf %15, %20 : vector<8x128xf32>
      %c0_18 = arith.constant 0 : index
      %c0_19 = arith.constant 0 : index
      %c2 = arith.constant 2 : index
      %c0_20 = arith.constant 0 : index
      %22 = vector.load %arg3[%c0_18, %c0_19, %c2, %c0_20] : memref<1x1x18x128xbf16, #tpu.memory_space<vmem>>, vector<1x1x8x128xbf16>
      %23 = vector.shape_cast %22 : vector<1x1x8x128xbf16> to vector<8x128xbf16>
      %c2_21 = arith.constant 2 : index
      %c0_22 = arith.constant 0 : index
      %c0_23 = arith.constant 0 : index
      %24 = vector.load %arg5[%c2_21, %c0_22, %c0_23] : memref<9x128x128xbf16, #tpu.memory_space<vmem>>, vector<1x128x128xbf16>
      %25 = vector.shape_cast %24 : vector<1x128x128xbf16> to vector<128x128xbf16>
      %cst_24 = arith.constant dense<0.000000e+00> : vector<8x128xf32>
      %26 = tpu.matmul %23, %25, %cst_24 {dimension_numbers = #tpu.dot_dimension_numbers<[1], [0], [0], [1], [0, 0, 1, 1], [], []>} : vector<8x128xbf16>, vector<128x128xbf16>, vector<8x128xf32> -> vector<8x128xf32>
      %27 = arith.addf %21, %26 : vector<8x128xf32>
      %c0_25 = arith.constant 0 : index
      %c0_26 = arith.constant 0 : index
      %c4 = arith.constant 4 : index
      %c0_27 = arith.constant 0 : index
      %28 = vector.load %arg3[%c0_25, %c0_26, %c4, %c0_27] : memref<1x1x18x128xbf16, #tpu.memory_space<vmem>>, vector<1x1x8x128xbf16>
      %29 = vector.shape_cast %28 : vector<1x1x8x128xbf16> to vector<8x128xbf16>
      %c3 = arith.constant 3 : index
      %c0_28 = arith.constant 0 : index
      %c0_29 = arith.constant 0 : index
      %30 = vector.load %arg5[%c3, %c0_28, %c0_29] : memref<9x128x128xbf16, #tpu.memory_space<vmem>>, vector<1x128x128xbf16>
      %31 = vector.shape_cast %30 : vector<1x128x128xbf16> to vector<128x128xbf16>
      %cst_30 = arith.constant dense<0.000000e+00> : vector<8x128xf32>
      %32 = tpu.matmul %29, %31, %cst_30 {dimension_numbers = #tpu.dot_dimension_numbers<[1], [0], [0], [1], [0, 0, 1, 1], [], []>} : vector<8x128xbf16>, vector<128x128xbf16>, vector<8x128xf32> -> vector<8x128xf32>
      %33 = arith.addf %27, %32 : vector<8x128xf32>
      %c0_31 = arith.constant 0 : index
      %c0_32 = arith.constant 0 : index
      %c5 = arith.constant 5 : index
      %c0_33 = arith.constant 0 : index
      %34 = vector.load %arg3[%c0_31, %c0_32, %c5, %c0_33] : memref<1x1x18x128xbf16, #tpu.memory_space<vmem>>, vector<1x1x8x128xbf16>
      %35 = vector.shape_cast %34 : vector<1x1x8x128xbf16> to vector<8x128xbf16>
      %c4_34 = arith.constant 4 : index
      %c0_35 = arith.constant 0 : index
      %c0_36 = arith.constant 0 : index
      %36 = vector.load %arg5[%c4_34, %c0_35, %c0_36] : memref<9x128x128xbf16, #tpu.memory_space<vmem>>, vector<1x128x128xbf16>
      %37 = vector.shape_cast %36 : vector<1x128x128xbf16> to vector<128x128xbf16>
      %cst_37 = arith.constant dense<0.000000e+00> : vector<8x128xf32>
      %38 = tpu.matmul %35, %37, %cst_37 {dimension_numbers = #tpu.dot_dimension_numbers<[1], [0], [0], [1], [0, 0, 1, 1], [], []>} : vector<8x128xbf16>, vector<128x128xbf16>, vector<8x128xf32> -> vector<8x128xf32>
      %39 = arith.addf %33, %38 : vector<8x128xf32>
      %c0_38 = arith.constant 0 : index
      %c0_39 = arith.constant 0 : index
      %c6 = arith.constant 6 : index
      %c0_40 = arith.constant 0 : index
      %40 = vector.load %arg3[%c0_38, %c0_39, %c6, %c0_40] : memref<1x1x18x128xbf16, #tpu.memory_space<vmem>>, vector<1x1x8x128xbf16>
      %41 = vector.shape_cast %40 : vector<1x1x8x128xbf16> to vector<8x128xbf16>
      %c5_41 = arith.constant 5 : index
      %c0_42 = arith.constant 0 : index
      %c0_43 = arith.constant 0 : index
      %42 = vector.load %arg5[%c5_41, %c0_42, %c0_43] : memref<9x128x128xbf16, #tpu.memory_space<vmem>>, vector<1x128x128xbf16>
      %43 = vector.shape_cast %42 : vector<1x128x128xbf16> to vector<128x128xbf16>
      %cst_44 = arith.constant dense<0.000000e+00> : vector<8x128xf32>
      %44 = tpu.matmul %41, %43, %cst_44 {dimension_numbers = #tpu.dot_dimension_numbers<[1], [0], [0], [1], [0, 0, 1, 1], [], []>} : vector<8x128xbf16>, vector<128x128xbf16>, vector<8x128xf32> -> vector<8x128xf32>
      %45 = arith.addf %39, %44 : vector<8x128xf32>
      %c0_45 = arith.constant 0 : index
      %c0_46 = arith.constant 0 : index
      %c8 = arith.constant 8 : index
      %c0_47 = arith.constant 0 : index
      %46 = vector.load %arg3[%c0_45, %c0_46, %c8, %c0_47] : memref<1x1x18x128xbf16, #tpu.memory_space<vmem>>, vector<1x1x8x128xbf16>
      %47 = vector.shape_cast %46 : vector<1x1x8x128xbf16> to vector<8x128xbf16>
      %c6_48 = arith.constant 6 : index
      %c0_49 = arith.constant 0 : index
      %c0_50 = arith.constant 0 : index
      %48 = vector.load %arg5[%c6_48, %c0_49, %c0_50] : memref<9x128x128xbf16, #tpu.memory_space<vmem>>, vector<1x128x128xbf16>
      %49 = vector.shape_cast %48 : vector<1x128x128xbf16> to vector<128x128xbf16>
      %cst_51 = arith.constant dense<0.000000e+00> : vector<8x128xf32>
      %50 = tpu.matmul %47, %49, %cst_51 {dimension_numbers = #tpu.dot_dimension_numbers<[1], [0], [0], [1], [0, 0, 1, 1], [], []>} : vector<8x128xbf16>, vector<128x128xbf16>, vector<8x128xf32> -> vector<8x128xf32>
      %51 = arith.addf %45, %50 : vector<8x128xf32>
      %c0_52 = arith.constant 0 : index
      %c0_53 = arith.constant 0 : index
      %c9 = arith.constant 9 : index
      %c0_54 = arith.constant 0 : index
      %52 = vector.load %arg3[%c0_52, %c0_53, %c9, %c0_54] : memref<1x1x18x128xbf16, #tpu.memory_space<vmem>>, vector<1x1x8x128xbf16>
      %53 = vector.shape_cast %52 : vector<1x1x8x128xbf16> to vector<8x128xbf16>
      %c7 = arith.constant 7 : index
      %c0_55 = arith.constant 0 : index
      %c0_56 = arith.constant 0 : index
      %54 = vector.load %arg5[%c7, %c0_55, %c0_56] : memref<9x128x128xbf16, #tpu.memory_space<vmem>>, vector<1x128x128xbf16>
      %55 = vector.shape_cast %54 : vector<1x128x128xbf16> to vector<128x128xbf16>
      %cst_57 = arith.constant dense<0.000000e+00> : vector<8x128xf32>
      %56 = tpu.matmul %53, %55, %cst_57 {dimension_numbers = #tpu.dot_dimension_numbers<[1], [0], [0], [1], [0, 0, 1, 1], [], []>} : vector<8x128xbf16>, vector<128x128xbf16>, vector<8x128xf32> -> vector<8x128xf32>
      %57 = arith.addf %51, %56 : vector<8x128xf32>
      %c0_58 = arith.constant 0 : index
      %c0_59 = arith.constant 0 : index
      %c10 = arith.constant 10 : index
      %c0_60 = arith.constant 0 : index
      %58 = vector.load %arg3[%c0_58, %c0_59, %c10, %c0_60] : memref<1x1x18x128xbf16, #tpu.memory_space<vmem>>, vector<1x1x8x128xbf16>
      %59 = vector.shape_cast %58 : vector<1x1x8x128xbf16> to vector<8x128xbf16>
      %c8_61 = arith.constant 8 : index
      %c0_62 = arith.constant 0 : index
      %c0_63 = arith.constant 0 : index
      %60 = vector.load %arg5[%c8_61, %c0_62, %c0_63] : memref<9x128x128xbf16, #tpu.memory_space<vmem>>, vector<1x128x128xbf16>
      %61 = vector.shape_cast %60 : vector<1x128x128xbf16> to vector<128x128xbf16>
      %cst_64 = arith.constant dense<0.000000e+00> : vector<8x128xf32>
      %62 = tpu.matmul %59, %61, %cst_64 {dimension_numbers = #tpu.dot_dimension_numbers<[1], [0], [0], [1], [0, 0, 1, 1], [], []>} : vector<8x128xbf16>, vector<128x128xbf16>, vector<8x128xf32> -> vector<8x128xf32>
      %63 = arith.addf %57, %62 : vector<8x128xf32>
      %c0_65 = arith.constant 0 : index
      %c0_66 = arith.constant 0 : index
      %64 = vector.load %arg6[%c0_65, %c0_66] : memref<1x128xf32, #tpu.memory_space<vmem>>, vector<1x128xf32>
      %65 = vector.broadcast %64 : vector<1x128xf32> to vector<8x128xf32>
      %66 = arith.addf %63, %65 : vector<8x128xf32>
      %c0_67 = arith.constant 0 : index
      %c0_68 = arith.constant 0 : index
      %67 = vector.load %arg4[%c0_67, %c0_68] : memref<8x1xf32, #tpu.memory_space<vmem>>, vector<8x1xf32>
      %c0_69 = arith.constant 0 : index
      %c0_70 = arith.constant 0 : index
      %68 = vector.load %arg11[%c0_69, %c0_70] : memref<1x128xf32, #tpu.memory_space<vmem>>, vector<1x128xf32>
      %69 = vector.broadcast %67 : vector<8x1xf32> to vector<8x128xf32>
      %70 = arith.mulf %66, %69 : vector<8x128xf32>
      %cst_71 = arith.constant dense<0.000000e+00> : vector<128xf32>
      %71 = vector.multi_reduction <add>, %70, %cst_71 [0] : vector<8x128xf32> to vector<128xf32>
      %72 = vector.shape_cast %71 : vector<128xf32> to vector<1x128xf32>
      %73 = arith.addf %68, %72 : vector<1x128xf32>
      %c0_72 = arith.constant 0 : index
      %c0_73 = arith.constant 0 : index
      %74 = vector.load %arg11[%c0_72, %c0_73] : memref<1x128xf32, #tpu.memory_space<vmem>>, vector<1x128xf32>
      tpu.vector_store %arg11[%c0_72, %c0_73], %73 {strides = array<i32>} : memref<1x128xf32, #tpu.memory_space<vmem>>, vector<1x128xf32>,
      %c0_74 = arith.constant 0 : index
      %c0_75 = arith.constant 0 : index
      %75 = vector.load %arg12[%c0_74, %c0_75] : memref<1x128xf32, #tpu.memory_space<vmem>>, vector<1x128xf32>
      %76 = arith.mulf %66, %66 : vector<8x128xf32>
      %77 = vector.broadcast %67 : vector<8x1xf32> to vector<8x128xf32>
      %78 = arith.mulf %76, %77 : vector<8x128xf32>
      %cst_76 = arith.constant dense<0.000000e+00> : vector<128xf32>
      %79 = vector.multi_reduction <add>, %78, %cst_76 [0] : vector<8x128xf32> to vector<128xf32>
      %80 = vector.shape_cast %79 : vector<128xf32> to vector<1x128xf32>
      %81 = arith.addf %75, %80 : vector<1x128xf32>
      %c0_77 = arith.constant 0 : index
      %c0_78 = arith.constant 0 : index
      %82 = vector.load %arg12[%c0_77, %c0_78] : memref<1x128xf32, #tpu.memory_space<vmem>>, vector<1x128xf32>
      tpu.vector_store %arg12[%c0_77, %c0_78], %81 {strides = array<i32>} : memref<1x128xf32, #tpu.memory_space<vmem>>, vector<1x128xf32>,
      %cst_79 = arith.constant 0.000000e+00 : f32
      %83 = vector.broadcast %cst_79 : f32 to vector<8x512xf32>
      %c0_80 = arith.constant 0 : index
      %c0_81 = arith.constant 0 : index
      %c0_82 = arith.constant 0 : index
      %c0_83 = arith.constant 0 : index
      %84 = vector.load %arg10[%c0_80, %c0_81, %c0_82, %c0_83] : memref<1x1x8x512xf32, #tpu.memory_space<vmem>>, vector<1x1x8x512xf32>
      %85 = vector.shape_cast %84 : vector<1x1x8x512xf32> to vector<8x512xf32>
      %86 = vector.shape_cast %83 : vector<8x512xf32> to vector<1x1x8x512xf32>
      tpu.vector_store %arg10[%c0_80, %c0_81, %c0_82, %c0_83], %86 {strides = array<i32>} : memref<1x1x8x512xf32, #tpu.memory_space<vmem>>, vector<1x1x8x512xf32>,
    } else {
    }
    %c1_i32 = arith.constant 1 : i32
    %3 = arith.cmpi eq, %arg1, %c1_i32 : i32
    %4 = arith.extui %3 : i1 to i32
    %c0_i32_1 = arith.constant 0 : i32
    %5 = arith.cmpi ne, %4, %c0_i32_1 : i32
    scf.if %5 {
      %cst = arith.constant 0.000000e+00 : f32
      %6 = vector.broadcast %cst : f32 to vector<8x128xf32>
      %c0 = arith.constant 0 : index
      %c0_2 = arith.constant 0 : index
      %c0_3 = arith.constant 0 : index
      %c0_4 = arith.constant 0 : index
      %7 = vector.load %arg3[%c0, %c0_2, %c0_3, %c0_4] : memref<1x1x18x128xbf16, #tpu.memory_space<vmem>>, vector<1x1x8x128xbf16>
      %8 = vector.shape_cast %7 : vector<1x1x8x128xbf16> to vector<8x128xbf16>
      %c0_5 = arith.constant 0 : index
      %c0_6 = arith.constant 0 : index
      %c0_7 = arith.constant 0 : index
      %9 = vector.load %arg5[%c0_5, %c0_6, %c0_7] : memref<9x128x128xbf16, #tpu.memory_space<vmem>>, vector<1x128x128xbf16>
      %10 = vector.shape_cast %9 : vector<1x128x128xbf16> to vector<128x128xbf16>
      %cst_8 = arith.constant dense<0.000000e+00> : vector<8x128xf32>
      %11 = tpu.matmul %8, %10, %cst_8 {dimension_numbers = #tpu.dot_dimension_numbers<[1], [0], [0], [1], [0, 0, 1, 1], [], []>} : vector<8x128xbf16>, vector<128x128xbf16>, vector<8x128xf32> -> vector<8x128xf32>
      %12 = arith.addf %6, %11 : vector<8x128xf32>
      %c0_9 = arith.constant 0 : index
      %c0_10 = arith.constant 0 : index
      %c1 = arith.constant 1 : index
      %c0_11 = arith.constant 0 : index
      %13 = vector.load %arg3[%c0_9, %c0_10, %c1, %c0_11] : memref<1x1x18x128xbf16, #tpu.memory_space<vmem>>, vector<1x1x8x128xbf16>
      %14 = vector.shape_cast %13 : vector<1x1x8x128xbf16> to vector<8x128xbf16>
      %c1_12 = arith.constant 1 : index
      %c0_13 = arith.constant 0 : index
      %c0_14 = arith.constant 0 : index
      %15 = vector.load %arg5[%c1_12, %c0_13, %c0_14] : memref<9x128x128xbf16, #tpu.memory_space<vmem>>, vector<1x128x128xbf16>
      %16 = vector.shape_cast %15 : vector<1x128x128xbf16> to vector<128x128xbf16>
      %cst_15 = arith.constant dense<0.000000e+00> : vector<8x128xf32>
      %17 = tpu.matmul %14, %16, %cst_15 {dimension_numbers = #tpu.dot_dimension_numbers<[1], [0], [0], [1], [0, 0, 1, 1], [], []>} : vector<8x128xbf16>, vector<128x128xbf16>, vector<8x128xf32> -> vector<8x128xf32>
      %18 = arith.addf %12, %17 : vector<8x128xf32>
      %c0_16 = arith.constant 0 : index
      %c0_17 = arith.constant 0 : index
      %c2 = arith.constant 2 : index
      %c0_18 = arith.constant 0 : index
      %19 = vector.load %arg3[%c0_16, %c0_17, %c2, %c0_18] : memref<1x1x18x128xbf16, #tpu.memory_space<vmem>>, vector<1x1x8x128xbf16>
      %20 = vector.shape_cast %19 : vector<1x1x8x128xbf16> to vector<8x128xbf16>
      %c2_19 = arith.constant 2 : index
      %c0_20 = arith.constant 0 : index
      %c0_21 = arith.constant 0 : index
      %21 = vector.load %arg5[%c2_19, %c0_20, %c0_21] : memref<9x128x128xbf16, #tpu.memory_space<vmem>>, vector<1x128x128xbf16>
      %22 = vector.shape_cast %21 : vector<1x128x128xbf16> to vector<128x128xbf16>
      %cst_22 = arith.constant dense<0.000000e+00> : vector<8x128xf32>
      %23 = tpu.matmul %20, %22, %cst_22 {dimension_numbers = #tpu.dot_dimension_numbers<[1], [0], [0], [1], [0, 0, 1, 1], [], []>} : vector<8x128xbf16>, vector<128x128xbf16>, vector<8x128xf32> -> vector<8x128xf32>
      %24 = arith.addf %18, %23 : vector<8x128xf32>
      %c0_23 = arith.constant 0 : index
      %c0_24 = arith.constant 0 : index
      %c4 = arith.constant 4 : index
      %c0_25 = arith.constant 0 : index
      %25 = vector.load %arg3[%c0_23, %c0_24, %c4, %c0_25] : memref<1x1x18x128xbf16, #tpu.memory_space<vmem>>, vector<1x1x8x128xbf16>
      %26 = vector.shape_cast %25 : vector<1x1x8x128xbf16> to vector<8x128xbf16>
      %c3 = arith.constant 3 : index
      %c0_26 = arith.constant 0 : index
      %c0_27 = arith.constant 0 : index
      %27 = vector.load %arg5[%c3, %c0_26, %c0_27] : memref<9x128x128xbf16, #tpu.memory_space<vmem>>, vector<1x128x128xbf16>
      %28 = vector.shape_cast %27 : vector<1x128x128xbf16> to vector<128x128xbf16>
      %cst_28 = arith.constant dense<0.000000e+00> : vector<8x128xf32>
      %29 = tpu.matmul %26, %28, %cst_28 {dimension_numbers = #tpu.dot_dimension_numbers<[1], [0], [0], [1], [0, 0, 1, 1], [], []>} : vector<8x128xbf16>, vector<128x128xbf16>, vector<8x128xf32> -> vector<8x128xf32>
      %30 = arith.addf %24, %29 : vector<8x128xf32>
      %c0_29 = arith.constant 0 : index
      %c0_30 = arith.constant 0 : index
      %c5 = arith.constant 5 : index
      %c0_31 = arith.constant 0 : index
      %31 = vector.load %arg3[%c0_29, %c0_30, %c5, %c0_31] : memref<1x1x18x128xbf16, #tpu.memory_space<vmem>>, vector<1x1x8x128xbf16>
      %32 = vector.shape_cast %31 : vector<1x1x8x128xbf16> to vector<8x128xbf16>
      %c4_32 = arith.constant 4 : index
      %c0_33 = arith.constant 0 : index
      %c0_34 = arith.constant 0 : index
      %33 = vector.load %arg5[%c4_32, %c0_33, %c0_34] : memref<9x128x128xbf16, #tpu.memory_space<vmem>>, vector<1x128x128xbf16>
      %34 = vector.shape_cast %33 : vector<1x128x128xbf16> to vector<128x128xbf16>
      %cst_35 = arith.constant dense<0.000000e+00> : vector<8x128xf32>
      %35 = tpu.matmul %32, %34, %cst_35 {dimension_numbers = #tpu.dot_dimension_numbers<[1], [0], [0], [1], [0, 0, 1, 1], [], []>} : vector<8x128xbf16>, vector<128x128xbf16>, vector<8x128xf32> -> vector<8x128xf32>
      %36 = arith.addf %30, %35 : vector<8x128xf32>
      %c0_36 = arith.constant 0 : index
      %c0_37 = arith.constant 0 : index
      %c6 = arith.constant 6 : index
      %c0_38 = arith.constant 0 : index
      %37 = vector.load %arg3[%c0_36, %c0_37, %c6, %c0_38] : memref<1x1x18x128xbf16, #tpu.memory_space<vmem>>, vector<1x1x8x128xbf16>
      %38 = vector.shape_cast %37 : vector<1x1x8x128xbf16> to vector<8x128xbf16>
      %c5_39 = arith.constant 5 : index
      %c0_40 = arith.constant 0 : index
      %c0_41 = arith.constant 0 : index
      %39 = vector.load %arg5[%c5_39, %c0_40, %c0_41] : memref<9x128x128xbf16, #tpu.memory_space<vmem>>, vector<1x128x128xbf16>
      %40 = vector.shape_cast %39 : vector<1x128x128xbf16> to vector<128x128xbf16>
      %cst_42 = arith.constant dense<0.000000e+00> : vector<8x128xf32>
      %41 = tpu.matmul %38, %40, %cst_42 {dimension_numbers = #tpu.dot_dimension_numbers<[1], [0], [0], [1], [0, 0, 1, 1], [], []>} : vector<8x128xbf16>, vector<128x128xbf16>, vector<8x128xf32> -> vector<8x128xf32>
      %42 = arith.addf %36, %41 : vector<8x128xf32>
      %c0_43 = arith.constant 0 : index
      %c0_44 = arith.constant 0 : index
      %c8 = arith.constant 8 : index
      %c0_45 = arith.constant 0 : index
      %43 = vector.load %arg3[%c0_43, %c0_44, %c8, %c0_45] : memref<1x1x18x128xbf16, #tpu.memory_space<vmem>>, vector<1x1x8x128xbf16>
      %44 = vector.shape_cast %43 : vector<1x1x8x128xbf16> to vector<8x128xbf16>
      %c6_46 = arith.constant 6 : index
      %c0_47 = arith.constant 0 : index
      %c0_48 = arith.constant 0 : index
      %45 = vector.load %arg5[%c6_46, %c0_47, %c0_48] : memref<9x128x128xbf16, #tpu.memory_space<vmem>>, vector<1x128x128xbf16>
      %46 = vector.shape_cast %45 : vector<1x128x128xbf16> to vector<128x128xbf16>
      %cst_49 = arith.constant dense<0.000000e+00> : vector<8x128xf32>
      %47 = tpu.matmul %44, %46, %cst_49 {dimension_numbers = #tpu.dot_dimension_numbers<[1], [0], [0], [1], [0, 0, 1, 1], [], []>} : vector<8x128xbf16>, vector<128x128xbf16>, vector<8x128xf32> -> vector<8x128xf32>
      %48 = arith.addf %42, %47 : vector<8x128xf32>
      %c0_50 = arith.constant 0 : index
      %c0_51 = arith.constant 0 : index
      %c9 = arith.constant 9 : index
      %c0_52 = arith.constant 0 : index
      %49 = vector.load %arg3[%c0_50, %c0_51, %c9, %c0_52] : memref<1x1x18x128xbf16, #tpu.memory_space<vmem>>, vector<1x1x8x128xbf16>
      %50 = vector.shape_cast %49 : vector<1x1x8x128xbf16> to vector<8x128xbf16>
      %c7 = arith.constant 7 : index
      %c0_53 = arith.constant 0 : index
      %c0_54 = arith.constant 0 : index
      %51 = vector.load %arg5[%c7, %c0_53, %c0_54] : memref<9x128x128xbf16, #tpu.memory_space<vmem>>, vector<1x128x128xbf16>
      %52 = vector.shape_cast %51 : vector<1x128x128xbf16> to vector<128x128xbf16>
      %cst_55 = arith.constant dense<0.000000e+00> : vector<8x128xf32>
      %53 = tpu.matmul %50, %52, %cst_55 {dimension_numbers = #tpu.dot_dimension_numbers<[1], [0], [0], [1], [0, 0, 1, 1], [], []>} : vector<8x128xbf16>, vector<128x128xbf16>, vector<8x128xf32> -> vector<8x128xf32>
      %54 = arith.addf %48, %53 : vector<8x128xf32>
      %c0_56 = arith.constant 0 : index
      %c0_57 = arith.constant 0 : index
      %c10 = arith.constant 10 : index
      %c0_58 = arith.constant 0 : index
      %55 = vector.load %arg3[%c0_56, %c0_57, %c10, %c0_58] : memref<1x1x18x128xbf16, #tpu.memory_space<vmem>>, vector<1x1x8x128xbf16>
      %56 = vector.shape_cast %55 : vector<1x1x8x128xbf16> to vector<8x128xbf16>
      %c8_59 = arith.constant 8 : index
      %c0_60 = arith.constant 0 : index
      %c0_61 = arith.constant 0 : index
      %57 = vector.load %arg5[%c8_59, %c0_60, %c0_61] : memref<9x128x128xbf16, #tpu.memory_space<vmem>>, vector<1x128x128xbf16>
      %58 = vector.shape_cast %57 : vector<1x128x128xbf16> to vector<128x128xbf16>
      %cst_62 = arith.constant dense<0.000000e+00> : vector<8x128xf32>
      %59 = tpu.matmul %56, %58, %cst_62 {dimension_numbers = #tpu.dot_dimension_numbers<[1], [0], [0], [1], [0, 0, 1, 1], [], []>} : vector<8x128xbf16>, vector<128x128xbf16>, vector<8x128xf32> -> vector<8x128xf32>
      %60 = arith.addf %54, %59 : vector<8x128xf32>
      %c0_63 = arith.constant 0 : index
      %c0_64 = arith.constant 0 : index
      %61 = vector.load %arg6[%c0_63, %c0_64] : memref<1x128xf32, #tpu.memory_space<vmem>>, vector<1x128xf32>
      %62 = vector.broadcast %61 : vector<1x128xf32> to vector<8x128xf32>
      %63 = arith.addf %60, %62 : vector<8x128xf32>
      %c0_65 = arith.constant 0 : index
      %c0_66 = arith.constant 0 : index
      %64 = vector.load %arg11[%c0_65, %c0_66] : memref<1x128xf32, #tpu.memory_space<vmem>>, vector<1x128xf32>
      %cst_67 = arith.constant 1.250000e-01 : f32
      %65 = vector.broadcast %cst_67 : f32 to vector<1x128xf32>
      %66 = arith.mulf %64, %65 : vector<1x128xf32>
      %c0_68 = arith.constant 0 : index
      %c0_69 = arith.constant 0 : index
      %67 = vector.load %arg12[%c0_68, %c0_69] : memref<1x128xf32, #tpu.memory_space<vmem>>, vector<1x128xf32>
      %cst_70 = arith.constant 1.250000e-01 : f32
      %68 = vector.broadcast %cst_70 : f32 to vector<1x128xf32>
      %69 = arith.mulf %67, %68 : vector<1x128xf32>
      %70 = arith.mulf %66, %66 : vector<1x128xf32>
      %71 = arith.subf %69, %70 : vector<1x128xf32>
      %72 = vector.broadcast %66 : vector<1x128xf32> to vector<8x128xf32>
      %73 = arith.subf %63, %72 : vector<8x128xf32>
      %cst_71 = arith.constant 9.99999974E-6 : f32
      %74 = vector.broadcast %cst_71 : f32 to vector<1x128xf32>
      %75 = arith.addf %71, %74 : vector<1x128xf32>
      %76 = math.rsqrt %75 : vector<1x128xf32>
      %77 = vector.broadcast %76 : vector<1x128xf32> to vector<8x128xf32>
      %78 = arith.mulf %73, %77 : vector<8x128xf32>
      %c0_72 = arith.constant 0 : index
      %c0_73 = arith.constant 0 : index
      %79 = vector.load %arg7[%c0_72, %c0_73] : memref<1x128xf32, #tpu.memory_space<vmem>>, vector<1x128xf32>
      %80 = vector.broadcast %79 : vector<1x128xf32> to vector<8x128xf32>
      %81 = arith.mulf %78, %80 : vector<8x128xf32>
      %c0_74 = arith.constant 0 : index
      %c0_75 = arith.constant 0 : index
      %82 = vector.load %arg8[%c0_74, %c0_75] : memref<1x128xf32, #tpu.memory_space<vmem>>, vector<1x128xf32>
      %83 = vector.broadcast %82 : vector<1x128xf32> to vector<8x128xf32>
      %84 = arith.addf %81, %83 : vector<8x128xf32>
      %cst_76 = arith.constant 0.000000e+00 : f32
      %85 = vector.broadcast %cst_76 : f32 to vector<8x128xf32>
      %86 = arith.maximumf %84, %85 : vector<8x128xf32>
      %87 = arith.truncf %86 : vector<8x128xf32> to vector<8x128xbf16>
      %c0_77 = arith.constant 0 : index
      %c0_78 = arith.constant 0 : index
      %88 = vector.load %arg9[%c0_77, %c0_78] : memref<128x512xbf16, #tpu.memory_space<vmem>>, vector<128x512xbf16>
      %cst_79 = arith.constant dense<0.000000e+00> : vector<8x512xf32>
      %89 = tpu.matmul %87, %88, %cst_79 {dimension_numbers = #tpu.dot_dimension_numbers<[1], [0], [0], [1], [0, 0, 1, 1], [], []>} : vector<8x128xbf16>, vector<128x512xbf16>, vector<8x512xf32> -> vector<8x512xf32>
      %c0_80 = arith.constant 0 : index
      %c0_81 = arith.constant 0 : index
      %c0_82 = arith.constant 0 : index
      %c0_83 = arith.constant 0 : index
      %90 = vector.load %arg10[%c0_80, %c0_81, %c0_82, %c0_83] : memref<1x1x8x512xf32, #tpu.memory_space<vmem>>, vector<1x1x8x512xf32>
      %91 = vector.shape_cast %90 : vector<1x1x8x512xf32> to vector<8x512xf32>
      %92 = vector.shape_cast %89 : vector<8x512xf32> to vector<1x1x8x512xf32>
      tpu.vector_store %arg10[%c0_80, %c0_81, %c0_82, %c0_83], %92 {strides = array<i32>} : memref<1x1x8x512xf32, #tpu.memory_space<vmem>>, vector<1x1x8x512xf32>,
    } else {
    }
    return
  }
  func.func @transform_0(%arg0: i32, %arg1: i32, %arg2: i32) -> (i32, i32, i32, i32) {
    %c0_i32 = arith.constant 0 : i32
    %c0_i32_0 = arith.constant 0 : i32
    %c0_i32_1 = arith.constant 0 : i32
    return %arg0, %arg2, %c0_i32, %c0_i32_0 : i32, i32, i32, i32
  }
  func.func @transform_1(%arg0: i32, %arg1: i32, %arg2: i32) -> (i32, i32) {
    %c0_i32 = arith.constant 0 : i32
    %c0_i32_0 = arith.constant 0 : i32
    %c0_i32_1 = arith.constant 0 : i32
    return %c0_i32, %c0_i32_0 : i32, i32
  }
  func.func @transform_2(%arg0: i32, %arg1: i32, %arg2: i32) -> (i32, i32, i32) {
    %c0_i32 = arith.constant 0 : i32
    %c0_i32_0 = arith.constant 0 : i32
    %c0_i32_1 = arith.constant 0 : i32
    %c0_i32_2 = arith.constant 0 : i32
    return %c0_i32, %c0_i32_0, %c0_i32_1 : i32, i32, i32
  }
  func.func @transform_3(%arg0: i32, %arg1: i32, %arg2: i32) -> (i32, i32) {
    %c0_i32 = arith.constant 0 : i32
    %c0_i32_0 = arith.constant 0 : i32
    %c0_i32_1 = arith.constant 0 : i32
    return %c0_i32, %c0_i32_0 : i32, i32
  }
  func.func @transform_4(%arg0: i32, %arg1: i32, %arg2: i32) -> (i32, i32) {
    %c0_i32 = arith.constant 0 : i32
    %c0_i32_0 = arith.constant 0 : i32
    %c0_i32_1 = arith.constant 0 : i32
    return %c0_i32, %c0_i32_0 : i32, i32
  }
  func.func @transform_5(%arg0: i32, %arg1: i32, %arg2: i32) -> (i32, i32) {
    %c0_i32 = arith.constant 0 : i32
    %c0_i32_0 = arith.constant 0 : i32
    %c0_i32_1 = arith.constant 0 : i32
    return %c0_i32, %c0_i32_0 : i32, i32
  }
  func.func @transform_6(%arg0: i32, %arg1: i32, %arg2: i32) -> (i32, i32) {
    %c0_i32 = arith.constant 0 : i32
    %c0_i32_0 = arith.constant 0 : i32
    %c0_i32_1 = arith.constant 0 : i32
    return %c0_i32, %c0_i32_0 : i32, i32
  }
  func.func @transform_7(%arg0: i32, %arg1: i32, %arg2: i32) -> (i32, i32, i32, i32) {
    %c0_i32 = arith.constant 0 : i32
    %c0_i32_0 = arith.constant 0 : i32
    %c0_i32_1 = arith.constant 0 : i32
    return %arg0, %arg2, %c0_i32, %c0_i32_0 : i32, i32, i32, i32
  }
}

module attributes {stable_mosaic.version = 11 : i64} {
  func.func @_branch_kernel(%arg0: i32, %arg1: i32, %arg2: i32, %arg3: memref<1x1x102x128xbf16, #tpu.memory_space<vmem>>, %arg4: memref<80x1xf32, #tpu.memory_space<vmem>>, %arg5: memref<9x128x128xbf16, #tpu.memory_space<vmem>>, %arg6: memref<1x128xf32, #tpu.memory_space<vmem>>, %arg7: memref<1x128xf32, #tpu.memory_space<vmem>>, %arg8: memref<1x128xf32, #tpu.memory_space<vmem>>, %arg9: memref<128x512xbf16, #tpu.memory_space<vmem>>, %arg10: memref<1x1x80x512xf32, #tpu.memory_space<vmem>>, %arg11: memref<1x128xf32, #tpu.memory_space<vmem>>, %arg12: memref<1x128xf32, #tpu.memory_space<vmem>>) attributes {dimension_semantics = [#tpu.dimension_semantics<arbitrary>, #tpu.dimension_semantics<arbitrary>, #tpu.dimension_semantics<arbitrary>], iteration_bounds = array<i64: 1, 2, 2>, scalar_prefetch = 0 : i64, scratch_operands = 2 : i64, tpu.core_type = #tpu.core_type<tc>, window_params = [{transform_indices = @transform_0, window_bounds = array<i64: 1, 1, 102, 128>}, {pipeline_mode = #tpu.pipeline_mode<synchronous>, transform_indices = @transform_1, window_bounds = array<i64: 80, 1>}, {pipeline_mode = #tpu.pipeline_mode<synchronous>, transform_indices = @transform_2, window_bounds = array<i64: 9, 128, 128>}, {pipeline_mode = #tpu.pipeline_mode<synchronous>, transform_indices = @transform_3, window_bounds = array<i64: 1, 128>}, {pipeline_mode = #tpu.pipeline_mode<synchronous>, transform_indices = @transform_4, window_bounds = array<i64: 1, 128>}, {pipeline_mode = #tpu.pipeline_mode<synchronous>, transform_indices = @transform_5, window_bounds = array<i64: 1, 128>}, {pipeline_mode = #tpu.pipeline_mode<synchronous>, transform_indices = @transform_6, window_bounds = array<i64: 128, 512>}, {transform_indices = @transform_7, window_bounds = array<i64: 1, 1, 80, 512>}]} {
    %c0_i32 = arith.constant 0 : i32
    %0 = arith.cmpi eq, %arg1, %c0_i32 : i32
    %1 = arith.extui %0 : i1 to i32
    %c0_i32_0 = arith.constant 0 : i32
    %2 = arith.cmpi ne, %1, %c0_i32_0 : i32
    scf.if %2 {
      %c0_i32_2 = arith.constant 0 : i32
      %6 = arith.cmpi eq, %arg2, %c0_i32_2 : i32
      %7 = arith.extui %6 : i1 to i32
      %c0_i32_3 = arith.constant 0 : i32
      %8 = arith.cmpi ne, %7, %c0_i32_3 : i32
      scf.if %8 {
        %cst_80 = arith.constant 0.000000e+00 : f32
        %87 = vector.broadcast %cst_80 : f32 to vector<1x128xf32>
        %c0_81 = arith.constant 0 : index
        %c0_82 = arith.constant 0 : index
        %88 = vector.load %arg11[%c0_81, %c0_82] : memref<1x128xf32, #tpu.memory_space<vmem>>, vector<1x128xf32>
        tpu.vector_store %arg11[%c0_81, %c0_82], %87 {strides = array<i32>} : memref<1x128xf32, #tpu.memory_space<vmem>>, vector<1x128xf32>,
        %cst_83 = arith.constant 0.000000e+00 : f32
        %89 = vector.broadcast %cst_83 : f32 to vector<1x128xf32>
        %c0_84 = arith.constant 0 : index
        %c0_85 = arith.constant 0 : index
        %90 = vector.load %arg12[%c0_84, %c0_85] : memref<1x128xf32, #tpu.memory_space<vmem>>, vector<1x128xf32>
        tpu.vector_store %arg12[%c0_84, %c0_85], %89 {strides = array<i32>} : memref<1x128xf32, #tpu.memory_space<vmem>>, vector<1x128xf32>,
      } else {
      }
      %cst = arith.constant 0.000000e+00 : f32
      %9 = vector.broadcast %cst : f32 to vector<80x128xf32>
      %c0 = arith.constant 0 : index
      %c0_4 = arith.constant 0 : index
      %c0_5 = arith.constant 0 : index
      %c0_6 = arith.constant 0 : index
      %10 = vector.load %arg3[%c0, %c0_4, %c0_5, %c0_6] : memref<1x1x102x128xbf16, #tpu.memory_space<vmem>>, vector<1x1x80x128xbf16>
      %11 = vector.shape_cast %10 : vector<1x1x80x128xbf16> to vector<80x128xbf16>
      %c0_7 = arith.constant 0 : index
      %c0_8 = arith.constant 0 : index
      %c0_9 = arith.constant 0 : index
      %12 = vector.load %arg5[%c0_7, %c0_8, %c0_9] : memref<9x128x128xbf16, #tpu.memory_space<vmem>>, vector<1x128x128xbf16>
      %13 = vector.shape_cast %12 : vector<1x128x128xbf16> to vector<128x128xbf16>
      %cst_10 = arith.constant dense<0.000000e+00> : vector<80x128xf32>
      %14 = tpu.matmul %11, %13, %cst_10 {dimension_numbers = #tpu.dot_dimension_numbers<[1], [0], [0], [1], [0, 0, 1, 1], [], []>} : vector<80x128xbf16>, vector<128x128xbf16>, vector<80x128xf32> -> vector<80x128xf32>
      %15 = arith.addf %9, %14 : vector<80x128xf32>
      %c0_11 = arith.constant 0 : index
      %c0_12 = arith.constant 0 : index
      %c1 = arith.constant 1 : index
      %c0_13 = arith.constant 0 : index
      %16 = vector.load %arg3[%c0_11, %c0_12, %c1, %c0_13] : memref<1x1x102x128xbf16, #tpu.memory_space<vmem>>, vector<1x1x80x128xbf16>
      %17 = vector.shape_cast %16 : vector<1x1x80x128xbf16> to vector<80x128xbf16>
      %c1_14 = arith.constant 1 : index
      %c0_15 = arith.constant 0 : index
      %c0_16 = arith.constant 0 : index
      %18 = vector.load %arg5[%c1_14, %c0_15, %c0_16] : memref<9x128x128xbf16, #tpu.memory_space<vmem>>, vector<1x128x128xbf16>
      %19 = vector.shape_cast %18 : vector<1x128x128xbf16> to vector<128x128xbf16>
      %cst_17 = arith.constant dense<0.000000e+00> : vector<80x128xf32>
      %20 = tpu.matmul %17, %19, %cst_17 {dimension_numbers = #tpu.dot_dimension_numbers<[1], [0], [0], [1], [0, 0, 1, 1], [], []>} : vector<80x128xbf16>, vector<128x128xbf16>, vector<80x128xf32> -> vector<80x128xf32>
      %21 = arith.addf %15, %20 : vector<80x128xf32>
      %c0_18 = arith.constant 0 : index
      %c0_19 = arith.constant 0 : index
      %c2 = arith.constant 2 : index
      %c0_20 = arith.constant 0 : index
      %22 = vector.load %arg3[%c0_18, %c0_19, %c2, %c0_20] : memref<1x1x102x128xbf16, #tpu.memory_space<vmem>>, vector<1x1x80x128xbf16>
      %23 = vector.shape_cast %22 : vector<1x1x80x128xbf16> to vector<80x128xbf16>
      %c2_21 = arith.constant 2 : index
      %c0_22 = arith.constant 0 : index
      %c0_23 = arith.constant 0 : index
      %24 = vector.load %arg5[%c2_21, %c0_22, %c0_23] : memref<9x128x128xbf16, #tpu.memory_space<vmem>>, vector<1x128x128xbf16>
      %25 = vector.shape_cast %24 : vector<1x128x128xbf16> to vector<128x128xbf16>
      %cst_24 = arith.constant dense<0.000000e+00> : vector<80x128xf32>
      %26 = tpu.matmul %23, %25, %cst_24 {dimension_numbers = #tpu.dot_dimension_numbers<[1], [0], [0], [1], [0, 0, 1, 1], [], []>} : vector<80x128xbf16>, vector<128x128xbf16>, vector<80x128xf32> -> vector<80x128xf32>
      %27 = arith.addf %21, %26 : vector<80x128xf32>
      %c0_25 = arith.constant 0 : index
      %c0_26 = arith.constant 0 : index
      %c10 = arith.constant 10 : index
      %c0_27 = arith.constant 0 : index
      %28 = vector.load %arg3[%c0_25, %c0_26, %c10, %c0_27] : memref<1x1x102x128xbf16, #tpu.memory_space<vmem>>, vector<1x1x80x128xbf16>
      %29 = vector.shape_cast %28 : vector<1x1x80x128xbf16> to vector<80x128xbf16>
      %c3 = arith.constant 3 : index
      %c0_28 = arith.constant 0 : index
      %c0_29 = arith.constant 0 : index
      %30 = vector.load %arg5[%c3, %c0_28, %c0_29] : memref<9x128x128xbf16, #tpu.memory_space<vmem>>, vector<1x128x128xbf16>
      %31 = vector.shape_cast %30 : vector<1x128x128xbf16> to vector<128x128xbf16>
      %cst_30 = arith.constant dense<0.000000e+00> : vector<80x128xf32>
      %32 = tpu.matmul %29, %31, %cst_30 {dimension_numbers = #tpu.dot_dimension_numbers<[1], [0], [0], [1], [0, 0, 1, 1], [], []>} : vector<80x128xbf16>, vector<128x128xbf16>, vector<80x128xf32> -> vector<80x128xf32>
      %33 = arith.addf %27, %32 : vector<80x128xf32>
      %c0_31 = arith.constant 0 : index
      %c0_32 = arith.constant 0 : index
      %c11 = arith.constant 11 : index
      %c0_33 = arith.constant 0 : index
      %34 = vector.load %arg3[%c0_31, %c0_32, %c11, %c0_33] : memref<1x1x102x128xbf16, #tpu.memory_space<vmem>>, vector<1x1x80x128xbf16>
      %35 = vector.shape_cast %34 : vector<1x1x80x128xbf16> to vector<80x128xbf16>
      %c4 = arith.constant 4 : index
      %c0_34 = arith.constant 0 : index
      %c0_35 = arith.constant 0 : index
      %36 = vector.load %arg5[%c4, %c0_34, %c0_35] : memref<9x128x128xbf16, #tpu.memory_space<vmem>>, vector<1x128x128xbf16>
      %37 = vector.shape_cast %36 : vector<1x128x128xbf16> to vector<128x128xbf16>
      %cst_36 = arith.constant dense<0.000000e+00> : vector<80x128xf32>
      %38 = tpu.matmul %35, %37, %cst_36 {dimension_numbers = #tpu.dot_dimension_numbers<[1], [0], [0], [1], [0, 0, 1, 1], [], []>} : vector<80x128xbf16>, vector<128x128xbf16>, vector<80x128xf32> -> vector<80x128xf32>
      %39 = arith.addf %33, %38 : vector<80x128xf32>
      %c0_37 = arith.constant 0 : index
      %c0_38 = arith.constant 0 : index
      %c12 = arith.constant 12 : index
      %c0_39 = arith.constant 0 : index
      %40 = vector.load %arg3[%c0_37, %c0_38, %c12, %c0_39] : memref<1x1x102x128xbf16, #tpu.memory_space<vmem>>, vector<1x1x80x128xbf16>
      %41 = vector.shape_cast %40 : vector<1x1x80x128xbf16> to vector<80x128xbf16>
      %c5 = arith.constant 5 : index
      %c0_40 = arith.constant 0 : index
      %c0_41 = arith.constant 0 : index
      %42 = vector.load %arg5[%c5, %c0_40, %c0_41] : memref<9x128x128xbf16, #tpu.memory_space<vmem>>, vector<1x128x128xbf16>
      %43 = vector.shape_cast %42 : vector<1x128x128xbf16> to vector<128x128xbf16>
      %cst_42 = arith.constant dense<0.000000e+00> : vector<80x128xf32>
      %44 = tpu.matmul %41, %43, %cst_42 {dimension_numbers = #tpu.dot_dimension_numbers<[1], [0], [0], [1], [0, 0, 1, 1], [], []>} : vector<80x128xbf16>, vector<128x128xbf16>, vector<80x128xf32> -> vector<80x128xf32>
      %45 = arith.addf %39, %44 : vector<80x128xf32>
      %c0_43 = arith.constant 0 : index
      %c0_44 = arith.constant 0 : index
      %c20 = arith.constant 20 : index
      %c0_45 = arith.constant 0 : index
      %46 = vector.load %arg3[%c0_43, %c0_44, %c20, %c0_45] : memref<1x1x102x128xbf16, #tpu.memory_space<vmem>>, vector<1x1x80x128xbf16>
      %47 = vector.shape_cast %46 : vector<1x1x80x128xbf16> to vector<80x128xbf16>
      %c6 = arith.constant 6 : index
      %c0_46 = arith.constant 0 : index
      %c0_47 = arith.constant 0 : index
      %48 = vector.load %arg5[%c6, %c0_46, %c0_47] : memref<9x128x128xbf16, #tpu.memory_space<vmem>>, vector<1x128x128xbf16>
      %49 = vector.shape_cast %48 : vector<1x128x128xbf16> to vector<128x128xbf16>
      %cst_48 = arith.constant dense<0.000000e+00> : vector<80x128xf32>
      %50 = tpu.matmul %47, %49, %cst_48 {dimension_numbers = #tpu.dot_dimension_numbers<[1], [0], [0], [1], [0, 0, 1, 1], [], []>} : vector<80x128xbf16>, vector<128x128xbf16>, vector<80x128xf32> -> vector<80x128xf32>
      %51 = arith.addf %45, %50 : vector<80x128xf32>
      %c0_49 = arith.constant 0 : index
      %c0_50 = arith.constant 0 : index
      %c21 = arith.constant 21 : index
      %c0_51 = arith.constant 0 : index
      %52 = vector.load %arg3[%c0_49, %c0_50, %c21, %c0_51] : memref<1x1x102x128xbf16, #tpu.memory_space<vmem>>, vector<1x1x80x128xbf16>
      %53 = vector.shape_cast %52 : vector<1x1x80x128xbf16> to vector<80x128xbf16>
      %c7 = arith.constant 7 : index
      %c0_52 = arith.constant 0 : index
      %c0_53 = arith.constant 0 : index
      %54 = vector.load %arg5[%c7, %c0_52, %c0_53] : memref<9x128x128xbf16, #tpu.memory_space<vmem>>, vector<1x128x128xbf16>
      %55 = vector.shape_cast %54 : vector<1x128x128xbf16> to vector<128x128xbf16>
      %cst_54 = arith.constant dense<0.000000e+00> : vector<80x128xf32>
      %56 = tpu.matmul %53, %55, %cst_54 {dimension_numbers = #tpu.dot_dimension_numbers<[1], [0], [0], [1], [0, 0, 1, 1], [], []>} : vector<80x128xbf16>, vector<128x128xbf16>, vector<80x128xf32> -> vector<80x128xf32>
      %57 = arith.addf %51, %56 : vector<80x128xf32>
      %c0_55 = arith.constant 0 : index
      %c0_56 = arith.constant 0 : index
      %c22 = arith.constant 22 : index
      %c0_57 = arith.constant 0 : index
      %58 = vector.load %arg3[%c0_55, %c0_56, %c22, %c0_57] : memref<1x1x102x128xbf16, #tpu.memory_space<vmem>>, vector<1x1x80x128xbf16>
      %59 = vector.shape_cast %58 : vector<1x1x80x128xbf16> to vector<80x128xbf16>
      %c8 = arith.constant 8 : index
      %c0_58 = arith.constant 0 : index
      %c0_59 = arith.constant 0 : index
      %60 = vector.load %arg5[%c8, %c0_58, %c0_59] : memref<9x128x128xbf16, #tpu.memory_space<vmem>>, vector<1x128x128xbf16>
      %61 = vector.shape_cast %60 : vector<1x128x128xbf16> to vector<128x128xbf16>
      %cst_60 = arith.constant dense<0.000000e+00> : vector<80x128xf32>
      %62 = tpu.matmul %59, %61, %cst_60 {dimension_numbers = #tpu.dot_dimension_numbers<[1], [0], [0], [1], [0, 0, 1, 1], [], []>} : vector<80x128xbf16>, vector<128x128xbf16>, vector<80x128xf32> -> vector<80x128xf32>
      %63 = arith.addf %57, %62 : vector<80x128xf32>
      %c0_61 = arith.constant 0 : index
      %c0_62 = arith.constant 0 : index
      %64 = vector.load %arg6[%c0_61, %c0_62] : memref<1x128xf32, #tpu.memory_space<vmem>>, vector<1x128xf32>
      %65 = vector.broadcast %64 : vector<1x128xf32> to vector<80x128xf32>
      %66 = arith.addf %63, %65 : vector<80x128xf32>
      %c0_63 = arith.constant 0 : index
      %c0_64 = arith.constant 0 : index
      %67 = vector.load %arg4[%c0_63, %c0_64] : memref<80x1xf32, #tpu.memory_space<vmem>>, vector<80x1xf32>
      %c0_65 = arith.constant 0 : index
      %c0_66 = arith.constant 0 : index
      %68 = vector.load %arg11[%c0_65, %c0_66] : memref<1x128xf32, #tpu.memory_space<vmem>>, vector<1x128xf32>
      %69 = vector.broadcast %67 : vector<80x1xf32> to vector<80x128xf32>
      %70 = arith.mulf %66, %69 : vector<80x128xf32>
      %cst_67 = arith.constant dense<0.000000e+00> : vector<128xf32>
      %71 = vector.multi_reduction <add>, %70, %cst_67 [0] : vector<80x128xf32> to vector<128xf32>
      %72 = vector.shape_cast %71 : vector<128xf32> to vector<1x128xf32>
      %73 = arith.addf %68, %72 : vector<1x128xf32>
      %c0_68 = arith.constant 0 : index
      %c0_69 = arith.constant 0 : index
      %74 = vector.load %arg11[%c0_68, %c0_69] : memref<1x128xf32, #tpu.memory_space<vmem>>, vector<1x128xf32>
      tpu.vector_store %arg11[%c0_68, %c0_69], %73 {strides = array<i32>} : memref<1x128xf32, #tpu.memory_space<vmem>>, vector<1x128xf32>,
      %c0_70 = arith.constant 0 : index
      %c0_71 = arith.constant 0 : index
      %75 = vector.load %arg12[%c0_70, %c0_71] : memref<1x128xf32, #tpu.memory_space<vmem>>, vector<1x128xf32>
      %76 = arith.mulf %66, %66 : vector<80x128xf32>
      %77 = vector.broadcast %67 : vector<80x1xf32> to vector<80x128xf32>
      %78 = arith.mulf %76, %77 : vector<80x128xf32>
      %cst_72 = arith.constant dense<0.000000e+00> : vector<128xf32>
      %79 = vector.multi_reduction <add>, %78, %cst_72 [0] : vector<80x128xf32> to vector<128xf32>
      %80 = vector.shape_cast %79 : vector<128xf32> to vector<1x128xf32>
      %81 = arith.addf %75, %80 : vector<1x128xf32>
      %c0_73 = arith.constant 0 : index
      %c0_74 = arith.constant 0 : index
      %82 = vector.load %arg12[%c0_73, %c0_74] : memref<1x128xf32, #tpu.memory_space<vmem>>, vector<1x128xf32>
      tpu.vector_store %arg12[%c0_73, %c0_74], %81 {strides = array<i32>} : memref<1x128xf32, #tpu.memory_space<vmem>>, vector<1x128xf32>,
      %cst_75 = arith.constant 0.000000e+00 : f32
      %83 = vector.broadcast %cst_75 : f32 to vector<80x512xf32>
      %c0_76 = arith.constant 0 : index
      %c0_77 = arith.constant 0 : index
      %c0_78 = arith.constant 0 : index
      %c0_79 = arith.constant 0 : index
      %84 = vector.load %arg10[%c0_76, %c0_77, %c0_78, %c0_79] : memref<1x1x80x512xf32, #tpu.memory_space<vmem>>, vector<1x1x80x512xf32>
      %85 = vector.shape_cast %84 : vector<1x1x80x512xf32> to vector<80x512xf32>
      %86 = vector.shape_cast %83 : vector<80x512xf32> to vector<1x1x80x512xf32>
      tpu.vector_store %arg10[%c0_76, %c0_77, %c0_78, %c0_79], %86 {strides = array<i32>} : memref<1x1x80x512xf32, #tpu.memory_space<vmem>>, vector<1x1x80x512xf32>,
    } else {
    }
    %c1_i32 = arith.constant 1 : i32
    %3 = arith.cmpi eq, %arg1, %c1_i32 : i32
    %4 = arith.extui %3 : i1 to i32
    %c0_i32_1 = arith.constant 0 : i32
    %5 = arith.cmpi ne, %4, %c0_i32_1 : i32
    scf.if %5 {
      %cst = arith.constant 0.000000e+00 : f32
      %6 = vector.broadcast %cst : f32 to vector<80x128xf32>
      %c0 = arith.constant 0 : index
      %c0_2 = arith.constant 0 : index
      %c0_3 = arith.constant 0 : index
      %c0_4 = arith.constant 0 : index
      %7 = vector.load %arg3[%c0, %c0_2, %c0_3, %c0_4] : memref<1x1x102x128xbf16, #tpu.memory_space<vmem>>, vector<1x1x80x128xbf16>
      %8 = vector.shape_cast %7 : vector<1x1x80x128xbf16> to vector<80x128xbf16>
      %c0_5 = arith.constant 0 : index
      %c0_6 = arith.constant 0 : index
      %c0_7 = arith.constant 0 : index
      %9 = vector.load %arg5[%c0_5, %c0_6, %c0_7] : memref<9x128x128xbf16, #tpu.memory_space<vmem>>, vector<1x128x128xbf16>
      %10 = vector.shape_cast %9 : vector<1x128x128xbf16> to vector<128x128xbf16>
      %cst_8 = arith.constant dense<0.000000e+00> : vector<80x128xf32>
      %11 = tpu.matmul %8, %10, %cst_8 {dimension_numbers = #tpu.dot_dimension_numbers<[1], [0], [0], [1], [0, 0, 1, 1], [], []>} : vector<80x128xbf16>, vector<128x128xbf16>, vector<80x128xf32> -> vector<80x128xf32>
      %12 = arith.addf %6, %11 : vector<80x128xf32>
      %c0_9 = arith.constant 0 : index
      %c0_10 = arith.constant 0 : index
      %c1 = arith.constant 1 : index
      %c0_11 = arith.constant 0 : index
      %13 = vector.load %arg3[%c0_9, %c0_10, %c1, %c0_11] : memref<1x1x102x128xbf16, #tpu.memory_space<vmem>>, vector<1x1x80x128xbf16>
      %14 = vector.shape_cast %13 : vector<1x1x80x128xbf16> to vector<80x128xbf16>
      %c1_12 = arith.constant 1 : index
      %c0_13 = arith.constant 0 : index
      %c0_14 = arith.constant 0 : index
      %15 = vector.load %arg5[%c1_12, %c0_13, %c0_14] : memref<9x128x128xbf16, #tpu.memory_space<vmem>>, vector<1x128x128xbf16>
      %16 = vector.shape_cast %15 : vector<1x128x128xbf16> to vector<128x128xbf16>
      %cst_15 = arith.constant dense<0.000000e+00> : vector<80x128xf32>
      %17 = tpu.matmul %14, %16, %cst_15 {dimension_numbers = #tpu.dot_dimension_numbers<[1], [0], [0], [1], [0, 0, 1, 1], [], []>} : vector<80x128xbf16>, vector<128x128xbf16>, vector<80x128xf32> -> vector<80x128xf32>
      %18 = arith.addf %12, %17 : vector<80x128xf32>
      %c0_16 = arith.constant 0 : index
      %c0_17 = arith.constant 0 : index
      %c2 = arith.constant 2 : index
      %c0_18 = arith.constant 0 : index
      %19 = vector.load %arg3[%c0_16, %c0_17, %c2, %c0_18] : memref<1x1x102x128xbf16, #tpu.memory_space<vmem>>, vector<1x1x80x128xbf16>
      %20 = vector.shape_cast %19 : vector<1x1x80x128xbf16> to vector<80x128xbf16>
      %c2_19 = arith.constant 2 : index
      %c0_20 = arith.constant 0 : index
      %c0_21 = arith.constant 0 : index
      %21 = vector.load %arg5[%c2_19, %c0_20, %c0_21] : memref<9x128x128xbf16, #tpu.memory_space<vmem>>, vector<1x128x128xbf16>
      %22 = vector.shape_cast %21 : vector<1x128x128xbf16> to vector<128x128xbf16>
      %cst_22 = arith.constant dense<0.000000e+00> : vector<80x128xf32>
      %23 = tpu.matmul %20, %22, %cst_22 {dimension_numbers = #tpu.dot_dimension_numbers<[1], [0], [0], [1], [0, 0, 1, 1], [], []>} : vector<80x128xbf16>, vector<128x128xbf16>, vector<80x128xf32> -> vector<80x128xf32>
      %24 = arith.addf %18, %23 : vector<80x128xf32>
      %c0_23 = arith.constant 0 : index
      %c0_24 = arith.constant 0 : index
      %c10 = arith.constant 10 : index
      %c0_25 = arith.constant 0 : index
      %25 = vector.load %arg3[%c0_23, %c0_24, %c10, %c0_25] : memref<1x1x102x128xbf16, #tpu.memory_space<vmem>>, vector<1x1x80x128xbf16>
      %26 = vector.shape_cast %25 : vector<1x1x80x128xbf16> to vector<80x128xbf16>
      %c3 = arith.constant 3 : index
      %c0_26 = arith.constant 0 : index
      %c0_27 = arith.constant 0 : index
      %27 = vector.load %arg5[%c3, %c0_26, %c0_27] : memref<9x128x128xbf16, #tpu.memory_space<vmem>>, vector<1x128x128xbf16>
      %28 = vector.shape_cast %27 : vector<1x128x128xbf16> to vector<128x128xbf16>
      %cst_28 = arith.constant dense<0.000000e+00> : vector<80x128xf32>
      %29 = tpu.matmul %26, %28, %cst_28 {dimension_numbers = #tpu.dot_dimension_numbers<[1], [0], [0], [1], [0, 0, 1, 1], [], []>} : vector<80x128xbf16>, vector<128x128xbf16>, vector<80x128xf32> -> vector<80x128xf32>
      %30 = arith.addf %24, %29 : vector<80x128xf32>
      %c0_29 = arith.constant 0 : index
      %c0_30 = arith.constant 0 : index
      %c11 = arith.constant 11 : index
      %c0_31 = arith.constant 0 : index
      %31 = vector.load %arg3[%c0_29, %c0_30, %c11, %c0_31] : memref<1x1x102x128xbf16, #tpu.memory_space<vmem>>, vector<1x1x80x128xbf16>
      %32 = vector.shape_cast %31 : vector<1x1x80x128xbf16> to vector<80x128xbf16>
      %c4 = arith.constant 4 : index
      %c0_32 = arith.constant 0 : index
      %c0_33 = arith.constant 0 : index
      %33 = vector.load %arg5[%c4, %c0_32, %c0_33] : memref<9x128x128xbf16, #tpu.memory_space<vmem>>, vector<1x128x128xbf16>
      %34 = vector.shape_cast %33 : vector<1x128x128xbf16> to vector<128x128xbf16>
      %cst_34 = arith.constant dense<0.000000e+00> : vector<80x128xf32>
      %35 = tpu.matmul %32, %34, %cst_34 {dimension_numbers = #tpu.dot_dimension_numbers<[1], [0], [0], [1], [0, 0, 1, 1], [], []>} : vector<80x128xbf16>, vector<128x128xbf16>, vector<80x128xf32> -> vector<80x128xf32>
      %36 = arith.addf %30, %35 : vector<80x128xf32>
      %c0_35 = arith.constant 0 : index
      %c0_36 = arith.constant 0 : index
      %c12 = arith.constant 12 : index
      %c0_37 = arith.constant 0 : index
      %37 = vector.load %arg3[%c0_35, %c0_36, %c12, %c0_37] : memref<1x1x102x128xbf16, #tpu.memory_space<vmem>>, vector<1x1x80x128xbf16>
      %38 = vector.shape_cast %37 : vector<1x1x80x128xbf16> to vector<80x128xbf16>
      %c5 = arith.constant 5 : index
      %c0_38 = arith.constant 0 : index
      %c0_39 = arith.constant 0 : index
      %39 = vector.load %arg5[%c5, %c0_38, %c0_39] : memref<9x128x128xbf16, #tpu.memory_space<vmem>>, vector<1x128x128xbf16>
      %40 = vector.shape_cast %39 : vector<1x128x128xbf16> to vector<128x128xbf16>
      %cst_40 = arith.constant dense<0.000000e+00> : vector<80x128xf32>
      %41 = tpu.matmul %38, %40, %cst_40 {dimension_numbers = #tpu.dot_dimension_numbers<[1], [0], [0], [1], [0, 0, 1, 1], [], []>} : vector<80x128xbf16>, vector<128x128xbf16>, vector<80x128xf32> -> vector<80x128xf32>
      %42 = arith.addf %36, %41 : vector<80x128xf32>
      %c0_41 = arith.constant 0 : index
      %c0_42 = arith.constant 0 : index
      %c20 = arith.constant 20 : index
      %c0_43 = arith.constant 0 : index
      %43 = vector.load %arg3[%c0_41, %c0_42, %c20, %c0_43] : memref<1x1x102x128xbf16, #tpu.memory_space<vmem>>, vector<1x1x80x128xbf16>
      %44 = vector.shape_cast %43 : vector<1x1x80x128xbf16> to vector<80x128xbf16>
      %c6 = arith.constant 6 : index
      %c0_44 = arith.constant 0 : index
      %c0_45 = arith.constant 0 : index
      %45 = vector.load %arg5[%c6, %c0_44, %c0_45] : memref<9x128x128xbf16, #tpu.memory_space<vmem>>, vector<1x128x128xbf16>
      %46 = vector.shape_cast %45 : vector<1x128x128xbf16> to vector<128x128xbf16>
      %cst_46 = arith.constant dense<0.000000e+00> : vector<80x128xf32>
      %47 = tpu.matmul %44, %46, %cst_46 {dimension_numbers = #tpu.dot_dimension_numbers<[1], [0], [0], [1], [0, 0, 1, 1], [], []>} : vector<80x128xbf16>, vector<128x128xbf16>, vector<80x128xf32> -> vector<80x128xf32>
      %48 = arith.addf %42, %47 : vector<80x128xf32>
      %c0_47 = arith.constant 0 : index
      %c0_48 = arith.constant 0 : index
      %c21 = arith.constant 21 : index
      %c0_49 = arith.constant 0 : index
      %49 = vector.load %arg3[%c0_47, %c0_48, %c21, %c0_49] : memref<1x1x102x128xbf16, #tpu.memory_space<vmem>>, vector<1x1x80x128xbf16>
      %50 = vector.shape_cast %49 : vector<1x1x80x128xbf16> to vector<80x128xbf16>
      %c7 = arith.constant 7 : index
      %c0_50 = arith.constant 0 : index
      %c0_51 = arith.constant 0 : index
      %51 = vector.load %arg5[%c7, %c0_50, %c0_51] : memref<9x128x128xbf16, #tpu.memory_space<vmem>>, vector<1x128x128xbf16>
      %52 = vector.shape_cast %51 : vector<1x128x128xbf16> to vector<128x128xbf16>
      %cst_52 = arith.constant dense<0.000000e+00> : vector<80x128xf32>
      %53 = tpu.matmul %50, %52, %cst_52 {dimension_numbers = #tpu.dot_dimension_numbers<[1], [0], [0], [1], [0, 0, 1, 1], [], []>} : vector<80x128xbf16>, vector<128x128xbf16>, vector<80x128xf32> -> vector<80x128xf32>
      %54 = arith.addf %48, %53 : vector<80x128xf32>
      %c0_53 = arith.constant 0 : index
      %c0_54 = arith.constant 0 : index
      %c22 = arith.constant 22 : index
      %c0_55 = arith.constant 0 : index
      %55 = vector.load %arg3[%c0_53, %c0_54, %c22, %c0_55] : memref<1x1x102x128xbf16, #tpu.memory_space<vmem>>, vector<1x1x80x128xbf16>
      %56 = vector.shape_cast %55 : vector<1x1x80x128xbf16> to vector<80x128xbf16>
      %c8 = arith.constant 8 : index
      %c0_56 = arith.constant 0 : index
      %c0_57 = arith.constant 0 : index
      %57 = vector.load %arg5[%c8, %c0_56, %c0_57] : memref<9x128x128xbf16, #tpu.memory_space<vmem>>, vector<1x128x128xbf16>
      %58 = vector.shape_cast %57 : vector<1x128x128xbf16> to vector<128x128xbf16>
      %cst_58 = arith.constant dense<0.000000e+00> : vector<80x128xf32>
      %59 = tpu.matmul %56, %58, %cst_58 {dimension_numbers = #tpu.dot_dimension_numbers<[1], [0], [0], [1], [0, 0, 1, 1], [], []>} : vector<80x128xbf16>, vector<128x128xbf16>, vector<80x128xf32> -> vector<80x128xf32>
      %60 = arith.addf %54, %59 : vector<80x128xf32>
      %c0_59 = arith.constant 0 : index
      %c0_60 = arith.constant 0 : index
      %61 = vector.load %arg6[%c0_59, %c0_60] : memref<1x128xf32, #tpu.memory_space<vmem>>, vector<1x128xf32>
      %62 = vector.broadcast %61 : vector<1x128xf32> to vector<80x128xf32>
      %63 = arith.addf %60, %62 : vector<80x128xf32>
      %c0_61 = arith.constant 0 : index
      %c0_62 = arith.constant 0 : index
      %64 = vector.load %arg11[%c0_61, %c0_62] : memref<1x128xf32, #tpu.memory_space<vmem>>, vector<1x128xf32>
      %cst_63 = arith.constant 7.812500e-03 : f32
      %65 = vector.broadcast %cst_63 : f32 to vector<1x128xf32>
      %66 = arith.mulf %64, %65 : vector<1x128xf32>
      %c0_64 = arith.constant 0 : index
      %c0_65 = arith.constant 0 : index
      %67 = vector.load %arg12[%c0_64, %c0_65] : memref<1x128xf32, #tpu.memory_space<vmem>>, vector<1x128xf32>
      %cst_66 = arith.constant 7.812500e-03 : f32
      %68 = vector.broadcast %cst_66 : f32 to vector<1x128xf32>
      %69 = arith.mulf %67, %68 : vector<1x128xf32>
      %70 = arith.mulf %66, %66 : vector<1x128xf32>
      %71 = arith.subf %69, %70 : vector<1x128xf32>
      %72 = vector.broadcast %66 : vector<1x128xf32> to vector<80x128xf32>
      %73 = arith.subf %63, %72 : vector<80x128xf32>
      %cst_67 = arith.constant 9.99999974E-6 : f32
      %74 = vector.broadcast %cst_67 : f32 to vector<1x128xf32>
      %75 = arith.addf %71, %74 : vector<1x128xf32>
      %76 = math.rsqrt %75 : vector<1x128xf32>
      %77 = vector.broadcast %76 : vector<1x128xf32> to vector<80x128xf32>
      %78 = arith.mulf %73, %77 : vector<80x128xf32>
      %c0_68 = arith.constant 0 : index
      %c0_69 = arith.constant 0 : index
      %79 = vector.load %arg7[%c0_68, %c0_69] : memref<1x128xf32, #tpu.memory_space<vmem>>, vector<1x128xf32>
      %80 = vector.broadcast %79 : vector<1x128xf32> to vector<80x128xf32>
      %81 = arith.mulf %78, %80 : vector<80x128xf32>
      %c0_70 = arith.constant 0 : index
      %c0_71 = arith.constant 0 : index
      %82 = vector.load %arg8[%c0_70, %c0_71] : memref<1x128xf32, #tpu.memory_space<vmem>>, vector<1x128xf32>
      %83 = vector.broadcast %82 : vector<1x128xf32> to vector<80x128xf32>
      %84 = arith.addf %81, %83 : vector<80x128xf32>
      %cst_72 = arith.constant 0.000000e+00 : f32
      %85 = vector.broadcast %cst_72 : f32 to vector<80x128xf32>
      %86 = arith.maximumf %84, %85 : vector<80x128xf32>
      %87 = arith.truncf %86 : vector<80x128xf32> to vector<80x128xbf16>
      %c0_73 = arith.constant 0 : index
      %c0_74 = arith.constant 0 : index
      %88 = vector.load %arg9[%c0_73, %c0_74] : memref<128x512xbf16, #tpu.memory_space<vmem>>, vector<128x512xbf16>
      %cst_75 = arith.constant dense<0.000000e+00> : vector<80x512xf32>
      %89 = tpu.matmul %87, %88, %cst_75 {dimension_numbers = #tpu.dot_dimension_numbers<[1], [0], [0], [1], [0, 0, 1, 1], [], []>} : vector<80x128xbf16>, vector<128x512xbf16>, vector<80x512xf32> -> vector<80x512xf32>
      %c0_76 = arith.constant 0 : index
      %c0_77 = arith.constant 0 : index
      %c0_78 = arith.constant 0 : index
      %c0_79 = arith.constant 0 : index
      %90 = vector.load %arg10[%c0_76, %c0_77, %c0_78, %c0_79] : memref<1x1x80x512xf32, #tpu.memory_space<vmem>>, vector<1x1x80x512xf32>
      %91 = vector.shape_cast %90 : vector<1x1x80x512xf32> to vector<80x512xf32>
      %92 = vector.shape_cast %89 : vector<80x512xf32> to vector<1x1x80x512xf32>
      tpu.vector_store %arg10[%c0_76, %c0_77, %c0_78, %c0_79], %92 {strides = array<i32>} : memref<1x1x80x512xf32, #tpu.memory_space<vmem>>, vector<1x1x80x512xf32>,
    } else {
    }
    return
  }
  func.func @transform_0(%arg0: i32, %arg1: i32, %arg2: i32) -> (i32, i32, i32, i32) {
    %c0_i32 = arith.constant 0 : i32
    %c0_i32_0 = arith.constant 0 : i32
    %c0_i32_1 = arith.constant 0 : i32
    return %arg0, %arg2, %c0_i32, %c0_i32_0 : i32, i32, i32, i32
  }
  func.func @transform_1(%arg0: i32, %arg1: i32, %arg2: i32) -> (i32, i32) {
    %c0_i32 = arith.constant 0 : i32
    %c0_i32_0 = arith.constant 0 : i32
    %c0_i32_1 = arith.constant 0 : i32
    return %c0_i32, %c0_i32_0 : i32, i32
  }
  func.func @transform_2(%arg0: i32, %arg1: i32, %arg2: i32) -> (i32, i32, i32) {
    %c0_i32 = arith.constant 0 : i32
    %c0_i32_0 = arith.constant 0 : i32
    %c0_i32_1 = arith.constant 0 : i32
    %c0_i32_2 = arith.constant 0 : i32
    return %c0_i32, %c0_i32_0, %c0_i32_1 : i32, i32, i32
  }
  func.func @transform_3(%arg0: i32, %arg1: i32, %arg2: i32) -> (i32, i32) {
    %c0_i32 = arith.constant 0 : i32
    %c0_i32_0 = arith.constant 0 : i32
    %c0_i32_1 = arith.constant 0 : i32
    return %c0_i32, %c0_i32_0 : i32, i32
  }
  func.func @transform_4(%arg0: i32, %arg1: i32, %arg2: i32) -> (i32, i32) {
    %c0_i32 = arith.constant 0 : i32
    %c0_i32_0 = arith.constant 0 : i32
    %c0_i32_1 = arith.constant 0 : i32
    return %c0_i32, %c0_i32_0 : i32, i32
  }
  func.func @transform_5(%arg0: i32, %arg1: i32, %arg2: i32) -> (i32, i32) {
    %c0_i32 = arith.constant 0 : i32
    %c0_i32_0 = arith.constant 0 : i32
    %c0_i32_1 = arith.constant 0 : i32
    return %c0_i32, %c0_i32_0 : i32, i32
  }
  func.func @transform_6(%arg0: i32, %arg1: i32, %arg2: i32) -> (i32, i32) {
    %c0_i32 = arith.constant 0 : i32
    %c0_i32_0 = arith.constant 0 : i32
    %c0_i32_1 = arith.constant 0 : i32
    return %c0_i32, %c0_i32_0 : i32, i32
  }
  func.func @transform_7(%arg0: i32, %arg1: i32, %arg2: i32) -> (i32, i32, i32, i32) {
    %c0_i32 = arith.constant 0 : i32
    %c0_i32_0 = arith.constant 0 : i32
    %c0_i32_1 = arith.constant 0 : i32
    return %arg0, %arg2, %c0_i32, %c0_i32_0 : i32, i32, i32, i32
  }
}

module attributes {stable_mosaic.version = 11 : i64} {
  func.func @_branch_kernel(%arg0: i32, %arg1: i32, %arg2: i32, %arg3: memref<1x1x38x128xbf16, #tpu.memory_space<vmem>>, %arg4: memref<24x1xf32, #tpu.memory_space<vmem>>, %arg5: memref<9x128x128xbf16, #tpu.memory_space<vmem>>, %arg6: memref<1x128xf32, #tpu.memory_space<vmem>>, %arg7: memref<1x128xf32, #tpu.memory_space<vmem>>, %arg8: memref<1x128xf32, #tpu.memory_space<vmem>>, %arg9: memref<128x512xbf16, #tpu.memory_space<vmem>>, %arg10: memref<1x1x24x512xf32, #tpu.memory_space<vmem>>, %arg11: memref<1x128xf32, #tpu.memory_space<vmem>>, %arg12: memref<1x128xf32, #tpu.memory_space<vmem>>) attributes {dimension_semantics = [#tpu.dimension_semantics<arbitrary>, #tpu.dimension_semantics<arbitrary>, #tpu.dimension_semantics<arbitrary>], iteration_bounds = array<i64: 1, 2, 2>, scalar_prefetch = 0 : i64, scratch_operands = 2 : i64, tpu.core_type = #tpu.core_type<tc>, window_params = [{transform_indices = @transform_0, window_bounds = array<i64: 1, 1, 38, 128>}, {pipeline_mode = #tpu.pipeline_mode<synchronous>, transform_indices = @transform_1, window_bounds = array<i64: 24, 1>}, {pipeline_mode = #tpu.pipeline_mode<synchronous>, transform_indices = @transform_2, window_bounds = array<i64: 9, 128, 128>}, {pipeline_mode = #tpu.pipeline_mode<synchronous>, transform_indices = @transform_3, window_bounds = array<i64: 1, 128>}, {pipeline_mode = #tpu.pipeline_mode<synchronous>, transform_indices = @transform_4, window_bounds = array<i64: 1, 128>}, {pipeline_mode = #tpu.pipeline_mode<synchronous>, transform_indices = @transform_5, window_bounds = array<i64: 1, 128>}, {pipeline_mode = #tpu.pipeline_mode<synchronous>, transform_indices = @transform_6, window_bounds = array<i64: 128, 512>}, {transform_indices = @transform_7, window_bounds = array<i64: 1, 1, 24, 512>}]} {
    %c0_i32 = arith.constant 0 : i32
    %0 = arith.cmpi eq, %arg1, %c0_i32 : i32
    %1 = arith.extui %0 : i1 to i32
    %c0_i32_0 = arith.constant 0 : i32
    %2 = arith.cmpi ne, %1, %c0_i32_0 : i32
    scf.if %2 {
      %c0_i32_2 = arith.constant 0 : i32
      %6 = arith.cmpi eq, %arg2, %c0_i32_2 : i32
      %7 = arith.extui %6 : i1 to i32
      %c0_i32_3 = arith.constant 0 : i32
      %8 = arith.cmpi ne, %7, %c0_i32_3 : i32
      scf.if %8 {
        %cst_83 = arith.constant 0.000000e+00 : f32
        %87 = vector.broadcast %cst_83 : f32 to vector<1x128xf32>
        %c0_84 = arith.constant 0 : index
        %c0_85 = arith.constant 0 : index
        %88 = vector.load %arg11[%c0_84, %c0_85] : memref<1x128xf32, #tpu.memory_space<vmem>>, vector<1x128xf32>
        tpu.vector_store %arg11[%c0_84, %c0_85], %87 {strides = array<i32>} : memref<1x128xf32, #tpu.memory_space<vmem>>, vector<1x128xf32>,
        %cst_86 = arith.constant 0.000000e+00 : f32
        %89 = vector.broadcast %cst_86 : f32 to vector<1x128xf32>
        %c0_87 = arith.constant 0 : index
        %c0_88 = arith.constant 0 : index
        %90 = vector.load %arg12[%c0_87, %c0_88] : memref<1x128xf32, #tpu.memory_space<vmem>>, vector<1x128xf32>
        tpu.vector_store %arg12[%c0_87, %c0_88], %89 {strides = array<i32>} : memref<1x128xf32, #tpu.memory_space<vmem>>, vector<1x128xf32>,
      } else {
      }
      %cst = arith.constant 0.000000e+00 : f32
      %9 = vector.broadcast %cst : f32 to vector<24x128xf32>
      %c0 = arith.constant 0 : index
      %c0_4 = arith.constant 0 : index
      %c0_5 = arith.constant 0 : index
      %c0_6 = arith.constant 0 : index
      %10 = vector.load %arg3[%c0, %c0_4, %c0_5, %c0_6] : memref<1x1x38x128xbf16, #tpu.memory_space<vmem>>, vector<1x1x24x128xbf16>
      %11 = vector.shape_cast %10 : vector<1x1x24x128xbf16> to vector<24x128xbf16>
      %c0_7 = arith.constant 0 : index
      %c0_8 = arith.constant 0 : index
      %c0_9 = arith.constant 0 : index
      %12 = vector.load %arg5[%c0_7, %c0_8, %c0_9] : memref<9x128x128xbf16, #tpu.memory_space<vmem>>, vector<1x128x128xbf16>
      %13 = vector.shape_cast %12 : vector<1x128x128xbf16> to vector<128x128xbf16>
      %cst_10 = arith.constant dense<0.000000e+00> : vector<24x128xf32>
      %14 = tpu.matmul %11, %13, %cst_10 {dimension_numbers = #tpu.dot_dimension_numbers<[1], [0], [0], [1], [0, 0, 1, 1], [], []>} : vector<24x128xbf16>, vector<128x128xbf16>, vector<24x128xf32> -> vector<24x128xf32>
      %15 = arith.addf %9, %14 : vector<24x128xf32>
      %c0_11 = arith.constant 0 : index
      %c0_12 = arith.constant 0 : index
      %c1 = arith.constant 1 : index
      %c0_13 = arith.constant 0 : index
      %16 = vector.load %arg3[%c0_11, %c0_12, %c1, %c0_13] : memref<1x1x38x128xbf16, #tpu.memory_space<vmem>>, vector<1x1x24x128xbf16>
      %17 = vector.shape_cast %16 : vector<1x1x24x128xbf16> to vector<24x128xbf16>
      %c1_14 = arith.constant 1 : index
      %c0_15 = arith.constant 0 : index
      %c0_16 = arith.constant 0 : index
      %18 = vector.load %arg5[%c1_14, %c0_15, %c0_16] : memref<9x128x128xbf16, #tpu.memory_space<vmem>>, vector<1x128x128xbf16>
      %19 = vector.shape_cast %18 : vector<1x128x128xbf16> to vector<128x128xbf16>
      %cst_17 = arith.constant dense<0.000000e+00> : vector<24x128xf32>
      %20 = tpu.matmul %17, %19, %cst_17 {dimension_numbers = #tpu.dot_dimension_numbers<[1], [0], [0], [1], [0, 0, 1, 1], [], []>} : vector<24x128xbf16>, vector<128x128xbf16>, vector<24x128xf32> -> vector<24x128xf32>
      %21 = arith.addf %15, %20 : vector<24x128xf32>
      %c0_18 = arith.constant 0 : index
      %c0_19 = arith.constant 0 : index
      %c2 = arith.constant 2 : index
      %c0_20 = arith.constant 0 : index
      %22 = vector.load %arg3[%c0_18, %c0_19, %c2, %c0_20] : memref<1x1x38x128xbf16, #tpu.memory_space<vmem>>, vector<1x1x24x128xbf16>
      %23 = vector.shape_cast %22 : vector<1x1x24x128xbf16> to vector<24x128xbf16>
      %c2_21 = arith.constant 2 : index
      %c0_22 = arith.constant 0 : index
      %c0_23 = arith.constant 0 : index
      %24 = vector.load %arg5[%c2_21, %c0_22, %c0_23] : memref<9x128x128xbf16, #tpu.memory_space<vmem>>, vector<1x128x128xbf16>
      %25 = vector.shape_cast %24 : vector<1x128x128xbf16> to vector<128x128xbf16>
      %cst_24 = arith.constant dense<0.000000e+00> : vector<24x128xf32>
      %26 = tpu.matmul %23, %25, %cst_24 {dimension_numbers = #tpu.dot_dimension_numbers<[1], [0], [0], [1], [0, 0, 1, 1], [], []>} : vector<24x128xbf16>, vector<128x128xbf16>, vector<24x128xf32> -> vector<24x128xf32>
      %27 = arith.addf %21, %26 : vector<24x128xf32>
      %c0_25 = arith.constant 0 : index
      %c0_26 = arith.constant 0 : index
      %c6 = arith.constant 6 : index
      %c0_27 = arith.constant 0 : index
      %28 = vector.load %arg3[%c0_25, %c0_26, %c6, %c0_27] : memref<1x1x38x128xbf16, #tpu.memory_space<vmem>>, vector<1x1x24x128xbf16>
      %29 = vector.shape_cast %28 : vector<1x1x24x128xbf16> to vector<24x128xbf16>
      %c3 = arith.constant 3 : index
      %c0_28 = arith.constant 0 : index
      %c0_29 = arith.constant 0 : index
      %30 = vector.load %arg5[%c3, %c0_28, %c0_29] : memref<9x128x128xbf16, #tpu.memory_space<vmem>>, vector<1x128x128xbf16>
      %31 = vector.shape_cast %30 : vector<1x128x128xbf16> to vector<128x128xbf16>
      %cst_30 = arith.constant dense<0.000000e+00> : vector<24x128xf32>
      %32 = tpu.matmul %29, %31, %cst_30 {dimension_numbers = #tpu.dot_dimension_numbers<[1], [0], [0], [1], [0, 0, 1, 1], [], []>} : vector<24x128xbf16>, vector<128x128xbf16>, vector<24x128xf32> -> vector<24x128xf32>
      %33 = arith.addf %27, %32 : vector<24x128xf32>
      %c0_31 = arith.constant 0 : index
      %c0_32 = arith.constant 0 : index
      %c7 = arith.constant 7 : index
      %c0_33 = arith.constant 0 : index
      %34 = vector.load %arg3[%c0_31, %c0_32, %c7, %c0_33] : memref<1x1x38x128xbf16, #tpu.memory_space<vmem>>, vector<1x1x24x128xbf16>
      %35 = vector.shape_cast %34 : vector<1x1x24x128xbf16> to vector<24x128xbf16>
      %c4 = arith.constant 4 : index
      %c0_34 = arith.constant 0 : index
      %c0_35 = arith.constant 0 : index
      %36 = vector.load %arg5[%c4, %c0_34, %c0_35] : memref<9x128x128xbf16, #tpu.memory_space<vmem>>, vector<1x128x128xbf16>
      %37 = vector.shape_cast %36 : vector<1x128x128xbf16> to vector<128x128xbf16>
      %cst_36 = arith.constant dense<0.000000e+00> : vector<24x128xf32>
      %38 = tpu.matmul %35, %37, %cst_36 {dimension_numbers = #tpu.dot_dimension_numbers<[1], [0], [0], [1], [0, 0, 1, 1], [], []>} : vector<24x128xbf16>, vector<128x128xbf16>, vector<24x128xf32> -> vector<24x128xf32>
      %39 = arith.addf %33, %38 : vector<24x128xf32>
      %c0_37 = arith.constant 0 : index
      %c0_38 = arith.constant 0 : index
      %c8 = arith.constant 8 : index
      %c0_39 = arith.constant 0 : index
      %40 = vector.load %arg3[%c0_37, %c0_38, %c8, %c0_39] : memref<1x1x38x128xbf16, #tpu.memory_space<vmem>>, vector<1x1x24x128xbf16>
      %41 = vector.shape_cast %40 : vector<1x1x24x128xbf16> to vector<24x128xbf16>
      %c5 = arith.constant 5 : index
      %c0_40 = arith.constant 0 : index
      %c0_41 = arith.constant 0 : index
      %42 = vector.load %arg5[%c5, %c0_40, %c0_41] : memref<9x128x128xbf16, #tpu.memory_space<vmem>>, vector<1x128x128xbf16>
      %43 = vector.shape_cast %42 : vector<1x128x128xbf16> to vector<128x128xbf16>
      %cst_42 = arith.constant dense<0.000000e+00> : vector<24x128xf32>
      %44 = tpu.matmul %41, %43, %cst_42 {dimension_numbers = #tpu.dot_dimension_numbers<[1], [0], [0], [1], [0, 0, 1, 1], [], []>} : vector<24x128xbf16>, vector<128x128xbf16>, vector<24x128xf32> -> vector<24x128xf32>
      %45 = arith.addf %39, %44 : vector<24x128xf32>
      %c0_43 = arith.constant 0 : index
      %c0_44 = arith.constant 0 : index
      %c12 = arith.constant 12 : index
      %c0_45 = arith.constant 0 : index
      %46 = vector.load %arg3[%c0_43, %c0_44, %c12, %c0_45] : memref<1x1x38x128xbf16, #tpu.memory_space<vmem>>, vector<1x1x24x128xbf16>
      %47 = vector.shape_cast %46 : vector<1x1x24x128xbf16> to vector<24x128xbf16>
      %c6_46 = arith.constant 6 : index
      %c0_47 = arith.constant 0 : index
      %c0_48 = arith.constant 0 : index
      %48 = vector.load %arg5[%c6_46, %c0_47, %c0_48] : memref<9x128x128xbf16, #tpu.memory_space<vmem>>, vector<1x128x128xbf16>
      %49 = vector.shape_cast %48 : vector<1x128x128xbf16> to vector<128x128xbf16>
      %cst_49 = arith.constant dense<0.000000e+00> : vector<24x128xf32>
      %50 = tpu.matmul %47, %49, %cst_49 {dimension_numbers = #tpu.dot_dimension_numbers<[1], [0], [0], [1], [0, 0, 1, 1], [], []>} : vector<24x128xbf16>, vector<128x128xbf16>, vector<24x128xf32> -> vector<24x128xf32>
      %51 = arith.addf %45, %50 : vector<24x128xf32>
      %c0_50 = arith.constant 0 : index
      %c0_51 = arith.constant 0 : index
      %c13 = arith.constant 13 : index
      %c0_52 = arith.constant 0 : index
      %52 = vector.load %arg3[%c0_50, %c0_51, %c13, %c0_52] : memref<1x1x38x128xbf16, #tpu.memory_space<vmem>>, vector<1x1x24x128xbf16>
      %53 = vector.shape_cast %52 : vector<1x1x24x128xbf16> to vector<24x128xbf16>
      %c7_53 = arith.constant 7 : index
      %c0_54 = arith.constant 0 : index
      %c0_55 = arith.constant 0 : index
      %54 = vector.load %arg5[%c7_53, %c0_54, %c0_55] : memref<9x128x128xbf16, #tpu.memory_space<vmem>>, vector<1x128x128xbf16>
      %55 = vector.shape_cast %54 : vector<1x128x128xbf16> to vector<128x128xbf16>
      %cst_56 = arith.constant dense<0.000000e+00> : vector<24x128xf32>
      %56 = tpu.matmul %53, %55, %cst_56 {dimension_numbers = #tpu.dot_dimension_numbers<[1], [0], [0], [1], [0, 0, 1, 1], [], []>} : vector<24x128xbf16>, vector<128x128xbf16>, vector<24x128xf32> -> vector<24x128xf32>
      %57 = arith.addf %51, %56 : vector<24x128xf32>
      %c0_57 = arith.constant 0 : index
      %c0_58 = arith.constant 0 : index
      %c14 = arith.constant 14 : index
      %c0_59 = arith.constant 0 : index
      %58 = vector.load %arg3[%c0_57, %c0_58, %c14, %c0_59] : memref<1x1x38x128xbf16, #tpu.memory_space<vmem>>, vector<1x1x24x128xbf16>
      %59 = vector.shape_cast %58 : vector<1x1x24x128xbf16> to vector<24x128xbf16>
      %c8_60 = arith.constant 8 : index
      %c0_61 = arith.constant 0 : index
      %c0_62 = arith.constant 0 : index
      %60 = vector.load %arg5[%c8_60, %c0_61, %c0_62] : memref<9x128x128xbf16, #tpu.memory_space<vmem>>, vector<1x128x128xbf16>
      %61 = vector.shape_cast %60 : vector<1x128x128xbf16> to vector<128x128xbf16>
      %cst_63 = arith.constant dense<0.000000e+00> : vector<24x128xf32>
      %62 = tpu.matmul %59, %61, %cst_63 {dimension_numbers = #tpu.dot_dimension_numbers<[1], [0], [0], [1], [0, 0, 1, 1], [], []>} : vector<24x128xbf16>, vector<128x128xbf16>, vector<24x128xf32> -> vector<24x128xf32>
      %63 = arith.addf %57, %62 : vector<24x128xf32>
      %c0_64 = arith.constant 0 : index
      %c0_65 = arith.constant 0 : index
      %64 = vector.load %arg6[%c0_64, %c0_65] : memref<1x128xf32, #tpu.memory_space<vmem>>, vector<1x128xf32>
      %65 = vector.broadcast %64 : vector<1x128xf32> to vector<24x128xf32>
      %66 = arith.addf %63, %65 : vector<24x128xf32>
      %c0_66 = arith.constant 0 : index
      %c0_67 = arith.constant 0 : index
      %67 = vector.load %arg4[%c0_66, %c0_67] : memref<24x1xf32, #tpu.memory_space<vmem>>, vector<24x1xf32>
      %c0_68 = arith.constant 0 : index
      %c0_69 = arith.constant 0 : index
      %68 = vector.load %arg11[%c0_68, %c0_69] : memref<1x128xf32, #tpu.memory_space<vmem>>, vector<1x128xf32>
      %69 = vector.broadcast %67 : vector<24x1xf32> to vector<24x128xf32>
      %70 = arith.mulf %66, %69 : vector<24x128xf32>
      %cst_70 = arith.constant dense<0.000000e+00> : vector<128xf32>
      %71 = vector.multi_reduction <add>, %70, %cst_70 [0] : vector<24x128xf32> to vector<128xf32>
      %72 = vector.shape_cast %71 : vector<128xf32> to vector<1x128xf32>
      %73 = arith.addf %68, %72 : vector<1x128xf32>
      %c0_71 = arith.constant 0 : index
      %c0_72 = arith.constant 0 : index
      %74 = vector.load %arg11[%c0_71, %c0_72] : memref<1x128xf32, #tpu.memory_space<vmem>>, vector<1x128xf32>
      tpu.vector_store %arg11[%c0_71, %c0_72], %73 {strides = array<i32>} : memref<1x128xf32, #tpu.memory_space<vmem>>, vector<1x128xf32>,
      %c0_73 = arith.constant 0 : index
      %c0_74 = arith.constant 0 : index
      %75 = vector.load %arg12[%c0_73, %c0_74] : memref<1x128xf32, #tpu.memory_space<vmem>>, vector<1x128xf32>
      %76 = arith.mulf %66, %66 : vector<24x128xf32>
      %77 = vector.broadcast %67 : vector<24x1xf32> to vector<24x128xf32>
      %78 = arith.mulf %76, %77 : vector<24x128xf32>
      %cst_75 = arith.constant dense<0.000000e+00> : vector<128xf32>
      %79 = vector.multi_reduction <add>, %78, %cst_75 [0] : vector<24x128xf32> to vector<128xf32>
      %80 = vector.shape_cast %79 : vector<128xf32> to vector<1x128xf32>
      %81 = arith.addf %75, %80 : vector<1x128xf32>
      %c0_76 = arith.constant 0 : index
      %c0_77 = arith.constant 0 : index
      %82 = vector.load %arg12[%c0_76, %c0_77] : memref<1x128xf32, #tpu.memory_space<vmem>>, vector<1x128xf32>
      tpu.vector_store %arg12[%c0_76, %c0_77], %81 {strides = array<i32>} : memref<1x128xf32, #tpu.memory_space<vmem>>, vector<1x128xf32>,
      %cst_78 = arith.constant 0.000000e+00 : f32
      %83 = vector.broadcast %cst_78 : f32 to vector<24x512xf32>
      %c0_79 = arith.constant 0 : index
      %c0_80 = arith.constant 0 : index
      %c0_81 = arith.constant 0 : index
      %c0_82 = arith.constant 0 : index
      %84 = vector.load %arg10[%c0_79, %c0_80, %c0_81, %c0_82] : memref<1x1x24x512xf32, #tpu.memory_space<vmem>>, vector<1x1x24x512xf32>
      %85 = vector.shape_cast %84 : vector<1x1x24x512xf32> to vector<24x512xf32>
      %86 = vector.shape_cast %83 : vector<24x512xf32> to vector<1x1x24x512xf32>
      tpu.vector_store %arg10[%c0_79, %c0_80, %c0_81, %c0_82], %86 {strides = array<i32>} : memref<1x1x24x512xf32, #tpu.memory_space<vmem>>, vector<1x1x24x512xf32>,
    } else {
    }
    %c1_i32 = arith.constant 1 : i32
    %3 = arith.cmpi eq, %arg1, %c1_i32 : i32
    %4 = arith.extui %3 : i1 to i32
    %c0_i32_1 = arith.constant 0 : i32
    %5 = arith.cmpi ne, %4, %c0_i32_1 : i32
    scf.if %5 {
      %cst = arith.constant 0.000000e+00 : f32
      %6 = vector.broadcast %cst : f32 to vector<24x128xf32>
      %c0 = arith.constant 0 : index
      %c0_2 = arith.constant 0 : index
      %c0_3 = arith.constant 0 : index
      %c0_4 = arith.constant 0 : index
      %7 = vector.load %arg3[%c0, %c0_2, %c0_3, %c0_4] : memref<1x1x38x128xbf16, #tpu.memory_space<vmem>>, vector<1x1x24x128xbf16>
      %8 = vector.shape_cast %7 : vector<1x1x24x128xbf16> to vector<24x128xbf16>
      %c0_5 = arith.constant 0 : index
      %c0_6 = arith.constant 0 : index
      %c0_7 = arith.constant 0 : index
      %9 = vector.load %arg5[%c0_5, %c0_6, %c0_7] : memref<9x128x128xbf16, #tpu.memory_space<vmem>>, vector<1x128x128xbf16>
      %10 = vector.shape_cast %9 : vector<1x128x128xbf16> to vector<128x128xbf16>
      %cst_8 = arith.constant dense<0.000000e+00> : vector<24x128xf32>
      %11 = tpu.matmul %8, %10, %cst_8 {dimension_numbers = #tpu.dot_dimension_numbers<[1], [0], [0], [1], [0, 0, 1, 1], [], []>} : vector<24x128xbf16>, vector<128x128xbf16>, vector<24x128xf32> -> vector<24x128xf32>
      %12 = arith.addf %6, %11 : vector<24x128xf32>
      %c0_9 = arith.constant 0 : index
      %c0_10 = arith.constant 0 : index
      %c1 = arith.constant 1 : index
      %c0_11 = arith.constant 0 : index
      %13 = vector.load %arg3[%c0_9, %c0_10, %c1, %c0_11] : memref<1x1x38x128xbf16, #tpu.memory_space<vmem>>, vector<1x1x24x128xbf16>
      %14 = vector.shape_cast %13 : vector<1x1x24x128xbf16> to vector<24x128xbf16>
      %c1_12 = arith.constant 1 : index
      %c0_13 = arith.constant 0 : index
      %c0_14 = arith.constant 0 : index
      %15 = vector.load %arg5[%c1_12, %c0_13, %c0_14] : memref<9x128x128xbf16, #tpu.memory_space<vmem>>, vector<1x128x128xbf16>
      %16 = vector.shape_cast %15 : vector<1x128x128xbf16> to vector<128x128xbf16>
      %cst_15 = arith.constant dense<0.000000e+00> : vector<24x128xf32>
      %17 = tpu.matmul %14, %16, %cst_15 {dimension_numbers = #tpu.dot_dimension_numbers<[1], [0], [0], [1], [0, 0, 1, 1], [], []>} : vector<24x128xbf16>, vector<128x128xbf16>, vector<24x128xf32> -> vector<24x128xf32>
      %18 = arith.addf %12, %17 : vector<24x128xf32>
      %c0_16 = arith.constant 0 : index
      %c0_17 = arith.constant 0 : index
      %c2 = arith.constant 2 : index
      %c0_18 = arith.constant 0 : index
      %19 = vector.load %arg3[%c0_16, %c0_17, %c2, %c0_18] : memref<1x1x38x128xbf16, #tpu.memory_space<vmem>>, vector<1x1x24x128xbf16>
      %20 = vector.shape_cast %19 : vector<1x1x24x128xbf16> to vector<24x128xbf16>
      %c2_19 = arith.constant 2 : index
      %c0_20 = arith.constant 0 : index
      %c0_21 = arith.constant 0 : index
      %21 = vector.load %arg5[%c2_19, %c0_20, %c0_21] : memref<9x128x128xbf16, #tpu.memory_space<vmem>>, vector<1x128x128xbf16>
      %22 = vector.shape_cast %21 : vector<1x128x128xbf16> to vector<128x128xbf16>
      %cst_22 = arith.constant dense<0.000000e+00> : vector<24x128xf32>
      %23 = tpu.matmul %20, %22, %cst_22 {dimension_numbers = #tpu.dot_dimension_numbers<[1], [0], [0], [1], [0, 0, 1, 1], [], []>} : vector<24x128xbf16>, vector<128x128xbf16>, vector<24x128xf32> -> vector<24x128xf32>
      %24 = arith.addf %18, %23 : vector<24x128xf32>
      %c0_23 = arith.constant 0 : index
      %c0_24 = arith.constant 0 : index
      %c6 = arith.constant 6 : index
      %c0_25 = arith.constant 0 : index
      %25 = vector.load %arg3[%c0_23, %c0_24, %c6, %c0_25] : memref<1x1x38x128xbf16, #tpu.memory_space<vmem>>, vector<1x1x24x128xbf16>
      %26 = vector.shape_cast %25 : vector<1x1x24x128xbf16> to vector<24x128xbf16>
      %c3 = arith.constant 3 : index
      %c0_26 = arith.constant 0 : index
      %c0_27 = arith.constant 0 : index
      %27 = vector.load %arg5[%c3, %c0_26, %c0_27] : memref<9x128x128xbf16, #tpu.memory_space<vmem>>, vector<1x128x128xbf16>
      %28 = vector.shape_cast %27 : vector<1x128x128xbf16> to vector<128x128xbf16>
      %cst_28 = arith.constant dense<0.000000e+00> : vector<24x128xf32>
      %29 = tpu.matmul %26, %28, %cst_28 {dimension_numbers = #tpu.dot_dimension_numbers<[1], [0], [0], [1], [0, 0, 1, 1], [], []>} : vector<24x128xbf16>, vector<128x128xbf16>, vector<24x128xf32> -> vector<24x128xf32>
      %30 = arith.addf %24, %29 : vector<24x128xf32>
      %c0_29 = arith.constant 0 : index
      %c0_30 = arith.constant 0 : index
      %c7 = arith.constant 7 : index
      %c0_31 = arith.constant 0 : index
      %31 = vector.load %arg3[%c0_29, %c0_30, %c7, %c0_31] : memref<1x1x38x128xbf16, #tpu.memory_space<vmem>>, vector<1x1x24x128xbf16>
      %32 = vector.shape_cast %31 : vector<1x1x24x128xbf16> to vector<24x128xbf16>
      %c4 = arith.constant 4 : index
      %c0_32 = arith.constant 0 : index
      %c0_33 = arith.constant 0 : index
      %33 = vector.load %arg5[%c4, %c0_32, %c0_33] : memref<9x128x128xbf16, #tpu.memory_space<vmem>>, vector<1x128x128xbf16>
      %34 = vector.shape_cast %33 : vector<1x128x128xbf16> to vector<128x128xbf16>
      %cst_34 = arith.constant dense<0.000000e+00> : vector<24x128xf32>
      %35 = tpu.matmul %32, %34, %cst_34 {dimension_numbers = #tpu.dot_dimension_numbers<[1], [0], [0], [1], [0, 0, 1, 1], [], []>} : vector<24x128xbf16>, vector<128x128xbf16>, vector<24x128xf32> -> vector<24x128xf32>
      %36 = arith.addf %30, %35 : vector<24x128xf32>
      %c0_35 = arith.constant 0 : index
      %c0_36 = arith.constant 0 : index
      %c8 = arith.constant 8 : index
      %c0_37 = arith.constant 0 : index
      %37 = vector.load %arg3[%c0_35, %c0_36, %c8, %c0_37] : memref<1x1x38x128xbf16, #tpu.memory_space<vmem>>, vector<1x1x24x128xbf16>
      %38 = vector.shape_cast %37 : vector<1x1x24x128xbf16> to vector<24x128xbf16>
      %c5 = arith.constant 5 : index
      %c0_38 = arith.constant 0 : index
      %c0_39 = arith.constant 0 : index
      %39 = vector.load %arg5[%c5, %c0_38, %c0_39] : memref<9x128x128xbf16, #tpu.memory_space<vmem>>, vector<1x128x128xbf16>
      %40 = vector.shape_cast %39 : vector<1x128x128xbf16> to vector<128x128xbf16>
      %cst_40 = arith.constant dense<0.000000e+00> : vector<24x128xf32>
      %41 = tpu.matmul %38, %40, %cst_40 {dimension_numbers = #tpu.dot_dimension_numbers<[1], [0], [0], [1], [0, 0, 1, 1], [], []>} : vector<24x128xbf16>, vector<128x128xbf16>, vector<24x128xf32> -> vector<24x128xf32>
      %42 = arith.addf %36, %41 : vector<24x128xf32>
      %c0_41 = arith.constant 0 : index
      %c0_42 = arith.constant 0 : index
      %c12 = arith.constant 12 : index
      %c0_43 = arith.constant 0 : index
      %43 = vector.load %arg3[%c0_41, %c0_42, %c12, %c0_43] : memref<1x1x38x128xbf16, #tpu.memory_space<vmem>>, vector<1x1x24x128xbf16>
      %44 = vector.shape_cast %43 : vector<1x1x24x128xbf16> to vector<24x128xbf16>
      %c6_44 = arith.constant 6 : index
      %c0_45 = arith.constant 0 : index
      %c0_46 = arith.constant 0 : index
      %45 = vector.load %arg5[%c6_44, %c0_45, %c0_46] : memref<9x128x128xbf16, #tpu.memory_space<vmem>>, vector<1x128x128xbf16>
      %46 = vector.shape_cast %45 : vector<1x128x128xbf16> to vector<128x128xbf16>
      %cst_47 = arith.constant dense<0.000000e+00> : vector<24x128xf32>
      %47 = tpu.matmul %44, %46, %cst_47 {dimension_numbers = #tpu.dot_dimension_numbers<[1], [0], [0], [1], [0, 0, 1, 1], [], []>} : vector<24x128xbf16>, vector<128x128xbf16>, vector<24x128xf32> -> vector<24x128xf32>
      %48 = arith.addf %42, %47 : vector<24x128xf32>
      %c0_48 = arith.constant 0 : index
      %c0_49 = arith.constant 0 : index
      %c13 = arith.constant 13 : index
      %c0_50 = arith.constant 0 : index
      %49 = vector.load %arg3[%c0_48, %c0_49, %c13, %c0_50] : memref<1x1x38x128xbf16, #tpu.memory_space<vmem>>, vector<1x1x24x128xbf16>
      %50 = vector.shape_cast %49 : vector<1x1x24x128xbf16> to vector<24x128xbf16>
      %c7_51 = arith.constant 7 : index
      %c0_52 = arith.constant 0 : index
      %c0_53 = arith.constant 0 : index
      %51 = vector.load %arg5[%c7_51, %c0_52, %c0_53] : memref<9x128x128xbf16, #tpu.memory_space<vmem>>, vector<1x128x128xbf16>
      %52 = vector.shape_cast %51 : vector<1x128x128xbf16> to vector<128x128xbf16>
      %cst_54 = arith.constant dense<0.000000e+00> : vector<24x128xf32>
      %53 = tpu.matmul %50, %52, %cst_54 {dimension_numbers = #tpu.dot_dimension_numbers<[1], [0], [0], [1], [0, 0, 1, 1], [], []>} : vector<24x128xbf16>, vector<128x128xbf16>, vector<24x128xf32> -> vector<24x128xf32>
      %54 = arith.addf %48, %53 : vector<24x128xf32>
      %c0_55 = arith.constant 0 : index
      %c0_56 = arith.constant 0 : index
      %c14 = arith.constant 14 : index
      %c0_57 = arith.constant 0 : index
      %55 = vector.load %arg3[%c0_55, %c0_56, %c14, %c0_57] : memref<1x1x38x128xbf16, #tpu.memory_space<vmem>>, vector<1x1x24x128xbf16>
      %56 = vector.shape_cast %55 : vector<1x1x24x128xbf16> to vector<24x128xbf16>
      %c8_58 = arith.constant 8 : index
      %c0_59 = arith.constant 0 : index
      %c0_60 = arith.constant 0 : index
      %57 = vector.load %arg5[%c8_58, %c0_59, %c0_60] : memref<9x128x128xbf16, #tpu.memory_space<vmem>>, vector<1x128x128xbf16>
      %58 = vector.shape_cast %57 : vector<1x128x128xbf16> to vector<128x128xbf16>
      %cst_61 = arith.constant dense<0.000000e+00> : vector<24x128xf32>
      %59 = tpu.matmul %56, %58, %cst_61 {dimension_numbers = #tpu.dot_dimension_numbers<[1], [0], [0], [1], [0, 0, 1, 1], [], []>} : vector<24x128xbf16>, vector<128x128xbf16>, vector<24x128xf32> -> vector<24x128xf32>
      %60 = arith.addf %54, %59 : vector<24x128xf32>
      %c0_62 = arith.constant 0 : index
      %c0_63 = arith.constant 0 : index
      %61 = vector.load %arg6[%c0_62, %c0_63] : memref<1x128xf32, #tpu.memory_space<vmem>>, vector<1x128xf32>
      %62 = vector.broadcast %61 : vector<1x128xf32> to vector<24x128xf32>
      %63 = arith.addf %60, %62 : vector<24x128xf32>
      %c0_64 = arith.constant 0 : index
      %c0_65 = arith.constant 0 : index
      %64 = vector.load %arg11[%c0_64, %c0_65] : memref<1x128xf32, #tpu.memory_space<vmem>>, vector<1x128xf32>
      %cst_66 = arith.constant 3.125000e-02 : f32
      %65 = vector.broadcast %cst_66 : f32 to vector<1x128xf32>
      %66 = arith.mulf %64, %65 : vector<1x128xf32>
      %c0_67 = arith.constant 0 : index
      %c0_68 = arith.constant 0 : index
      %67 = vector.load %arg12[%c0_67, %c0_68] : memref<1x128xf32, #tpu.memory_space<vmem>>, vector<1x128xf32>
      %cst_69 = arith.constant 3.125000e-02 : f32
      %68 = vector.broadcast %cst_69 : f32 to vector<1x128xf32>
      %69 = arith.mulf %67, %68 : vector<1x128xf32>
      %70 = arith.mulf %66, %66 : vector<1x128xf32>
      %71 = arith.subf %69, %70 : vector<1x128xf32>
      %72 = vector.broadcast %66 : vector<1x128xf32> to vector<24x128xf32>
      %73 = arith.subf %63, %72 : vector<24x128xf32>
      %cst_70 = arith.constant 9.99999974E-6 : f32
      %74 = vector.broadcast %cst_70 : f32 to vector<1x128xf32>
      %75 = arith.addf %71, %74 : vector<1x128xf32>
      %76 = math.rsqrt %75 : vector<1x128xf32>
      %77 = vector.broadcast %76 : vector<1x128xf32> to vector<24x128xf32>
      %78 = arith.mulf %73, %77 : vector<24x128xf32>
      %c0_71 = arith.constant 0 : index
      %c0_72 = arith.constant 0 : index
      %79 = vector.load %arg7[%c0_71, %c0_72] : memref<1x128xf32, #tpu.memory_space<vmem>>, vector<1x128xf32>
      %80 = vector.broadcast %79 : vector<1x128xf32> to vector<24x128xf32>
      %81 = arith.mulf %78, %80 : vector<24x128xf32>
      %c0_73 = arith.constant 0 : index
      %c0_74 = arith.constant 0 : index
      %82 = vector.load %arg8[%c0_73, %c0_74] : memref<1x128xf32, #tpu.memory_space<vmem>>, vector<1x128xf32>
      %83 = vector.broadcast %82 : vector<1x128xf32> to vector<24x128xf32>
      %84 = arith.addf %81, %83 : vector<24x128xf32>
      %cst_75 = arith.constant 0.000000e+00 : f32
      %85 = vector.broadcast %cst_75 : f32 to vector<24x128xf32>
      %86 = arith.maximumf %84, %85 : vector<24x128xf32>
      %87 = arith.truncf %86 : vector<24x128xf32> to vector<24x128xbf16>
      %c0_76 = arith.constant 0 : index
      %c0_77 = arith.constant 0 : index
      %88 = vector.load %arg9[%c0_76, %c0_77] : memref<128x512xbf16, #tpu.memory_space<vmem>>, vector<128x512xbf16>
      %cst_78 = arith.constant dense<0.000000e+00> : vector<24x512xf32>
      %89 = tpu.matmul %87, %88, %cst_78 {dimension_numbers = #tpu.dot_dimension_numbers<[1], [0], [0], [1], [0, 0, 1, 1], [], []>} : vector<24x128xbf16>, vector<128x512xbf16>, vector<24x512xf32> -> vector<24x512xf32>
      %c0_79 = arith.constant 0 : index
      %c0_80 = arith.constant 0 : index
      %c0_81 = arith.constant 0 : index
      %c0_82 = arith.constant 0 : index
      %90 = vector.load %arg10[%c0_79, %c0_80, %c0_81, %c0_82] : memref<1x1x24x512xf32, #tpu.memory_space<vmem>>, vector<1x1x24x512xf32>
      %91 = vector.shape_cast %90 : vector<1x1x24x512xf32> to vector<24x512xf32>
      %92 = vector.shape_cast %89 : vector<24x512xf32> to vector<1x1x24x512xf32>
      tpu.vector_store %arg10[%c0_79, %c0_80, %c0_81, %c0_82], %92 {strides = array<i32>} : memref<1x1x24x512xf32, #tpu.memory_space<vmem>>, vector<1x1x24x512xf32>,
    } else {
    }
    return
  }
  func.func @transform_0(%arg0: i32, %arg1: i32, %arg2: i32) -> (i32, i32, i32, i32) {
    %c0_i32 = arith.constant 0 : i32
    %c0_i32_0 = arith.constant 0 : i32
    %c0_i32_1 = arith.constant 0 : i32
    return %arg0, %arg2, %c0_i32, %c0_i32_0 : i32, i32, i32, i32
  }
  func.func @transform_1(%arg0: i32, %arg1: i32, %arg2: i32) -> (i32, i32) {
    %c0_i32 = arith.constant 0 : i32
    %c0_i32_0 = arith.constant 0 : i32
    %c0_i32_1 = arith.constant 0 : i32
    return %c0_i32, %c0_i32_0 : i32, i32
  }
  func.func @transform_2(%arg0: i32, %arg1: i32, %arg2: i32) -> (i32, i32, i32) {
    %c0_i32 = arith.constant 0 : i32
    %c0_i32_0 = arith.constant 0 : i32
    %c0_i32_1 = arith.constant 0 : i32
    %c0_i32_2 = arith.constant 0 : i32
    return %c0_i32, %c0_i32_0, %c0_i32_1 : i32, i32, i32
  }
  func.func @transform_3(%arg0: i32, %arg1: i32, %arg2: i32) -> (i32, i32) {
    %c0_i32 = arith.constant 0 : i32
    %c0_i32_0 = arith.constant 0 : i32
    %c0_i32_1 = arith.constant 0 : i32
    return %c0_i32, %c0_i32_0 : i32, i32
  }
  func.func @transform_4(%arg0: i32, %arg1: i32, %arg2: i32) -> (i32, i32) {
    %c0_i32 = arith.constant 0 : i32
    %c0_i32_0 = arith.constant 0 : i32
    %c0_i32_1 = arith.constant 0 : i32
    return %c0_i32, %c0_i32_0 : i32, i32
  }
  func.func @transform_5(%arg0: i32, %arg1: i32, %arg2: i32) -> (i32, i32) {
    %c0_i32 = arith.constant 0 : i32
    %c0_i32_0 = arith.constant 0 : i32
    %c0_i32_1 = arith.constant 0 : i32
    return %c0_i32, %c0_i32_0 : i32, i32
  }
  func.func @transform_6(%arg0: i32, %arg1: i32, %arg2: i32) -> (i32, i32) {
    %c0_i32 = arith.constant 0 : i32
    %c0_i32_0 = arith.constant 0 : i32
    %c0_i32_1 = arith.constant 0 : i32
    return %c0_i32, %c0_i32_0 : i32, i32
  }
  func.func @transform_7(%arg0: i32, %arg1: i32, %arg2: i32) -> (i32, i32, i32, i32) {
    %c0_i32 = arith.constant 0 : i32
    %c0_i32_0 = arith.constant 0 : i32
    %c0_i32_1 = arith.constant 0 : i32
    return %arg0, %arg2, %c0_i32, %c0_i32_0 : i32, i32, i32, i32
  }
}

module attributes {stable_mosaic.version = 11 : i64} {
  func.func @_final_kernel(%arg0: i32, %arg1: i32, %arg2: memref<1x1x182x128xbf16, #tpu.memory_space<vmem>>, %arg3: memref<1x9x128x128xbf16, #tpu.memory_space<vmem>>, %arg4: memref<1x128xf32, #tpu.memory_space<vmem>>, %arg5: memref<1x144x128xf32, #tpu.memory_space<vmem>>, %arg6: memref<144x128xf32, #tpu.memory_space<vmem>>) attributes {dimension_semantics = [#tpu.dimension_semantics<parallel>, #tpu.dimension_semantics<arbitrary>], iteration_bounds = array<i64: 4, 6>, scalar_prefetch = 0 : i64, scratch_operands = 1 : i64, tpu.core_type = #tpu.core_type<tc>, window_params = [{transform_indices = @transform_0, window_bounds = array<i64: 1, 1, 182, 128>}, {transform_indices = @transform_1, window_bounds = array<i64: 1, 9, 128, 128>}, {pipeline_mode = #tpu.pipeline_mode<synchronous>, transform_indices = @transform_2, window_bounds = array<i64: 1, 128>}, {transform_indices = @transform_3, window_bounds = array<i64: 1, 144, 128>}]} {
    %c0_i32 = arith.constant 0 : i32
    %0 = arith.cmpi eq, %arg1, %c0_i32 : i32
    %1 = arith.extui %0 : i1 to i32
    %c0_i32_0 = arith.constant 0 : i32
    %2 = arith.cmpi ne, %1, %c0_i32_0 : i32
    scf.if %2 {
      %cst_71 = arith.constant 0.000000e+00 : f32
      %62 = vector.broadcast %cst_71 : f32 to vector<144x128xf32>
      %c0_72 = arith.constant 0 : index
      %c0_73 = arith.constant 0 : index
      %63 = vector.load %arg6[%c0_72, %c0_73] : memref<144x128xf32, #tpu.memory_space<vmem>>, vector<144x128xf32>
      tpu.vector_store %arg6[%c0_72, %c0_73], %62 {strides = array<i32>} : memref<144x128xf32, #tpu.memory_space<vmem>>, vector<144x128xf32>,
    } else {
    }
    %c0 = arith.constant 0 : index
    %c0_1 = arith.constant 0 : index
    %3 = vector.load %arg6[%c0, %c0_1] : memref<144x128xf32, #tpu.memory_space<vmem>>, vector<144x128xf32>
    %c0_2 = arith.constant 0 : index
    %c0_3 = arith.constant 0 : index
    %c0_4 = arith.constant 0 : index
    %c0_5 = arith.constant 0 : index
    %4 = vector.load %arg2[%c0_2, %c0_3, %c0_4, %c0_5] : memref<1x1x182x128xbf16, #tpu.memory_space<vmem>>, vector<1x1x144x128xbf16>
    %5 = vector.shape_cast %4 : vector<1x1x144x128xbf16> to vector<144x128xbf16>
    %c0_6 = arith.constant 0 : index
    %c0_7 = arith.constant 0 : index
    %c0_8 = arith.constant 0 : index
    %c0_9 = arith.constant 0 : index
    %6 = vector.load %arg3[%c0_6, %c0_7, %c0_8, %c0_9] : memref<1x9x128x128xbf16, #tpu.memory_space<vmem>>, vector<1x1x128x128xbf16>
    %7 = vector.shape_cast %6 : vector<1x1x128x128xbf16> to vector<128x128xbf16>
    %cst = arith.constant dense<0.000000e+00> : vector<144x128xf32>
    %8 = tpu.matmul %5, %7, %cst {dimension_numbers = #tpu.dot_dimension_numbers<[1], [0], [0], [1], [0, 0, 1, 1], [], []>} : vector<144x128xbf16>, vector<128x128xbf16>, vector<144x128xf32> -> vector<144x128xf32>
    %9 = arith.addf %3, %8 : vector<144x128xf32>
    %c0_10 = arith.constant 0 : index
    %c0_11 = arith.constant 0 : index
    %c1 = arith.constant 1 : index
    %c0_12 = arith.constant 0 : index
    %10 = vector.load %arg2[%c0_10, %c0_11, %c1, %c0_12] : memref<1x1x182x128xbf16, #tpu.memory_space<vmem>>, vector<1x1x144x128xbf16>
    %11 = vector.shape_cast %10 : vector<1x1x144x128xbf16> to vector<144x128xbf16>
    %c0_13 = arith.constant 0 : index
    %c1_14 = arith.constant 1 : index
    %c0_15 = arith.constant 0 : index
    %c0_16 = arith.constant 0 : index
    %12 = vector.load %arg3[%c0_13, %c1_14, %c0_15, %c0_16] : memref<1x9x128x128xbf16, #tpu.memory_space<vmem>>, vector<1x1x128x128xbf16>
    %13 = vector.shape_cast %12 : vector<1x1x128x128xbf16> to vector<128x128xbf16>
    %cst_17 = arith.constant dense<0.000000e+00> : vector<144x128xf32>
    %14 = tpu.matmul %11, %13, %cst_17 {dimension_numbers = #tpu.dot_dimension_numbers<[1], [0], [0], [1], [0, 0, 1, 1], [], []>} : vector<144x128xbf16>, vector<128x128xbf16>, vector<144x128xf32> -> vector<144x128xf32>
    %15 = arith.addf %9, %14 : vector<144x128xf32>
    %c0_18 = arith.constant 0 : index
    %c0_19 = arith.constant 0 : index
    %c2 = arith.constant 2 : index
    %c0_20 = arith.constant 0 : index
    %16 = vector.load %arg2[%c0_18, %c0_19, %c2, %c0_20] : memref<1x1x182x128xbf16, #tpu.memory_space<vmem>>, vector<1x1x144x128xbf16>
    %17 = vector.shape_cast %16 : vector<1x1x144x128xbf16> to vector<144x128xbf16>
    %c0_21 = arith.constant 0 : index
    %c2_22 = arith.constant 2 : index
    %c0_23 = arith.constant 0 : index
    %c0_24 = arith.constant 0 : index
    %18 = vector.load %arg3[%c0_21, %c2_22, %c0_23, %c0_24] : memref<1x9x128x128xbf16, #tpu.memory_space<vmem>>, vector<1x1x128x128xbf16>
    %19 = vector.shape_cast %18 : vector<1x1x128x128xbf16> to vector<128x128xbf16>
    %cst_25 = arith.constant dense<0.000000e+00> : vector<144x128xf32>
    %20 = tpu.matmul %17, %19, %cst_25 {dimension_numbers = #tpu.dot_dimension_numbers<[1], [0], [0], [1], [0, 0, 1, 1], [], []>} : vector<144x128xbf16>, vector<128x128xbf16>, vector<144x128xf32> -> vector<144x128xf32>
    %21 = arith.addf %15, %20 : vector<144x128xf32>
    %c0_26 = arith.constant 0 : index
    %c0_27 = arith.constant 0 : index
    %c18 = arith.constant 18 : index
    %c0_28 = arith.constant 0 : index
    %22 = vector.load %arg2[%c0_26, %c0_27, %c18, %c0_28] : memref<1x1x182x128xbf16, #tpu.memory_space<vmem>>, vector<1x1x144x128xbf16>
    %23 = vector.shape_cast %22 : vector<1x1x144x128xbf16> to vector<144x128xbf16>
    %c0_29 = arith.constant 0 : index
    %c3 = arith.constant 3 : index
    %c0_30 = arith.constant 0 : index
    %c0_31 = arith.constant 0 : index
    %24 = vector.load %arg3[%c0_29, %c3, %c0_30, %c0_31] : memref<1x9x128x128xbf16, #tpu.memory_space<vmem>>, vector<1x1x128x128xbf16>
    %25 = vector.shape_cast %24 : vector<1x1x128x128xbf16> to vector<128x128xbf16>
    %cst_32 = arith.constant dense<0.000000e+00> : vector<144x128xf32>
    %26 = tpu.matmul %23, %25, %cst_32 {dimension_numbers = #tpu.dot_dimension_numbers<[1], [0], [0], [1], [0, 0, 1, 1], [], []>} : vector<144x128xbf16>, vector<128x128xbf16>, vector<144x128xf32> -> vector<144x128xf32>
    %27 = arith.addf %21, %26 : vector<144x128xf32>
    %c0_33 = arith.constant 0 : index
    %c0_34 = arith.constant 0 : index
    %c19 = arith.constant 19 : index
    %c0_35 = arith.constant 0 : index
    %28 = vector.load %arg2[%c0_33, %c0_34, %c19, %c0_35] : memref<1x1x182x128xbf16, #tpu.memory_space<vmem>>, vector<1x1x144x128xbf16>
    %29 = vector.shape_cast %28 : vector<1x1x144x128xbf16> to vector<144x128xbf16>
    %c0_36 = arith.constant 0 : index
    %c4 = arith.constant 4 : index
    %c0_37 = arith.constant 0 : index
    %c0_38 = arith.constant 0 : index
    %30 = vector.load %arg3[%c0_36, %c4, %c0_37, %c0_38] : memref<1x9x128x128xbf16, #tpu.memory_space<vmem>>, vector<1x1x128x128xbf16>
    %31 = vector.shape_cast %30 : vector<1x1x128x128xbf16> to vector<128x128xbf16>
    %cst_39 = arith.constant dense<0.000000e+00> : vector<144x128xf32>
    %32 = tpu.matmul %29, %31, %cst_39 {dimension_numbers = #tpu.dot_dimension_numbers<[1], [0], [0], [1], [0, 0, 1, 1], [], []>} : vector<144x128xbf16>, vector<128x128xbf16>, vector<144x128xf32> -> vector<144x128xf32>
    %33 = arith.addf %27, %32 : vector<144x128xf32>
    %c0_40 = arith.constant 0 : index
    %c0_41 = arith.constant 0 : index
    %c20 = arith.constant 20 : index
    %c0_42 = arith.constant 0 : index
    %34 = vector.load %arg2[%c0_40, %c0_41, %c20, %c0_42] : memref<1x1x182x128xbf16, #tpu.memory_space<vmem>>, vector<1x1x144x128xbf16>
    %35 = vector.shape_cast %34 : vector<1x1x144x128xbf16> to vector<144x128xbf16>
    %c0_43 = arith.constant 0 : index
    %c5 = arith.constant 5 : index
    %c0_44 = arith.constant 0 : index
    %c0_45 = arith.constant 0 : index
    %36 = vector.load %arg3[%c0_43, %c5, %c0_44, %c0_45] : memref<1x9x128x128xbf16, #tpu.memory_space<vmem>>, vector<1x1x128x128xbf16>
    %37 = vector.shape_cast %36 : vector<1x1x128x128xbf16> to vector<128x128xbf16>
    %cst_46 = arith.constant dense<0.000000e+00> : vector<144x128xf32>
    %38 = tpu.matmul %35, %37, %cst_46 {dimension_numbers = #tpu.dot_dimension_numbers<[1], [0], [0], [1], [0, 0, 1, 1], [], []>} : vector<144x128xbf16>, vector<128x128xbf16>, vector<144x128xf32> -> vector<144x128xf32>
    %39 = arith.addf %33, %38 : vector<144x128xf32>
    %c0_47 = arith.constant 0 : index
    %c0_48 = arith.constant 0 : index
    %c36 = arith.constant 36 : index
    %c0_49 = arith.constant 0 : index
    %40 = vector.load %arg2[%c0_47, %c0_48, %c36, %c0_49] : memref<1x1x182x128xbf16, #tpu.memory_space<vmem>>, vector<1x1x144x128xbf16>
    %41 = vector.shape_cast %40 : vector<1x1x144x128xbf16> to vector<144x128xbf16>
    %c0_50 = arith.constant 0 : index
    %c6 = arith.constant 6 : index
    %c0_51 = arith.constant 0 : index
    %c0_52 = arith.constant 0 : index
    %42 = vector.load %arg3[%c0_50, %c6, %c0_51, %c0_52] : memref<1x9x128x128xbf16, #tpu.memory_space<vmem>>, vector<1x1x128x128xbf16>
    %43 = vector.shape_cast %42 : vector<1x1x128x128xbf16> to vector<128x128xbf16>
    %cst_53 = arith.constant dense<0.000000e+00> : vector<144x128xf32>
    %44 = tpu.matmul %41, %43, %cst_53 {dimension_numbers = #tpu.dot_dimension_numbers<[1], [0], [0], [1], [0, 0, 1, 1], [], []>} : vector<144x128xbf16>, vector<128x128xbf16>, vector<144x128xf32> -> vector<144x128xf32>
    %45 = arith.addf %39, %44 : vector<144x128xf32>
    %c0_54 = arith.constant 0 : index
    %c0_55 = arith.constant 0 : index
    %c37 = arith.constant 37 : index
    %c0_56 = arith.constant 0 : index
    %46 = vector.load %arg2[%c0_54, %c0_55, %c37, %c0_56] : memref<1x1x182x128xbf16, #tpu.memory_space<vmem>>, vector<1x1x144x128xbf16>
    %47 = vector.shape_cast %46 : vector<1x1x144x128xbf16> to vector<144x128xbf16>
    %c0_57 = arith.constant 0 : index
    %c7 = arith.constant 7 : index
    %c0_58 = arith.constant 0 : index
    %c0_59 = arith.constant 0 : index
    %48 = vector.load %arg3[%c0_57, %c7, %c0_58, %c0_59] : memref<1x9x128x128xbf16, #tpu.memory_space<vmem>>, vector<1x1x128x128xbf16>
    %49 = vector.shape_cast %48 : vector<1x1x128x128xbf16> to vector<128x128xbf16>
    %cst_60 = arith.constant dense<0.000000e+00> : vector<144x128xf32>
    %50 = tpu.matmul %47, %49, %cst_60 {dimension_numbers = #tpu.dot_dimension_numbers<[1], [0], [0], [1], [0, 0, 1, 1], [], []>} : vector<144x128xbf16>, vector<128x128xbf16>, vector<144x128xf32> -> vector<144x128xf32>
    %51 = arith.addf %45, %50 : vector<144x128xf32>
    %c0_61 = arith.constant 0 : index
    %c0_62 = arith.constant 0 : index
    %c38 = arith.constant 38 : index
    %c0_63 = arith.constant 0 : index
    %52 = vector.load %arg2[%c0_61, %c0_62, %c38, %c0_63] : memref<1x1x182x128xbf16, #tpu.memory_space<vmem>>, vector<1x1x144x128xbf16>
    %53 = vector.shape_cast %52 : vector<1x1x144x128xbf16> to vector<144x128xbf16>
    %c0_64 = arith.constant 0 : index
    %c8 = arith.constant 8 : index
    %c0_65 = arith.constant 0 : index
    %c0_66 = arith.constant 0 : index
    %54 = vector.load %arg3[%c0_64, %c8, %c0_65, %c0_66] : memref<1x9x128x128xbf16, #tpu.memory_space<vmem>>, vector<1x1x128x128xbf16>
    %55 = vector.shape_cast %54 : vector<1x1x128x128xbf16> to vector<128x128xbf16>
    %cst_67 = arith.constant dense<0.000000e+00> : vector<144x128xf32>
    %56 = tpu.matmul %53, %55, %cst_67 {dimension_numbers = #tpu.dot_dimension_numbers<[1], [0], [0], [1], [0, 0, 1, 1], [], []>} : vector<144x128xbf16>, vector<128x128xbf16>, vector<144x128xf32> -> vector<144x128xf32>
    %57 = arith.addf %51, %56 : vector<144x128xf32>
    %c0_68 = arith.constant 0 : index
    %c0_69 = arith.constant 0 : index
    %58 = vector.load %arg6[%c0_68, %c0_69] : memref<144x128xf32, #tpu.memory_space<vmem>>, vector<144x128xf32>
    tpu.vector_store %arg6[%c0_68, %c0_69], %57 {strides = array<i32>} : memref<144x128xf32, #tpu.memory_space<vmem>>, vector<144x128xf32>,
    %c5_i32 = arith.constant 5 : i32
    %59 = arith.cmpi eq, %arg1, %c5_i32 : i32
    %60 = arith.extui %59 : i1 to i32
    %c0_i32_70 = arith.constant 0 : i32
    %61 = arith.cmpi ne, %60, %c0_i32_70 : i32
    scf.if %61 {
      %c0_71 = arith.constant 0 : index
      %c0_72 = arith.constant 0 : index
      %62 = vector.load %arg6[%c0_71, %c0_72] : memref<144x128xf32, #tpu.memory_space<vmem>>, vector<144x128xf32>
      %c0_73 = arith.constant 0 : index
      %c0_74 = arith.constant 0 : index
      %63 = vector.load %arg4[%c0_73, %c0_74] : memref<1x128xf32, #tpu.memory_space<vmem>>, vector<1x128xf32>
      %64 = vector.broadcast %63 : vector<1x128xf32> to vector<144x128xf32>
      %65 = arith.addf %62, %64 : vector<144x128xf32>
      %c0_75 = arith.constant 0 : index
      %c0_76 = arith.constant 0 : index
      %c0_77 = arith.constant 0 : index
      %66 = vector.load %arg5[%c0_75, %c0_76, %c0_77] : memref<1x144x128xf32, #tpu.memory_space<vmem>>, vector<1x144x128xf32>
      %67 = vector.shape_cast %66 : vector<1x144x128xf32> to vector<144x128xf32>
      %68 = vector.shape_cast %65 : vector<144x128xf32> to vector<1x144x128xf32>
      tpu.vector_store %arg5[%c0_75, %c0_76, %c0_77], %68 {strides = array<i32>} : memref<1x144x128xf32, #tpu.memory_space<vmem>>, vector<1x144x128xf32>,
    } else {
    }
    return
  }
  func.func @transform_0(%arg0: i32, %arg1: i32) -> (i32, i32, i32, i32) {
    %c0_i32 = arith.constant 0 : i32
    %c0_i32_0 = arith.constant 0 : i32
    %c0_i32_1 = arith.constant 0 : i32
    return %arg1, %arg0, %c0_i32, %c0_i32_0 : i32, i32, i32, i32
  }
  func.func @transform_1(%arg0: i32, %arg1: i32) -> (i32, i32, i32, i32) {
    %c0_i32 = arith.constant 0 : i32
    %c0_i32_0 = arith.constant 0 : i32
    %c0_i32_1 = arith.constant 0 : i32
    %c0_i32_2 = arith.constant 0 : i32
    return %arg1, %c0_i32, %c0_i32_0, %c0_i32_1 : i32, i32, i32, i32
  }
  func.func @transform_2(%arg0: i32, %arg1: i32) -> (i32, i32) {
    %c0_i32 = arith.constant 0 : i32
    %c0_i32_0 = arith.constant 0 : i32
    %c0_i32_1 = arith.constant 0 : i32
    return %c0_i32, %c0_i32_0 : i32, i32
  }
  func.func @transform_3(%arg0: i32, %arg1: i32) -> (i32, i32, i32) {
    %c0_i32 = arith.constant 0 : i32
    %c0_i32_0 = arith.constant 0 : i32
    %c0_i32_1 = arith.constant 0 : i32
    return %arg0, %c0_i32, %c0_i32_0 : i32, i32, i32
  }
}

</mosaic_0001>

<bundles_post_ra>
// kernel: msc_forward.6
= control target key start
LH: loop header
LB: loop body
LE: loop exit
PB: predicated region body
PF: predicated region fallthrough
CT: control target
= control target key end

     0   :  { %s6317_s24 = smov 0   ;;  %s6319_s25 = smov 0   ;;  %s7954_s0 = inlined_call_operand.vmem [shape: bf16[1,2,102,128], index: 0, kind: input, shape index: {}]   ;;  %s7955_s1 = inlined_call_operand.vmem [shape: f32[80,1], index: 1, kind: input, shape index: {}]   ;;  %s7956_s2 = inlined_call_operand.vmem [shape: bf16[9,128,128], index: 2, kind: input, shape index: {}]   ;;  %s7957_s3 = inlined_call_operand.vmem [shape: f32[1,128], index: 3, kind: input, shape index: {}]   ;;  %s7958_s4 = inlined_call_operand.vmem [shape: f32[1,128], index: 4, kind: input, shape index: {}]   ;;  %s7959_s5 = inlined_call_operand.vmem [shape: f32[1,128], index: 5, kind: input, shape index: {}]   ;;  %s7960_s6 = inlined_call_operand.vmem [shape: bf16[128,512], index: 6, kind: input, shape index: {}]   ;;  %s7961_s7 = inlined_call_operand.vmem [shape: f32[1,2,80,512], index: 7, kind: output, shape index: {}]  }
   0x1   :  { %s6321_s26 = smov 0   ;;  %s6323_s27 = smov 0  }
   0x2   :  { %s6325_s28 = smov 0  }
   0x3 LB: > { %s29_s29 = sadd.s32 1, %s6260_s26  ;;  %s32_s30 = sadd.s32 1, %s6264_s27  ;;  %s6268_s28 = sphi %s6325_s28, %s17_s28   ;;  %s6264_s27 = sphi %s6323_s27, %s7965_s27   ;;  %s6260_s26 = sphi %s6321_s26, %s7964_s26   ;;  %s6256_s25 = sphi %s6319_s25, %s7963_s25   ;;  %s6252_s24 = sphi %s6317_s24, %s7962_s24  }
   0x4   : > { %p30_p0 = scmp.ge.s32.totalorder %s29_s29, 2  ;;  %p4534_p1 = scmp.ge.s32.totalorder %s6268_s28, 1 }
   0x5   : > { %p264_p2 = scmp.lt.s32.totalorder %s6268_s28, 5 }
   0x6   : > { %s7967_s29 = smov (%p30_p0, %s29_s29), 0  ;;  %s7969_s30 = smov (!%p30_p0, %s32_s30), %s6264_s27 }
   0x7   : > { %p265_p3 = pnand %p4534_p1, %p264_p2  ;;  %p34_p4 = scmp.ge.s32.totalorder %s7969_s30, 2 }
   0x8   : > { %p306_p5 = scmp.lt.s32.totalorder (!%p265_p3), %s6252_s24, 1  ;;  %p4537_p6 = scmp.ne.s32.totalorder (!%p265_p3), %s6256_s25, 0 }
   0x9   : > { %s7971_s30 = smov (%p34_p4, %s7969_s30), 0  ;;  %268 = sbr.rel (%p265_p3) target bundleno = 1175 (0x497), region = 48 }
  0x10   : > { %s307_s8 = scalar_select %p306_p5, %s6252_s24, 1 }
  0x11   : > { %326 = sbr.rel (%p4537_p6) target bundleno = 487 (0x1e7), region = 52  ;;  %p4538_p7 = scmp.ne.s32.totalorder (!%p4537_p6), %s6252_s24, 0 }
  0x12   : > { %s5938_s9 = smul.u32 52, %s307_s8 }
  0x13   : > { %s5939_s10 = smul.u32 320, %s307_s8 }
  0x14   : > { %s6352_s13 = scalar_lea.vmem %s7954_s0, %s5938_s9 }
  0x15   : > { %s6357_s16 = scalar_lea.vmem %s7961_s7, %s5939_s10 }
  0x18   : > { %330 = sbr.rel (%p4538_p7) target bundleno = 31 (0x1f), region = 56  ;;  %v6270_v0 = vmov (!%p4538_p7), 0.0  }
  0x19   : > { %331 = vst [vmem:[#allocation2] sm:$0x1] (!%p4538_p7), %v6270_v0  ;;  %332 = vst [vmem:[#allocation3] sm:$0x1] (!%p4538_p7), %v6270_v0 }
  0x1f PF: > { %v5989_v1 = vld [vmem:[%s7956_s2 + $0x40] sm:$0xff]   ;;  %v6271_v2 = vmov 0.0   ;;  %v5991_v4 = vld [vmem:[%s7956_s2 + $0x48] sm:$0xff]   ;;  %vm6272_vm0 = vmmov 0   ;;  %v5993_v6 = vld [vmem:[%s7956_s2 + $0x50] sm:$0xff]   ;;  %vm723_vm2 = vcmask 1046528  }
  0x20   : > { %5258 = vmatprep.subr.bf16.mxu0 %v6271_v2  ;;  %2180 = vst [vmem:[%s6357_s16] sm:$0xff] %v6271_v2  ;;  %2181 = vst [vmem:[%s6357_s16 + $0x8] sm:$0xff] %v6271_v2  ;;  %5294 = vmatprep.subr.bf16.mxu1 %v6271_v2  ;;  %v5990_v3 = vld [vmem:[%s7956_s2] sm:$0xff]   ;;  %v5992_v5 = vld [vmem:[%s7956_s2 + $0x8] sm:$0xff]   ;;  %vm405_vm1 = vsmask.f32 7424  ;;  %vm1306_vm4 = vcmask 1045504  }
  0x21   : > { %2182 = vst [vmem:[%s6357_s16 + $0x10] sm:$0xff] %v6271_v2  ;;  %2183 = vst [vmem:[%s6357_s16 + $0x18] sm:$0xff] %v6271_v2  ;;  %5259 = vmatpush3.bf16.msra.mxu0 %v5989_v1  ;;  %5274 = vmatprep.mubr.msk.bf16.mxu0 %vm6272_vm0, %v6271_v2  ;;  %v5994_v7 = vld [vmem:[%s7956_s2 + $0x10] sm:$0xff]   ;;  %v5995_v8 = vld [vmem:[%s7956_s2 + $0x58] sm:$0xff]   ;;  %vm1095_vm3 = vsmask.f32 6400 }
  0x22   : > { %2184 = vst [vmem:[%s6357_s16 + $0x20] sm:$0xff] %v6271_v2  ;;  %2185 = vst [vmem:[%s6357_s16 + $0x28] sm:$0xff] %v6271_v2  ;;  %5295 = vmatpush3.bf16.msra.mxu1 %v5990_v3  ;;  %5260 = vmatprep.subr.bf16.mxu0 %v6271_v2  ;;  %v5996_v9 = vld [vmem:[%s7956_s2 + $0x18] sm:$0xff]   ;;  %v5997_v10 = vld [vmem:[%s7956_s2 + $0x60] sm:$0xff]   ;;  %vm1678_vm5 = vsmask.f32 5376 }
  0x23   : > { %2186 = vst [vmem:[%s6357_s16 + $0x30] sm:$0xff] %v6271_v2  ;;  %2187 = vst [vmem:[%s6357_s16 + $0x38] sm:$0xff] %v6271_v2  ;;  %5296 = vmatprep.subr.bf16.mxu1 %v6271_v2  ;;  %5310 = vmatprep.mubr.msk.bf16.mxu1 %vm6272_vm0, %v6271_v2  ;;  %v5998_v11 = vld [vmem:[%s7956_s2 + $0x20] sm:$0xff]   ;;  %v5999_v14 = vld [vmem:[%s7956_s2 + $0x68] sm:$0xff]   ;;  %vm1889_vm6 = vcmask 1044480  }
  0x24   : > { %2188 = vst [vmem:[%s6357_s16 + $0x40] sm:$0xff] %v6271_v2  ;;  %2189 = vst [vmem:[%s6357_s16 + $0x48] sm:$0xff] %v6271_v2  ;;  %v333_v12 = vld [vmem:[%s6352_s13] sm:$0xf]  ;;  %v6486_v13 = vld [vmem:[%s6352_s13 + $0x4] sm:$0xf] }
  0x25   : > { %2190 = vst [vmem:[%s6357_s16 + $0x50] sm:$0xff] %v6271_v2  ;;  %2191 = vst [vmem:[%s6357_s16 + $0x58] sm:$0xff] %v6271_v2  ;;  %5261 = vmatpush3.bf16.msra.mxu0 %v5991_v4  ;;  %v4555_v15 = vcombine.low %v333_v12, %v6486_v13  ;;  %v6493_v16 = vld [vmem:[%s6352_s13 + $0x8] sm:$0xff]   ;;  %v6001_v19 = vld [vmem:[%s7956_s2 + $0x70] sm:$0xff]  }
  0x26   : > { %2192 = vst [vmem:[%s6357_s16 + $0x60] sm:$0xff] %v6271_v2  ;;  %2193 = vst [vmem:[%s6357_s16 + $0x68] sm:$0xff] %v6271_v2  ;;  %5297 = vmatpush3.bf16.msra.mxu1 %v5992_v5  ;;  %5262 = vmatprep.subr.bf16.mxu0 %v6271_v2  ;;  %v6000_v17 = vld [vmem:[%s7956_s2 + $0x28] sm:$0xff]   ;;  %v414_v22 = vshll.u32 %v6493_v16, 16  ;;  %v6002_v23 = vld [vmem:[%s7956_s2 + $0x30] sm:$0xff]   ;;  %v418_v31 = vshrl.u32 %v6493_v16, 16 }
  0x27   : > { %2194 = vst [vmem:[%s6357_s16 + $0x70] sm:$0xff] %v6271_v2  ;;  %2195 = vst [vmem:[%s6357_s16 + $0x78] sm:$0xff] %v6271_v2  ;;  %5298 = vmatprep.subr.bf16.mxu1 %v6271_v2  ;;  %v409_v18 = vshll.u32 %v4555_v15, 16  ;;  %v407_v20 = vshrl.u32 %v4555_v15, 16  ;;  %v6003_v24 = vld [vmem:[%s7956_s2 + $0x78] sm:$0xff]   ;;  %v6516_v28 = vld [vmem:[%s6352_s13 + $0x10] sm:$0xff]  }
  0x28   : > { %2196 = vst [vmem:[%s6357_s16 + $0x80] sm:$0xff] %v6271_v2  ;;  %2197 = vst [vmem:[%s6357_s16 + $0x88] sm:$0xff] %v6271_v2  ;;  %v6004_v25 = vld [vmem:[%s7956_s2 + $0x38] sm:$0xff]   ;;  %v416_v27 = vrot.slane %v414_v22, 1  ;;  %v6007_v29 = vld [vmem:[%s7956_s2 + $0x80] sm:$0xff]   ;;  %v422_v32 = vshll.u32 %v6516_v28, 16 }
  0x29   : > { %2198 = vst [vmem:[%s6357_s16 + $0x90] sm:$0xff] %v6271_v2  ;;  %2199 = vst [vmem:[%s6357_s16 + $0x98] sm:$0xff] %v6271_v2  ;;  %5263 = vmatpush3.bf16.msra.mxu0 %v5993_v6  ;;  %v411_v21 = vrot.slane %v409_v18, 1  ;;  %v6010_v33 = vld [vmem:[%s7956_s2 + $0xc0] sm:$0xff]   ;;  %v6532_v34 = vld [vmem:[%s6352_s13 + $0x18] sm:$0xff]   ;;  %v426_v42 = vshrl.u32 %v6516_v28, 16 }
  0x2a   : > { %2200 = vst [vmem:[%s6357_s16 + $0xa0] sm:$0xff] %v6271_v2  ;;  %2201 = vst [vmem:[%s6357_s16 + $0xa8] sm:$0xff] %v6271_v2  ;;  %5299 = vmatpush3.bf16.msra.mxu1 %v5994_v7  ;;  %5264 = vmatprep.subr.bf16.mxu0 %v6271_v2  ;;  %v6008_v35 = vld [vmem:[%s7956_s2 + $0x88] sm:$0xff]   ;;  %v420_v36 = vor.u32 %v418_v31, %v416_v27  ;;  %v424_v37 = vrot.slane %v422_v32, 1  ;;  %v430_v39 = vshll.u32 %v6532_v34, 16  ;;  %v6011_v41 = vld [vmem:[%s7956_s2 + $0x90] sm:$0xff]  }
  0x2b   : > { %2202 = vst [vmem:[%s6357_s16 + $0xb0] sm:$0xff] %v6271_v2  ;;  %2203 = vst [vmem:[%s6357_s16 + $0xb8] sm:$0xff] %v6271_v2  ;;  %5300 = vmatprep.subr.bf16.mxu1 %v6271_v2  ;;  %v412_v26 = vor.u32 %v411_v21, %v407_v20  ;;  %v6012_v38 = vld [vmem:[%s7956_s2 + $0xc8] sm:$0xff]   ;;  %v6015_v43 = vld [vmem:[%s7956_s2 + $0xd0] sm:$0xff]   ;;  %v434_v51 = vshrl.u32 %v6532_v34, 16  ;;  %v727_v22 = vrot.slane %v6516_v28, 1 }
  0x2c   : > { %2204 = vst [vmem:[%s6357_s16 + $0xc0] sm:$0xff] %v6271_v2  ;;  %2205 = vst [vmem:[%s6357_s16 + $0xc8] sm:$0xff] %v6271_v2  ;;  %v425_v40 = vsel %vm405_vm1, %v420_v36, %v424_v37  ;;  %v432_v44 = vrot.slane %v430_v39, 1  ;;  %v6014_v45 = vld [vmem:[%s7956_s2 + $0x98] sm:$0xff]   ;;  %v6561_v46 = vld [vmem:[%s6352_s13 + $0x20] sm:$0xff]   ;;  %v428_v47 = vor.u32 %v426_v42, %v424_v37 }
  0x2d   : > { %2206 = vst [vmem:[%s6357_s16 + $0xd0] sm:$0xff] %v6271_v2  ;;  %2207 = vst [vmem:[%s6357_s16 + $0xd8] sm:$0xff] %v6271_v2  ;;  %5265 = vmatpush3.bf16.msra.mxu0 %v5995_v8  ;;  %v417_v30 = vsel %vm405_vm1, %v412_v26, %v416_v27  ;;  %v6017_v48 = vld [vmem:[%s7956_s2 + $0xd8] sm:$0xff]   ;;  %v6016_v49 = vld [vmem:[%s7956_s2 + $0xa0] sm:$0xff]   ;;  %v438_v52 = vshll.u32 %v6561_v46, 16  ;;  %v442_v60 = vshrl.u32 %v6561_v46, 16 }
  0x2e   : > { %2208 = vst [vmem:[%s6357_s16 + $0xe0] sm:$0xff] %v6271_v2  ;;  %2209 = vst [vmem:[%s6357_s16 + $0xe8] sm:$0xff] %v6271_v2  ;;  %5301 = vmatpush3.bf16.msra.mxu1 %v5996_v9  ;;  %5266 = vmatprep.subr.bf16.mxu0 %v6271_v2  ;;  %v433_v50 = vsel %vm405_vm1, %v428_v47, %v432_v44  ;;  %v6019_v53 = vld [vmem:[%s7956_s2 + $0xe0] sm:$0xff]   ;;  %v6584_v54 = vld [vmem:[%s6352_s13 + $0x28] ss:$0 sps:$4 sm:$0x11]   ;;  %v436_v55 = vor.u32 %v434_v51, %v432_v44 }
  0x2f   : > { %2210 = vst [vmem:[%s6357_s16 + $0xf0] sm:$0xff] %v6271_v2  ;;  %2211 = vst [vmem:[%s6357_s16 + $0xf8] sm:$0xff] %v6271_v2  ;;  %5302 = vmatprep.subr.bf16.mxu1 %v6271_v2  ;;  %v440_v56 = vrot.slane %v438_v52, 1  ;;  %v6020_v57 = vld [vmem:[%s7956_s2 + $0xa8] sm:$0xff]   ;;  %v446_v61 = vshll.u32 %v6584_v54, 16  ;;  %v6022_v62 = vld [vmem:[%s7956_s2 + $0xb0] sm:$0xff]  }
  0x30   : > { %2212 = vst [vmem:[%s6357_s16 + $0x100] sm:$0xff] %v6271_v2  ;;  %2213 = vst [vmem:[%s6357_s16 + $0x108] sm:$0xff] %v6271_v2  ;;  %v6021_v58 = vld [vmem:[%s7956_s2 + $0xe8] sm:$0xff]   ;;  %v6024_v63 = vld [vmem:[%s7956_s2 + $0xf0] sm:$0xff]   ;;  %v731_v39 = vrot.slane %v6561_v46, 1 }
  0x31   : > { %2214 = vst [vmem:[%s6357_s16 + $0x110] sm:$0xff] %v6271_v2  ;;  %2215 = vst [vmem:[%s6357_s16 + $0x118] sm:$0xff] %v6271_v2  ;;  %5267 = vmatpush3.bf16.msra.mxu0 %v5997_v10  ;;  %v441_v59 = vsel %vm405_vm1, %v436_v55, %v440_v56  ;;  %v6025_v0 = vld [vmem:[%s7956_s2 + $0xb8] sm:$0xff]   ;;  %v444_v1 = vor.u32 %v442_v60, %v440_v56  ;;  %v448_v3 = vrot.slane %v446_v61, 1  ;;  %v702_v5 = vld [vmem:[%s6352_s13] sm:$0xe] }
  0x32   : > { %2216 = vst [vmem:[%s6357_s16 + $0x120] sm:$0xff] %v6271_v2  ;;  %2217 = vst [vmem:[%s6357_s16 + $0x128] sm:$0xff] %v6271_v2  ;;  %5303 = vmatpush3.bf16.msra.mxu1 %v5998_v11  ;;  %5268 = vmatprep.subr.bf16.mxu0 %v6271_v2  ;;  %v6026_v4 = vld [vmem:[%s7956_s2 + $0xf8] sm:$0xff]   ;;  %v871_v6 = vld [vmem:[%s6352_s13 + $0x4] sm:$0xe]  ;;  %v4593_v9 = vcombine.low %v702_v5, %v6486_v13  ;;  %v725_v13 = vrot.slane %v6493_v16, 1 }
  0x33   : > { %2218 = vst [vmem:[%s6357_s16 + $0x130] sm:$0xff] %v6271_v2  ;;  %2219 = vst [vmem:[%s6357_s16 + $0x138] sm:$0xff] %v6271_v2  ;;  %5304 = vmatprep.subr.bf16.mxu1 %v6271_v2  ;;  %v6626_v7 = vld [vmem:[%s6352_s13 + $0x8] sm:$0xf]  ;;  %v449_v8 = vsel %vm405_vm1, %v444_v1, %v448_v3  ;;  %v6635_v11 = vld [vmem:[%s6352_s13 + $0xc] sm:$0xff]  }
  0x34   : > { %v6632_v10 = vcombine.low %v871_v6, %v6626_v7  ;;  %v724_v12 = vrot.slane %v4593_v9, 1  ;;  %v6030_v18 = vld [vmem:[%s7956_s2 + $0x100] sm:$0xff]   ;;  %v6653_v20 = vld [vmem:[%s6352_s13 + $0x14] sm:$0xff]   ;;  %v6031_v21 = vld [vmem:[%s7956_s2 + $0x108] sm:$0xff]   ;;  %v1105_v51 = vshrl.u32 %v6635_v11, 16  ;;  %v1108_v52 = vshll.u32 %v6635_v11, 16 }
  0x35   : > { %5269 = vmatpush3.bf16.msra.mxu0 %v5999_v14  ;;  %v6034_v26 = vld [vmem:[%s7956_s2 + $0x110] sm:$0xff]   ;;  %v6037_v31 = vld [vmem:[%s7956_s2 + $0x118] sm:$0xff]   ;;  %v6706_v37 = vld [vmem:[%s6352_s13 + $0x24] sm:$0xff]   ;;  %v1114_v3 = vshrl.u32 %v6653_v20, 16  ;;  %v1308_v6 = vrot.slane %v6635_v11, 2 }
  0x36   : > { %5305 = vmatpush3.bf16.msra.mxu1 %v6000_v17  ;;  %5270 = vmatprep.subr.bf16.mxu0 %v6271_v2  ;;  %v927_v14 = vrot.slane %v6632_v10, 1  ;;  %v726_v17 = vsel %vm723_vm2, %v724_v12, %v725_v13  ;;  %v6044_v42 = vld [vmem:[%s7956_s2 + $0x168] sm:$0xff]   ;;  %v6047_v47 = vld [vmem:[%s7956_s2 + $0x170] sm:$0xff]   ;;  %v6049_v55 = vld [vmem:[%s7956_s2 + $0x178] sm:$0xff]   ;;  %v1107_v60 = vrot.slane %v1105_v51, 1  ;;  %v1110_v61 = vrot.slane %v1108_v52, 2 }
  0x37   : > { %5306 = vmatprep.subr.bf16.mxu1 %v6271_v2  ;;  %v6046_v44 = vld [vmem:[%s6352_s13 + $0x2c] ss:$0 sps:$4 sm:$0x11]   ;;  %v1285_v56 = vld [vmem:[%s6352_s13 + $0x4] sm:$0xc]  ;;  %v1116_v9 = vrot.slane %v1114_v3, 1 }
  0x38   : > { %v1111_v1 = vor.u32 %v1110_v61, %v1107_v60  ;;  %v6854_v52 = vld [vmem:[%s6352_s13 + $0x10] sm:$0xff]   ;;  %v6067_v61 = vld [vmem:[%s7956_s2 + $0x1f8] sm:$0xff]  }
  0x39   : > { %5271 = vmatpush3.bf16.msra.mxu0 %v6001_v19  ;;  %v1691_v60 = vshll.u32 %v6854_v52, 16 }
  0x3a   : > { %5307 = vmatpush3.bf16.msra.mxu1 %v6002_v23  ;;  %5272 = vmatprep.subr.bf16.mxu0 %v6271_v2  ;;  %v930_v23 = vrot.slane %v6653_v20, 1 }
  0x3b   : > { %5308 = vmatprep.subr.bf16.mxu1 %v6271_v2 }
  0x3d   : > { %5273 = vmatpush3.bf16.msra.mxu0 %v6003_v24  ;;  %v6035_v24 = vld [vmem:[%s7956_s2 + $0x148] sm:$0xff]  }
  0x3e   : > { %5309 = vmatpush3.bf16.msra.mxu1 %v6004_v25  ;;  %5330 = vmatprep.subr.bf16.mxu0 %v6271_v2  ;;  %v728_v25 = vsel %vm723_vm2, %v725_v13, %v727_v22  ;;  %v6053_v13 = vld [vmem:[%s7956_s2 + $0x1c0] sm:$0xff]  }
  0x3f   : > { %5366 = vmatprep.subr.bf16.mxu1 %v6271_v2 }
  0x40   : > { %5275 = vmatmul.mubr.bf16.vlgmr.msra.gmra.mrb[0].mxu0 %v417_v30  ;;  %v729_v30 = vrot.slane %v6532_v34, 1 }
  0x41   : > { %5311 = vmatmul.mubr.bf16.vlgmr.msra.gmra.mrb[0].mxu1 %v4555_v15  ;;  %5331 = vmatpush3.bf16.msra.mxu0 %v6007_v29  ;;  %v928_v15 = vrot.slane %v6635_v11, 1  ;;  %v6038_v29 = vld [vmem:[%s7956_s2 + $0x150] sm:$0xff]   ;;  %v6052_v11 = vld [vmem:[%s7956_s2 + $0x188] sm:$0xff]  }
  0x42   : > { %5332 = vmatprep.subr.bf16.mxu0 %v6271_v2  ;;  %5278 = vmatprep.mubr.msk.bf16.mxu0 %vm6272_vm0, %v6271_v2 }
  0x43   : > { %5314 = vmatprep.mubr.msk.bf16.mxu1 %vm6272_vm0, %v6271_v2  ;;  %5367 = vmatpush3.bf16.msra.mxu1 %v6010_v33  ;;  %v929_v19 = vsel %vm723_vm2, %v927_v14, %v928_v15  ;;  %v931_v27 = vsel %vm723_vm2, %v928_v15, %v930_v23  ;;  %v6040_v33 = vld [vmem:[%s7956_s2 + $0x158] sm:$0xff]  }
  0x44   : > { %5368 = vmatprep.subr.bf16.mxu1 %v6271_v2 }
  0x45   : > { %5333 = vmatpush3.bf16.msra.mxu0 %v6008_v35  ;;  %v6039_v35 = vld [vmem:[%s7956_s2 + $0x120] sm:$0xff]  }
  0x46   : > { %5334 = vmatprep.subr.bf16.mxu0 %v6271_v2 }
  0x47   : > { %5369 = vmatpush3.bf16.msra.mxu1 %v6012_v38  ;;  %v6042_v38 = vld [vmem:[%s7956_s2 + $0x160] sm:$0xff]  }
  0x48   : > { %5279 = vmatmul.mubr.bf16.gmra.mrb[4].mxu0 %v425_v40  ;;  %5370 = vmatprep.subr.bf16.mxu1 %v6271_v2  ;;  %v6043_v40 = vld [vmem:[%s7956_s2 + $0x128] sm:$0xff]  }
  0x49   : > { %5315 = vmatmul.mubr.bf16.gmra.mrb[4].mxu1 %v6493_v16  ;;  %5335 = vmatpush3.bf16.msra.mxu0 %v6011_v41  ;;  %v6033_v16 = vld [vmem:[%s7956_s2 + $0x140] sm:$0xff]   ;;  %v934_v41 = vrot.slane %v6706_v37, 1 }
  0x4a   : > { %5282 = vmatprep.mubr.msk.bf16.mxu0 %vm6272_vm0, %v6271_v2  ;;  %5318 = vmatprep.mubr.msk.bf16.mxu1 %vm6272_vm0, %v6271_v2 }
  0x4b   : > { %5336 = vmatprep.subr.bf16.mxu0 %v6271_v2  ;;  %5371 = vmatpush3.bf16.msra.mxu1 %v6015_v43  ;;  %v732_v43 = vsel %vm723_vm2, %v729_v30, %v731_v39 }
  0x4c   : > { %5372 = vmatprep.subr.bf16.mxu1 %v6271_v2 }
  0x4d   : > { %5337 = vmatpush3.bf16.msra.mxu0 %v6014_v45 }
  0x4e   : > { %5338 = vmatprep.subr.bf16.mxu0 %v6271_v2 }
  0x4f   : > { %5373 = vmatpush3.bf16.msra.mxu1 %v6017_v48  ;;  %v733_v48 = vrot.slane %v6584_v54, 1  ;;  %v6048_v54 = vld [vmem:[%s7956_s2 + $0x138] sm:$0xff]  }
  0x50   : > { %5283 = vmatmul.mubr.bf16.gmra.mrb[8].mxu0 %v433_v50  ;;  %5374 = vmatprep.subr.bf16.mxu1 %v6271_v2  ;;  %v1100_v50 = vshll.u32 %v6632_v10, 16 }
  0x51   : > { %5319 = vmatmul.mubr.bf16.gmra.mrb[8].mxu1 %v6516_v28  ;;  %5339 = vmatpush3.bf16.msra.mxu0 %v6016_v49  ;;  %v6679_v28 = vld [vmem:[%s6352_s13 + $0x1c] sm:$0xff]   ;;  %v1097_v49 = vshrl.u32 %v6632_v10, 16 }
  0x52   : > { %5286 = vmatprep.mubr.msk.bf16.mxu0 %vm6272_vm0, %v6271_v2  ;;  %5322 = vmatprep.mubr.msk.bf16.mxu1 %vm6272_vm0, %v6271_v2  ;;  %v932_v32 = vrot.slane %v6679_v28, 1  ;;  %v1123_v15 = vshrl.u32 %v6679_v28, 16 }
  0x53   : > { %5340 = vmatprep.subr.bf16.mxu0 %v6271_v2  ;;  %5375 = vmatpush3.bf16.msra.mxu1 %v6019_v53  ;;  %v936_v53 = vrot.slane %v6046_v44, 1  ;;  %v6062_v44 = vld [vmem:[%s7956_s2 + $0x1e8] sm:$0xff]  }
  0x54   : > { %5376 = vmatprep.subr.bf16.mxu1 %v6271_v2  ;;  %v933_v36 = vsel %vm723_vm2, %v930_v23, %v932_v32  ;;  %v935_v45 = vsel %vm723_vm2, %v932_v32, %v934_v41 }
  0x55   : > { %5341 = vmatpush3.bf16.msra.mxu0 %v6020_v57  ;;  %v734_v57 = vsel %vm723_vm2, %v731_v39, %v733_v48 }
  0x56   : > { %5342 = vmatprep.subr.bf16.mxu0 %v6271_v2 }
  0x57   : > { %5377 = vmatpush3.bf16.msra.mxu1 %v6021_v58  ;;  %v1099_v58 = vrot.slane %v1097_v49, 1 }
  0x58   : > { %5287 = vmatmul.mubr.bf16.gmra.mrb[12].mxu0 %v441_v59  ;;  %5378 = vmatprep.subr.bf16.mxu1 %v6271_v2  ;;  %v1102_v59 = vrot.slane %v1100_v50, 2 }
  0x59   : > { %5323 = vmatmul.mubr.bf16.gmra.mrb[12].mxu1 %v6532_v34  ;;  %5290 = vmatprep.mubr.msk.bf16.mxu0 %vm6272_vm0, %v6271_v2  ;;  %v730_v34 = vsel %vm723_vm2, %v727_v22, %v729_v30  ;;  %v1125_v22 = vrot.slane %v1123_v15, 1  ;;  %v1312_v30 = vrot.slane %v6679_v28, 2 }
  0x5a   : > { %5326 = vmatprep.mubr.msk.bf16.mxu1 %vm6272_vm0, %v6271_v2  ;;  %5343 = vmatpush3.bf16.msra.mxu0 %v6022_v62  ;;  %v937_v62 = vsel %vm723_vm2, %v934_v41, %v936_v53  ;;  %v6065_v53 = vld [vmem:[%s7956_s2 + $0x1f0] sm:$0xff]  }
  0x5b   : > { %5379 = vmatpush3.bf16.msra.mxu1 %v6024_v63  ;;  %5344 = vmatprep.subr.bf16.mxu0 %v6271_v2  ;;  %v4673_v63 = vcombine.low %v1285_v56, %v6626_v7  ;;  %v6066_v56 = vld [vmem:[%s7956_s2 + $0x1b8] sm:$0xff]  }
  0x5c   : > { %5380 = vmatprep.subr.bf16.mxu1 %v6271_v2 }
  0x5d   : > { %v1307_v5 = vrot.slane %v4673_v63, 2  ;;  %v2054_v63 = vld [vmem:[%s7955_s1] sm:$0xff] }
  0x5e   : > { %5345 = vmatpush3.bf16.msra.mxu0 %v6025_v0  ;;  %v1103_v0 = vor.u32 %v1102_v59, %v1099_v58  ;;  %v1688_v59 = vshrl.u32 %v6854_v52, 16 }
  0x5f   : > { %5381 = vmatpush3.bf16.msra.mxu1 %v6026_v4  ;;  %5402 = vmatprep.subr.bf16.mxu0 %v6271_v2  ;;  %v1117_v4 = vshll.u32 %v6653_v20, 16  ;;  %v1309_v12 = vsel %vm1306_vm4, %v1307_v5, %v1308_v6 }
  0x60   : > { %5291 = vmatmul.mubr.bf16.gmra.mrb[16].mxu0 %v449_v8  ;;  %5438 = vmatprep.subr.bf16.mxu1 %v6271_v2  ;;  %v1112_v7 = vsel %vm1095_vm3, %v1103_v0, %v1111_v1  ;;  %v6051_v8 = vld [vmem:[%s7956_s2 + $0x180] sm:$0xff]   ;;  %v1690_v5 = vrot.slane %v1688_v59, 2  ;;  %v6080_v59 = vld [vmem:[%s6352_s13 + $0x30] ss:$0 sps:$4 sm:$0x33]  }
  0x61   : > { %5327 = vmatmul.mubr.bf16.gmra.mrb[16].mxu1 %v6561_v46  ;;  %5346 = vmatprep.mubr.msk.bf16.mxu0 %vm6272_vm0, %v6271_v2  ;;  %v6045_v46 = vld [vmem:[%s7956_s2 + $0x130] sm:$0xff]   ;;  %v1119_v10 = vrot.slane %v1117_v4, 2 }
  0x62   : > { %5382 = vmatprep.mubr.msk.bf16.mxu1 %vm6272_vm0, %v6271_v2 }
  0x63   : > { %v1120_v14 = vor.u32 %v1119_v10, %v1116_v9  ;;  %v2055_v9 = vld [vmem:[%s7955_s1 + $0x8] sm:$0xff] }
  0x68   : > { %5347 = vmatmul.mubr.bf16.vlgmr.msra.gmra.mrb[20].mxu0 %v726_v17  ;;  %v1126_v17 = vshll.u32 %v6679_v28, 16 }
  0x69   : > { %5383 = vmatmul.mubr.bf16.vlgmr.msra.gmra.mrb[20].mxu1 %v929_v19  ;;  %5403 = vmatpush3.bf16.msra.mxu0 %v6030_v18  ;;  %v1310_v18 = vrot.slane %v6653_v20, 2  ;;  %v6055_v19 = vld [vmem:[%s7956_s2 + $0x1c8] sm:$0xff]  }
  0x6a   : > { %5404 = vmatprep.subr.bf16.mxu0 %v6271_v2  ;;  %5350 = vmatprep.mubr.msk.bf16.mxu0 %vm6272_vm0, %v6271_v2  ;;  %v1128_v23 = vrot.slane %v1126_v17, 2  ;;  %v2057_v17 = vld [vmem:[%s7955_s1 + $0x18] sm:$0xff] }
  0x6b   : > { %5386 = vmatprep.mubr.msk.bf16.mxu1 %vm6272_vm0, %v6271_v2  ;;  %5439 = vmatpush3.bf16.msra.mxu1 %v6033_v16  ;;  %v1121_v16 = vsel %vm1095_vm3, %v1111_v1, %v1120_v14  ;;  %v1311_v20 = vsel %vm1306_vm4, %v1308_v6, %v1310_v18  ;;  %v1313_v28 = vsel %vm1306_vm4, %v1310_v18, %v1312_v30  ;;  %v1693_v6 = vrot.slane %v1691_v60, 3  ;;  %v2058_v18 = vld [vmem:[%s7955_s1 + $0x20] sm:$0xff] }
  0x6c   : > { %5440 = vmatprep.subr.bf16.mxu1 %v6271_v2 }
  0x6d   : > { %5405 = vmatpush3.bf16.msra.mxu0 %v6031_v21  ;;  %v6054_v21 = vld [vmem:[%s7956_s2 + $0x190] sm:$0xff]  }
  0x6e   : > { %5406 = vmatprep.subr.bf16.mxu0 %v6271_v2 }
  0x6f   : > { %5441 = vmatpush3.bf16.msra.mxu1 %v6035_v24  ;;  %v6057_v24 = vld [vmem:[%s7956_s2 + $0x1d0] sm:$0xff]  }
  0x70   : > { %5351 = vmatmul.mubr.bf16.gmra.mrb[24].mxu0 %v728_v25  ;;  %5442 = vmatprep.subr.bf16.mxu1 %v6271_v2  ;;  %v6800_v25 = vld [vmem:[%s6357_s16] sm:$0xff] }
  0x71   : > { %5387 = vmatmul.mubr.bf16.gmra.mrb[24].mxu1 %v931_v27  ;;  %5407 = vmatpush3.bf16.msra.mxu0 %v6034_v26  ;;  %v1129_v26 = vor.u32 %v1128_v23, %v1125_v22  ;;  %v6056_v27 = vld [vmem:[%s7956_s2 + $0x198] sm:$0xff]  }
  0x72   : > { %5354 = vmatprep.mubr.msk.bf16.mxu0 %vm6272_vm0, %v6271_v2  ;;  %5390 = vmatprep.mubr.msk.bf16.mxu1 %vm6272_vm0, %v6271_v2 }
  0x73   : > { %5408 = vmatprep.subr.bf16.mxu0 %v6271_v2  ;;  %5443 = vmatpush3.bf16.msra.mxu1 %v6038_v29  ;;  %v1135_v29 = vshll.u32 %v6706_v37, 16  ;;  %v1130_v32 = vsel %vm1095_vm3, %v1120_v14, %v1129_v26 }
  0x74   : > { %5444 = vmatprep.subr.bf16.mxu1 %v6271_v2 }
  0x75   : > { %5409 = vmatpush3.bf16.msra.mxu0 %v6037_v31  ;;  %v6059_v31 = vld [vmem:[%s7956_s2 + $0x1d8] sm:$0xff]  }
  0x76   : > { %5410 = vmatprep.subr.bf16.mxu0 %v6271_v2 }
  0x77   : > { %5445 = vmatpush3.bf16.msra.mxu1 %v6040_v33  ;;  %v6058_v33 = vld [vmem:[%s7956_s2 + $0x1a0] sm:$0xff]  }
  0x78   : > { %5355 = vmatmul.mubr.bf16.gmra.mrb[28].mxu0 %v730_v34  ;;  %5446 = vmatprep.subr.bf16.mxu1 %v6271_v2 }
  0x79   : > { %5391 = vmatmul.mubr.bf16.gmra.mrb[28].mxu1 %v933_v36  ;;  %5411 = vmatpush3.bf16.msra.mxu0 %v6039_v35  ;;  %v1137_v35 = vrot.slane %v1135_v29, 2  ;;  %v6064_v36 = vld [vmem:[%s6352_s13 + $0x2c] ss:$0 sps:$4 sm:$0x33]  }
  0x7a   : > { %5358 = vmatprep.mubr.msk.bf16.mxu0 %vm6272_vm0, %v6271_v2  ;;  %5394 = vmatprep.mubr.msk.bf16.mxu1 %vm6272_vm0, %v6271_v2  ;;  %v1141_v41 = vshrl.u32 %v6064_v36, 16 }
  0x7b   : > { %5412 = vmatprep.subr.bf16.mxu0 %v6271_v2  ;;  %5447 = vmatpush3.bf16.msra.mxu1 %v6042_v38  ;;  %v6060_v38 = vld [vmem:[%s7956_s2 + $0x1e0] sm:$0xff]  }
  0x7c   : > { %5448 = vmatprep.subr.bf16.mxu1 %v6271_v2  ;;  %v1143_v48 = vrot.slane %v1141_v41, 1 }
  0x7d   : > { %5413 = vmatpush3.bf16.msra.mxu0 %v6043_v40  ;;  %v6061_v40 = vld [vmem:[%s7956_s2 + $0x1a8] sm:$0xff]  }
  0x7e   : > { %5414 = vmatprep.subr.bf16.mxu0 %v6271_v2 }
  0x7f   : > { %5449 = vmatpush3.bf16.msra.mxu1 %v6044_v42  ;;  %v1144_v42 = vshll.u32 %v6064_v36, 16 }
  0x80   : > { %5359 = vmatmul.mubr.bf16.gmra.mrb[32].mxu0 %v732_v43  ;;  %5450 = vmatprep.subr.bf16.mxu1 %v6271_v2  ;;  %v1314_v43 = vrot.slane %v6706_v37, 2 }
  0x81   : > { %5395 = vmatmul.mubr.bf16.gmra.mrb[32].mxu1 %v935_v45  ;;  %5362 = vmatprep.mubr.msk.bf16.mxu0 %vm6272_vm0, %v6271_v2  ;;  %v1454_v45 = vld [vmem:[%s6352_s13 + $0x8] sm:$0xc]  ;;  %v1146_v49 = vrot.slane %v1144_v42, 2 }
  0x82   : > { %5398 = vmatprep.mubr.msk.bf16.mxu1 %vm6272_vm0, %v6271_v2  ;;  %5415 = vmatpush3.bf16.msra.mxu0 %v6045_v46  ;;  %v6843_v46 = vld [vmem:[%s6352_s13 + $0xc] sm:$0xf]  ;;  %v1315_v50 = vsel %vm1306_vm4, %v1312_v30, %v1314_v43 }
  0x83   : > { %5451 = vmatpush3.bf16.msra.mxu1 %v6047_v47  ;;  %5416 = vmatprep.subr.bf16.mxu0 %v6271_v2  ;;  %v4698_v51 = vcombine.low %v1454_v45, %v6843_v46 }
  0x84   : > { %5452 = vmatprep.subr.bf16.mxu1 %v6271_v2 }
  0x85   : > { %v1683_v58 = vshll.u32 %v4698_v51, 16  ;;  %v1510_v10 = vrot.slane %v4698_v51, 2 }
  0x86   : > { %5417 = vmatpush3.bf16.msra.mxu0 %v6048_v54  ;;  %v1147_v54 = vor.u32 %v1146_v49, %v1143_v48 }
  0x87   : > { %5453 = vmatpush3.bf16.msra.mxu1 %v6049_v55  ;;  %5474 = vmatprep.subr.bf16.mxu0 %v6271_v2  ;;  %v1316_v55 = vrot.slane %v6064_v36, 2  ;;  %v1685_v4 = vrot.slane %v1683_v58, 3 }
  0x88   : > { %5363 = vmatmul.mubr.bf16.gmra.mrb[36].mxu0 %v734_v57  ;;  %5510 = vmatprep.subr.bf16.mxu1 %v6271_v2  ;;  %v1680_v57 = vshrl.u32 %v4698_v51, 16 }
  0x89   : > { %5399 = vmatmul.mubr.bf16.gmra.mrb[36].mxu1 %v937_v62  ;;  %5418 = vmatprep.mubr.msk.bf16.mxu0 %vm6272_vm0, %v6271_v2  ;;  %v6273_v62 = vmov 0   ;;  %v1317_v1 = vsel %vm1306_vm4, %v1314_v43, %v1316_v55 }
  0x8a   : > { %5454 = vmatprep.mubr.msk.bf16.mxu1 %vm6272_vm0, %v6271_v2  ;;  %5987 = vset.pattern.permute.xlu0 %v6273_v62  ;;  %v1682_v3 = vrot.slane %v1680_v57, 2 }
  0x8b   : > { %2067 = vperm.xlu0 %5987, %v2054_v63   ;;  %5988 = vset.pattern.permute.xlu1 %v6273_v62 }
  0x8f   : > { %2072 = vperm.xlu0 %5987, %v2055_v9  }
  0x90   : > { %5419 = vmatmul.mubr.bf16.vlgmr.msra.gmra.mrb[40].mxu0 %v1112_v7  ;;  %v6880_v7 = vld [vmem:[%s6352_s13 + $0x18] sm:$0xff]  }
  0x91   : > { %5455 = vmatmul.mubr.bf16.vlgmr.msra.gmra.mrb[40].mxu1 %v1309_v12  ;;  %5475 = vmatpush3.bf16.msra.mxu0 %v6051_v8  ;;  %v2056_v8 = vld [vmem:[%s7955_s1 + $0x10] sm:$0xff]  ;;  %v1511_v12 = vrot.slane %v6854_v52, 2  ;;  %v1697_v14 = vshrl.u32 %v6880_v7, 16  ;;  %v1700_v15 = vshll.u32 %v6880_v7, 16 }
  0x92   : > { %5476 = vmatprep.subr.bf16.mxu0 %v6271_v2  ;;  %5422 = vmatprep.mubr.msk.bf16.mxu0 %vm6272_vm0, %v6271_v2 }
  0x93   : > { %5458 = vmatprep.mubr.msk.bf16.mxu1 %vm6272_vm0, %v6271_v2  ;;  %5511 = vmatpush3.bf16.msra.mxu1 %v6053_v13  ;;  %v1686_v13 = vor.u32 %v1685_v4, %v1682_v3  ;;  %v1699_v22 = vrot.slane %v1697_v14, 2  ;;  %v1702_v23 = vrot.slane %v1700_v15, 3  ;;  %v6082_v3 = vld [vmem:[%s7956_s2 + $0x238] sm:$0xff]   ;;  %v1868_v4 = vld [vmem:[%s6352_s13 + $0x8] sm:$0x8]  ;;  %v1893_v14 = vrot.slane %v6880_v7, 3 }
  0x94   : > { %5512 = vmatprep.subr.bf16.mxu1 %v6271_v2  ;;  %2077 = vperm.xlu1 %5988, %v2056_v8  }
  0x95   : > { %5477 = vmatpush3.bf16.msra.mxu0 %v6052_v11  ;;  %v1694_v11 = vor.u32 %v1693_v6, %v1690_v5  ;;  %2087 = vperm.xlu0 %5987, %v2058_v18   ;;  %v4753_v6 = vcombine.low %v1868_v4, %v6843_v46 }
  0x96   : > { %5478 = vmatprep.subr.bf16.mxu0 %v6271_v2  ;;  %v1132_v2 = vshrl.u32 %v6706_v37, 16  ;;  %v6063_v37 = vld [vmem:[%s7956_s2 + $0x1b0] sm:$0xff]  }
  0x97   : > { %5513 = vmatpush3.bf16.msra.mxu1 %v6055_v19  ;;  %v1512_v19 = vsel %vm1306_vm4, %v1510_v10, %v1511_v12  ;;  %v1890_v9 = vrot.slane %v4753_v6, 3  ;;  %v1891_v10 = vrot.slane %v6854_v52, 3 }
  0x98   : > { %5423 = vmatmul.mubr.bf16.gmra.mrb[44].mxu0 %v1121_v16  ;;  %5514 = vmatprep.subr.bf16.mxu1 %v6800_v25  ;;  %v1134_v34 = vrot.slane %v1132_v2, 1  ;;  %v6070_v16 = vld [vmem:[%s7956_s2 + $0x200] sm:$0xff]   ;;  %v1703_v2 = vor.u32 %v1702_v23, %v1699_v22 }
  0x99   : > { %5459 = vmatmul.mubr.bf16.gmra.mrb[44].mxu1 %v1311_v20  ;;  %5479 = vmatpush3.bf16.msra.mxu0 %v6054_v21  ;;  %v1695_v21 = vsel %vm1678_vm5, %v1686_v13, %v1694_v11  ;;  %v6909_v20 = vld [vmem:[%s6352_s13 + $0x20] sm:$0xff]   ;;  %v1892_v13 = vsel %vm1889_vm6, %v1890_v9, %v1891_v10  ;;  %v1894_v15 = vsel %vm1889_vm6, %v1891_v10, %v1893_v14 }
  0x9a   : > { %5426 = vmatprep.mubr.msk.bf16.mxu0 %vm6272_vm0, %v6800_v25  ;;  %5462 = vmatprep.mubr.msk.bf16.mxu1 %vm6272_vm0, %v6800_v25  ;;  %v1138_v39 = vor.u32 %v1137_v35, %v1134_v34  ;;  %v1706_v29 = vshrl.u32 %v6909_v20, 16  ;;  %v1709_v30 = vshll.u32 %v6909_v20, 16  ;;  %v1704_v34 = vsel %vm1678_vm5, %v1694_v11, %v1703_v2 }
  0x9b   : > { %5480 = vmatprep.subr.bf16.mxu0 %v6800_v25  ;;  %5515 = vmatpush3.bf16.msra.mxu1 %v6057_v24  ;;  %v6071_v24 = vld [vmem:[%s7956_s2 + $0x208] sm:$0xff]  }
  0x9c   : > { %5516 = vmatprep.subr.bf16.mxu1 %v6800_v25  ;;  %v1139_v47 = vsel %vm1095_vm3, %v1129_v26, %v1138_v39  ;;  %v1148_v0 = vsel %vm1095_vm3, %v1138_v39, %v1147_v54  ;;  %2082 = vperm.xlu1 %5988, %v2057_v17   ;;  %v1513_v26 = vrot.slane %v6880_v7, 2  ;;  %v1708_v35 = vrot.slane %v1706_v29, 2  ;;  %v6075_v39 = vld [vmem:[%s7956_s2 + $0x218] sm:$0xff]   ;;  %v2063_v54 = vld [vmem:[%s7955_s1 + $0x48] sm:$0xff] }
  0x9d   : > { %5481 = vmatpush3.bf16.msra.mxu0 %v6056_v27  ;;  %v2059_v27 = vld [vmem:[%s7955_s1 + $0x28] sm:$0xff]  ;;  %v1711_v36 = vrot.slane %v1709_v30, 3 }
  0x9e   : > { %5482 = vmatprep.subr.bf16.mxu0 %v6800_v25 }
  0x9f   : > { %5517 = vmatpush3.bf16.msra.mxu1 %v6059_v31  ;;  %v2060_v31 = vld [vmem:[%s7955_s1 + $0x30] sm:$0xff]  ;;  %v1712_v41 = vor.u32 %v1711_v36, %v1708_v35 }
  0xa0   : > { %5427 = vmatmul.mubr.bf16.gmra.mrb[48].mxu0 %v1130_v32  ;;  %5518 = vmatprep.subr.bf16.mxu1 %v6800_v25  ;;  %v1514_v32 = vsel %vm1306_vm4, %v1511_v12, %v1513_v26  ;;  %v1895_v12 = vrot.slane %v6909_v20, 3 }
  0xa1   : > { %5463 = vmatmul.mubr.bf16.gmra.mrb[48].mxu1 %v1313_v28  ;;  %5483 = vmatpush3.bf16.msra.mxu0 %v6058_v33  ;;  %v6073_v33 = vld [vmem:[%s7956_s2 + $0x210] sm:$0xff]   ;;  %v6936_v28 = vld [vmem:[%s6352_s13 + $0x28] sm:$0xff]   ;;  %v1713_v48 = vsel %vm1678_vm5, %v1703_v2, %v1712_v41 }
  0xa2   : > { %5430 = vmatprep.mubr.msk.bf16.mxu0 %vm6272_vm0, %v6800_v25  ;;  %5466 = vmatprep.mubr.msk.bf16.mxu1 %vm6272_vm0, %v6800_v25  ;;  %v1715_v42 = vshrl.u32 %v6936_v28, 16  ;;  %v1718_v43 = vshll.u32 %v6936_v28, 16  ;;  %v1517_v51 = vrot.slane %v6936_v28, 2  ;;  %v1897_v46 = vrot.slane %v6936_v28, 3 }
  0xa3   : > { %5484 = vmatprep.subr.bf16.mxu0 %v6800_v25  ;;  %5519 = vmatpush3.bf16.msra.mxu1 %v6060_v38  ;;  %v1515_v38 = vrot.slane %v6909_v20, 2  ;;  %v1896_v18 = vsel %vm1889_vm6, %v1893_v14, %v1895_v12 }
  0xa4   : > { %5520 = vmatprep.subr.bf16.mxu1 %v6800_v25  ;;  %2092 = vperm.xlu1 %5988, %v2059_v27   ;;  %v1717_v49 = vrot.slane %v1715_v42, 2  ;;  %v1898_v11 = vsel %vm1889_vm6, %v1895_v12, %v1897_v46 }
  0xa5   : > { %5485 = vmatpush3.bf16.msra.mxu0 %v6061_v40  ;;  %2097 = vperm.xlu0 %5987, %v2060_v31   ;;  %v2061_v40 = vld [vmem:[%s7955_s1 + $0x38] sm:$0xff]  ;;  %v1516_v45 = vsel %vm1306_vm4, %v1513_v26, %v1515_v38  ;;  %v1518_v58 = vsel %vm1306_vm4, %v1515_v38, %v1517_v51 }
  0xa6   : > { %5486 = vmatprep.subr.bf16.mxu0 %v6800_v25 }
  0xa7   : > { %5521 = vmatpush3.bf16.msra.mxu1 %v6062_v44  ;;  %v2062_v44 = vld [vmem:[%s7955_s1 + $0x40] sm:$0xff] }
  0xa8   : > { %5431 = vmatmul.mubr.bf16.gmra.mrb[52].mxu0 %v1139_v47  ;;  %5522 = vmatprep.subr.bf16.mxu1 %v6800_v25  ;;  %v6076_v47 = vld [vmem:[%s7956_s2 + $0x220] sm:$0xff]  }
  0xa9   : > { %5467 = vmatmul.mubr.bf16.gmra.mrb[52].mxu1 %v1315_v50  ;;  %5434 = vmatprep.mubr.msk.bf16.mxu0 %vm6272_vm0, %v6800_v25  ;;  %v1720_v50 = vrot.slane %v1718_v43, 3 }
  0xaa   : > { %5470 = vmatprep.mubr.msk.bf16.mxu1 %vm6272_vm0, %v6800_v25  ;;  %5487 = vmatpush3.bf16.msra.mxu0 %v6063_v37  ;;  %v6964_v37 = vld [vmem:[%s6352_s13 + $0x30] ss:$0 sps:$4 sm:$0x77]  }
  0xab   : > { %5523 = vmatpush3.bf16.msra.mxu1 %v6065_v53  ;;  %5488 = vmatprep.subr.bf16.mxu0 %v6800_v25  ;;  %v6078_v53 = vld [vmem:[%s7956_s2 + $0x228] sm:$0xff]   ;;  %v1721_v55 = vor.u32 %v1720_v50, %v1717_v49  ;;  %v1727_v57 = vshll.u32 %v6964_v37, 16  ;;  %v1899_v52 = vrot.slane %v6964_v37, 3 }
  0xac   : > { %5524 = vmatprep.subr.bf16.mxu1 %v6800_v25  ;;  %2102 = vperm.xlu1 %5988, %v2061_v40  }
  0xad   : > { %2107 = vperm.xlu0 %5987, %v2062_v44   ;;  %v1722_v60 = vsel %vm1678_vm5, %v1712_v41, %v1721_v55  ;;  %v1729_v63 = vrot.slane %v1727_v57, 3  ;;  %v1900_v17 = vsel %vm1889_vm6, %v1897_v46, %v1899_v52 }
  0xae   : > { %5489 = vmatpush3.bf16.msra.mxu0 %v6066_v56  ;;  %v1724_v56 = vshrl.u32 %v6964_v37, 16 }
  0xaf   : > { %5525 = vmatpush3.bf16.msra.mxu1 %v6067_v61  ;;  %5546 = vmatprep.subr.bf16.mxu0 %v6800_v25  ;;  %v6079_v61 = vld [vmem:[%s7956_s2 + $0x230] sm:$0xff]  }
  0xb0   : > { %5435 = vmatmul.mubr.bf16.gmra.mrb[56].mxu0 %v1148_v0  ;;  %5906 = vmatprep.subr.bf16.mxu1 %v6800_v25  ;;  %v1726_v62 = vrot.slane %v1724_v56, 2  ;;  %v1519_v0 = vrot.slane %v6080_v59, 2 }
  0xb1   : > { %5471 = vmatmul.mubr.bf16.gmra.mrb[56].mxu1 %v1317_v1  ;;  %5490 = vmatprep.mubr.msk.bf16.mxu0 %vm6272_vm0, %v6800_v25 }
  0xb2   : > { %5526 = vmatprep.mubr.msk.bf16.mxu1 %vm6272_vm0, %v6800_v25  ;;  %2112 = vperm.xlu1 %5988, %v2063_v54   ;;  %v1730_v1 = vor.u32 %v1729_v63, %v1726_v62  ;;  %v1520_v5 = vsel %vm1306_vm4, %v1517_v51, %v1519_v0 }
  0xb4   : > { %v1731_v8 = vsel %vm1678_vm5, %v1721_v55, %v1730_v1 }
  0xb8   : > { %5491 = vmatmul.mubr.bf16.vlgmr.msra.gmra.mrb[60].mxu0 %v1512_v19 }
  0xb9   : > { %5527 = vmatmul.mubr.bf16.vlgmr.msra.gmra.mrb[60].mxu1 %v1695_v21  ;;  %5547 = vmatpush3.bf16.msra.mxu0 %v6070_v16 }
  0xba   : > { %5548 = vmatprep.subr.bf16.mxu0 %v6800_v25  ;;  %5494 = vmatprep.mubr.msk.bf16.mxu0 %vm6272_vm0, %v6800_v25 }
  0xbb   : > { %5530 = vmatprep.mubr.msk.bf16.mxu1 %vm6272_vm0, %v6800_v25  ;;  %5914 = vmatpush3.bf16.msra.mxu1 %v6070_v16 }
  0xbc   : > { %5907 = vmatprep.subr.bf16.mxu1 %v6800_v25 }
  0xbd   : > { %5549 = vmatpush3.bf16.msra.mxu0 %v6071_v24 }
  0xbe   : > { %5550 = vmatprep.subr.bf16.mxu0 %v6800_v25 }
  0xbf   : > { %5915 = vmatpush3.bf16.msra.mxu1 %v6071_v24 }
  0xc0   : > { %5495 = vmatmul.mubr.bf16.gmra.mrb[64].mxu0 %v1514_v32  ;;  %5908 = vmatprep.subr.bf16.mxu1 %v6800_v25 }
  0xc1   : > { %5531 = vmatmul.mubr.bf16.gmra.mrb[64].mxu1 %v1704_v34  ;;  %5551 = vmatpush3.bf16.msra.mxu0 %v6073_v33 }
  0xc2   : > { %5498 = vmatprep.mubr.msk.bf16.mxu0 %vm6272_vm0, %v6800_v25  ;;  %5534 = vmatprep.mubr.msk.bf16.mxu1 %vm6272_vm0, %v6800_v25 }
  0xc3   : > { %5552 = vmatprep.subr.bf16.mxu0 %v6800_v25  ;;  %5916 = vmatpush3.bf16.msra.mxu1 %v6073_v33 }
  0xc4   : > { %5909 = vmatprep.subr.bf16.mxu1 %v6800_v25 }
  0xc5   : > { %5553 = vmatpush3.bf16.msra.mxu0 %v6075_v39 }
  0xc6   : > { %5554 = vmatprep.subr.bf16.mxu0 %v6800_v25 }
  0xc7   : > { %5917 = vmatpush3.bf16.msra.mxu1 %v6075_v39 }
  0xc8   : > { %5499 = vmatmul.mubr.bf16.gmra.mrb[68].mxu0 %v1516_v45  ;;  %5910 = vmatprep.subr.bf16.mxu1 %v6800_v25 }
  0xc9   : > { %5535 = vmatmul.mubr.bf16.gmra.mrb[68].mxu1 %v1713_v48  ;;  %5555 = vmatpush3.bf16.msra.mxu0 %v6076_v47 }
  0xca   : > { %5502 = vmatprep.mubr.msk.bf16.mxu0 %vm6272_vm0, %v6800_v25  ;;  %5538 = vmatprep.mubr.msk.bf16.mxu1 %vm6272_vm0, %v6800_v25 }
  0xcb   : > { %5918 = vmatpush3.bf16.msra.mxu1 %v6076_v47  ;;  %5556 = vmatprep.subr.bf16.mxu0 %v6800_v25 }
  0xcc   : > { %5911 = vmatprep.subr.bf16.mxu1 %v6800_v25 }
  0xcd   : > { %5557 = vmatpush3.bf16.msra.mxu0 %v6078_v53 }
  0xce   : > { %5558 = vmatprep.subr.bf16.mxu0 %v6800_v25 }
  0xcf   : > { %5919 = vmatpush3.bf16.msra.mxu1 %v6078_v53 }
  0xd0   : > { %5503 = vmatmul.mubr.bf16.gmra.mrb[72].mxu0 %v1518_v58  ;;  %5912 = vmatprep.subr.bf16.mxu1 %v6800_v25 }
  0xd1   : > { %5539 = vmatmul.mubr.bf16.gmra.mrb[72].mxu1 %v1722_v60  ;;  %5506 = vmatprep.mubr.msk.bf16.mxu0 %vm6272_vm0, %v6800_v25 }
  0xd2   : > { %5542 = vmatprep.mubr.msk.bf16.mxu1 %vm6272_vm0, %v6800_v25  ;;  %5559 = vmatpush3.bf16.msra.mxu0 %v6079_v61 }
  0xd3   : > { %5920 = vmatpush3.bf16.msra.mxu1 %v6079_v61  ;;  %5560 = vmatprep.subr.bf16.mxu0 %v6800_v25 }
  0xd4   : > { %5913 = vmatprep.subr.bf16.mxu1 %v6800_v25 }
  0xd6   : > { %5561 = vmatpush3.bf16.msra.mxu0 %v6082_v3 }
  0xd7   : > { %5921 = vmatpush3.bf16.msra.mxu1 %v6082_v3 }
  0xd8   : > { %5507 = vmatmul.mubr.bf16.gmra.mrb[76].mxu0 %v1520_v5 }
  0xd9   : > { %5543 = vmatmul.mubr.bf16.gmra.mrb[76].mxu1 %v1731_v8  ;;  %5562 = vmatprep.mubr.msk.bf16.mxu0 %vm6272_vm0, %v6800_v25 }
  0xda   : > { %5574 = vmatprep.mubr.msk.bf16.mxu1 %vm6272_vm0, %v6800_v25 }
  0xe0   : > { %5563 = vmatmul.mubr.bf16.vlgmr.msra.gmra.mrb[80].mxu0 %v1892_v13 }
  0xe1   : > { %5575 = vmatmul.mubr.bf16.vlgmr.msra.gmra.mrb[80].mxu1 %v1898_v11  ;;  %5566 = vmatprep.mubr.msk.bf16.mxu0 %vm6272_vm0, %v6800_v25 }
  0xe2   : > { %5578 = vmatprep.mubr.msk.bf16.mxu1 %vm6272_vm0, %v6800_v25 }
  0xe8   : > { %5567 = vmatmul.mubr.bf16.gmra.mrb[84].mxu0 %v1894_v15 }
  0xe9   : > { %5579 = vmatmul.mubr.bf16.gmra.mrb[84].mxu1 %v1900_v17  ;;  %5570 = vmatprep.mubr.msk.bf16.mxu0 %vm6272_vm0, %v6800_v25 }
  0xf0   : > { %5571 = vmatmul.mubr.bf16.gmra.mrb[88].mxu0 %v1896_v18 }
 0x113   : > { %v537_v19 = vpop.f32.mrb[0].mxu0 }
 0x114   : > { %v663_v16 = vpop.f32.mrb[0].mxu1  ;;  %v5276_v7 = vpop.f32.mrb[1].mxu0 }
 0x115   : > { %v664_v21 = vadd.f32 %v663_v16, %v537_v19  ;;  %v5312_v22 = vpop.f32.mrb[1].mxu1  ;;  %v540_v23 = vpop.f32.mrb[2].mxu0 }
 0x116   : > { %v666_v20 = vpop.f32.mrb[2].mxu1  ;;  %v5277_v24 = vpop.f32.mrb[3].mxu0 }
 0x117   : > { %v667_v26 = vadd.f32 %v666_v20, %v540_v23  ;;  %v5313_v27 = vpop.f32.mrb[3].mxu1 }
 0x11b   : > { %v545_v2 = vpop.f32.mrb[4].mxu0 }
 0x11c   : > { %v671_v29 = vpop.f32.mrb[4].mxu1  ;;  %v5280_v30 = vpop.f32.mrb[5].mxu0 }
 0x11d   : > { %v672_v31 = vadd.f32 %v671_v29, %v545_v2  ;;  %v5316_v32 = vpop.f32.mrb[5].mxu1  ;;  %v548_v33 = vpop.f32.mrb[6].mxu0 }
 0x11e   : > { %v674_v25 = vpop.f32.mrb[6].mxu1  ;;  %v5281_v34 = vpop.f32.mrb[7].mxu0 }
 0x11f   : > { %v675_v35 = vadd.f32 %v674_v25, %v548_v33  ;;  %v5317_v36 = vpop.f32.mrb[7].mxu1 }
 0x123   : > { %v553_v28 = vpop.f32.mrb[8].mxu0 }
 0x124   : > { %v679_v38 = vpop.f32.mrb[8].mxu1  ;;  %v5284_v39 = vpop.f32.mrb[9].mxu0 }
 0x125   : > { %v680_v40 = vadd.f32 %v679_v38, %v553_v28  ;;  %v5320_v41 = vpop.f32.mrb[9].mxu1  ;;  %v556_v42 = vpop.f32.mrb[10].mxu0 }
 0x126   : > { %v682_v43 = vpop.f32.mrb[10].mxu1  ;;  %v5285_v44 = vpop.f32.mrb[11].mxu0 }
 0x127   : > { %v683_v45 = vadd.f32 %v682_v43, %v556_v42  ;;  %v5321_v47 = vpop.f32.mrb[11].mxu1 }
 0x12b   : > { %v561_v48 = vpop.f32.mrb[12].mxu0 }
 0x12c   : > { %v687_v49 = vpop.f32.mrb[12].mxu1  ;;  %v5288_v50 = vpop.f32.mrb[13].mxu0 }
 0x12d   : > { %v688_v37 = vadd.f32 %v687_v49, %v561_v48  ;;  %v5324_v51 = vpop.f32.mrb[13].mxu1  ;;  %v564_v53 = vpop.f32.mrb[14].mxu0 }
 0x12e   : > { %v690_v54 = vpop.f32.mrb[14].mxu1  ;;  %v5289_v55 = vpop.f32.mrb[15].mxu0 }
 0x12f   : > { %v691_v56 = vadd.f32 %v690_v54, %v564_v53  ;;  %v5325_v57 = vpop.f32.mrb[15].mxu1 }
 0x133   : > { %v569_v58 = vpop.f32.mrb[16].mxu0 }
 0x134   : > { %v695_v59 = vpop.f32.mrb[16].mxu1  ;;  %v5292_v60 = vpop.f32.mrb[17].mxu0 }
 0x135   : > { %v696_v61 = vadd.f32 %v695_v59, %v569_v58  ;;  %v5328_v62 = vpop.f32.mrb[17].mxu1  ;;  %v572_v63 = vpop.f32.mrb[18].mxu0 }
 0x136   : > { %v698_v0 = vpop.f32.mrb[18].mxu1  ;;  %v5293_v1 = vpop.f32.mrb[19].mxu0 }
 0x137   : > { %v699_v3 = vadd.f32 %v698_v0, %v572_v63  ;;  %v5329_v4 = vpop.f32.mrb[19].mxu1 }
 0x13b   : > { %v822_v5 = vpop.f32.mrb[20].mxu0 }
 0x13c   : > { %v861_v6 = vadd.f32 %v822_v5, %v664_v21  ;;  %v5348_v8 = vpop.f32.mrb[21].mxu0  ;;  %v1025_v9 = vpop.f32.mrb[20].mxu1 }
 0x13d   : > { %v825_v10 = vpop.f32.mrb[22].mxu0  ;;  %v5384_v12 = vpop.f32.mrb[21].mxu1 }
 0x13e   : > { %v862_v46 = vadd.f32 %v825_v10, %v667_v26  ;;  %v1064_v13 = vadd.f32 %v1025_v9, %v861_v6  ;;  %v5349_v11 = vpop.f32.mrb[23].mxu0  ;;  %v1028_v14 = vpop.f32.mrb[22].mxu1 }
 0x13f   : > { %v5385_v52 = vpop.f32.mrb[23].mxu1 }
 0x140   : > { %v1065_v15 = vadd.f32 %v1028_v14, %v862_v46 }
 0x143   : > { %v830_v17 = vpop.f32.mrb[24].mxu0 }
 0x144   : > { %v863_v18 = vadd.f32 %v830_v17, %v672_v31  ;;  %v5352_v19 = vpop.f32.mrb[25].mxu0  ;;  %v1033_v16 = vpop.f32.mrb[24].mxu1 }
 0x145   : > { %v833_v7 = vpop.f32.mrb[26].mxu0  ;;  %v5388_v22 = vpop.f32.mrb[25].mxu1 }
 0x146   : > { %v864_v23 = vadd.f32 %v833_v7, %v675_v35  ;;  %v1066_v20 = vadd.f32 %v1033_v16, %v863_v18  ;;  %v5353_v24 = vpop.f32.mrb[27].mxu0  ;;  %v1036_v21 = vpop.f32.mrb[26].mxu1 }
 0x147   : > { %v5389_v27 = vpop.f32.mrb[27].mxu1 }
 0x148   : > { %v1067_v2 = vadd.f32 %v1036_v21, %v864_v23 }
 0x14b   : > { %v838_v29 = vpop.f32.mrb[28].mxu0 }
 0x14c   : > { %v865_v30 = vadd.f32 %v838_v29, %v680_v40  ;;  %v5356_v26 = vpop.f32.mrb[29].mxu0  ;;  %v1041_v32 = vpop.f32.mrb[28].mxu1 }
 0x14d   : > { %v841_v33 = vpop.f32.mrb[30].mxu0  ;;  %v5392_v25 = vpop.f32.mrb[29].mxu1 }
 0x14e   : > { %v866_v34 = vadd.f32 %v841_v33, %v683_v45  ;;  %v1068_v36 = vadd.f32 %v1041_v32, %v865_v30  ;;  %v5357_v28 = vpop.f32.mrb[31].mxu0  ;;  %v1044_v31 = vpop.f32.mrb[30].mxu1 }
 0x14f   : > { %v5393_v38 = vpop.f32.mrb[31].mxu1 }
 0x150   : > { %v1069_v39 = vadd.f32 %v1044_v31, %v866_v34 }
 0x153   : > { %v846_v41 = vpop.f32.mrb[32].mxu0 }
 0x154   : > { %v867_v42 = vadd.f32 %v846_v41, %v688_v37  ;;  %v5360_v35 = vpop.f32.mrb[33].mxu0  ;;  %v1049_v43 = vpop.f32.mrb[32].mxu1 }
 0x155   : > { %v849_v44 = vpop.f32.mrb[34].mxu0  ;;  %v5396_v47 = vpop.f32.mrb[33].mxu1 }
 0x156   : > { %v868_v48 = vadd.f32 %v849_v44, %v691_v56  ;;  %v1070_v49 = vadd.f32 %v1049_v43, %v867_v42  ;;  %v5361_v50 = vpop.f32.mrb[35].mxu0  ;;  %v1052_v40 = vpop.f32.mrb[34].mxu1 }
 0x157   : > { %v5397_v51 = vpop.f32.mrb[35].mxu1 }
 0x158   : > { %v1071_v53 = vadd.f32 %v1052_v40, %v868_v48 }
 0x15b   : > { %v854_v54 = vpop.f32.mrb[36].mxu0 }
 0x15c   : > { %v869_v55 = vadd.f32 %v854_v54, %v696_v61  ;;  %v5364_v45 = vpop.f32.mrb[37].mxu0  ;;  %v1057_v57 = vpop.f32.mrb[36].mxu1 }
 0x15d   : > { %v857_v58 = vpop.f32.mrb[38].mxu0  ;;  %v5400_v59 = vpop.f32.mrb[37].mxu1 }
 0x15e   : > { %v870_v60 = vadd.f32 %v857_v58, %v699_v3  ;;  %v1072_v62 = vadd.f32 %v1057_v57, %v869_v55  ;;  %v5365_v63 = vpop.f32.mrb[39].mxu0  ;;  %v1060_v37 = vpop.f32.mrb[38].mxu1 }
 0x15f   : > { %v5401_v0 = vpop.f32.mrb[39].mxu1 }
 0x160   : > { %v1073_v1 = vadd.f32 %v1060_v37, %v870_v60 }
 0x163   : > { %v1236_v4 = vpop.f32.mrb[40].mxu0 }
 0x164   : > { %v1275_v5 = vadd.f32 %v1236_v4, %v1064_v13  ;;  %v5420_v56 = vpop.f32.mrb[41].mxu0  ;;  %v1405_v6 = vpop.f32.mrb[40].mxu1 }
 0x165   : > { %v1239_v8 = vpop.f32.mrb[42].mxu0  ;;  %v5456_v9 = vpop.f32.mrb[41].mxu1 }
 0x166   : > { %v1276_v10 = vadd.f32 %v1239_v8, %v1065_v15  ;;  %v1444_v12 = vadd.f32 %v1405_v6, %v1275_v5  ;;  %v5421_v46 = vpop.f32.mrb[43].mxu0  ;;  %v1408_v61 = vpop.f32.mrb[42].mxu1 }
 0x167   : > { %v5457_v11 = vpop.f32.mrb[43].mxu1 }
 0x168   : > { %v1445_v14 = vadd.f32 %v1408_v61, %v1276_v10 }
 0x16b   : > { %v1244_v52 = vpop.f32.mrb[44].mxu0 }
 0x16c   : > { %v1277_v17 = vadd.f32 %v1244_v52, %v1066_v20  ;;  %v5424_v3 = vpop.f32.mrb[45].mxu0  ;;  %v1413_v18 = vpop.f32.mrb[44].mxu1 }
 0x16d   : > { %v1247_v19 = vpop.f32.mrb[46].mxu0  ;;  %v5460_v16 = vpop.f32.mrb[45].mxu1 }
 0x16e   : > { %v1278_v7 = vadd.f32 %v1247_v19, %v1067_v2  ;;  %v1446_v22 = vadd.f32 %v1413_v18, %v1277_v17  ;;  %v5425_v23 = vpop.f32.mrb[47].mxu0  ;;  %v1416_v13 = vpop.f32.mrb[46].mxu1 }
 0x16f   : > { %v5461_v24 = vpop.f32.mrb[47].mxu1 }
 0x170   : > { %v1447_v21 = vadd.f32 %v1416_v13, %v1278_v7 }
 0x173   : > { %v1252_v27 = vpop.f32.mrb[48].mxu0 }
 0x174   : > { %v1279_v29 = vadd.f32 %v1252_v27, %v1068_v36  ;;  %v5428_v15 = vpop.f32.mrb[49].mxu0  ;;  %v1421_v30 = vpop.f32.mrb[48].mxu1 }
 0x175   : > { %v1255_v26 = vpop.f32.mrb[50].mxu0  ;;  %v5464_v32 = vpop.f32.mrb[49].mxu1 }
 0x176   : > { %v1280_v33 = vadd.f32 %v1255_v26, %v1069_v39  ;;  %v1448_v25 = vadd.f32 %v1421_v30, %v1279_v29  ;;  %v5429_v34 = vpop.f32.mrb[51].mxu0  ;;  %v1424_v20 = vpop.f32.mrb[50].mxu1 }
 0x177   : > { %v5465_v28 = vpop.f32.mrb[51].mxu1 }
 0x178   : > { %v1449_v31 = vadd.f32 %v1424_v20, %v1280_v33 }
 0x17b   : > { %v1260_v38 = vpop.f32.mrb[52].mxu0 }
 0x17c   : > { %v1281_v41 = vadd.f32 %v1260_v38, %v1070_v49  ;;  %v5432_v2 = vpop.f32.mrb[53].mxu0  ;;  %v1429_v42 = vpop.f32.mrb[52].mxu1 }
 0x17d   : > { %v1263_v35 = vpop.f32.mrb[54].mxu0  ;;  %v5468_v43 = vpop.f32.mrb[53].mxu1 }
 0x17e   : > { %v1282_v44 = vadd.f32 %v1263_v35, %v1071_v53  ;;  %v1450_v47 = vadd.f32 %v1429_v42, %v1281_v41  ;;  %v5433_v48 = vpop.f32.mrb[55].mxu0  ;;  %v1432_v36 = vpop.f32.mrb[54].mxu1 }
 0x17f   : > { %v5469_v50 = vpop.f32.mrb[55].mxu1 }
 0x180   : > { %v1451_v40 = vadd.f32 %v1432_v36, %v1282_v44 }
 0x183   : > { %v1268_v51 = vpop.f32.mrb[56].mxu0 }
 0x184   : > { %v1283_v54 = vadd.f32 %v1268_v51, %v1072_v62  ;;  %v5436_v39 = vpop.f32.mrb[57].mxu0  ;;  %v1437_v55 = vpop.f32.mrb[56].mxu1 }
 0x185   : > { %v1271_v45 = vpop.f32.mrb[58].mxu0  ;;  %v5472_v57 = vpop.f32.mrb[57].mxu1 }
 0x186   : > { %v1284_v58 = vadd.f32 %v1271_v45, %v1073_v1  ;;  %v1452_v59 = vadd.f32 %v1437_v55, %v1283_v54  ;;  %v5437_v60 = vpop.f32.mrb[59].mxu0  ;;  %v1440_v49 = vpop.f32.mrb[58].mxu1 }
 0x187   : > { %v5473_v63 = vpop.f32.mrb[59].mxu1 }
 0x188   : > { %v1453_v37 = vadd.f32 %v1440_v49, %v1284_v58  ;;  %v2068_v63 = vpop.permute.xlu0 %2067 }
 0x18b   : > { %v1608_v0 = vpop.f32.mrb[60].mxu0 }
 0x18c   : > { %v1647_v4 = vadd.f32 %v1608_v0, %v1444_v12  ;;  %v5492_v53 = vpop.f32.mrb[61].mxu0  ;;  %v1819_v5 = vpop.f32.mrb[60].mxu1 }
 0x18d   : > { %v1611_v56 = vpop.f32.mrb[62].mxu0  ;;  %v5528_v6 = vpop.f32.mrb[61].mxu1 }
 0x18e   : > { %v1648_v8 = vadd.f32 %v1611_v56, %v1445_v14  ;;  %v1858_v9 = vadd.f32 %v1819_v5, %v1647_v4  ;;  %v5493_v10 = vpop.f32.mrb[63].mxu0  ;;  %v1822_v62 = vpop.f32.mrb[62].mxu1 }
 0x18f   : > { %v5529_v46 = vpop.f32.mrb[63].mxu1 }
 0x190   : > { %v1859_v61 = vadd.f32 %v1822_v62, %v1648_v8 }
 0x193   : > { %v1616_v11 = vpop.f32.mrb[64].mxu0 }
 0x194   : > { %v1649_v52 = vadd.f32 %v1616_v11, %v1446_v22  ;;  %v5496_v1 = vpop.f32.mrb[65].mxu0  ;;  %v1827_v17 = vpop.f32.mrb[64].mxu1 }
 0x195   : > { %v1619_v3 = vpop.f32.mrb[66].mxu0  ;;  %v5532_v18 = vpop.f32.mrb[65].mxu1 }
 0x196   : > { %v1650_v19 = vadd.f32 %v1619_v3, %v1447_v21  ;;  %v7023_v16 = vadd.f32 %v1827_v17, %v1649_v52  ;;  %v5497_v12 = vpop.f32.mrb[67].mxu0  ;;  %v1830_v7 = vpop.f32.mrb[66].mxu1 }
 0x197   : > { %v5533_v23 = vpop.f32.mrb[67].mxu1  ;;  %v2078_v17 = vpop.permute.xlu1 %2077 }
 0x198   : > { %v7025_v13 = vadd.f32 %v1830_v7, %v1650_v19  ;;  %v2073_v3 = vpop.permute.xlu0 %2072 }
 0x19b   : > { %v1624_v14 = vpop.f32.mrb[68].mxu0 }
 0x19c   : > { %v1651_v24 = vadd.f32 %v1624_v14, %v1448_v25  ;;  %v5500_v27 = vpop.f32.mrb[69].mxu0  ;;  %v1835_v29 = vpop.f32.mrb[68].mxu1 }
 0x19d   : > { %v1627_v15 = vpop.f32.mrb[70].mxu0  ;;  %v5536_v30 = vpop.f32.mrb[69].mxu1 }
 0x19e   : > { %v1652_v26 = vadd.f32 %v1627_v15, %v1449_v31  ;;  %v7027_v22 = vadd.f32 %v1835_v29, %v1651_v24  ;;  %v5501_v32 = vpop.f32.mrb[71].mxu0  ;;  %v1838_v33 = vpop.f32.mrb[70].mxu1 }
 0x19f   : > { %v5537_v34 = vpop.f32.mrb[71].mxu1 }
 0x1a0   : > { %v7029_v21 = vadd.f32 %v1838_v33, %v1652_v26 }
 0x1a3   : > { %v1632_v20 = vpop.f32.mrb[72].mxu0 }
 0x1a4   : > { %v1653_v28 = vadd.f32 %v1632_v20, %v1450_v47  ;;  %v5504_v38 = vpop.f32.mrb[73].mxu0  ;;  %v1843_v41 = vpop.f32.mrb[72].mxu1 }
 0x1a5   : > { %v1635_v2 = vpop.f32.mrb[74].mxu0  ;;  %v5540_v42 = vpop.f32.mrb[73].mxu1 }
 0x1a6   : > { %v1654_v35 = vadd.f32 %v1635_v2, %v1451_v40  ;;  %v1864_v25 = vadd.f32 %v1843_v41, %v1653_v28  ;;  %v5505_v43 = vpop.f32.mrb[75].mxu0  ;;  %v1846_v44 = vpop.f32.mrb[74].mxu1  ;;  %v7034_v40 = vld [vmem:[%s7957_s3] ss:$0 sm:$0xff] }
 0x1a7   : > { %v5541_v48 = vpop.f32.mrb[75].mxu1  ;;  %v2083_v28 = vpop.permute.xlu1 %2082 }
 0x1a8   : > { %v1865_v36 = vadd.f32 %v1846_v44, %v1654_v35 }
 0x1ab   : > { %v1640_v31 = vpop.f32.mrb[76].mxu0 }
 0x1ac   : > { %v1655_v50 = vadd.f32 %v1640_v31, %v1452_v59  ;;  %v5508_v51 = vpop.f32.mrb[77].mxu0  ;;  %v1851_v54 = vpop.f32.mrb[76].mxu1 }
 0x1ad   : > { %v1643_v39 = vpop.f32.mrb[78].mxu0  ;;  %v5544_v55 = vpop.f32.mrb[77].mxu1 }
 0x1ae   : > { %v1656_v45 = vadd.f32 %v1643_v39, %v1453_v37  ;;  %v1866_v57 = vadd.f32 %v1851_v54, %v1655_v50  ;;  %v5509_v58 = vpop.f32.mrb[79].mxu0  ;;  %v1854_v47 = vpop.f32.mrb[78].mxu1 }
 0x1af   : > { %v5545_v60 = vpop.f32.mrb[79].mxu1  ;;  %v2093_v55 = vpop.permute.xlu1 %2092 }
 0x1b0   : > { %v1867_v49 = vadd.f32 %v1854_v47, %v1656_v45 }
 0x1b3   : > { %v1988_v0 = vpop.f32.mrb[80].mxu0 }
 0x1b4   : > { %v2027_v4 = vadd.f32 %v1988_v0, %v1858_v9  ;;  %v2012_v53 = vpop.f32.mrb[80].mxu1  ;;  %v5564_v59 = vpop.f32.mrb[81].mxu0 }
 0x1b5   : > { %v2033_v5 = vadd.f32 %v2012_v53, %v1864_v25  ;;  %v5576_v56 = vpop.f32.mrb[81].mxu1  ;;  %v1991_v6 = vpop.f32.mrb[82].mxu0 }
 0x1b6   : > { %v2044_v37 = vadd.f32 %v7034_v40, %v2027_v4  ;;  %v2028_v8 = vadd.f32 %v1991_v6, %v1859_v61  ;;  %v2015_v10 = vpop.f32.mrb[82].mxu1  ;;  %v5565_v62 = vpop.f32.mrb[83].mxu0 }
 0x1b7   : > { %v2034_v46 = vadd.f32 %v2015_v10, %v1865_v36  ;;  %v5577_v11 = vpop.f32.mrb[83].mxu1  ;;  %v2050_v39 = vadd.f32 %v7034_v40, %v2033_v5  ;;  %v2103_v10 = vpop.permute.xlu1 %2102 }
 0x1b8   : > { %v2143_v52 = vmul.f32 %v2044_v37, %v2044_v37  ;;  %v2045_v1 = vadd.f32 %v7034_v40, %v2028_v8  ;;  %v2115_v18 = vmul.f32 %v2068_v63, %v2044_v37 }
 0x1b9   : > { %v2149_v59 = vmul.f32 %v2050_v39, %v2050_v39 }
 0x1ba   : > { %v2116_v19 = vmul.f32 %v2073_v3, %v2045_v1  ;;  %v2144_v9 = vmul.f32 %v2045_v1, %v2045_v1  ;;  %v2153_v7 = vmul.f32 %v2143_v52, %v2068_v63 }
 0x1bb   : > { %v1996_v12 = vpop.f32.mrb[84].mxu0 }
 0x1bc   : > { %v2125_v23 = vadd.f32 %v2116_v19, %v2115_v18  ;;  %v2154_v14 = vmul.f32 %v2144_v9, %v2073_v3  ;;  %v2029_v24 = vadd.f32 %v1996_v12, %v7023_v16  ;;  %v2020_v27 = vpop.f32.mrb[84].mxu1  ;;  %v5568_v61 = vpop.f32.mrb[85].mxu0 }
 0x1bd   : > { %v2035_v29 = vadd.f32 %v2020_v27, %v1866_v57  ;;  %v5580_v15 = vpop.f32.mrb[85].mxu1  ;;  %v1999_v30 = vpop.f32.mrb[86].mxu0 }
 0x1be   : > { %v2163_v26 = vadd.f32 %v2154_v14, %v2153_v7  ;;  %v2046_v32 = vadd.f32 %v7034_v40, %v2029_v24  ;;  %v2030_v33 = vadd.f32 %v1999_v30, %v7025_v13  ;;  %v2023_v34 = vpop.f32.mrb[86].mxu1  ;;  %v5569_v20 = vpop.f32.mrb[87].mxu0 }
 0x1bf   : > { %v2036_v38 = vadd.f32 %v2023_v34, %v1867_v49  ;;  %v5581_v41 = vpop.f32.mrb[87].mxu1  ;;  %v2088_v16 = vpop.permute.xlu0 %2087  ;;  %v2051_v49 = vadd.f32 %v7034_v40, %v2034_v46 }
 0x1c0   : > { %v2117_v2 = vmul.f32 %v2078_v17, %v2046_v32  ;;  %v2145_v42 = vmul.f32 %v2046_v32, %v2046_v32  ;;  %v2047_v35 = vadd.f32 %v7034_v40, %v2030_v33  ;;  %v2113_v7 = vpop.permute.xlu1 %2112 }
 0x1c1   : > { %v2150_v62 = vmul.f32 %v2051_v49, %v2051_v49  ;;  %v2122_v3 = vmul.f32 %v2103_v10, %v2051_v49 }
 0x1c2   : > { %v2126_v25 = vadd.f32 %v2125_v23, %v2117_v2  ;;  %v2155_v43 = vmul.f32 %v2145_v42, %v2078_v17  ;;  %v2118_v44 = vmul.f32 %v2083_v28, %v2047_v35  ;;  %v2146_v48 = vmul.f32 %v2047_v35, %v2047_v35 }
 0x1c3   : > { %v2004_v36 = vpop.f32.mrb[88].mxu0  ;;  %v2098_v63 = vpop.permute.xlu0 %2097  ;;  %v2160_v12 = vmul.f32 %v2150_v62, %v2103_v10 }
 0x1c4   : > { %v2164_v31 = vadd.f32 %v2163_v26, %v2155_v43  ;;  %v2127_v50 = vadd.f32 %v2126_v25, %v2118_v44  ;;  %v2156_v51 = vmul.f32 %v2146_v48, %v2083_v28  ;;  %v2031_v13 = vadd.f32 %v2004_v36, %v7027_v22  ;;  %v5572_v54 = vpop.f32.mrb[89].mxu0  ;;  %v2064_v25 = vld [vmem:[#allocation2] sm:$0x1]  ;;  %v2142_v48 = vld [vmem:[#allocation3] sm:$0x1] }
 0x1c5   : > { %v2007_v45 = vpop.f32.mrb[90].mxu0  ;;  %v2052_v22 = vadd.f32 %v7034_v40, %v2035_v29  ;;  %v2121_v8 = vmul.f32 %v2098_v63, %v2050_v39  ;;  %v2159_v1 = vmul.f32 %v2149_v59, %v2098_v63 }
 0x1c6   : > { %v2165_v57 = vadd.f32 %v2164_v31, %v2156_v51  ;;  %v2048_v58 = vadd.f32 %v7034_v40, %v2031_v13  ;;  %v2032_v47 = vadd.f32 %v2007_v45, %v7029_v21  ;;  %v5573_v60 = vpop.f32.mrb[91].mxu0  ;;  %v2053_v21 = vadd.f32 %v7034_v40, %v2036_v38 }
 0x1c7   : > { %v2108_v17 = vpop.permute.xlu0 %2107  ;;  %v2151_v18 = vmul.f32 %v2052_v22, %v2052_v22 }
 0x1c8   : > { %v2119_v0 = vmul.f32 %v2088_v16, %v2048_v58  ;;  %v2147_v4 = vmul.f32 %v2048_v58, %v2048_v58  ;;  %v2049_v53 = vadd.f32 %v7034_v40, %v2032_v47  ;;  %v2123_v23 = vmul.f32 %v2108_v17, %v2052_v22 }
 0x1c9   : > { %v2152_v14 = vmul.f32 %v2053_v21, %v2053_v21  ;;  %v2161_v61 = vmul.f32 %v2151_v18, %v2108_v17  ;;  %v2124_v29 = vmul.f32 %v2113_v7, %v2053_v21 }
 0x1ca   : > { %v2128_v56 = vadd.f32 %v2127_v50, %v2119_v0  ;;  %v2157_v5 = vmul.f32 %v2147_v4, %v2088_v16  ;;  %v2120_v6 = vmul.f32 %v2093_v55, %v2049_v53  ;;  %v2148_v37 = vmul.f32 %v2049_v53, %v2049_v53 }
 0x1cb   : > { %v2162_v40 = vmul.f32 %v2152_v14, %v2113_v7 }
 0x1cc   : > { %v2166_v11 = vadd.f32 %v2165_v57, %v2157_v5  ;;  %v2129_v52 = vadd.f32 %v2128_v56, %v2120_v6  ;;  %v2158_v46 = vmul.f32 %v2148_v37, %v2093_v55 }
 0x1ce   : > { %v2130_v19 = vadd.f32 %v2129_v52, %v2121_v8  ;;  %v2167_v9 = vadd.f32 %v2166_v11, %v2158_v46 }
 0x1d0   : > { %v2131_v24 = vadd.f32 %v2130_v19, %v2122_v3  ;;  %v2168_v27 = vadd.f32 %v2167_v9, %v2159_v1 }
 0x1d2   : > { %v2132_v15 = vadd.f32 %v2131_v24, %v2123_v23  ;;  %v2169_v30 = vadd.f32 %v2168_v27, %v2160_v12 }
 0x1d4   : > { %v2133_v26 = vadd.f32 %v2132_v15, %v2124_v29  ;;  %v2170_v32 = vadd.f32 %v2169_v30, %v2161_v61 }
 0x1d6   : > { %v2134_v33 = vrot.slane %v2133_v26, 4  ;;  %v2171_v34 = vadd.f32 %v2170_v32, %v2162_v40 }
 0x1d8   : > { %v2135_v20 = vadd.f32 %v2134_v33, %v2133_v26  ;;  %v2172_v28 = vrot.slane %v2171_v34, 4 }
 0x1da   : > { %v2136_v38 = vrot.slane %v2135_v20, 2  ;;  %v2173_v41 = vadd.f32 %v2172_v28, %v2171_v34 }
 0x1dc   : > { %v2137_v2 = vadd.f32 %v2136_v38, %v2135_v20  ;;  %v2174_v42 = vrot.slane %v2173_v41, 2 }
 0x1de   : > { %v2138_v35 = vrot.slane %v2137_v2, 1  ;;  %v2175_v16 = vadd.f32 %v2174_v42, %v2173_v41 }
 0x1e0   : > { %v2139_v43 = vadd.f32 %v2138_v35, %v2137_v2  ;;  %v2176_v44 = vrot.slane %v2175_v16, 1 }
 0x1e2   : > { %v2140_v36 = vadd.f32 %v2139_v43, %v2064_v25  ;;  %v2177_v31 = vadd.f32 %v2176_v44, %v2175_v16 }
 0x1e4   : > { %2141 = vst [vmem:[#allocation2] sm:$0x1] %v2140_v36  ;;  %v2178_v50 = vadd.f32 %v2177_v31, %v2142_v48 }
 0x1e6   : > { %2179 = vst [vmem:[#allocation3] sm:$0x1] %v2178_v50 }
 0x1e7 PF: > { %p4763_p8 = scmp.ne.s32.totalorder %s6256_s25, 1 }
 0x1e8   : > { %v6085_v51 = vld [vmem:[%s7956_s2 + $0x40] sm:$0xff] (!%p4763_p8)   ;;  %v6274_v13 = vmov (!%p4763_p8), 0.0   ;;  %v6087_v39 = vld [vmem:[%s7956_s2 + $0x48] sm:$0xff] (!%p4763_p8)   ;;  %vm6275_vm7 = vmmov (!%p4763_p8), 0   ;;  %v6089_v45 = vld [vmem:[%s7956_s2 + $0x50] sm:$0xff] (!%p4763_p8)   ;;  %vm2614_vm9 = vcmask (!%p4763_p8), 1046528  }
 0x1e9   : > { %2223 = sbr.rel (%p4763_p8) target bundleno = 1175 (0x497), region = 60  ;;  %5582 = vmatprep.subr.bf16.mxu0 (!%p4763_p8), %v6274_v13  ;;  %5618 = vmatprep.subr.bf16.mxu1 (!%p4763_p8), %v6274_v13  ;;  %v6086_v54 = vld [vmem:[%s7956_s2] sm:$0xff] (!%p4763_p8)   ;;  %v6088_v55 = vld [vmem:[%s7956_s2 + $0x8] sm:$0xff] (!%p4763_p8)   ;;  %v6090_v57 = vld [vmem:[%s7956_s2 + $0x10] sm:$0xff] (!%p4763_p8)   ;;  %vm2296_vm8 = vsmask.f32 (!%p4763_p8), 7424 }
 0x1ea   : > { %5583 = vmatpush3.bf16.msra.mxu0 (!%p4763_p8), %v6085_v51  ;;  %5598 = vmatprep.mubr.msk.bf16.mxu0 (!%p4763_p8), %vm6275_vm7, %v6274_v13  ;;  %v6091_v58 = vld [vmem:[%s7956_s2 + $0x58] sm:$0xff] (!%p4763_p8)   ;;  %v6093_v60 = vld [vmem:[%s7956_s2 + $0x60] sm:$0xff] (!%p4763_p8)   ;;  %v6095_v4 = vld [vmem:[%s7956_s2 + $0x68] sm:$0xff] (!%p4763_p8)   ;;  %vm2986_vm10 = vsmask.f32 (!%p4763_p8), 6400  ;;  %vm3197_vm11 = vcmask (!%p4763_p8), 1045504  }
 0x1eb   : > { %5619 = vmatpush3.bf16.msra.mxu1 (!%p4763_p8), %v6086_v54  ;;  %5584 = vmatprep.subr.bf16.mxu0 (!%p4763_p8), %v6274_v13  ;;  %v6092_v47 = vld [vmem:[%s7956_s2 + $0x18] sm:$0xff] (!%p4763_p8)   ;;  %v6094_v49 = vld [vmem:[%s7956_s2 + $0x20] sm:$0xff] (!%p4763_p8)   ;;  %v7104_v59 = vld [vmem:[%s6352_s13 + $0x8] sm:$0xff] (!%p4763_p8)   ;;  %vm3569_vm12 = vsmask.f32 (!%p4763_p8), 5376  ;;  %vm3780_vm13 = vcmask (!%p4763_p8), 1044480  }
 0x1ec   : > { %5620 = vmatprep.subr.bf16.mxu1 (!%p4763_p8), %v6274_v13  ;;  %5634 = vmatprep.mubr.msk.bf16.mxu1 (!%p4763_p8), %vm6275_vm7, %v6274_v13  ;;  %v2224_v63 = vld [vmem:[%s6352_s13] sm:$0xf] (!%p4763_p8)  ;;  %v7097_v0 = vld [vmem:[%s6352_s13 + $0x4] sm:$0xf] (!%p4763_p8)  ;;  %v6096_v22 = vld [vmem:[%s7956_s2 + $0x28] sm:$0xff] (!%p4763_p8)   ;;  %v2305_v8 = vshll.u32 (!%p4763_p8), %v7104_v59, 16 }
 0x1ed   : > { %v4780_v53 = vcombine.low (!%p4763_p8), %v2224_v63, %v7097_v0  ;;  %v6097_v5 = vld [vmem:[%s7956_s2 + $0x70] sm:$0xff] (!%p4763_p8)   ;;  %v6099_v62 = vld [vmem:[%s7956_s2 + $0x78] sm:$0xff] (!%p4763_p8)   ;;  %v6103_v1 = vld [vmem:[%s7956_s2 + $0x80] sm:$0xff] (!%p4763_p8)   ;;  %v2309_v3 = vshrl.u32 (!%p4763_p8), %v7104_v59, 16 }
 0x1ee   : > { %5585 = vmatpush3.bf16.msra.mxu0 (!%p4763_p8), %v6087_v39  ;;  %v6098_v10 = vld [vmem:[%s7956_s2 + $0x30] sm:$0xff] (!%p4763_p8)   ;;  %v6100_v21 = vld [vmem:[%s7956_s2 + $0x38] sm:$0xff] (!%p4763_p8)   ;;  %v2307_v52 = vrot.slane (!%p4763_p8), %v2305_v8, 1  ;;  %v6107_v19 = vld [vmem:[%s7956_s2 + $0xc0] sm:$0xff] (!%p4763_p8)  }
 0x1ef   : > { %5621 = vmatpush3.bf16.msra.mxu1 (!%p4763_p8), %v6088_v55  ;;  %5586 = vmatprep.subr.bf16.mxu0 (!%p4763_p8), %v6274_v13  ;;  %v2300_v56 = vshll.u32 (!%p4763_p8), %v4780_v53, 16  ;;  %v2298_v6 = vshrl.u32 (!%p4763_p8), %v4780_v53, 16  ;;  %v7127_v46 = vld [vmem:[%s6352_s13 + $0x10] sm:$0xff] (!%p4763_p8)   ;;  %v6104_v9 = vld [vmem:[%s7956_s2 + $0x88] sm:$0xff] (!%p4763_p8)   ;;  %v7146_v23 = vld [vmem:[%s6352_s13 + $0x18] sm:$0xff] (!%p4763_p8)  }
 0x1f0   : > { %5622 = vmatprep.subr.bf16.mxu1 %v6274_v13  ;;  %v2313_v18 = vshll.u32 %v7127_v46, 16  ;;  %v2311_v12 = vor.u32 %v2309_v3, %v2307_v52  ;;  %v6108_v14 = vld [vmem:[%s7956_s2 + $0xc8] sm:$0xff]   ;;  %v6106_v24 = vld [vmem:[%s7956_s2 + $0x90] sm:$0xff]   ;;  %v2317_v61 = vshrl.u32 %v7127_v46, 16  ;;  %v2321_v29 = vshll.u32 %v7146_v23, 16  ;;  %v6110_v30 = vld [vmem:[%s7956_s2 + $0x98] sm:$0xff]  }
 0x1f1   : > { %v2302_v37 = vrot.slane %v2300_v56, 1  ;;  %v6111_v15 = vld [vmem:[%s7956_s2 + $0xd0] sm:$0xff]   ;;  %v7173_v32 = vld [vmem:[%s6352_s13 + $0x20] sm:$0xff]   ;;  %v6113_v33 = vld [vmem:[%s7956_s2 + $0xd8] sm:$0xff]   ;;  %v2325_v28 = vshrl.u32 %v7146_v23, 16  ;;  %v2618_v8 = vrot.slane %v7127_v46, 1 }
 0x1f2   : > { %5587 = vmatpush3.bf16.msra.mxu0 %v6089_v45  ;;  %v2315_v7 = vrot.slane %v2313_v18, 1  ;;  %v2323_v26 = vrot.slane %v2321_v29, 1  ;;  %v6112_v34 = vld [vmem:[%s7956_s2 + $0xa0] sm:$0xff]   ;;  %v2329_v38 = vshll.u32 %v7173_v32, 16  ;;  %v6115_v16 = vld [vmem:[%s7956_s2 + $0xa8] sm:$0xff]   ;;  %v2333_v44 = vshrl.u32 %v7173_v32, 16 }
 0x1f3   : > { %5623 = vmatpush3.bf16.msra.mxu1 %v6090_v57  ;;  %5588 = vmatprep.subr.bf16.mxu0 %v6274_v13  ;;  %v2303_v11 = vor.u32 %v2302_v37, %v2298_v6  ;;  %v6116_v41 = vld [vmem:[%s7956_s2 + $0xe0] sm:$0xff]   ;;  %v7195_v2 = vld [vmem:[%s6352_s13 + $0x28] ss:$0 sps:$4 sm:$0x11]   ;;  %v6117_v36 = vld [vmem:[%s7956_s2 + $0xb0] sm:$0xff]  }
 0x1f4   : > { %5624 = vmatprep.subr.bf16.mxu1 %v6274_v13  ;;  %v2316_v27 = vsel %vm2296_vm8, %v2311_v12, %v2315_v7  ;;  %v2319_v40 = vor.u32 %v2317_v61, %v2315_v7  ;;  %v2327_v42 = vor.u32 %v2325_v28, %v2323_v26  ;;  %v2331_v35 = vrot.slane %v2329_v38, 1  ;;  %v6118_v25 = vld [vmem:[%s7956_s2 + $0xe8] sm:$0xff]   ;;  %v6120_v31 = vld [vmem:[%s7956_s2 + $0xf0] sm:$0xff]   ;;  %v6121_v50 = vld [vmem:[%s7956_s2 + $0xb8] sm:$0xff]  }
 0x1f5   : > { %v2308_v17 = vsel %vm2296_vm8, %v2303_v11, %v2307_v52  ;;  %v2337_v48 = vshll.u32 %v7195_v2, 16  ;;  %v2593_v51 = vld [vmem:[%s6352_s13] sm:$0xe]  ;;  %v6122_v55 = vld [vmem:[%s7956_s2 + $0xf8] sm:$0xff]   ;;  %v2762_v45 = vld [vmem:[%s6352_s13 + $0x4] sm:$0xe] }
 0x1f6   : > { %5589 = vmatpush3.bf16.msra.mxu0 %v6091_v58  ;;  %v2324_v20 = vsel %vm2296_vm8, %v2319_v40, %v2323_v26  ;;  %v2332_v43 = vsel %vm2296_vm8, %v2327_v42, %v2331_v35  ;;  %v2335_v54 = vor.u32 %v2333_v44, %v2331_v35  ;;  %v7237_v57 = vld [vmem:[%s6352_s13 + $0x8] sm:$0xf]  ;;  %v6124_v56 = vld [vmem:[%s7956_s2 + $0x100] sm:$0xff]   ;;  %v7264_v6 = vld [vmem:[%s6352_s13 + $0x14] sm:$0xff]  }
 0x1f7   : > { %5625 = vmatpush3.bf16.msra.mxu1 %v6092_v47  ;;  %5590 = vmatprep.subr.bf16.mxu0 %v6274_v13  ;;  %v2339_v39 = vrot.slane %v2337_v48, 1  ;;  %v4818_v47 = vcombine.low %v2593_v51, %v7097_v0  ;;  %v2616_v0 = vrot.slane %v7104_v59, 1  ;;  %v6127_v37 = vld [vmem:[%s7956_s2 + $0x108] sm:$0xff]   ;;  %v6129_v11 = vld [vmem:[%s7956_s2 + $0x110] sm:$0xff]   ;;  %v6132_v3 = vld [vmem:[%s7956_s2 + $0x118] sm:$0xff]  }
 0x1f8   : > { %5626 = vmatprep.subr.bf16.mxu1 %v6274_v13  ;;  %v6135_v12 = vld [vmem:[%s7956_s2 + $0x120] sm:$0xff]   ;;  %v6141_v29 = vld [vmem:[%s7956_s2 + $0x168] sm:$0xff]   ;;  %v6140_v26 = vld [vmem:[%s7956_s2 + $0x130] sm:$0xff]  }
 0x1f9   : > { %v2340_v58 = vsel %vm2296_vm8, %v2335_v54, %v2339_v39  ;;  %v2615_v63 = vrot.slane %v4818_v47, 1  ;;  %v6145_v28 = vld [vmem:[%s7956_s2 + $0x178] sm:$0xff]   ;;  %v3176_v42 = vld [vmem:[%s6352_s13 + $0x4] sm:$0xc]  ;;  %v3005_v54 = vshrl.u32 %v7264_v6, 16  ;;  %v3008_v39 = vshll.u32 %v7264_v6, 16 }
 0x1fa   : > { %5591 = vmatpush3.bf16.msra.mxu0 %v6093_v60  ;;  %v7243_v60 = vcombine.low %v2762_v45, %v7237_v57 }
 0x1fb   : > { %5627 = vmatpush3.bf16.msra.mxu1 %v6094_v49  ;;  %5592 = vmatprep.subr.bf16.mxu0 %v6274_v13  ;;  %v7246_v49 = vld [vmem:[%s6352_s13 + $0xc] sm:$0xff]   ;;  %v3007_v47 = vrot.slane %v3005_v54, 1 }
 0x1fc   : > { %5628 = vmatprep.subr.bf16.mxu1 %v6274_v13  ;;  %v2991_v38 = vshll.u32 %v7243_v60, 16  ;;  %v3199_v45 = vrot.slane %v7246_v49, 2 }
 0x1fe   : > { %5593 = vmatpush3.bf16.msra.mxu0 %v6095_v4  ;;  %v2818_v4 = vrot.slane %v7243_v60, 1 }
 0x1ff   : > { %5629 = vmatpush3.bf16.msra.mxu1 %v6096_v22  ;;  %5594 = vmatprep.subr.bf16.mxu0 %v6274_v13  ;;  %v2617_v22 = vsel %vm2614_vm9, %v2615_v63, %v2616_v0 }
 0x200   : > { %5630 = vmatprep.subr.bf16.mxu1 %v6274_v13 }
 0x202   : > { %5595 = vmatpush3.bf16.msra.mxu0 %v6097_v5 }
 0x203   : > { %5631 = vmatpush3.bf16.msra.mxu1 %v6098_v10  ;;  %5596 = vmatprep.subr.bf16.mxu0 %v6274_v13  ;;  %v2821_v10 = vrot.slane %v7264_v6, 1 }
 0x204   : > { %5632 = vmatprep.subr.bf16.mxu1 %v6274_v13 }
 0x206   : > { %5597 = vmatpush3.bf16.msra.mxu0 %v6099_v62  ;;  %v6131_v62 = vld [vmem:[%s7956_s2 + $0x148] sm:$0xff]  }
 0x207   : > { %5633 = vmatpush3.bf16.msra.mxu1 %v6100_v21  ;;  %5654 = vmatprep.subr.bf16.mxu0 %v6274_v13  ;;  %v2619_v21 = vsel %vm2614_vm9, %v2616_v0, %v2618_v8  ;;  %v6150_v0 = vld [vmem:[%s7956_s2 + $0x1c0] sm:$0xff]  }
 0x208   : > { %5690 = vmatprep.subr.bf16.mxu1 %v6274_v13 }
 0x209   : > { %5599 = vmatmul.mubr.bf16.vlgmr.msra.gmra.mrb[0].mxu0 %v2308_v17  ;;  %v2620_v17 = vrot.slane %v7146_v23, 1 }
 0x20a   : > { %5635 = vmatmul.mubr.bf16.vlgmr.msra.gmra.mrb[0].mxu1 %v4780_v53  ;;  %5655 = vmatpush3.bf16.msra.mxu0 %v6103_v1  ;;  %v2819_v53 = vrot.slane %v7246_v49, 1  ;;  %v6134_v1 = vld [vmem:[%s7956_s2 + $0x150] sm:$0xff]  }
 0x20b   : > { %5656 = vmatprep.subr.bf16.mxu0 %v6274_v13  ;;  %5602 = vmatprep.mubr.msk.bf16.mxu0 %vm6275_vm7, %v6274_v13 }
 0x20c   : > { %5638 = vmatprep.mubr.msk.bf16.mxu1 %vm6275_vm7, %v6274_v13  ;;  %5691 = vmatpush3.bf16.msra.mxu1 %v6107_v19  ;;  %v2820_v5 = vsel %vm2614_vm9, %v2818_v4, %v2819_v53  ;;  %v2822_v52 = vsel %vm2614_vm9, %v2819_v53, %v2821_v10  ;;  %v6136_v19 = vld [vmem:[%s7956_s2 + $0x158] sm:$0xff]  }
 0x20d   : > { %5692 = vmatprep.subr.bf16.mxu1 %v6274_v13 }
 0x20e   : > { %5657 = vmatpush3.bf16.msra.mxu0 %v6104_v9  ;;  %v2621_v9 = vsel %vm2614_vm9, %v2618_v8, %v2620_v17 }
 0x20f   : > { %5658 = vmatprep.subr.bf16.mxu0 %v6274_v13 }
 0x210   : > { %5693 = vmatpush3.bf16.msra.mxu1 %v6108_v14  ;;  %v6139_v14 = vld [vmem:[%s7956_s2 + $0x160] sm:$0xff]  }
 0x211   : > { %5603 = vmatmul.mubr.bf16.gmra.mrb[4].mxu0 %v2316_v27  ;;  %5694 = vmatprep.subr.bf16.mxu1 %v6274_v13  ;;  %v6138_v27 = vld [vmem:[%s7956_s2 + $0x128] sm:$0xff]  }
 0x212   : > { %5639 = vmatmul.mubr.bf16.gmra.mrb[4].mxu1 %v7104_v59  ;;  %5659 = vmatpush3.bf16.msra.mxu0 %v6106_v24  ;;  %v6130_v59 = vld [vmem:[%s7956_s2 + $0x140] sm:$0xff]   ;;  %v2622_v24 = vrot.slane %v7173_v32, 1 }
 0x213   : > { %5606 = vmatprep.mubr.msk.bf16.mxu0 %vm6275_vm7, %v6274_v13  ;;  %5642 = vmatprep.mubr.msk.bf16.mxu1 %vm6275_vm7, %v6274_v13 }
 0x214   : > { %5660 = vmatprep.subr.bf16.mxu0 %v6274_v13  ;;  %5695 = vmatpush3.bf16.msra.mxu1 %v6111_v15  ;;  %v2623_v15 = vsel %vm2614_vm9, %v2620_v17, %v2622_v24 }
 0x215   : > { %5696 = vmatprep.subr.bf16.mxu1 %v6274_v13 }
 0x216   : > { %5661 = vmatpush3.bf16.msra.mxu0 %v6110_v30  ;;  %v6142_v30 = vld [vmem:[%s6352_s13 + $0x2c] ss:$0 sps:$4 sm:$0x11]  }
 0x217   : > { %5662 = vmatprep.subr.bf16.mxu0 %v6274_v13  ;;  %v2827_v35 = vrot.slane %v6142_v30, 1  ;;  %v6159_v30 = vld [vmem:[%s7956_s2 + $0x1e8] sm:$0xff]  }
 0x218   : > { %5697 = vmatpush3.bf16.msra.mxu1 %v6113_v33  ;;  %v2624_v33 = vrot.slane %v7195_v2, 1  ;;  %v2999_v2 = vshll.u32 %v7246_v49, 16 }
 0x219   : > { %5607 = vmatmul.mubr.bf16.gmra.mrb[8].mxu0 %v2324_v20  ;;  %5698 = vmatprep.subr.bf16.mxu1 %v6274_v13  ;;  %v2988_v20 = vshrl.u32 %v7243_v60, 16  ;;  %v3010_v60 = vrot.slane %v3008_v39, 2 }
 0x21a   : > { %5643 = vmatmul.mubr.bf16.gmra.mrb[8].mxu1 %v7127_v46  ;;  %5663 = vmatpush3.bf16.msra.mxu0 %v6112_v34  ;;  %v7290_v46 = vld [vmem:[%s6352_s13 + $0x1c] sm:$0xff]   ;;  %v3001_v48 = vrot.slane %v2999_v2, 2 }
 0x21b   : > { %5610 = vmatprep.mubr.msk.bf16.mxu0 %vm6275_vm7, %v6274_v13  ;;  %5646 = vmatprep.mubr.msk.bf16.mxu1 %vm6275_vm7, %v6274_v13  ;;  %v2823_v18 = vrot.slane %v7290_v46, 1  ;;  %v6144_v34 = vld [vmem:[%s7956_s2 + $0x138] sm:$0xff]   ;;  %v3011_v4 = vor.u32 %v3010_v60, %v3007_v47  ;;  %v3014_v53 = vshrl.u32 %v7290_v46, 16  ;;  %v3203_v17 = vrot.slane %v7290_v46, 2 }
 0x21c   : > { %5664 = vmatprep.subr.bf16.mxu0 %v6274_v13  ;;  %5699 = vmatpush3.bf16.msra.mxu1 %v6116_v41  ;;  %v2996_v41 = vshrl.u32 %v7246_v49, 16  ;;  %v6148_v49 = vld [vmem:[%s7956_s2 + $0x188] sm:$0xff]  }
 0x21d   : > { %5700 = vmatprep.subr.bf16.mxu1 %v6274_v13  ;;  %v2824_v7 = vsel %vm2614_vm9, %v2821_v10, %v2823_v18  ;;  %v3016_v8 = vrot.slane %v3014_v53, 1 }
 0x21e   : > { %5665 = vmatpush3.bf16.msra.mxu0 %v6115_v16  ;;  %v2990_v16 = vrot.slane %v2988_v20, 1  ;;  %v2998_v44 = vrot.slane %v2996_v41, 1  ;;  %v6161_v41 = vld [vmem:[%s7956_s2 + $0x1f0] sm:$0xff]  }
 0x21f   : > { %5666 = vmatprep.subr.bf16.mxu0 %v6274_v13 }
 0x220   : > { %5701 = vmatpush3.bf16.msra.mxu1 %v6118_v25  ;;  %v2625_v25 = vsel %vm2614_vm9, %v2622_v24, %v2624_v33  ;;  %v3002_v51 = vor.u32 %v3001_v48, %v2998_v44  ;;  %v6163_v48 = vld [vmem:[%s7956_s2 + $0x1f8] sm:$0xff]  }
 0x221   : > { %5611 = vmatmul.mubr.bf16.gmra.mrb[12].mxu0 %v2332_v43  ;;  %5702 = vmatprep.subr.bf16.mxu1 %v6274_v13  ;;  %v2993_v43 = vrot.slane %v2991_v38, 2  ;;  %v7462_v38 = vld [vmem:[%s6352_s13 + $0x10] sm:$0xff]  }
 0x222   : > { %5647 = vmatmul.mubr.bf16.gmra.mrb[12].mxu1 %v7146_v23  ;;  %5614 = vmatprep.mubr.msk.bf16.mxu0 %vm6275_vm7, %v6274_v13  ;;  %v7317_v23 = vld [vmem:[%s6352_s13 + $0x24] sm:$0xff]   ;;  %v3582_v44 = vshll.u32 %v7462_v38, 16 }
 0x223   : > { %5650 = vmatprep.mubr.msk.bf16.mxu1 %vm6275_vm7, %v6274_v13  ;;  %5667 = vmatpush3.bf16.msra.mxu0 %v6117_v36  ;;  %v2825_v61 = vrot.slane %v7317_v23, 1 }
 0x224   : > { %5668 = vmatprep.subr.bf16.mxu0 %v6274_v13  ;;  %5703 = vmatpush3.bf16.msra.mxu1 %v6120_v31  ;;  %v4898_v31 = vcombine.low %v3176_v42, %v7237_v57  ;;  %v3584_v39 = vrot.slane %v3582_v44, 3 }
 0x225   : > { %5704 = vmatprep.subr.bf16.mxu1 %v6274_v13  ;;  %v2826_v40 = vsel %vm2614_vm9, %v2823_v18, %v2825_v61  ;;  %v2828_v36 = vsel %vm2614_vm9, %v2825_v61, %v2827_v35  ;;  %v6162_v35 = vld [vmem:[%s7956_s2 + $0x1b8] sm:$0xff]  }
 0x227   : > { %5669 = vmatpush3.bf16.msra.mxu0 %v6121_v50  ;;  %v2994_v50 = vor.u32 %v2993_v43, %v2990_v16  ;;  %v3579_v43 = vshrl.u32 %v7462_v38, 16 }
 0x228   : > { %5705 = vmatpush3.bf16.msra.mxu1 %v6122_v55  ;;  %5726 = vmatprep.subr.bf16.mxu0 %v6274_v13  ;;  %v3198_v55 = vrot.slane %v4898_v31, 2 }
 0x229   : > { %5615 = vmatmul.mubr.bf16.gmra.mrb[16].mxu0 %v2340_v58  ;;  %5762 = vmatprep.subr.bf16.mxu1 %v6274_v13  ;;  %v3003_v57 = vsel %vm2986_vm10, %v2994_v50, %v3002_v51  ;;  %v6146_v58 = vld [vmem:[%s7956_s2 + $0x180] sm:$0xff]   ;;  %v3581_v54 = vrot.slane %v3579_v43, 2 }
 0x22a   : > { %5651 = vmatmul.mubr.bf16.gmra.mrb[16].mxu1 %v7173_v32  ;;  %5670 = vmatprep.mubr.msk.bf16.mxu0 %vm6275_vm7, %v6274_v13  ;;  %v6143_v32 = vld [vmem:[%s7956_s2 + $0x170] sm:$0xff]   ;;  %v3200_v63 = vsel %vm3197_vm11, %v3198_v55, %v3199_v45  ;;  %v7485_v55 = vld [vmem:[%s6352_s13 + $0x18] sm:$0xff]  }
 0x22b   : > { %5706 = vmatprep.mubr.msk.bf16.mxu1 %vm6275_vm7, %v6274_v13  ;;  %v3585_v47 = vor.u32 %v3584_v39, %v3581_v54  ;;  %v3588_v60 = vshrl.u32 %v7485_v55, 16 }
 0x22d   : > { %v3590_v53 = vrot.slane %v3588_v60, 2 }
 0x231   : > { %5671 = vmatmul.mubr.bf16.vlgmr.msra.gmra.mrb[20].mxu0 %v2617_v22  ;;  %v3017_v22 = vshll.u32 %v7290_v46, 16  ;;  %v6160_v46 = vld [vmem:[%s6352_s13 + $0x2c] ss:$0 sps:$4 sm:$0x33]  }
 0x232   : > { %5727 = vmatpush3.bf16.msra.mxu0 %v6124_v56  ;;  %5707 = vmatmul.mubr.bf16.vlgmr.msra.gmra.mrb[20].mxu1 %v2820_v5  ;;  %v3201_v56 = vrot.slane %v7264_v6, 2  ;;  %v6151_v5 = vld [vmem:[%s7956_s2 + $0x1c8] sm:$0xff]   ;;  %v3032_v61 = vshrl.u32 %v6160_v46, 16  ;;  %v3207_v42 = vrot.slane %v6160_v46, 2 }
 0x233   : > { %5728 = vmatprep.subr.bf16.mxu0 %v6274_v13  ;;  %5674 = vmatprep.mubr.msk.bf16.mxu0 %vm6275_vm7, %v6274_v13  ;;  %v3019_v10 = vrot.slane %v3017_v22, 2 }
 0x234   : > { %5710 = vmatprep.mubr.msk.bf16.mxu1 %vm6275_vm7, %v6274_v13  ;;  %5763 = vmatpush3.bf16.msra.mxu1 %v6130_v59  ;;  %v3012_v59 = vsel %vm2986_vm10, %v3002_v51, %v3011_v4  ;;  %v3202_v6 = vsel %vm3197_vm11, %v3199_v45, %v3201_v56  ;;  %v3034_v33 = vrot.slane %v3032_v61, 1 }
 0x235   : > { %5764 = vmatprep.subr.bf16.mxu1 %v6274_v13 }
 0x236   : > { %5729 = vmatpush3.bf16.msra.mxu0 %v6127_v37  ;;  %v6149_v37 = vld [vmem:[%s7956_s2 + $0x190] sm:$0xff]  }
 0x237   : > { %5730 = vmatprep.subr.bf16.mxu0 %v6274_v13 }
 0x238   : > { %5765 = vmatpush3.bf16.msra.mxu1 %v6131_v62  ;;  %v6153_v62 = vld [vmem:[%s7956_s2 + $0x1d0] sm:$0xff]  }
 0x239   : > { %5675 = vmatmul.mubr.bf16.gmra.mrb[24].mxu0 %v2619_v21  ;;  %5766 = vmatprep.subr.bf16.mxu1 %v6274_v13  ;;  %v3020_v21 = vor.u32 %v3019_v10, %v3016_v8 }
 0x23a   : > { %5711 = vmatmul.mubr.bf16.gmra.mrb[24].mxu1 %v2822_v52  ;;  %5731 = vmatpush3.bf16.msra.mxu0 %v6129_v11  ;;  %v6152_v11 = vld [vmem:[%s7956_s2 + $0x198] sm:$0xff]   ;;  %v3023_v52 = vshrl.u32 %v7317_v23, 16 }
 0x23b   : > { %5678 = vmatprep.mubr.msk.bf16.mxu0 %vm6275_vm7, %v6274_v13  ;;  %5732 = vmatprep.subr.bf16.mxu0 %v6274_v13  ;;  %v3021_v18 = vsel %vm2986_vm10, %v3011_v4, %v3020_v21 }
 0x23c   : > { %5714 = vmatprep.mubr.msk.bf16.mxu1 %vm6275_vm7, %v6274_v13  ;;  %5767 = vmatpush3.bf16.msra.mxu1 %v6134_v1  ;;  %v3026_v1 = vshll.u32 %v7317_v23, 16 }
 0x23d   : > { %5768 = vmatprep.subr.bf16.mxu1 %v6274_v13 }
 0x23e   : > { %5733 = vmatpush3.bf16.msra.mxu0 %v6132_v3  ;;  %v6155_v3 = vld [vmem:[%s7956_s2 + $0x1d8] sm:$0xff]  }
 0x23f   : > { %5734 = vmatprep.subr.bf16.mxu0 %v6274_v13 }
 0x240   : > { %5769 = vmatpush3.bf16.msra.mxu1 %v6136_v19  ;;  %v6154_v19 = vld [vmem:[%s7956_s2 + $0x1a0] sm:$0xff]  }
 0x241   : > { %5679 = vmatmul.mubr.bf16.gmra.mrb[28].mxu0 %v2621_v9  ;;  %5770 = vmatprep.subr.bf16.mxu1 %v6274_v13  ;;  %v3025_v9 = vrot.slane %v3023_v52, 1 }
 0x242   : > { %5715 = vmatmul.mubr.bf16.gmra.mrb[28].mxu1 %v2824_v7  ;;  %5735 = vmatpush3.bf16.msra.mxu0 %v6135_v12  ;;  %v3028_v12 = vrot.slane %v3026_v1, 2  ;;  %v3204_v7 = vsel %vm3197_vm11, %v3201_v56, %v3203_v17  ;;  %v7501_v56 = vld [vmem:[%s6352_s13 + $0x20] sm:$0xff]   ;;  %v7521_v1 = vld [vmem:[%s6352_s13 + $0x28] sm:$0xff]  }
 0x243   : > { %5682 = vmatprep.mubr.msk.bf16.mxu0 %vm6275_vm7, %v6274_v13  ;;  %5718 = vmatprep.mubr.msk.bf16.mxu1 %vm6275_vm7, %v6274_v13  ;;  %v3597_v8 = vshrl.u32 %v7501_v56, 16  ;;  %v3600_v10 = vshll.u32 %v7501_v56, 16  ;;  %v3408_v61 = vrot.slane %v7521_v1, 2 }
 0x244   : > { %5736 = vmatprep.subr.bf16.mxu0 %v6274_v13  ;;  %5771 = vmatpush3.bf16.msra.mxu1 %v6139_v14  ;;  %v6157_v14 = vld [vmem:[%s7956_s2 + $0x1e0] sm:$0xff]   ;;  %v3029_v24 = vor.u32 %v3028_v12, %v3025_v9  ;;  %v3609_v9 = vshll.u32 %v7521_v1, 16 }
 0x245   : > { %5772 = vmatprep.subr.bf16.mxu1 %v6274_v13  ;;  %v3602_v52 = vrot.slane %v3600_v10, 3 }
 0x246   : > { %5737 = vmatpush3.bf16.msra.mxu0 %v6138_v27  ;;  %v6156_v27 = vld [vmem:[%s7956_s2 + $0x1a8] sm:$0xff]  }
 0x247   : > { %5738 = vmatprep.subr.bf16.mxu0 %v6274_v13 }
 0x248   : > { %5773 = vmatpush3.bf16.msra.mxu1 %v6141_v29  ;;  %v3035_v29 = vshll.u32 %v6160_v46, 16  ;;  %v6172_v46 = vld [vmem:[%s7956_s2 + $0x220] sm:$0xff]  }
 0x249   : > { %5683 = vmatmul.mubr.bf16.gmra.mrb[32].mxu0 %v2623_v15  ;;  %5774 = vmatprep.subr.bf16.mxu1 %v6274_v13  ;;  %v3205_v15 = vrot.slane %v7317_v23, 2  ;;  %v6158_v23 = vld [vmem:[%s7956_s2 + $0x1b0] sm:$0xff]  }
 0x24a   : > { %5719 = vmatmul.mubr.bf16.gmra.mrb[32].mxu1 %v2826_v40  ;;  %5686 = vmatprep.mubr.msk.bf16.mxu0 %vm6275_vm7, %v6274_v13  ;;  %v3345_v40 = vld [vmem:[%s6352_s13 + $0x8] sm:$0xc] }
 0x24b   : > { %5739 = vmatpush3.bf16.msra.mxu0 %v6140_v26  ;;  %5722 = vmatprep.mubr.msk.bf16.mxu1 %vm6275_vm7, %v6274_v13  ;;  %v7451_v26 = vld [vmem:[%s6352_s13 + $0xc] sm:$0xf]  ;;  %v3206_v20 = vsel %vm3197_vm11, %v3203_v17, %v3205_v15  ;;  %v3208_v31 = vsel %vm3197_vm11, %v3205_v15, %v3207_v42  ;;  %v3406_v17 = vrot.slane %v7501_v56, 2  ;;  %v6178_v42 = vld [vmem:[%s7956_s2 + $0x238] sm:$0xff]  }
 0x24c   : > { %5740 = vmatprep.subr.bf16.mxu0 %v6274_v13  ;;  %5775 = vmatpush3.bf16.msra.mxu1 %v6143_v32  ;;  %v3030_v32 = vsel %vm2986_vm10, %v3020_v21, %v3029_v24 }
 0x24d   : > { %5776 = vmatprep.subr.bf16.mxu1 %v6274_v13 }
 0x24f   : > { %5741 = vmatpush3.bf16.msra.mxu0 %v6144_v34  ;;  %v3037_v34 = vrot.slane %v3035_v29, 2  ;;  %v6174_v29 = vld [vmem:[%s7956_s2 + $0x228] sm:$0xff]  }
 0x250   : > { %5777 = vmatpush3.bf16.msra.mxu1 %v6145_v28  ;;  %5798 = vmatprep.subr.bf16.mxu0 %v6274_v13  ;;  %v4923_v28 = vcombine.low %v3345_v40, %v7451_v26 }
 0x251   : > { %5687 = vmatmul.mubr.bf16.gmra.mrb[36].mxu0 %v2625_v25  ;;  %5834 = vmatprep.subr.bf16.mxu1 %v6274_v13  ;;  %v3038_v2 = vor.u32 %v3037_v34, %v3034_v33  ;;  %v6176_v33 = vld [vmem:[%s6352_s13 + $0x30] ss:$0 sps:$4 sm:$0x33]  }
 0x252   : > { %5723 = vmatmul.mubr.bf16.gmra.mrb[36].mxu1 %v2828_v36  ;;  %5742 = vmatprep.mubr.msk.bf16.mxu0 %vm6275_vm7, %v6274_v13  ;;  %v3571_v16 = vshrl.u32 %v4923_v28, 16  ;;  %v3574_v25 = vshll.u32 %v4923_v28, 16  ;;  %v3401_v45 = vrot.slane %v4923_v28, 2 }
 0x253   : > { %5778 = vmatprep.mubr.msk.bf16.mxu1 %vm6275_vm7, %v6274_v13  ;;  %v3039_v36 = vsel %vm2986_vm10, %v3029_v24, %v3038_v2  ;;  %v3611_v24 = vrot.slane %v3609_v9, 3 }
 0x254   : > { %v3573_v50 = vrot.slane %v3571_v16, 2  ;;  %v3576_v51 = vrot.slane %v3574_v25, 3 }
 0x259   : > { %5743 = vmatmul.mubr.bf16.vlgmr.msra.gmra.mrb[40].mxu0 %v3003_v57  ;;  %v3402_v57 = vrot.slane %v7462_v38, 2 }
 0x25a   : > { %5799 = vmatpush3.bf16.msra.mxu0 %v6146_v58  ;;  %5779 = vmatmul.mubr.bf16.vlgmr.msra.gmra.mrb[40].mxu1 %v3200_v63  ;;  %v3577_v58 = vor.u32 %v3576_v51, %v3573_v50  ;;  %v3591_v63 = vshll.u32 %v7485_v55, 16  ;;  %v3786_v50 = vrot.slane %v7501_v56, 3 }
 0x25b   : > { %5800 = vmatprep.subr.bf16.mxu0 %v6274_v13  ;;  %5746 = vmatprep.mubr.msk.bf16.mxu0 %vm6275_vm7, %v6274_v13 }
 0x25c   : > { %5782 = vmatprep.mubr.msk.bf16.mxu1 %vm6275_vm7, %v6274_v13  ;;  %5835 = vmatpush3.bf16.msra.mxu1 %v6150_v0  ;;  %v3403_v0 = vsel %vm3197_vm11, %v3401_v45, %v3402_v57  ;;  %v3586_v4 = vsel %vm3569_vm12, %v3577_v58, %v3585_v47  ;;  %v3593_v22 = vrot.slane %v3591_v63, 3 }
 0x25d   : > { %5836 = vmatprep.subr.bf16.mxu1 %v6274_v13 }
 0x25e   : > { %5801 = vmatpush3.bf16.msra.mxu0 %v6148_v49  ;;  %v6166_v49 = vld [vmem:[%s7956_s2 + $0x200] sm:$0xff]  }
 0x25f   : > { %5802 = vmatprep.subr.bf16.mxu0 %v6274_v13 }
 0x260   : > { %5837 = vmatpush3.bf16.msra.mxu1 %v6151_v5  ;;  %v6167_v5 = vld [vmem:[%s7956_s2 + $0x208] sm:$0xff]  }
 0x261   : > { %5747 = vmatmul.mubr.bf16.gmra.mrb[44].mxu0 %v3012_v59  ;;  %5838 = vmatprep.subr.bf16.mxu1 %v6274_v13  ;;  %v3404_v59 = vrot.slane %v7485_v55, 2 }
 0x262   : > { %5783 = vmatmul.mubr.bf16.gmra.mrb[44].mxu1 %v3202_v6  ;;  %5803 = vmatpush3.bf16.msra.mxu0 %v6149_v37  ;;  %v3594_v37 = vor.u32 %v3593_v22, %v3590_v53 }
 0x263   : > { %5750 = vmatprep.mubr.msk.bf16.mxu0 %vm6275_vm7, %v6274_v13  ;;  %5804 = vmatprep.subr.bf16.mxu0 %v6274_v13  ;;  %v3405_v6 = vsel %vm3197_vm11, %v3402_v57, %v3404_v59  ;;  %v3407_v12 = vsel %vm3197_vm11, %v3404_v59, %v3406_v17 }
 0x264   : > { %5786 = vmatprep.mubr.msk.bf16.mxu1 %vm6275_vm7, %v6274_v13  ;;  %5839 = vmatpush3.bf16.msra.mxu1 %v6153_v62  ;;  %v6169_v62 = vld [vmem:[%s7956_s2 + $0x210] sm:$0xff]   ;;  %v3595_v21 = vsel %vm3569_vm12, %v3585_v47, %v3594_v37 }
 0x265   : > { %5840 = vmatprep.subr.bf16.mxu1 %v6274_v13 }
 0x266   : > { %5805 = vmatpush3.bf16.msra.mxu0 %v6152_v11  ;;  %v3599_v11 = vrot.slane %v3597_v8, 2 }
 0x267   : > { %5806 = vmatprep.subr.bf16.mxu0 %v6274_v13 }
 0x268   : > { %5841 = vmatpush3.bf16.msra.mxu1 %v6155_v3  ;;  %v6171_v3 = vld [vmem:[%s7956_s2 + $0x218] sm:$0xff]  }
 0x269   : > { %5751 = vmatmul.mubr.bf16.gmra.mrb[48].mxu0 %v3021_v18  ;;  %5842 = vmatprep.subr.bf16.mxu1 %v6274_v13  ;;  %v3603_v18 = vor.u32 %v3602_v52, %v3599_v11 }
 0x26a   : > { %5787 = vmatmul.mubr.bf16.gmra.mrb[48].mxu1 %v3204_v7  ;;  %5807 = vmatpush3.bf16.msra.mxu0 %v6154_v19  ;;  %v3606_v19 = vshrl.u32 %v7521_v1, 16 }
 0x26b   : > { %5754 = vmatprep.mubr.msk.bf16.mxu0 %vm6275_vm7, %v6274_v13  ;;  %5790 = vmatprep.mubr.msk.bf16.mxu1 %vm6275_vm7, %v6274_v13  ;;  %v3604_v7 = vsel %vm3569_vm12, %v3594_v37, %v3603_v18 }
 0x26c   : > { %5808 = vmatprep.subr.bf16.mxu0 %v6274_v13  ;;  %5843 = vmatpush3.bf16.msra.mxu1 %v6157_v14  ;;  %v3608_v14 = vrot.slane %v3606_v19, 2 }
 0x26d   : > { %5844 = vmatprep.subr.bf16.mxu1 %v6274_v13 }
 0x26e   : > { %5809 = vmatpush3.bf16.msra.mxu0 %v6156_v27  ;;  %v6177_v27 = vld [vmem:[%s6352_s13 + $0x30] ss:$0 sps:$4 sm:$0x77]   ;;  %v3612_v15 = vor.u32 %v3611_v24, %v3608_v14  ;;  %v7618_v24 = vld [vmem:[%s7960_s6 + $0x8] ss:$16 sps:$4 sm:$0xff]  }
 0x26f   : > { %5810 = vmatprep.subr.bf16.mxu0 %v6274_v13  ;;  %v3618_v40 = vshll.u32 %v6177_v27, 16  ;;  %v3790_v39 = vrot.slane %v6177_v27, 3 }
 0x270   : > { %5845 = vmatpush3.bf16.msra.mxu1 %v6159_v30  ;;  %v3615_v30 = vshrl.u32 %v6177_v27, 16  ;;  %v3613_v34 = vsel %vm3569_vm12, %v3603_v18, %v3612_v15  ;;  %v6185_v18 = vld [vmem:[%s7960_s6 + $0x24] ss:$16 sps:$4 sm:$0xff]  }
 0x271   : > { %5755 = vmatmul.mubr.bf16.gmra.mrb[52].mxu0 %v3030_v32  ;;  %5846 = vmatprep.subr.bf16.mxu1 %v6274_v13  ;;  %v3409_v32 = vsel %vm3197_vm11, %v3406_v17, %v3408_v61  ;;  %v3620_v28 = vrot.slane %v3618_v40, 3  ;;  %v7638_v40 = vld [vmem:[%s7960_s6 + $0x2c] ss:$16 sps:$4 sm:$0xff]  }
 0x272   : > { %5791 = vmatmul.mubr.bf16.gmra.mrb[52].mxu1 %v3206_v20  ;;  %5758 = vmatprep.mubr.msk.bf16.mxu0 %vm6275_vm7, %v6274_v13  ;;  %v6175_v20 = vld [vmem:[%s7956_s2 + $0x230] sm:$0xff]  }
 0x273   : > { %5811 = vmatpush3.bf16.msra.mxu0 %v6158_v23  ;;  %5794 = vmatprep.mubr.msk.bf16.mxu1 %vm6275_vm7, %v6274_v13  ;;  %v3617_v23 = vrot.slane %v3615_v30, 2  ;;  %v7633_v30 = vld [vmem:[%s7960_s6 + $0x28] ss:$16 sps:$4 sm:$0xff]  }
 0x274   : > { %5812 = vmatprep.subr.bf16.mxu0 %v6274_v13  ;;  %5847 = vmatpush3.bf16.msra.mxu1 %v6161_v41  ;;  %v3410_v41 = vrot.slane %v6176_v33, 2 }
 0x275   : > { %5848 = vmatprep.subr.bf16.mxu1 %v6274_v13  ;;  %v3621_v2 = vor.u32 %v3620_v28, %v3617_v23 }
 0x276   : > { %v3411_v16 = vsel %vm3197_vm11, %v3408_v61, %v3410_v41  ;;  %v7647_v41 = vld [vmem:[%s7960_s6 + $0x4c] ss:$16 sps:$4 sm:$0xff]  }
 0x277   : > { %5813 = vmatpush3.bf16.msra.mxu0 %v6162_v35  ;;  %v3759_v35 = vld [vmem:[%s6352_s13 + $0x8] sm:$0x8]  ;;  %v3622_v43 = vsel %vm3569_vm12, %v3612_v15, %v3621_v2  ;;  %v6191_v15 = vld [vmem:[%s7960_s6 + $0x44] ss:$16 sps:$4 sm:$0xff]  }
 0x278   : > { %5849 = vmatpush3.bf16.msra.mxu1 %v6163_v48  ;;  %5870 = vmatprep.subr.bf16.mxu0 %v6274_v13  ;;  %v4978_v25 = vcombine.low %v3759_v35, %v7451_v26  ;;  %v3782_v48 = vrot.slane %v7462_v38, 3  ;;  %v3784_v26 = vrot.slane %v7485_v55, 3  ;;  %v3788_v38 = vrot.slane %v7521_v1, 3  ;;  %v6195_v35 = vld [vmem:[%s7960_s6 + $0x60] ss:$16 sps:$4 sm:$0xff]  }
 0x279   : > { %5759 = vmatmul.mubr.bf16.gmra.mrb[56].mxu0 %v3039_v36 }
 0x27a   : > { %5795 = vmatmul.mubr.bf16.gmra.mrb[56].mxu1 %v3208_v31  ;;  %5814 = vmatprep.mubr.msk.bf16.mxu0 %vm6275_vm7, %v6274_v13  ;;  %v3781_v44 = vrot.slane %v4978_v25, 3  ;;  %v3785_v31 = vsel %vm3780_vm13, %v3782_v48, %v3784_v26  ;;  %v3787_v51 = vsel %vm3780_vm13, %v3784_v26, %v3786_v50  ;;  %v3789_v54 = vsel %vm3780_vm13, %v3786_v50, %v3788_v38  ;;  %v7673_v26 = vld [vmem:[%s7960_s6 + $0x68] ss:$16 sps:$4 sm:$0xff]  }
 0x27b   : > { %5850 = vmatprep.mubr.msk.bf16.mxu1 %vm6275_vm7, %v6274_v13  ;;  %v3791_v55 = vsel %vm3780_vm13, %v3788_v38, %v3790_v39 }
 0x27c   : > { %v3783_v36 = vsel %vm3780_vm13, %v3781_v44, %v3782_v48  ;;  %v7660_v44 = vld [vmem:[%s7960_s6 + $0x48] ss:$16 sps:$4 sm:$0xff]   ;;  %v6203_v48 = vld [vmem:[%s7960_s6 + $0x84] ss:$16 sps:$4 sm:$0xff]  }
 0x281   : > { %5815 = vmatmul.mubr.bf16.vlgmr.msra.gmra.mrb[60].mxu0 %v3403_v0 }
 0x282   : > { %5871 = vmatpush3.bf16.msra.mxu0 %v6166_v49  ;;  %5851 = vmatmul.mubr.bf16.vlgmr.msra.gmra.mrb[60].mxu1 %v3586_v4 }
 0x283   : > { %5872 = vmatprep.subr.bf16.mxu0 %v6274_v13  ;;  %5818 = vmatprep.mubr.msk.bf16.mxu0 %vm6275_vm7, %v6274_v13 }
 0x284   : > { %5854 = vmatprep.mubr.msk.bf16.mxu1 %vm6275_vm7, %v6274_v13 }
 0x286   : > { %5873 = vmatpush3.bf16.msra.mxu0 %v6167_v5 }
 0x287   : > { %5874 = vmatprep.subr.bf16.mxu0 %v6274_v13 }
 0x289   : > { %5819 = vmatmul.mubr.bf16.gmra.mrb[64].mxu0 %v3405_v6  ;;  %v6180_v6 = vld [vmem:[%s7960_s6] ss:$16 sps:$4 sm:$0xff]  }
 0x28a   : > { %5855 = vmatmul.mubr.bf16.gmra.mrb[64].mxu1 %v3595_v21  ;;  %5875 = vmatpush3.bf16.msra.mxu0 %v6169_v62  ;;  %v6182_v62 = vld [vmem:[%s7960_s6 + $0x4] ss:$16 sps:$4 sm:$0xff]  }
 0x28b   : > { %5822 = vmatprep.mubr.msk.bf16.mxu0 %vm6275_vm7, %v6274_v13  ;;  %5876 = vmatprep.subr.bf16.mxu0 %v6274_v13 }
 0x28c   : > { %5858 = vmatprep.mubr.msk.bf16.mxu1 %vm6275_vm7, %v6274_v13  ;;  %4226 = vmatprep.subr.bf16.mxu1 %v6182_v62  ;;  %v6218_v62 = vld [vmem:[%s7960_s6 + $0xc4] ss:$16 sps:$4 sm:$0xff]  }
 0x28d   : > { %4227 = vmatpush1.bf16.msra.mxu1 %v6180_v6 }
 0x28e   : > { %5877 = vmatpush3.bf16.msra.mxu0 %v6171_v3  ;;  %v6183_v3 = vld [vmem:[%s7960_s6 + $0x20] ss:$16 sps:$4 sm:$0xff]   ;;  %4228 = vmatprep.subr.bf16.mxu1 %v6185_v18  ;;  %v7734_v18 = vld [vmem:[%s7960_s6 + $0xc8] ss:$16 sps:$4 sm:$0xff]  }
 0x28f   : > { %5878 = vmatprep.subr.bf16.mxu0 %v6274_v13 }
 0x291   : > { %5823 = vmatmul.mubr.bf16.gmra.mrb[68].mxu0 %v3407_v12  ;;  %4229 = vmatpush1.bf16.msra.mxu1 %v6183_v3  ;;  %v6216_v3 = vld [vmem:[%s7960_s6 + $0xc0] ss:$16 sps:$4 sm:$0xff]  }
 0x292   : > { %5859 = vmatmul.mubr.bf16.gmra.mrb[68].mxu1 %v3604_v7  ;;  %5879 = vmatpush3.bf16.msra.mxu0 %v6172_v46  ;;  %v7613_v46 = vld [vmem:[%s7960_s6 + $0xc] ss:$16 sps:$4 sm:$0xff]  }
 0x293   : > { %5826 = vmatprep.mubr.msk.bf16.mxu0 %vm6275_vm7, %v6274_v13  ;;  %5862 = vmatprep.mubr.msk.bf16.mxu1 %vm6275_vm7, %v6274_v13 }
 0x294   : > { %5880 = vmatprep.subr.bf16.mxu0 %v6274_v13  ;;  %4230 = vmatprep.subr.bf16.mxu1 %v6191_v15 }
 0x296   : > { %5881 = vmatpush3.bf16.msra.mxu0 %v6174_v29  ;;  %v6189_v29 = vld [vmem:[%s7960_s6 + $0x40] ss:$16 sps:$4 sm:$0xff]  }
 0x297   : > { %5882 = vmatprep.subr.bf16.mxu0 %v6274_v13  ;;  %4231 = vmatpush1.bf16.msra.mxu1 %v6189_v29 }
 0x299   : > { %5827 = vmatmul.mubr.bf16.gmra.mrb[72].mxu0 %v3409_v32 }
 0x29a   : > { %5863 = vmatmul.mubr.bf16.gmra.mrb[72].mxu1 %v3613_v34  ;;  %5830 = vmatprep.mubr.msk.bf16.mxu0 %vm6275_vm7, %v6274_v13 }
 0x29b   : > { %5883 = vmatpush3.bf16.msra.mxu0 %v6175_v20  ;;  %5866 = vmatprep.mubr.msk.bf16.mxu1 %vm6275_vm7, %v6274_v13 }
 0x29c   : > { %5884 = vmatprep.subr.bf16.mxu0 %v6274_v13 }
 0x29f   : > { %5885 = vmatpush3.bf16.msra.mxu0 %v6178_v42 }
 0x2a0   : > { %4309 = vmatprep.subr.bf16.mxu0 %v7613_v46 }
 0x2a1   : > { %5831 = vmatmul.mubr.bf16.gmra.mrb[76].mxu0 %v3411_v16  ;;  %v6197_v16 = vld [vmem:[%s7960_s6 + $0x64] ss:$16 sps:$4 sm:$0xff]  }
 0x2a2   : > { %5867 = vmatmul.mubr.bf16.gmra.mrb[76].mxu1 %v3622_v43  ;;  %5886 = vmatprep.mubr.msk.bf16.mxu0 %vm6275_vm7, %v6274_v13 }
 0x2a3   : > { %4232 = vmatprep.subr.bf16.mxu1 %v6197_v16  ;;  %v6276_v16 = vmov 0  }
 0x2a4   : > { %4233 = vmatpush1.bf16.msra.mxu1 %v6195_v35  ;;  %4258 = vmatprep.mubr.bf16.mxu1 %v6276_v16 }
 0x2a5   : > { %4234 = vmatprep.subr.bf16.mxu1 %v6203_v48 }
 0x2a9   : > { %5887 = vmatmul.mubr.bf16.vlgmr.msra.gmra.mrb[80].mxu0 %v3783_v36  ;;  %v6201_v36 = vld [vmem:[%s7960_s6 + $0x80] ss:$16 sps:$4 sm:$0xff]  }
 0x2aa   : > { %5890 = vmatprep.mubr.msk.bf16.mxu0 %vm6275_vm7, %v6274_v13  ;;  %4310 = vmatpush1.bf16.msra.mxu0 %v7618_v24 }
 0x2ab   : > { %4311 = vmatprep.subr.bf16.mxu0 %v7638_v40  ;;  %4235 = vmatpush1.bf16.msra.mxu1 %v6201_v36 }
 0x2ae   : > { %4312 = vmatpush1.bf16.msra.mxu0 %v7633_v30 }
 0x2af   : > { %4313 = vmatprep.subr.bf16.mxu0 %v7647_v41 }
 0x2b1   : > { %5891 = vmatmul.mubr.bf16.gmra.mrb[84].mxu0 %v3785_v31  ;;  %v7678_v31 = vld [vmem:[%s7960_s6 + $0x6c] ss:$16 sps:$4 sm:$0xff]  }
 0x2b2   : > { %5894 = vmatprep.mubr.msk.bf16.mxu0 %vm6275_vm7, %v6274_v13  ;;  %4314 = vmatpush1.bf16.msra.mxu0 %v7660_v44 }
 0x2b3   : > { %4315 = vmatprep.subr.bf16.mxu0 %v7678_v31 }
 0x2b6   : > { %4316 = vmatpush1.bf16.msra.mxu0 %v7673_v26 }
 0x2b9   : > { %5895 = vmatmul.mubr.bf16.gmra.mrb[88].mxu0 %v3787_v51 }
 0x2ba   : > { %5898 = vmatprep.mubr.msk.bf16.mxu0 %vm6275_vm7, %v6274_v13 }
 0x2c1   : > { %5899 = vmatmul.mubr.bf16.gmra.mrb[92].mxu0 %v3789_v54 }
 0x2c2   : > { %5902 = vmatprep.mubr.msk.bf16.mxu0 %vm6275_vm7, %v6274_v13 }
 0x2c9   : > { %5903 = vmatmul.mubr.bf16.gmra.mrb[96].mxu0 %v3791_v55 }
 0x2ca   : > { %4341 = vmatprep.mubr.bf16.mxu0 %v6276_v16 }
 0x2dc   : > { %v2428_v45 = vpop.f32.mrb[0].mxu0 }
 0x2dd   : > { %v2554_v57 = vpop.f32.mrb[0].mxu1  ;;  %v5600_v58 = vpop.f32.mrb[1].mxu0 }
 0x2de   : > { %v7588_v47 = vadd.f32 %v2554_v57, %v2428_v45  ;;  %v5636_v60 = vpop.f32.mrb[1].mxu1  ;;  %v2431_v63 = vpop.f32.mrb[2].mxu0  ;;  %v7687_v45 = vld [vmem:[%s7960_s6 + $0x8c] ss:$16 sps:$4 sm:$0xff]  }
 0x2df   : > { %v2557_v0 = vpop.f32.mrb[2].mxu1  ;;  %v5601_v49 = vpop.f32.mrb[3].mxu0  ;;  %v7692_v60 = vld [vmem:[%s7960_s6 + $0x88] ss:$16 sps:$4 sm:$0xff]   ;;  %4317 = vmatprep.subr.bf16.mxu0 %v7687_v45 }
 0x2e0   : > { %v7590_v4 = vadd.f32 %v2557_v0, %v2431_v63  ;;  %v5637_v53 = vpop.f32.mrb[3].mxu1  ;;  %v6212_v49 = vld [vmem:[%s7960_s6 + $0xa4] ss:$16 sps:$4 sm:$0xff]   ;;  %4318 = vmatpush1.bf16.msra.mxu0 %v7692_v60 }
 0x2e1   : > { %v7704_v53 = vld [vmem:[%s7960_s6 + $0xac] ss:$16 sps:$4 sm:$0xff]   ;;  %4236 = vmatprep.subr.bf16.mxu1 %v6212_v49 }
 0x2e2   : > { %4319 = vmatprep.subr.bf16.mxu0 %v7704_v53 }
 0x2e4   : > { %v2436_v22 = vpop.f32.mrb[4].mxu0 }
 0x2e5   : > { %v2562_v56 = vpop.f32.mrb[4].mxu1  ;;  %v5604_v5 = vpop.f32.mrb[5].mxu0 }
 0x2e6   : > { %v7592_v13 = vadd.f32 %v2562_v56, %v2436_v22  ;;  %v5640_v59 = vpop.f32.mrb[5].mxu1  ;;  %v2439_v37 = vpop.f32.mrb[6].mxu0  ;;  %v6210_v22 = vld [vmem:[%s7960_s6 + $0xa0] ss:$16 sps:$4 sm:$0xff]   ;;  %v7712_v56 = vld [vmem:[%s7960_s6 + $0xa8] ss:$16 sps:$4 sm:$0xff]  }
 0x2e7   : > { %v2565_v8 = vpop.f32.mrb[6].mxu1  ;;  %v5605_v10 = vpop.f32.mrb[7].mxu0  ;;  %4237 = vmatpush1.bf16.msra.mxu1 %v6210_v22  ;;  %4320 = vmatpush1.bf16.msra.mxu0 %v7712_v56 }
 0x2e8   : > { %v7600_v21 = vadd.f32 %v2565_v8, %v2439_v37  ;;  %v5641_v11 = vpop.f32.mrb[7].mxu1  ;;  %4238 = vmatprep.subr.bf16.mxu1 %v6218_v62 }
 0x2e9   : > { %v7723_v11 = vld [vmem:[%s7960_s6 + $0xcc] ss:$16 sps:$4 sm:$0xff]  }
 0x2ea   : > { %4321 = vmatprep.subr.bf16.mxu0 %v7723_v11 }
 0x2eb   : > { %4239 = vmatpush1.bf16.msra.mxu1 %v6216_v3  ;;  %4322 = vmatpush1.bf16.msra.mxu0 %v7734_v18 }
 0x2ec   : > { %v2444_v52 = vpop.f32.mrb[8].mxu0 }
 0x2ed   : > { %v2570_v1 = vpop.f32.mrb[8].mxu1  ;;  %v5608_v17 = vpop.f32.mrb[9].mxu0 }
 0x2ee   : > { %v7608_v19 = vadd.f32 %v2570_v1, %v2444_v52  ;;  %v5644_v9 = vpop.f32.mrb[9].mxu1  ;;  %v2447_v12 = vpop.f32.mrb[10].mxu0 }
 0x2ef   : > { %v2573_v7 = vpop.f32.mrb[10].mxu1  ;;  %v5609_v14 = vpop.f32.mrb[11].mxu0 }
 0x2f0   : > { %v7620_v27 = vadd.f32 %v2573_v7, %v2447_v12  ;;  %v5645_v61 = vpop.f32.mrb[11].mxu1  ;;  %v7746_v7 = vld [vmem:[%s7960_s6 + $0xec] ss:$16 sps:$4 sm:$0xff]   ;;  %v6222_v14 = vld [vmem:[%s7960_s6 + $0xe0] ss:$16 sps:$4 sm:$0xff]  }
 0x2f1   : > { %v7754_v61 = vld [vmem:[%s7960_s6 + $0xe8] ss:$16 sps:$4 sm:$0xff]   ;;  %4323 = vmatprep.subr.bf16.mxu0 %v7746_v7 }
 0x2f2   : > { %4324 = vmatpush1.bf16.msra.mxu0 %v7754_v61 }
 0x2f4   : > { %v2452_v32 = vpop.f32.mrb[12].mxu0 }
 0x2f5   : > { %v2578_v33 = vpop.f32.mrb[12].mxu1  ;;  %v5612_v34 = vpop.f32.mrb[13].mxu0 }
 0x2f6   : > { %v7642_v20 = vadd.f32 %v2578_v33, %v2452_v32  ;;  %v5648_v23 = vpop.f32.mrb[13].mxu1  ;;  %v2455_v28 = vpop.f32.mrb[14].mxu0 }
 0x2f7   : > { %v2581_v2 = vpop.f32.mrb[14].mxu1  ;;  %v5613_v42 = vpop.f32.mrb[15].mxu0 }
 0x2f8   : > { %v7655_v25 = vadd.f32 %v2581_v2, %v2455_v28  ;;  %v5649_v43 = vpop.f32.mrb[15].mxu1 }
 0x2fc   : > { %v2460_v50 = vpop.f32.mrb[16].mxu0 }
 0x2fd   : > { %v2586_v51 = vpop.f32.mrb[16].mxu1  ;;  %v5616_v38 = vpop.f32.mrb[17].mxu0 }
 0x2fe   : > { %v7681_v54 = vadd.f32 %v2586_v51, %v2460_v50  ;;  %v5652_v39 = vpop.f32.mrb[17].mxu1  ;;  %v2463_v55 = vpop.f32.mrb[18].mxu0 }
 0x2ff   : > { %v2589_v57 = vpop.f32.mrb[18].mxu1  ;;  %v5617_v58 = vpop.f32.mrb[19].mxu0 }
 0x300   : > { %v7694_v63 = vadd.f32 %v2589_v57, %v2463_v55  ;;  %v5653_v0 = vpop.f32.mrb[19].mxu1 }
 0x304   : > { %v2713_v5 = vpop.f32.mrb[20].mxu0 }
 0x305   : > { %v2752_v59 = vadd.f32 %v2713_v5, %v7588_v47  ;;  %v5672_v37 = vpop.f32.mrb[21].mxu0  ;;  %v2916_v8 = vpop.f32.mrb[20].mxu1 }
 0x306   : > { %v2716_v10 = vpop.f32.mrb[22].mxu0  ;;  %v5708_v6 = vpop.f32.mrb[21].mxu1 }
 0x307   : > { %v2753_v52 = vadd.f32 %v2716_v10, %v7590_v4  ;;  %v7726_v1 = vadd.f32 %v2916_v8, %v2752_v59  ;;  %v5673_v47 = vpop.f32.mrb[23].mxu0  ;;  %v2919_v17 = vpop.f32.mrb[22].mxu1  ;;  %v6224_v4 = vld [vmem:[%s7960_s6 + $0xe4] ss:$16 sps:$4 sm:$0xff]  }
 0x308   : > { %v5709_v9 = vpop.f32.mrb[23].mxu1  ;;  %4240 = vmatprep.subr.bf16.mxu1 %v6224_v4 }
 0x309   : > { %v7737_v12 = vadd.f32 %v2919_v17, %v2753_v52  ;;  %4241 = vmatpush1.bf16.msra.mxu1 %v6222_v14 }
 0x30a   : > { %5922 = vmatprep.subr.bf16.mxu1 %v7613_v46 }
 0x30c   : > { %v2721_v29 = vpop.f32.mrb[24].mxu0 }
 0x30d   : > { %v2754_v15 = vadd.f32 %v2721_v29, %v7592_v13  ;;  %v5676_v32 = vpop.f32.mrb[25].mxu0  ;;  %v2924_v33 = vpop.f32.mrb[24].mxu1 }
 0x30e   : > { %v2724_v34 = vpop.f32.mrb[26].mxu0  ;;  %v5712_v23 = vpop.f32.mrb[25].mxu1 }
 0x30f   : > { %v2755_v28 = vadd.f32 %v2724_v34, %v7600_v21  ;;  %v2957_v2 = vadd.f32 %v2924_v33, %v2754_v15  ;;  %v5677_v42 = vpop.f32.mrb[27].mxu0  ;;  %v2927_v35 = vpop.f32.mrb[26].mxu1 }
 0x310   : > { %v5713_v13 = vpop.f32.mrb[27].mxu1 }
 0x311   : > { %v2958_v43 = vadd.f32 %v2927_v35, %v2755_v28 }
 0x314   : > { %v2729_v48 = vpop.f32.mrb[28].mxu0 }
 0x315   : > { %v2756_v36 = vadd.f32 %v2729_v48, %v7608_v19  ;;  %v5680_v50 = vpop.f32.mrb[29].mxu0  ;;  %v2932_v51 = vpop.f32.mrb[28].mxu1 }
 0x316   : > { %v2732_v38 = vpop.f32.mrb[30].mxu0  ;;  %v5716_v39 = vpop.f32.mrb[29].mxu1 }
 0x317   : > { %v2757_v46 = vadd.f32 %v2732_v38, %v7620_v27  ;;  %v2959_v21 = vadd.f32 %v2932_v51, %v2756_v36  ;;  %v5681_v55 = vpop.f32.mrb[31].mxu0  ;;  %v2935_v57 = vpop.f32.mrb[30].mxu1 }
 0x318   : > { %v5717_v58 = vpop.f32.mrb[31].mxu1 }
 0x319   : > { %v2960_v0 = vadd.f32 %v2935_v57, %v2757_v46 }
 0x31c   : > { %v2737_v49 = vpop.f32.mrb[32].mxu0 }
 0x31d   : > { %v2758_v22 = vadd.f32 %v2737_v49, %v7642_v20  ;;  %v5684_v5 = vpop.f32.mrb[33].mxu0  ;;  %v2940_v59 = vpop.f32.mrb[32].mxu1 }
 0x31e   : > { %v2740_v37 = vpop.f32.mrb[34].mxu0  ;;  %v5720_v8 = vpop.f32.mrb[33].mxu1 }
 0x31f   : > { %v2759_v19 = vadd.f32 %v2740_v37, %v7655_v25  ;;  %v2961_v10 = vadd.f32 %v2940_v59, %v2758_v22  ;;  %v5685_v6 = vpop.f32.mrb[35].mxu0  ;;  %v2943_v62 = vpop.f32.mrb[34].mxu1 }
 0x320   : > { %v5721_v52 = vpop.f32.mrb[35].mxu1 }
 0x321   : > { %v2962_v47 = vadd.f32 %v2943_v62, %v2759_v19 }
 0x324   : > { %v2745_v27 = vpop.f32.mrb[36].mxu0 }
 0x325   : > { %v2760_v17 = vadd.f32 %v2745_v27, %v7681_v54  ;;  %v5688_v3 = vpop.f32.mrb[37].mxu0  ;;  %v2948_v9 = vpop.f32.mrb[36].mxu1 }
 0x326   : > { %v2748_v4 = vpop.f32.mrb[38].mxu0  ;;  %v5724_v14 = vpop.f32.mrb[37].mxu1 }
 0x327   : > { %v2761_v20 = vadd.f32 %v2748_v4, %v7694_v63  ;;  %v2963_v29 = vadd.f32 %v2948_v9, %v2760_v17  ;;  %v5689_v15 = vpop.f32.mrb[39].mxu0  ;;  %v2951_v32 = vpop.f32.mrb[38].mxu1 }
 0x328   : > { %v5725_v33 = vpop.f32.mrb[39].mxu1 }
 0x329   : > { %v2964_v34 = vadd.f32 %v2951_v32, %v2761_v20 }
 0x32c   : > { %v3127_v25 = vpop.f32.mrb[40].mxu0 }
 0x32d   : > { %v3166_v23 = vadd.f32 %v3127_v25, %v7726_v1  ;;  %v5744_v28 = vpop.f32.mrb[41].mxu0  ;;  %v3296_v42 = vpop.f32.mrb[40].mxu1 }
 0x32e   : > { %v3130_v35 = vpop.f32.mrb[42].mxu0  ;;  %v5780_v13 = vpop.f32.mrb[41].mxu1 }
 0x32f   : > { %v3167_v54 = vadd.f32 %v3130_v35, %v7737_v12  ;;  %v3335_v48 = vadd.f32 %v3296_v42, %v3166_v23  ;;  %v5745_v36 = vpop.f32.mrb[43].mxu0  ;;  %v3299_v50 = vpop.f32.mrb[42].mxu1 }
 0x330   : > { %v5781_v51 = vpop.f32.mrb[43].mxu1 }
 0x331   : > { %v3336_v38 = vadd.f32 %v3299_v50, %v3167_v54 }
 0x334   : > { %v3135_v63 = vpop.f32.mrb[44].mxu0 }
 0x335   : > { %v3168_v39 = vadd.f32 %v3135_v63, %v2957_v2  ;;  %v5748_v46 = vpop.f32.mrb[45].mxu0  ;;  %v3304_v55 = vpop.f32.mrb[44].mxu1 }
 0x336   : > { %v3138_v57 = vpop.f32.mrb[46].mxu0  ;;  %v5784_v58 = vpop.f32.mrb[45].mxu1 }
 0x337   : > { %v3169_v49 = vadd.f32 %v3138_v57, %v2958_v43  ;;  %v3337_v22 = vadd.f32 %v3304_v55, %v3168_v39  ;;  %v5749_v1 = vpop.f32.mrb[47].mxu0  ;;  %v3307_v5 = vpop.f32.mrb[46].mxu1 }
 0x338   : > { %v5785_v59 = vpop.f32.mrb[47].mxu1 }
 0x339   : > { %v3338_v37 = vadd.f32 %v3307_v5, %v3169_v49 }
 0x33c   : > { %v3143_v8 = vpop.f32.mrb[48].mxu0 }
 0x33d   : > { %v3170_v19 = vadd.f32 %v3143_v8, %v2959_v21  ;;  %v5752_v12 = vpop.f32.mrb[49].mxu0  ;;  %v3312_v6 = vpop.f32.mrb[48].mxu1 }
 0x33e   : > { %v3146_v62 = vpop.f32.mrb[50].mxu0  ;;  %v5788_v52 = vpop.f32.mrb[49].mxu1 }
 0x33f   : > { %v3171_v27 = vadd.f32 %v3146_v62, %v2960_v0  ;;  %v3339_v17 = vadd.f32 %v3312_v6, %v3170_v19  ;;  %v5753_v3 = vpop.f32.mrb[51].mxu0  ;;  %v3315_v2 = vpop.f32.mrb[50].mxu1 }
 0x340   : > { %v5789_v9 = vpop.f32.mrb[51].mxu1 }
 0x341   : > { %v3340_v4 = vadd.f32 %v3315_v2, %v3171_v27 }
 0x344   : > { %v3151_v14 = vpop.f32.mrb[52].mxu0 }
 0x345   : > { %v3172_v20 = vadd.f32 %v3151_v14, %v2961_v10  ;;  %v5756_v43 = vpop.f32.mrb[53].mxu0  ;;  %v3320_v15 = vpop.f32.mrb[52].mxu1 }
 0x346   : > { %v3154_v32 = vpop.f32.mrb[54].mxu0  ;;  %v5792_v33 = vpop.f32.mrb[53].mxu1 }
 0x347   : > { %v3173_v25 = vadd.f32 %v3154_v32, %v2962_v47  ;;  %v3341_v23 = vadd.f32 %v3320_v15, %v3172_v20  ;;  %v5757_v28 = vpop.f32.mrb[55].mxu0  ;;  %v3323_v21 = vpop.f32.mrb[54].mxu1  ;;  %v3945_v15 = vld [vmem:[#allocation2] sm:$0x1] }
 0x348   : > { %v5793_v42 = vpop.f32.mrb[55].mxu1  ;;  %v3946_v33 = vmul.f32 0.0078125, %v3945_v15 }
 0x349   : > { %v3342_v35 = vadd.f32 %v3323_v21, %v3173_v25  ;;  %v3947_v25 = vld [vmem:[#allocation3] sm:$0x1] }
 0x34c   : > { %v3159_v13 = vpop.f32.mrb[56].mxu0 }
 0x34d   : > { %v3174_v54 = vadd.f32 %v3159_v13, %v2963_v29  ;;  %v5760_v0 = vpop.f32.mrb[57].mxu0  ;;  %v3328_v36 = vpop.f32.mrb[56].mxu1 }
 0x34e   : > { %v3162_v50 = vpop.f32.mrb[58].mxu0  ;;  %v5796_v51 = vpop.f32.mrb[57].mxu1  ;;  %v3948_v0 = vmul.f32 0.0078125, %v3947_v25 }
 0x34f   : > { %v3175_v63 = vadd.f32 %v3162_v50, %v2964_v34  ;;  %v7771_v39 = vadd.f32 %v3328_v36, %v3174_v54  ;;  %v5761_v10 = vpop.f32.mrb[59].mxu0  ;;  %v3331_v46 = vpop.f32.mrb[58].mxu1  ;;  %v3949_v36 = vmul.f32 %v3946_v33, %v3946_v33 }
 0x350   : > { %v5797_v55 = vpop.f32.mrb[59].mxu1 }
 0x351   : > { %v7773_v57 = vadd.f32 %v3331_v46, %v3175_v63  ;;  %v3950_v55 = vsub.f32 %v3948_v0, %v3949_v36 }
 0x354   : > { %v3499_v47 = vpop.f32.mrb[60].mxu0 }
 0x355   : > { %v3538_v58 = vadd.f32 %v3499_v47, %v3335_v48  ;;  %v5816_v49 = vpop.f32.mrb[61].mxu0  ;;  %v3710_v1 = vpop.f32.mrb[60].mxu1 }
 0x356   : > { %v3502_v5 = vpop.f32.mrb[62].mxu0  ;;  %v5852_v59 = vpop.f32.mrb[61].mxu1 }
 0x357   : > { %v3539_v8 = vadd.f32 %v3502_v5, %v3336_v38  ;;  %v7775_v29 = vadd.f32 %v3710_v1, %v3538_v58  ;;  %v5817_v19 = vpop.f32.mrb[63].mxu0  ;;  %v3713_v12 = vpop.f32.mrb[62].mxu1  ;;  %v3967_v59 = vadd.f32 1e-05, %v3950_v55 }
 0x358   : > { %v5853_v6 = vpop.f32.mrb[63].mxu1 }
 0x359   : > { %v7777_v34 = vadd.f32 %v3713_v12, %v3539_v8  ;;  %6228 = vrsqrt.f32 %v3967_v59 }
 0x35c   : > { %v3507_v62 = vpop.f32.mrb[64].mxu0 }
 0x35d   : > { %v3540_v52 = vadd.f32 %v3507_v62, %v3337_v22  ;;  %v5820_v27 = vpop.f32.mrb[65].mxu0  ;;  %v3718_v3 = vpop.f32.mrb[64].mxu1 }
 0x35e   : > { %v3510_v2 = vpop.f32.mrb[66].mxu0  ;;  %v5856_v9 = vpop.f32.mrb[65].mxu1 }
 0x35f   : > { %v3541_v14 = vadd.f32 %v3510_v2, %v3338_v37  ;;  %v7779_v48 = vadd.f32 %v3718_v3, %v3540_v52  ;;  %v5821_v20 = vpop.f32.mrb[67].mxu0  ;;  %v3721_v43 = vpop.f32.mrb[66].mxu1  ;;  %v3952_v52 = vlaneseq }
 0x360   : > { %v5857_v38 = vpop.f32.mrb[67].mxu1 }
 0x361   : > { %v7781_v32 = vadd.f32 %v3721_v43, %v3541_v14  ;;  %v3953_v9 = vshrl.u32 %v3952_v52, 7 }
 0x364   : > { %v3515_v28 = vpop.f32.mrb[68].mxu0 }
 0x365   : > { %v3542_v21 = vadd.f32 %v3515_v28, %v3339_v17  ;;  %v5824_v42 = vpop.f32.mrb[69].mxu0  ;;  %v3726_v13 = vpop.f32.mrb[68].mxu1 }
 0x366   : > { %v3518_v22 = vpop.f32.mrb[70].mxu0  ;;  %v5860_v54 = vpop.f32.mrb[69].mxu1 }
 0x367   : > { %v3543_v50 = vadd.f32 %v3518_v22, %v3340_v4  ;;  %v7783_v37 = vadd.f32 %v3726_v13, %v3542_v21  ;;  %v5825_v51 = vpop.f32.mrb[71].mxu0  ;;  %v3729_v63 = vpop.f32.mrb[70].mxu1  ;;  %v3954_v21 = vsub.s32 0, %v3953_v9 }
 0x368   : > { %v5861_v10 = vpop.f32.mrb[71].mxu1  ;;  %v6229_v42 = vpop.eup %6228 }
 0x369   : > { %v7785_v46 = vadd.f32 %v3729_v63, %v3543_v50  ;;  %v7803_v54 = vrot.slane %v3946_v33, %v3954_v21  ;;  %v7806_v50 = vrot.slane %v6229_v42, %v3954_v21 }
 0x36c   : > { %v3523_v47 = vpop.f32.mrb[72].mxu0 }
 0x36d   : > { %v3544_v58 = vadd.f32 %v3523_v47, %v3341_v23  ;;  %v5828_v49 = vpop.f32.mrb[73].mxu0  ;;  %v3734_v1 = vpop.f32.mrb[72].mxu1  ;;  %v7814_v47 = vld [vmem:[%s7958_s4] ss:$0 sm:$0xff] }
 0x36e   : > { %v3526_v17 = vpop.f32.mrb[74].mxu0  ;;  %v5864_v5 = vpop.f32.mrb[73].mxu1 }
 0x36f   : > { %v3545_v8 = vadd.f32 %v3526_v17, %v3342_v35  ;;  %v7787_v19 = vadd.f32 %v3734_v1, %v3544_v58  ;;  %v5829_v12 = vpop.f32.mrb[75].mxu0  ;;  %v3737_v4 = vpop.f32.mrb[74].mxu1  ;;  %v7821_v58 = vld [vmem:[%s7959_s5] ss:$0 sm:$0xff] }
 0x370   : > { %v5865_v6 = vpop.f32.mrb[75].mxu1 }
 0x371   : > { %v7789_v62 = vadd.f32 %v3737_v4, %v3545_v8 }
 0x374   : > { %v3531_v27 = vpop.f32.mrb[76].mxu0 }
 0x375   : > { %v3546_v3 = vadd.f32 %v3531_v27, %v7771_v39  ;;  %v5832_v2 = vpop.f32.mrb[77].mxu0  ;;  %v3742_v23 = vpop.f32.mrb[76].mxu1  ;;  %v7800_v39 = vld [vmem:[%s7957_s3] ss:$0 sm:$0xff] }
 0x376   : > { %v3534_v14 = vpop.f32.mrb[78].mxu0  ;;  %v5868_v20 = vpop.f32.mrb[77].mxu1 }
 0x377   : > { %v3547_v43 = vadd.f32 %v3534_v14, %v7773_v57  ;;  %v7793_v35 = vadd.f32 %v3742_v23, %v3546_v3  ;;  %v5833_v15 = vpop.f32.mrb[79].mxu0  ;;  %v3745_v38 = vpop.f32.mrb[78].mxu1 }
 0x378   : > { %v5869_v25 = vpop.f32.mrb[79].mxu1 }
 0x379   : > { %v7795_v28 = vadd.f32 %v3745_v38, %v3547_v43 }
 0x37c   : > { %v3879_v13 = vpop.f32.mrb[80].mxu0 }
 0x37d   : > { %v3918_v22 = vadd.f32 %v3879_v13, %v7775_v29  ;;  %v5888_v57 = vpop.f32.mrb[81].mxu0 }
 0x37e   : > { %v3882_v0 = vpop.f32.mrb[82].mxu0 }
 0x37f   : > { %v3935_v36 = vadd.f32 %v7800_v39, %v3918_v22  ;;  %v3919_v51 = vadd.f32 %v3882_v0, %v7777_v34  ;;  %v5889_v63 = vpop.f32.mrb[83].mxu0 }
 0x381   : > { %v3957_v10 = vsub.f32 %v3935_v36, %v7803_v54  ;;  %v3936_v55 = vadd.f32 %v7800_v39, %v3919_v51 }
 0x383   : > { %v3975_v29 = vmul.f32 %v7806_v50, %v3957_v10  ;;  %v3958_v33 = vsub.f32 %v3936_v55, %v7803_v54 }
 0x384   : > { %v3887_v34 = vpop.f32.mrb[84].mxu0 }
 0x385   : > { %v3992_v49 = vmul.f32 %v7814_v47, %v3975_v29  ;;  %v3976_v1 = vmul.f32 %v7806_v50, %v3958_v33  ;;  %v3920_v17 = vadd.f32 %v3887_v34, %v7779_v48  ;;  %v5892_v5 = vpop.f32.mrb[85].mxu0 }
 0x386   : > { %v3890_v59 = vpop.f32.mrb[86].mxu0 }
 0x387   : > { %v4009_v8 = vadd.f32 %v7821_v58, %v3992_v49  ;;  %v3993_v12 = vmul.f32 %v7814_v47, %v3976_v1  ;;  %v3937_v4 = vadd.f32 %v7800_v39, %v3920_v17  ;;  %v3921_v6 = vadd.f32 %v3890_v59, %v7781_v32  ;;  %v5893_v52 = vpop.f32.mrb[87].mxu0 }
 0x389   : > { %v4010_v27 = vadd.f32 %v7821_v58, %v3993_v12  ;;  %v3959_v3 = vsub.f32 %v3937_v4, %v7803_v54  ;;  %v3938_v2 = vadd.f32 %v7800_v39, %v3921_v6  ;;  %v4019_v23 = vmax.f32 %v4009_v8, 0.0 }
 0x38b   : > { %v4020_v9 = vmax.f32 %v4010_v27, 0.0  ;;  %v3977_v48 = vmul.f32 %v7806_v50, %v3959_v3  ;;  %v3960_v14 = vsub.f32 %v3938_v2, %v7803_v54 }
 0x38c   : > { %v3895_v20 = vpop.f32.mrb[88].mxu0 }
 0x38d   : > { %v3978_v43 = vmul.f32 %v7806_v50, %v3960_v14  ;;  %v3922_v15 = vadd.f32 %v3895_v20, %v7783_v37  ;;  %v5896_v38 = vpop.f32.mrb[89].mxu0  ;;  %v4029_v32 = vpack.c.bf16 %v4020_v9, %v4019_v23  ;;  %v3994_v25 = vmul.f32 %v7814_v47, %v3977_v48 }
 0x38e   : > { %v3898_v21 = vpop.f32.mrb[90].mxu0 }
 0x38f   : > { %v3939_v42 = vadd.f32 %v7800_v39, %v3922_v15  ;;  %v3923_v13 = vadd.f32 %v3898_v21, %v7785_v46  ;;  %v5897_v22 = vpop.f32.mrb[91].mxu0  ;;  %4259 = vmatmul.mubr.bf16.vlgmr.msra.gmra.mrb[80].mxu1 %v4029_v32  ;;  %4342 = vmatmul.mubr.bf16.vlgmr.msra.gmra.mrb[100].mxu0 %v4029_v32  ;;  %v3995_v57 = vmul.f32 %v7814_v47, %v3978_v43 }
 0x390   : > { %5930 = vmatpush1.bf16.msra.mxu1 %v7618_v24  ;;  %4268 = vmatprep.mubr.bf16.mxu1 %v6276_v16  ;;  %v4011_v37 = vadd.f32 %v7821_v58, %v3994_v25 }
 0x391   : > { %v3961_v0 = vsub.f32 %v3939_v42, %v7803_v54  ;;  %v3940_v36 = vadd.f32 %v7800_v39, %v3923_v13  ;;  %5923 = vmatprep.subr.bf16.mxu1 %v7638_v40  ;;  %4351 = vmatprep.mubr.bf16.mxu0 %v6276_v16  ;;  %v4012_v46 = vadd.f32 %v7821_v58, %v3995_v57 }
 0x392   : > { %v4021_v10 = vmax.f32 %v4011_v37, 0.0 }
 0x393   : > { %v3979_v51 = vmul.f32 %v7806_v50, %v3961_v0  ;;  %v3962_v63 = vsub.f32 %v3940_v36, %v7803_v54  ;;  %v4022_v24 = vmax.f32 %v4012_v46, 0.0 }
 0x394   : > { %v3903_v55 = vpop.f32.mrb[92].mxu0  ;;  %5931 = vmatpush1.bf16.msra.mxu1 %v7633_v30 }
 0x395   : > { %v3980_v29 = vmul.f32 %v7806_v50, %v3962_v63  ;;  %v3924_v33 = vadd.f32 %v3903_v55, %v7787_v19  ;;  %v5900_v34 = vpop.f32.mrb[93].mxu0  ;;  %v4030_v49 = vpack.c.bf16 %v4022_v24, %v4021_v10  ;;  %5924 = vmatprep.subr.bf16.mxu1 %v7647_v41  ;;  %v3996_v40 = vmul.f32 %v7814_v47, %v3979_v51 }
 0x396   : > { %v3906_v1 = vpop.f32.mrb[94].mxu0 }
 0x397   : > { %v3941_v17 = vadd.f32 %v7800_v39, %v3924_v33  ;;  %v3925_v5 = vadd.f32 %v3906_v1, %v7789_v62  ;;  %v5901_v59 = vpop.f32.mrb[95].mxu0  ;;  %4269 = vmatmul.mubr.bf16.gmra.mrb[84].mxu1 %v4030_v49  ;;  %4352 = vmatmul.mubr.bf16.gmra.mrb[104].mxu0 %v4030_v49  ;;  %v3997_v30 = vmul.f32 %v7814_v47, %v3980_v29 }
 0x398   : > { %5932 = vmatpush1.bf16.msra.mxu1 %v7660_v44  ;;  %4278 = vmatprep.mubr.bf16.mxu1 %v6276_v16  ;;  %v4013_v19 = vadd.f32 %v7821_v58, %v3996_v40 }
 0x399   : > { %v3963_v41 = vsub.f32 %v3941_v17, %v7803_v54  ;;  %v3942_v8 = vadd.f32 %v7800_v39, %v3925_v5  ;;  %5925 = vmatprep.subr.bf16.mxu1 %v7678_v31  ;;  %4361 = vmatprep.mubr.bf16.mxu0 %v6276_v16  ;;  %v4014_v62 = vadd.f32 %v7821_v58, %v3997_v30 }
 0x39a   : > { %v4023_v6 = vmax.f32 %v4013_v19, 0.0 }
 0x39b   : > { %v3981_v12 = vmul.f32 %v7806_v50, %v3963_v41  ;;  %v3964_v4 = vsub.f32 %v3942_v8, %v7803_v54  ;;  %v4024_v44 = vmax.f32 %v4014_v62, 0.0 }
 0x39c   : > { %v3911_v52 = vpop.f32.mrb[96].mxu0  ;;  %5933 = vmatpush1.bf16.msra.mxu1 %v7673_v26 }
 0x39d   : > { %v3982_v27 = vmul.f32 %v7806_v50, %v3964_v4  ;;  %v3926_v3 = vadd.f32 %v3911_v52, %v7793_v35  ;;  %v5904_v2 = vpop.f32.mrb[97].mxu0  ;;  %v4031_v23 = vpack.c.bf16 %v4024_v44, %v4023_v6  ;;  %5926 = vmatprep.subr.bf16.mxu1 %v7687_v45  ;;  %v3998_v31 = vmul.f32 %v7814_v47, %v3981_v12 }
 0x39e   : > { %v3914_v9 = vpop.f32.mrb[98].mxu0 }
 0x39f   : > { %v3943_v48 = vadd.f32 %v7800_v39, %v3926_v3  ;;  %v3927_v14 = vadd.f32 %v3914_v9, %v7795_v28  ;;  %v5905_v20 = vpop.f32.mrb[99].mxu0  ;;  %4279 = vmatmul.mubr.bf16.gmra.mrb[88].mxu1 %v4031_v23  ;;  %4362 = vmatmul.mubr.bf16.gmra.mrb[108].mxu0 %v4031_v23  ;;  %v3999_v26 = vmul.f32 %v7814_v47, %v3982_v27 }
 0x3a0   : > { %5934 = vmatpush1.bf16.msra.mxu1 %v7692_v60  ;;  %4288 = vmatprep.mubr.bf16.mxu1 %v6276_v16  ;;  %v4015_v35 = vadd.f32 %v7821_v58, %v3998_v31 }
 0x3a1   : > { %v3965_v45 = vsub.f32 %v3943_v48, %v7803_v54  ;;  %v3944_v43 = vadd.f32 %v7800_v39, %v3927_v14  ;;  %v4016_v15 = vadd.f32 %v7821_v58, %v3999_v26  ;;  %5927 = vmatprep.subr.bf16.mxu1 %v7704_v53 }
 0x3a2   : > { %v4025_v32 = vmax.f32 %v4015_v35, 0.0 }
 0x3a3   : > { %v3983_v28 = vmul.f32 %v7806_v50, %v3965_v45  ;;  %v3966_v38 = vsub.f32 %v3944_v43, %v7803_v54  ;;  %v4026_v25 = vmax.f32 %v4016_v15, 0.0 }
 0x3a4   : > { %5935 = vmatpush1.bf16.msra.mxu1 %v7712_v56 }
 0x3a5   : > { %v3984_v60 = vmul.f32 %v7806_v50, %v3966_v38  ;;  %v4032_v21 = vpack.c.bf16 %v4026_v25, %v4025_v32  ;;  %5928 = vmatprep.subr.bf16.mxu1 %v7723_v11  ;;  %v4000_v42 = vmul.f32 %v7814_v47, %v3983_v28 }
 0x3a7   : > { %4289 = vmatmul.mubr.bf16.gmra.mrb[92].mxu1 %v4032_v21  ;;  %v4001_v39 = vmul.f32 %v7814_v47, %v3984_v60  ;;  %v4017_v53 = vadd.f32 %v7821_v58, %v4000_v42 }
 0x3a8   : > { %4298 = vmatprep.mubr.bf16.mxu1 %v6276_v16  ;;  %5936 = vmatpush1.bf16.msra.mxu1 %v7734_v18 }
 0x3a9   : > { %v4018_v56 = vadd.f32 %v7821_v58, %v4001_v39  ;;  %5929 = vmatprep.subr.bf16.mxu1 %v7746_v7  ;;  %v4027_v54 = vmax.f32 %v4017_v53, 0.0 }
 0x3ab   : > { %v4028_v11 = vmax.f32 %v4018_v56, 0.0 }
 0x3ac   : > { %5937 = vmatpush1.bf16.msra.mxu1 %v7754_v61 }
 0x3ad   : > { %v4033_v50 = vpack.c.bf16 %v4028_v11, %v4027_v54 }
 0x3af   : > { %4299 = vmatmul.mubr.bf16.gmra.mrb[96].mxu1 %v4033_v50 }
 0x3b0   : > { %4371 = vmatprep.mubr.bf16.mxu1 %v6276_v16 }
 0x3b7   : > { %4372 = vmatmul.mubr.bf16.vlgmr.msra.gmra.mrb[100].mxu1 %v4032_v21 }
 0x3b8   : > { %4381 = vmatprep.mubr.bf16.mxu1 %v6276_v16 }
 0x3bf   : > { %4382 = vmatmul.mubr.bf16.gmra.mrb[104].mxu1 %v4033_v50 }
 0x462   : > { %v4260_v18 = vpop.f32.mrb[80].mxu1  ;;  %v4343_v7 = vpop.f32.mrb[100].mxu0 }
 0x463   : > { %4392 = vst [vmem:[%s6357_s16] sm:$0xff] %v4260_v18  ;;  %4394 = vst [vmem:[%s6357_s16 + $0x10] sm:$0xff] %v4343_v7  ;;  %v4262_v47 = vpop.f32.mrb[81].mxu1  ;;  %v4345_v61 = vpop.f32.mrb[101].mxu0 }
 0x464   : > { %4393 = vst [vmem:[%s6357_s16 + $0x8] sm:$0xff] %v4262_v47  ;;  %4395 = vst [vmem:[%s6357_s16 + $0x18] sm:$0xff] %v4345_v61  ;;  %v4264_v58 = vpop.f32.mrb[82].mxu1  ;;  %v4347_v13 = vpop.f32.mrb[102].mxu0 }
 0x465   : > { %4396 = vst [vmem:[%s6357_s16 + $0x20] sm:$0xff] %v4264_v58  ;;  %4398 = vst [vmem:[%s6357_s16 + $0x30] sm:$0xff] %v4347_v13  ;;  %v4266_v16 = vpop.f32.mrb[83].mxu1  ;;  %v4349_v22 = vpop.f32.mrb[103].mxu0 }
 0x466   : > { %4397 = vst [vmem:[%s6357_s16 + $0x28] sm:$0xff] %v4266_v16  ;;  %4399 = vst [vmem:[%s6357_s16 + $0x38] sm:$0xff] %v4349_v22 }
 0x46a   : > { %v4270_v57 = vpop.f32.mrb[84].mxu1  ;;  %v4353_v37 = vpop.f32.mrb[104].mxu0 }
 0x46b   : > { %4400 = vst [vmem:[%s6357_s16 + $0x40] sm:$0xff] %v4270_v57  ;;  %4402 = vst [vmem:[%s6357_s16 + $0x50] sm:$0xff] %v4353_v37  ;;  %v4272_v0 = vpop.f32.mrb[85].mxu1  ;;  %v4355_v36 = vpop.f32.mrb[105].mxu0 }
 0x46c   : > { %4401 = vst [vmem:[%s6357_s16 + $0x48] sm:$0xff] %v4272_v0  ;;  %4403 = vst [vmem:[%s6357_s16 + $0x58] sm:$0xff] %v4355_v36  ;;  %v4274_v46 = vpop.f32.mrb[86].mxu1  ;;  %v4357_v51 = vpop.f32.mrb[106].mxu0 }
 0x46d   : > { %4404 = vst [vmem:[%s6357_s16 + $0x60] sm:$0xff] %v4274_v46  ;;  %4406 = vst [vmem:[%s6357_s16 + $0x70] sm:$0xff] %v4357_v51  ;;  %v4276_v63 = vpop.f32.mrb[87].mxu1  ;;  %v4359_v10 = vpop.f32.mrb[107].mxu0 }
 0x46e   : > { %4405 = vst [vmem:[%s6357_s16 + $0x68] sm:$0xff] %v4276_v63  ;;  %4407 = vst [vmem:[%s6357_s16 + $0x78] sm:$0xff] %v4359_v10 }
 0x472   : > { %v4280_v24 = vpop.f32.mrb[88].mxu1  ;;  %v4363_v55 = vpop.f32.mrb[108].mxu0 }
 0x473   : > { %4408 = vst [vmem:[%s6357_s16 + $0x80] sm:$0xff] %v4280_v24  ;;  %4410 = vst [vmem:[%s6357_s16 + $0x90] sm:$0xff] %v4363_v55  ;;  %v4282_v29 = vpop.f32.mrb[89].mxu1  ;;  %v4365_v33 = vpop.f32.mrb[109].mxu0 }
 0x474   : > { %4409 = vst [vmem:[%s6357_s16 + $0x88] sm:$0xff] %v4282_v29  ;;  %4411 = vst [vmem:[%s6357_s16 + $0x98] sm:$0xff] %v4365_v33  ;;  %v4284_v34 = vpop.f32.mrb[90].mxu1  ;;  %v4367_v49 = vpop.f32.mrb[110].mxu0 }
 0x475   : > { %4412 = vst [vmem:[%s6357_s16 + $0xa0] sm:$0xff] %v4284_v34  ;;  %4414 = vst [vmem:[%s6357_s16 + $0xb0] sm:$0xff] %v4367_v49  ;;  %v4286_v40 = vpop.f32.mrb[91].mxu1  ;;  %v4369_v1 = vpop.f32.mrb[111].mxu0 }
 0x476   : > { %4413 = vst [vmem:[%s6357_s16 + $0xa8] sm:$0xff] %v4286_v40  ;;  %4415 = vst [vmem:[%s6357_s16 + $0xb8] sm:$0xff] %v4369_v1 }
 0x47a   : > { %v4290_v17 = vpop.f32.mrb[92].mxu1 }
 0x47b   : > { %4416 = vst [vmem:[%s6357_s16 + $0xc0] sm:$0xff] %v4290_v17  ;;  %v4292_v5 = vpop.f32.mrb[93].mxu1 }
 0x47c   : > { %4417 = vst [vmem:[%s6357_s16 + $0xc8] sm:$0xff] %v4292_v5  ;;  %v4294_v59 = vpop.f32.mrb[94].mxu1 }
 0x47d   : > { %4420 = vst [vmem:[%s6357_s16 + $0xe0] sm:$0xff] %v4294_v59  ;;  %v4296_v30 = vpop.f32.mrb[95].mxu1 }
 0x47e   : > { %4421 = vst [vmem:[%s6357_s16 + $0xe8] sm:$0xff] %v4296_v30 }
 0x482   : > { %v4300_v19 = vpop.f32.mrb[96].mxu1 }
 0x483   : > { %4424 = vst [vmem:[%s6357_s16 + $0x100] sm:$0xff] %v4300_v19  ;;  %v4302_v41 = vpop.f32.mrb[97].mxu1 }
 0x484   : > { %4425 = vst [vmem:[%s6357_s16 + $0x108] sm:$0xff] %v4302_v41  ;;  %v4304_v8 = vpop.f32.mrb[98].mxu1 }
 0x485   : > { %4428 = vst [vmem:[%s6357_s16 + $0x120] sm:$0xff] %v4304_v8  ;;  %v4306_v62 = vpop.f32.mrb[99].mxu1 }
 0x486   : > { %4429 = vst [vmem:[%s6357_s16 + $0x128] sm:$0xff] %v4306_v62 }
 0x48a   : > { %v4373_v12 = vpop.f32.mrb[100].mxu1 }
 0x48b   : > { %4418 = vst [vmem:[%s6357_s16 + $0xd0] sm:$0xff] %v4373_v12  ;;  %v4375_v4 = vpop.f32.mrb[101].mxu1 }
 0x48c   : > { %4419 = vst [vmem:[%s6357_s16 + $0xd8] sm:$0xff] %v4375_v4  ;;  %v4377_v6 = vpop.f32.mrb[102].mxu1 }
 0x48d   : > { %4422 = vst [vmem:[%s6357_s16 + $0xf0] sm:$0xff] %v4377_v6  ;;  %v4379_v44 = vpop.f32.mrb[103].mxu1 }
 0x48e   : > { %4423 = vst [vmem:[%s6357_s16 + $0xf8] sm:$0xff] %v4379_v44 }
 0x492   : > { %v4383_v52 = vpop.f32.mrb[104].mxu1 }
 0x493   : > { %4426 = vst [vmem:[%s6357_s16 + $0x110] sm:$0xff] %v4383_v52  ;;  %v4385_v27 = vpop.f32.mrb[105].mxu1 }
 0x494   : > { %4427 = vst [vmem:[%s6357_s16 + $0x118] sm:$0xff] %v4385_v27  ;;  %v4387_v3 = vpop.f32.mrb[106].mxu1 }
 0x495   : > { %4430 = vst [vmem:[%s6357_s16 + $0x130] sm:$0xff] %v4387_v3  ;;  %v4389_v2 = vpop.f32.mrb[107].mxu1 }
 0x496   : > { %4431 = vst [vmem:[%s6357_s16 + $0x138] sm:$0xff] %v4389_v2 }
 0x497 PF: > { %s17_s28 = sadd.s32 1, %s6268_s28   ;;  %s7962_s24 = smov %s6260_s26 }
 0x498   : > { %p14_p9 = scmp.ge.s32.totalorder %s17_s28, 6   ;;  %s7963_s25 = smov %s6264_s27 }
 0x499   : > { %s7964_s26 = smov %s7967_s29  ;;  %s7965_s27 = smov %s7971_s30 }
 0x49a   :  { %16 = sbr.rel (!%p14_p9) target bundleno = 3 (0x3), region = 106 }

// kernel: msc_forward.4
= control target key start
LH: loop header
LB: loop body
LE: loop exit
PB: predicated region body
PF: predicated region fallthrough
CT: control target
= control target key end

     0   :  { %s4210_s24 = smov 0   ;;  %s4212_s25 = smov 0   ;;  %s5057_s0 = inlined_call_operand.vmem [shape: bf16[3,2,18,128], index: 0, kind: input, shape index: {}]   ;;  %s5058_s1 = inlined_call_operand.vmem [shape: f32[8,1], index: 1, kind: input, shape index: {}]   ;;  %s5059_s2 = inlined_call_operand.vmem [shape: bf16[9,128,128], index: 2, kind: input, shape index: {}]   ;;  %s5060_s3 = inlined_call_operand.vmem [shape: f32[1,128], index: 3, kind: input, shape index: {}]   ;;  %s5061_s4 = inlined_call_operand.vmem [shape: f32[1,128], index: 4, kind: input, shape index: {}]   ;;  %s5062_s5 = inlined_call_operand.vmem [shape: f32[1,128], index: 5, kind: input, shape index: {}]   ;;  %s5063_s6 = inlined_call_operand.vmem [shape: bf16[128,512], index: 6, kind: input, shape index: {}]   ;;  %s5064_s7 = inlined_call_operand.vmem [shape: f32[3,2,8,512], index: 7, kind: output, shape index: {}]  }
   0x1   :  { %s4214_s26 = smov 0   ;;  %s4216_s27 = smov 0  }
   0x2   :  { %s4218_s28 = smov 0   ;;  %s4220_s29 = smov 0  }
   0x3   :  { %s4222_s30 = smov 0  }
   0x4 LB: > { %s29_s8 = sadd.s32 1, %s4149_s27  ;;  %s32_s9 = sadd.s32 1, %s4153_s28  ;;  %s4161_s30 = sphi %s4222_s30, %s17_s30   ;;  %s4157_s29 = sphi %s4220_s29, %s5074_s29   ;;  %s4153_s28 = sphi %s4218_s28, %s5073_s28   ;;  %s4149_s27 = sphi %s4216_s27, %s5072_s27   ;;  %s4145_s26 = sphi %s4214_s26, %s5071_s26   ;;  %s4141_s25 = sphi %s4212_s25, %s5070_s25   ;;  %s4137_s24 = sphi %s4210_s24, %s5069_s24  }
   0x5   : > { %p30_p0 = scmp.ge.s32.totalorder %s29_s8, 2  ;;  %p2851_p1 = scmp.ge.s32.totalorder %s4161_s30, 1 }
   0x6   : > { %p264_p2 = scmp.lt.s32.totalorder %s4161_s30, 13  ;;  %s36_s10 = sadd.s32 1, %s4157_s29 }
   0x7   : > { %s5076_s8 = smov (%p30_p0, %s29_s8), 0  ;;  %s5078_s9 = smov (!%p30_p0, %s32_s9), %s4153_s28 }
   0x8   : > { %p265_p3 = pnand %p2851_p1, %p264_p2  ;;  %p34_p4 = scmp.ge.s32.totalorder %s5078_s9, 2 }
   0x9   : > { %p304_p6 = scmp.lt.s32.totalorder (!%p265_p3), %s4145_s26, 2  ;;  %p306_p7 = scmp.lt.s32.totalorder (!%p265_p3), %s4137_s24, 1 }
   0xa   : > { %s5080_s9 = smov (%p34_p4, %s5078_s9), 0  ;;  %s5082_s10 = smov (!%p34_p4, %s36_s10), %s4157_s29 }
   0xb   : > { %5065 = sst [smem:[#allocation4_spill]] %s5080_s9  ;;  %p38_p5 = scmp.ge.s32.totalorder %s5082_s10, 3 }
   0xc   : > { %268 = sbr.rel (%p265_p3) target bundleno = 1038 (0x40e), region = 48  ;;  %p2856_p8 = scmp.ne.s32.totalorder (!%p265_p3), %s4141_s25, 0 }
   0xd   : > { %s5084_s10 = smov (%p38_p5, %s5082_s10), 0 }
   0xe   : > { %5066 = sst [smem:[#allocation5_spill]] %s5084_s10 }
  0x13   : > { %s5086_s26 = smov (!%p304_p6, %s4145_s26), 2  ;;  %p2857_p9 = scmp.ne.s32.totalorder (!%p2856_p8), %s4137_s24, 0 }
  0x14   : > { %s307_s11 = scalar_select %p306_p7, %s4137_s24, 1 }
  0x15   : > { %s3834_s12 = smul.u32 6, %s5086_s26  ;;  %s2854_s13 = sshll.u32 %s5086_s26, 3 }
  0x16   : > { %s3833_s14 = smul.u32 3, %s307_s11  ;;  %s2853_s15 = sshll.u32 %s307_s11, 2 }
  0x17   : > { %s319_s16 = sadd.s32 %s2854_s13, %s2853_s15  ;;  %326 = sbr.rel (%p2856_p8) target bundleno = 433 (0x1b1), region = 52 }
  0x18   : > { %s310_s17 = sadd.s32 %s3834_s12, %s3833_s14  ;;  %s2855_s18 = sshll.u32 %s319_s16, 3 }
  0x19   : > { %s2852_s19 = sshll.u32 %s310_s17, 2  ;;  %s4261_s22 = scalar_lea.vmem %s5064_s7, %s2855_s18 }
  0x1a   : > { %s4266_s9 = scalar_lea.vmem %s5057_s0, %s2852_s19 }
  0x1e   : > { %330 = sbr.rel (%p2857_p9) target bundleno = 37 (0x25), region = 56  ;;  %v4163_v0 = vmov (!%p2857_p9), 0.0  }
  0x1f   : > { %331 = vst [vmem:[#allocation2] sm:$0x1] (!%p2857_p9), %v4163_v0  ;;  %332 = vst [vmem:[#allocation3] sm:$0x1] (!%p2857_p9), %v4163_v0 }
  0x25 PF: > { %v3899_v1 = vld [vmem:[%s5059_s2 + $0x40] sm:$0xff]   ;;  %v4164_v2 = vmov 0.0   ;;  %v3901_v4 = vld [vmem:[%s5059_s2 + $0x48] sm:$0xff]   ;;  %vm4165_vm0 = vmmov 0   ;;  %v3903_v6 = vld [vmem:[%s5059_s2 + $0x50] sm:$0xff]  }
  0x26   : > { %3473 = vmatprep.subr.bf16.mxu0 %v4164_v2  ;;  %1390 = vst [vmem:[%s4261_s22] sm:$0xff] %v4164_v2  ;;  %1391 = vst [vmem:[%s4261_s22 + $0x8] sm:$0xff] %v4164_v2  ;;  %3493 = vmatprep.subr.bf16.mxu1 %v4164_v2  ;;  %v3900_v3 = vld [vmem:[%s5059_s2] sm:$0xff]   ;;  %v3902_v5 = vld [vmem:[%s5059_s2 + $0x8] sm:$0xff]  }
  0x27   : > { %1392 = vst [vmem:[%s4261_s22 + $0x10] sm:$0xff] %v4164_v2  ;;  %1393 = vst [vmem:[%s4261_s22 + $0x18] sm:$0xff] %v4164_v2  ;;  %3474 = vmatpush3.bf16.msra.mxu0 %v3899_v1  ;;  %3489 = vmatprep.mubr.msk.bf16.mxu0 %vm4165_vm0, %v4164_v2  ;;  %v3904_v7 = vld [vmem:[%s5059_s2 + $0x10] sm:$0xff]   ;;  %v3905_v8 = vld [vmem:[%s5059_s2 + $0x58] sm:$0xff]  }
  0x28   : > { %3494 = vmatpush3.bf16.msra.mxu1 %v3900_v3  ;;  %3475 = vmatprep.subr.bf16.mxu0 %v4164_v2  ;;  %v3906_v9 = vld [vmem:[%s5059_s2 + $0x18] sm:$0xff]   ;;  %v3907_v10 = vld [vmem:[%s5059_s2 + $0x60] sm:$0xff]   ;;  %v3909_v15 = vld [vmem:[%s5059_s2 + $0x68] sm:$0xff]  }
  0x29   : > { %3495 = vmatprep.subr.bf16.mxu1 %v4164_v2  ;;  %3509 = vmatprep.mubr.msk.bf16.mxu1 %vm4165_vm0, %v4164_v2  ;;  %v3908_v11 = vld [vmem:[%s5059_s2 + $0x20] sm:$0xff]   ;;  %v3910_v16 = vld [vmem:[%s5059_s2 + $0x28] sm:$0xff]   ;;  %v3911_v18 = vld [vmem:[%s5059_s2 + $0x70] sm:$0xff]  }
  0x2a   : > { %v333_v12 = vld [vmem:[%s4266_s9] sm:$0xf]  ;;  %v4324_v13 = vld [vmem:[%s4266_s9 + $0x4] sm:$0x1]  ;;  %v3912_v19 = vld [vmem:[%s5059_s2 + $0x30] sm:$0xff]  }
  0x2b   : > { %3476 = vmatpush3.bf16.msra.mxu0 %v3901_v4  ;;  %v2874_v14 = vcombine.low %v333_v12, %v4324_v13  ;;  %v3913_v22 = vld [vmem:[%s5059_s2 + $0x78] sm:$0xff]   ;;  %v3916_v25 = vld [vmem:[%s5059_s2 + $0x80] sm:$0xff]   ;;  %v3918_v27 = vld [vmem:[%s5059_s2 + $0x88] sm:$0xff]  }
  0x2c   : > { %3496 = vmatpush3.bf16.msra.mxu1 %v3902_v5  ;;  %3477 = vmatprep.subr.bf16.mxu0 %v4164_v2  ;;  %v3914_v23 = vld [vmem:[%s5059_s2 + $0x38] sm:$0xff]   ;;  %v3917_v26 = vld [vmem:[%s5059_s2 + $0xc0] sm:$0xff]   ;;  %v3919_v28 = vld [vmem:[%s5059_s2 + $0xc8] sm:$0xff]  }
  0x2d   : > { %3497 = vmatprep.subr.bf16.mxu1 %v4164_v2  ;;  %v376_v17 = vshll.u32 %v2874_v14, 16  ;;  %v374_v20 = vshrl.u32 %v2874_v14, 16  ;;  %v3920_v29 = vld [vmem:[%s5059_s2 + $0x90] sm:$0xff]   ;;  %v3922_v31 = vld [vmem:[%s5059_s2 + $0x98] sm:$0xff]   ;;  %v3924_v33 = vld [vmem:[%s5059_s2 + $0xa0] sm:$0xff]  }
  0x2e   : > { %v3921_v30 = vld [vmem:[%s5059_s2 + $0xd0] sm:$0xff]   ;;  %v3923_v32 = vld [vmem:[%s5059_s2 + $0xd8] sm:$0xff]   ;;  %v3925_v34 = vld [vmem:[%s5059_s2 + $0xe0] sm:$0xff]  }
  0x2f   : > { %3478 = vmatpush3.bf16.msra.mxu0 %v3903_v6  ;;  %v378_v21 = vrot.slane %v376_v17, 1  ;;  %v3926_v35 = vld [vmem:[%s5059_s2 + $0xa8] sm:$0xff]   ;;  %v3928_v37 = vld [vmem:[%s5059_s2 + $0xb0] sm:$0xff]   ;;  %v557_v39 = vld [vmem:[%s4266_s9] sm:$0xe] }
  0x30   : > { %3498 = vmatpush3.bf16.msra.mxu1 %v3904_v7  ;;  %3479 = vmatprep.subr.bf16.mxu0 %v4164_v2  ;;  %v3927_v36 = vld [vmem:[%s5059_s2 + $0xe8] sm:$0xff]   ;;  %v3929_v38 = vld [vmem:[%s5059_s2 + $0xf0] sm:$0xff]   ;;  %v669_v40 = vld [vmem:[%s4266_s9] sm:$0xc]  ;;  %v2907_v42 = vcombine.low %v557_v39, %v4324_v13 }
  0x31   : > { %3499 = vmatprep.subr.bf16.mxu1 %v4164_v2  ;;  %v379_v24 = vor.u32 %v378_v21, %v374_v20  ;;  %v670_v41 = vld [vmem:[%s4266_s9 + $0x4] sm:$0x3]  ;;  %v3930_v43 = vld [vmem:[%s5059_s2 + $0xb8] sm:$0xff]   ;;  %v3937_v50 = vld [vmem:[%s5059_s2 + $0x108] sm:$0xff]  }
  0x32   : > { %v2932_v44 = vcombine.low %v669_v40, %v670_v41  ;;  %v3931_v45 = vld [vmem:[%s5059_s2 + $0xf8] sm:$0xff]   ;;  %v578_v46 = vrot.slane %v2907_v42, 1  ;;  %v3933_v47 = vld [vmem:[%s5059_s2 + $0x100] sm:$0xff]   ;;  %v3938_v51 = vld [vmem:[%s5059_s2 + $0x148] sm:$0xff]  }
  0x33   : > { %3480 = vmatpush3.bf16.msra.mxu0 %v3905_v8  ;;  %v3936_v49 = vld [vmem:[%s5059_s2 + $0x140] sm:$0xff]   ;;  %v3939_v52 = vld [vmem:[%s5059_s2 + $0x110] sm:$0xff]   ;;  %v3941_v54 = vld [vmem:[%s5059_s2 + $0x118] sm:$0xff]  }
  0x34   : > { %3500 = vmatpush3.bf16.msra.mxu1 %v3906_v9  ;;  %3481 = vmatprep.subr.bf16.mxu0 %v4164_v2  ;;  %v693_v48 = vrot.slane %v2932_v44, 2  ;;  %v3940_v53 = vld [vmem:[%s5059_s2 + $0x150] sm:$0xff]   ;;  %v3942_v55 = vld [vmem:[%s5059_s2 + $0x158] sm:$0xff]   ;;  %v784_v56 = vld [vmem:[%s4266_s9 + $0x4] sm:$0x7] }
  0x35   : > { %3501 = vmatprep.subr.bf16.mxu1 %v4164_v2  ;;  %v3943_v57 = vld [vmem:[%s5059_s2 + $0x120] sm:$0xff]   ;;  %v2957_v59 = vcombine.low %v669_v40, %v784_v56  ;;  %v3945_v60 = vld [vmem:[%s5059_s2 + $0x128] sm:$0xff]   ;;  %v3947_v0 = vld [vmem:[%s5059_s2 + $0x130] sm:$0xff]  }
  0x36   : > { %v3944_v58 = vld [vmem:[%s5059_s2 + $0x160] sm:$0xff]   ;;  %v3946_v61 = vld [vmem:[%s5059_s2 + $0x168] sm:$0xff]   ;;  %v3948_v1 = vld [vmem:[%s5059_s2 + $0x170] sm:$0xff]  }
  0x37   : > { %3482 = vmatpush3.bf16.msra.mxu0 %v3907_v10  ;;  %v806_v62 = vshrl.u32 %v2957_v59, 16  ;;  %v809_v63 = vshll.u32 %v2957_v59, 16  ;;  %v903_v3 = vld [vmem:[%s4266_s9] sm:$0x8]  ;;  %v3949_v6 = vld [vmem:[%s5059_s2 + $0x138] sm:$0xff]   ;;  %v3954_v13 = vld [vmem:[%s5059_s2 + $0x188] sm:$0xff]  }
  0x38   : > { %3502 = vmatpush3.bf16.msra.mxu1 %v3908_v11  ;;  %3483 = vmatprep.subr.bf16.mxu0 %v4164_v2  ;;  %v2982_v7 = vcombine.low %v903_v3, %v784_v56  ;;  %v3950_v8 = vld [vmem:[%s5059_s2 + $0x178] sm:$0xff]   ;;  %v3951_v10 = vld [vmem:[%s5059_s2 + $0x180] sm:$0xff]   ;;  %v3955_v14 = vld [vmem:[%s5059_s2 + $0x1c8] sm:$0xff]  }
  0x39   : > { %3503 = vmatprep.subr.bf16.mxu1 %v4164_v2  ;;  %v808_v4 = vrot.slane %v806_v62, 2  ;;  %v811_v5 = vrot.slane %v809_v63, 3  ;;  %v3958_v17 = vld [vmem:[%s5059_s2 + $0x198] sm:$0xff]   ;;  %v3961_v20 = vld [vmem:[%s5059_s2 + $0x1e0] sm:$0xff]   ;;  %v3971_v39 = vld [vmem:[%s5059_s2 + $0x210] sm:$0xff]  }
  0x3a   : > { %v924_v11 = vrot.slane %v2982_v7, 3  ;;  %v1122_v21 = vld [vmem:[%s4266_s9 + $0x4] sm:$0xf]  ;;  %v3972_v40 = vld [vmem:[%s5059_s2 + $0x218] sm:$0xff]   ;;  %v3974_v42 = vld [vmem:[%s5059_s2 + $0x228] sm:$0xff]  }
  0x3b   : > { %3484 = vmatpush3.bf16.msra.mxu0 %v3909_v15  ;;  %v812_v9 = vor.u32 %v811_v5, %v808_v4  ;;  %v3956_v15 = vld [vmem:[%s5059_s2 + $0x190] sm:$0xff]   ;;  %v3973_v41 = vld [vmem:[%s5059_s2 + $0x220] sm:$0xff]  }
  0x3c   : > { %3504 = vmatpush3.bf16.msra.mxu1 %v3910_v16  ;;  %3485 = vmatprep.subr.bf16.mxu0 %v4164_v2  ;;  %v3957_v16 = vld [vmem:[%s5059_s2 + $0x1d0] sm:$0xff]   ;;  %v1243_v44 = vld [vmem:[%s4266_s9 + $0x4] sm:$0xe] }
  0x3d   : > { %3505 = vmatprep.subr.bf16.mxu1 %v4164_v2 }
  0x3f   : > { %3486 = vmatpush3.bf16.msra.mxu0 %v3911_v18  ;;  %v3959_v18 = vld [vmem:[%s5059_s2 + $0x1d8] sm:$0xff]  }
  0x40   : > { %3506 = vmatpush3.bf16.msra.mxu1 %v3912_v19  ;;  %3487 = vmatprep.subr.bf16.mxu0 %v4164_v2  ;;  %v3960_v19 = vld [vmem:[%s5059_s2 + $0x1a0] sm:$0xff]  }
  0x41   : > { %3507 = vmatprep.subr.bf16.mxu1 %v4164_v2 }
  0x43   : > { %3488 = vmatpush3.bf16.msra.mxu0 %v3913_v22  ;;  %v1123_v22 = vld [vmem:[%s4266_s9 + $0x8] sm:$0x1] }
  0x44   : > { %3508 = vmatpush3.bf16.msra.mxu1 %v3914_v23  ;;  %3513 = vmatprep.subr.bf16.mxu0 %v4164_v2  ;;  %v3962_v23 = vld [vmem:[%s5059_s2 + $0x1a8] sm:$0xff]  }
  0x45   : > { %3533 = vmatprep.subr.bf16.mxu1 %v4164_v2 }
  0x46   : > { %3490 = vmatmul.mubr.bf16.vlgmr.msra.gmra.mrb[0].mxu0 %v379_v24  ;;  %v3031_v24 = vcombine.low %v1122_v21, %v1123_v22 }
  0x47   : > { %3510 = vmatmul.mubr.bf16.vlgmr.msra.gmra.mrb[0].mxu1 %v333_v12  ;;  %3514 = vmatpush3.bf16.msra.mxu0 %v3916_v25  ;;  %v3953_v12 = vld [vmem:[%s5059_s2 + $0x1c0] sm:$0xff]   ;;  %v3963_v25 = vld [vmem:[%s5059_s2 + $0x1e8] sm:$0xff]  }
  0x48   : > { %3534 = vmatpush3.bf16.msra.mxu1 %v3917_v26  ;;  %3515 = vmatprep.subr.bf16.mxu0 %v4164_v2  ;;  %v3964_v26 = vld [vmem:[%s5059_s2 + $0x1b0] sm:$0xff]  }
  0x49   : > { %3535 = vmatprep.subr.bf16.mxu1 %v4164_v2  ;;  %3529 = vmatprep.mubr.msk.bf16.mxu0 %vm4165_vm0, %v4164_v2 }
  0x4a   : > { %3549 = vmatprep.mubr.msk.bf16.mxu1 %vm4165_vm0, %v4164_v2 }
  0x4b   : > { %3516 = vmatpush3.bf16.msra.mxu0 %v3918_v27  ;;  %v1149_v27 = vshll.u32 %v3031_v24, 16 }
  0x4c   : > { %3536 = vmatpush3.bf16.msra.mxu1 %v3919_v28  ;;  %3517 = vmatprep.subr.bf16.mxu0 %v4164_v2  ;;  %v3965_v28 = vld [vmem:[%s5059_s2 + $0x1f0] sm:$0xff]  }
  0x4d   : > { %3537 = vmatprep.subr.bf16.mxu1 %v4164_v2 }
  0x4f   : > { %3518 = vmatpush3.bf16.msra.mxu0 %v3920_v29  ;;  %v1363_v29 = vld [vmem:[%s5058_s1] sm:$0xff] }
  0x50   : > { %3538 = vmatpush3.bf16.msra.mxu1 %v3921_v30  ;;  %3519 = vmatprep.subr.bf16.mxu0 %v4164_v2  ;;  %v4166_v30 = vmov 0  }
  0x51   : > { %3539 = vmatprep.subr.bf16.mxu1 %v4164_v2  ;;  %3898 = vset.pattern.permute.xlu0 %v4166_v30 }
  0x52   : > { %1367 = vperm.xlu0 %3898, %v1363_v29  }
  0x53   : > { %3520 = vmatpush3.bf16.msra.mxu0 %v3922_v31  ;;  %v3966_v31 = vld [vmem:[%s5059_s2 + $0x1b8] sm:$0xff]  }
  0x54   : > { %3540 = vmatpush3.bf16.msra.mxu1 %v3923_v32  ;;  %3521 = vmatprep.subr.bf16.mxu0 %v4164_v2  ;;  %v1147_v32 = vshrl.u32 %v3031_v24, 16  ;;  %v3065_v24 = vld [vmem:[%s5060_s3] ss:$0 sm:$0xff] }
  0x55   : > { %3541 = vmatprep.subr.bf16.mxu1 %v4164_v2 }
  0x57   : > { %3522 = vmatpush3.bf16.msra.mxu0 %v3924_v33  ;;  %v1151_v33 = vrot.slane %v1149_v27, 1 }
  0x58   : > { %3542 = vmatpush3.bf16.msra.mxu1 %v3925_v34  ;;  %3523 = vmatprep.subr.bf16.mxu0 %v4164_v2  ;;  %v3967_v34 = vld [vmem:[%s5059_s2 + $0x1f8] sm:$0xff]  }
  0x59   : > { %3543 = vmatprep.subr.bf16.mxu1 %v4164_v2 }
  0x5b   : > { %3524 = vmatpush3.bf16.msra.mxu0 %v3926_v35  ;;  %v1015_v35 = vld [vmem:[%s4266_s9 + $0x4] sm:$0xf] }
  0x5c   : > { %3544 = vmatpush3.bf16.msra.mxu1 %v3927_v36  ;;  %3525 = vmatprep.subr.bf16.mxu0 %v4164_v2  ;;  %v3968_v36 = vld [vmem:[%s5059_s2 + $0x200] sm:$0xff]  }
  0x5d   : > { %3545 = vmatprep.subr.bf16.mxu1 %v4164_v2 }
  0x5f   : > { %3526 = vmatpush3.bf16.msra.mxu0 %v3928_v37  ;;  %v1152_v37 = vor.u32 %v1151_v33, %v1147_v32 }
  0x60   : > { %3546 = vmatpush3.bf16.msra.mxu1 %v3929_v38  ;;  %3527 = vmatprep.subr.bf16.mxu0 %v4164_v2  ;;  %v3970_v38 = vld [vmem:[%s5059_s2 + $0x208] sm:$0xff]  }
  0x61   : > { %3547 = vmatprep.subr.bf16.mxu1 %v4164_v2 }
  0x63   : > { %3528 = vmatpush3.bf16.msra.mxu0 %v3930_v43  ;;  %v3975_v43 = vld [vmem:[%s5059_s2 + $0x230] sm:$0xff]  }
  0x64   : > { %3548 = vmatpush3.bf16.msra.mxu1 %v3931_v45  ;;  %3553 = vmatprep.subr.bf16.mxu0 %v4164_v2  ;;  %v3056_v45 = vcombine.low %v1243_v44, %v1123_v22 }
  0x65   : > { %3573 = vmatprep.subr.bf16.mxu1 %v4164_v2 }
  0x66   : > { %3530 = vmatmul.mubr.bf16.vlgmr.msra.gmra.mrb[4].mxu0 %v578_v46  ;;  %v3976_v46 = vld [vmem:[%s5059_s2 + $0x238] sm:$0xff]  }
  0x67   : > { %3554 = vmatpush3.bf16.msra.mxu0 %v3933_v47  ;;  %3550 = vmatmul.mubr.bf16.vlgmr.msra.gmra.mrb[4].mxu1 %v693_v48  ;;  %v1264_v47 = vrot.slane %v3056_v45, 1 }
  0x68   : > { %3574 = vmatpush3.bf16.msra.mxu1 %v3936_v49  ;;  %3555 = vmatprep.subr.bf16.mxu0 %v4164_v2 }
  0x69   : > { %3575 = vmatprep.subr.bf16.mxu1 %v4164_v2  ;;  %3569 = vmatprep.mubr.msk.bf16.mxu0 %vm4165_vm0, %v4164_v2 }
  0x6a   : > { %3589 = vmatprep.mubr.msk.bf16.mxu1 %vm4165_vm0, %v4164_v2 }
  0x6b   : > { %3556 = vmatpush3.bf16.msra.mxu0 %v3937_v50 }
  0x6c   : > { %3576 = vmatpush3.bf16.msra.mxu1 %v3938_v51  ;;  %3557 = vmatprep.subr.bf16.mxu0 %v4164_v2 }
  0x6d   : > { %3577 = vmatprep.subr.bf16.mxu1 %v4164_v2 }
  0x6f   : > { %3558 = vmatpush3.bf16.msra.mxu0 %v3939_v52 }
  0x70   : > { %3578 = vmatpush3.bf16.msra.mxu1 %v3940_v53  ;;  %3559 = vmatprep.subr.bf16.mxu0 %v4164_v2 }
  0x71   : > { %3579 = vmatprep.subr.bf16.mxu1 %v4164_v2 }
  0x73   : > { %3560 = vmatpush3.bf16.msra.mxu0 %v3941_v54 }
  0x74   : > { %3580 = vmatpush3.bf16.msra.mxu1 %v3942_v55  ;;  %3561 = vmatprep.subr.bf16.mxu0 %v4164_v2 }
  0x75   : > { %3581 = vmatprep.subr.bf16.mxu1 %v4164_v2 }
  0x77   : > { %3562 = vmatpush3.bf16.msra.mxu0 %v3943_v57 }
  0x78   : > { %3582 = vmatpush3.bf16.msra.mxu1 %v3944_v58  ;;  %3563 = vmatprep.subr.bf16.mxu0 %v4164_v2 }
  0x79   : > { %3583 = vmatprep.subr.bf16.mxu1 %v4164_v2 }
  0x7b   : > { %3564 = vmatpush3.bf16.msra.mxu0 %v3945_v60 }
  0x7c   : > { %3584 = vmatpush3.bf16.msra.mxu1 %v3946_v61  ;;  %3565 = vmatprep.subr.bf16.mxu0 %v4164_v2 }
  0x7d   : > { %3585 = vmatprep.subr.bf16.mxu1 %v4164_v2 }
  0x7f   : > { %3566 = vmatpush3.bf16.msra.mxu0 %v3947_v0 }
  0x80   : > { %3586 = vmatpush3.bf16.msra.mxu1 %v3948_v1  ;;  %3567 = vmatprep.subr.bf16.mxu0 %v4164_v2 }
  0x81   : > { %3587 = vmatprep.subr.bf16.mxu1 %v4164_v2 }
  0x83   : > { %3568 = vmatpush3.bf16.msra.mxu0 %v3949_v6 }
  0x84   : > { %3588 = vmatpush3.bf16.msra.mxu1 %v3950_v8  ;;  %3593 = vmatprep.subr.bf16.mxu0 %v4164_v2 }
  0x85   : > { %3613 = vmatprep.subr.bf16.mxu1 %v4164_v2 }
  0x86   : > { %3570 = vmatmul.mubr.bf16.vlgmr.msra.gmra.mrb[8].mxu0 %v812_v9 }
  0x87   : > { %3594 = vmatpush3.bf16.msra.mxu0 %v3951_v10  ;;  %3590 = vmatmul.mubr.bf16.vlgmr.msra.gmra.mrb[8].mxu1 %v924_v11 }
  0x88   : > { %3614 = vmatpush3.bf16.msra.mxu1 %v3953_v12  ;;  %3595 = vmatprep.subr.bf16.mxu0 %v4164_v2 }
  0x89   : > { %3615 = vmatprep.subr.bf16.mxu1 %v4164_v2  ;;  %3609 = vmatprep.mubr.msk.bf16.mxu0 %vm4165_vm0, %v4164_v2 }
  0x8a   : > { %3629 = vmatprep.mubr.msk.bf16.mxu1 %vm4165_vm0, %v4164_v2 }
  0x8b   : > { %3596 = vmatpush3.bf16.msra.mxu0 %v3954_v13 }
  0x8c   : > { %3616 = vmatpush3.bf16.msra.mxu1 %v3955_v14  ;;  %3597 = vmatprep.subr.bf16.mxu0 %v4164_v2 }
  0x8d   : > { %3617 = vmatprep.subr.bf16.mxu1 %v4164_v2 }
  0x8f   : > { %3598 = vmatpush3.bf16.msra.mxu0 %v3956_v15 }
  0x90   : > { %3618 = vmatpush3.bf16.msra.mxu1 %v3957_v16  ;;  %3599 = vmatprep.subr.bf16.mxu0 %v4164_v2 }
  0x91   : > { %3619 = vmatprep.subr.bf16.mxu1 %v4164_v2 }
  0x93   : > { %3600 = vmatpush3.bf16.msra.mxu0 %v3958_v17 }
  0x94   : > { %3620 = vmatpush3.bf16.msra.mxu1 %v3959_v18  ;;  %3601 = vmatprep.subr.bf16.mxu0 %v4164_v2 }
  0x95   : > { %3621 = vmatprep.subr.bf16.mxu1 %v4164_v2 }
  0x97   : > { %3602 = vmatpush3.bf16.msra.mxu0 %v3960_v19 }
  0x98   : > { %3622 = vmatpush3.bf16.msra.mxu1 %v3961_v20  ;;  %3603 = vmatprep.subr.bf16.mxu0 %v4164_v2 }
  0x99   : > { %3623 = vmatprep.subr.bf16.mxu1 %v4164_v2 }
  0x9b   : > { %3604 = vmatpush3.bf16.msra.mxu0 %v3962_v23 }
  0x9c   : > { %3624 = vmatpush3.bf16.msra.mxu1 %v3963_v25  ;;  %3605 = vmatprep.subr.bf16.mxu0 %v4164_v2 }
  0x9d   : > { %3625 = vmatprep.subr.bf16.mxu1 %v4164_v2 }
  0x9f   : > { %3606 = vmatpush3.bf16.msra.mxu0 %v3964_v26 }
  0xa0   : > { %3626 = vmatpush3.bf16.msra.mxu1 %v3965_v28  ;;  %3607 = vmatprep.subr.bf16.mxu0 %v4164_v2 }
  0xa1   : > { %3627 = vmatprep.subr.bf16.mxu1 %v4164_v2 }
  0xa3   : > { %3608 = vmatpush3.bf16.msra.mxu0 %v3966_v31 }
  0xa4   : > { %3628 = vmatpush3.bf16.msra.mxu1 %v3967_v34  ;;  %3633 = vmatprep.subr.bf16.mxu0 %v4164_v2 }
  0xa6   : > { %3610 = vmatmul.mubr.bf16.vlgmr.msra.gmra.mrb[12].mxu0 %v1015_v35 }
  0xa7   : > { %3634 = vmatpush3.bf16.msra.mxu0 %v3968_v36  ;;  %3630 = vmatmul.mubr.bf16.vlgmr.msra.gmra.mrb[12].mxu1 %v1152_v37 }
  0xa8   : > { %3635 = vmatprep.subr.bf16.mxu0 %v4164_v2  ;;  %3649 = vmatprep.mubr.msk.bf16.mxu0 %vm4165_vm0, %v4164_v2 }
  0xab   : > { %3636 = vmatpush3.bf16.msra.mxu0 %v3970_v38 }
  0xac   : > { %3637 = vmatprep.subr.bf16.mxu0 %v4164_v2 }
  0xaf   : > { %3638 = vmatpush3.bf16.msra.mxu0 %v3971_v39 }
  0xb0   : > { %3639 = vmatprep.subr.bf16.mxu0 %v4164_v2 }
  0xb3   : > { %3640 = vmatpush3.bf16.msra.mxu0 %v3972_v40 }
  0xb4   : > { %3641 = vmatprep.subr.bf16.mxu0 %v4164_v2 }
  0xb7   : > { %3642 = vmatpush3.bf16.msra.mxu0 %v3973_v41 }
  0xb8   : > { %3643 = vmatprep.subr.bf16.mxu0 %v4164_v2 }
  0xbb   : > { %3644 = vmatpush3.bf16.msra.mxu0 %v3974_v42 }
  0xbc   : > { %3645 = vmatprep.subr.bf16.mxu0 %v4164_v2 }
  0xbf   : > { %3646 = vmatpush3.bf16.msra.mxu0 %v3975_v43  ;;  %v1364_v43 = vld [vmem:[#allocation2] sm:$0x1] }
  0xc0   : > { %3647 = vmatprep.subr.bf16.mxu0 %v4164_v2 }
  0xc3   : > { %3648 = vmatpush3.bf16.msra.mxu0 %v3976_v46  ;;  %v1379_v46 = vld [vmem:[#allocation3] sm:$0x1] }
  0xc6   : > { %3650 = vmatmul.mubr.bf16.vlgmr.msra.gmra.mrb[16].mxu0 %v1264_v47 }
  0xd1   : > { %v1368_v28 = vpop.permute.xlu0 %1367 }
 0x119   : > { %v463_v48 = vpop.f32.mrb[0].mxu0 }
 0x11a   : > { %v3491_v49 = vpop.f32.mrb[1].mxu0  ;;  %v551_v50 = vpop.f32.mrb[0].mxu1 }
 0x11b   : > { %v552_v51 = vadd.f32 %v551_v50, %v463_v48  ;;  %v466_v52 = vpop.f32.mrb[2].mxu0  ;;  %v3511_v53 = vpop.f32.mrb[1].mxu1 }
 0x11c   : > { %v3492_v54 = vpop.f32.mrb[3].mxu0  ;;  %v554_v55 = vpop.f32.mrb[2].mxu1 }
 0x11d   : > { %v3512_v56 = vpop.f32.mrb[3].mxu1 }
 0x139   : > { %v662_v57 = vpop.f32.mrb[4].mxu0 }
 0x13a   : > { %v668_v58 = vadd.f32 %v662_v57, %v552_v51  ;;  %v3531_v59 = vpop.f32.mrb[5].mxu0  ;;  %v777_v60 = vpop.f32.mrb[4].mxu1 }
 0x13b   : > { %v665_v61 = vpop.f32.mrb[6].mxu0  ;;  %v3551_v62 = vpop.f32.mrb[5].mxu1 }
 0x13c   : > { %v783_v63 = vadd.f32 %v777_v60, %v668_v58  ;;  %v3532_v2 = vpop.f32.mrb[7].mxu0  ;;  %v780_v0 = vpop.f32.mrb[6].mxu1 }
 0x13d   : > { %v3552_v1 = vpop.f32.mrb[7].mxu1 }
 0x159   : > { %v896_v3 = vpop.f32.mrb[8].mxu0 }
 0x15a   : > { %v902_v4 = vadd.f32 %v896_v3, %v783_v63  ;;  %v3571_v5 = vpop.f32.mrb[9].mxu0  ;;  %v1008_v6 = vpop.f32.mrb[8].mxu1 }
 0x15b   : > { %v899_v7 = vpop.f32.mrb[10].mxu0  ;;  %v3591_v8 = vpop.f32.mrb[9].mxu1 }
 0x15c   : > { %v1014_v9 = vadd.f32 %v1008_v6, %v902_v4  ;;  %v3572_v10 = vpop.f32.mrb[11].mxu0  ;;  %v1011_v11 = vpop.f32.mrb[10].mxu1 }
 0x15d   : > { %v3592_v12 = vpop.f32.mrb[11].mxu1 }
 0x179   : > { %v1115_v13 = vpop.f32.mrb[12].mxu0 }
 0x17a   : > { %v1121_v14 = vadd.f32 %v1115_v13, %v1014_v9  ;;  %v3611_v15 = vpop.f32.mrb[13].mxu0  ;;  %v1236_v16 = vpop.f32.mrb[12].mxu1 }
 0x17b   : > { %v1118_v17 = vpop.f32.mrb[14].mxu0  ;;  %v3631_v18 = vpop.f32.mrb[13].mxu1 }
 0x17c   : > { %v1242_v19 = vadd.f32 %v1236_v16, %v1121_v14  ;;  %v3612_v20 = vpop.f32.mrb[15].mxu0  ;;  %v1239_v21 = vpop.f32.mrb[14].mxu1 }
 0x17d   : > { %v3632_v22 = vpop.f32.mrb[15].mxu1 }
 0x199   : > { %v1348_v23 = vpop.f32.mrb[16].mxu0 }
 0x19a   : > { %v1354_v25 = vadd.f32 %v1348_v23, %v1242_v19  ;;  %v3651_v26 = vpop.f32.mrb[17].mxu0 }
 0x19b   : > { %v1351_v27 = vpop.f32.mrb[18].mxu0 }
 0x19c   : > { %v3652_v29 = vpop.f32.mrb[19].mxu0  ;;  %v1362_v30 = vadd.f32 %v3065_v24, %v1354_v25 }
 0x19e   : > { %v1370_v31 = vmul.f32 %v1368_v28, %v1362_v30  ;;  %v1380_v32 = vmul.f32 %v1362_v30, %v1362_v30 }
 0x1a0   : > { %v1371_v33 = vrot.slane %v1370_v31, 4  ;;  %v1381_v34 = vmul.f32 %v1380_v32, %v1368_v28 }
 0x1a2   : > { %v1372_v35 = vadd.f32 %v1371_v33, %v1370_v31  ;;  %v1382_v36 = vrot.slane %v1381_v34, 4 }
 0x1a4   : > { %v1373_v37 = vrot.slane %v1372_v35, 2  ;;  %v1383_v38 = vadd.f32 %v1382_v36, %v1381_v34 }
 0x1a6   : > { %v1374_v39 = vadd.f32 %v1373_v37, %v1372_v35  ;;  %v1384_v40 = vrot.slane %v1383_v38, 2 }
 0x1a8   : > { %v1375_v41 = vrot.slane %v1374_v39, 1  ;;  %v1385_v42 = vadd.f32 %v1384_v40, %v1383_v38 }
 0x1aa   : > { %v1376_v44 = vadd.f32 %v1375_v41, %v1374_v39  ;;  %v1386_v45 = vrot.slane %v1385_v42, 1 }
 0x1ac   : > { %v1377_v47 = vadd.f32 %v1376_v44, %v1364_v43  ;;  %v1387_v48 = vadd.f32 %v1386_v45, %v1385_v42 }
 0x1ae   : > { %1378 = vst [vmem:[#allocation2] sm:$0x1] %v1377_v47  ;;  %v1388_v49 = vadd.f32 %v1387_v48, %v1379_v46 }
 0x1b0   : > { %1389 = vst [vmem:[#allocation3] sm:$0x1] %v1388_v49 }
 0x1b1 PF: > { %p3066_p10 = scmp.ne.s32.totalorder %s4141_s25, 1 }
 0x1b2   : > { %v3978_v50 = vld [vmem:[%s5059_s2 + $0x40] sm:$0xff] (!%p3066_p10)   ;;  %v4167_v51 = vmov (!%p3066_p10), 0.0   ;;  %v3980_v53 = vld [vmem:[%s5059_s2 + $0x48] sm:$0xff] (!%p3066_p10)   ;;  %vm4168_vm1 = vmmov (!%p3066_p10), 0   ;;  %v3982_v55 = vld [vmem:[%s5059_s2 + $0x50] sm:$0xff] (!%p3066_p10)  }
 0x1b3   : > { %1397 = sbr.rel (%p3066_p10) target bundleno = 1038 (0x40e), region = 60  ;;  %3653 = vmatprep.subr.bf16.mxu0 (!%p3066_p10), %v4167_v51  ;;  %3673 = vmatprep.subr.bf16.mxu1 (!%p3066_p10), %v4167_v51  ;;  %v3979_v52 = vld [vmem:[%s5059_s2] sm:$0xff] (!%p3066_p10)   ;;  %v3981_v54 = vld [vmem:[%s5059_s2 + $0x8] sm:$0xff] (!%p3066_p10)   ;;  %v3983_v56 = vld [vmem:[%s5059_s2 + $0x10] sm:$0xff] (!%p3066_p10)  }
 0x1b4   : > { %3654 = vmatpush3.bf16.msra.mxu0 (!%p3066_p10), %v3978_v50  ;;  %3669 = vmatprep.mubr.msk.bf16.mxu0 (!%p3066_p10), %vm4168_vm1, %v4167_v51  ;;  %v3984_v57 = vld [vmem:[%s5059_s2 + $0x58] sm:$0xff] (!%p3066_p10)   ;;  %v3986_v59 = vld [vmem:[%s5059_s2 + $0x60] sm:$0xff] (!%p3066_p10)   ;;  %v3988_v2 = vld [vmem:[%s5059_s2 + $0x68] sm:$0xff] (!%p3066_p10)  }
 0x1b5   : > { %3674 = vmatpush3.bf16.msra.mxu1 (!%p3066_p10), %v3979_v52  ;;  %3655 = vmatprep.subr.bf16.mxu0 (!%p3066_p10), %v4167_v51  ;;  %v3985_v58 = vld [vmem:[%s5059_s2 + $0x18] sm:$0xff] (!%p3066_p10)   ;;  %v3987_v60 = vld [vmem:[%s5059_s2 + $0x20] sm:$0xff] (!%p3066_p10)   ;;  %v3989_v0 = vld [vmem:[%s5059_s2 + $0x28] sm:$0xff] (!%p3066_p10)  }
 0x1b6   : > { %3675 = vmatprep.subr.bf16.mxu1 (!%p3066_p10), %v4167_v51  ;;  %3689 = vmatprep.mubr.msk.bf16.mxu1 (!%p3066_p10), %vm4168_vm1, %v4167_v51  ;;  %v1398_v61 = vld [vmem:[%s4266_s9] sm:$0xf] (!%p3066_p10)  ;;  %v4652_v62 = vld [vmem:[%s4266_s9 + $0x4] sm:$0x1] (!%p3066_p10)  ;;  %v3990_v3 = vld [vmem:[%s5059_s2 + $0x70] sm:$0xff] (!%p3066_p10)  }
 0x1b7   : > { %v3083_v63 = vcombine.low (!%p3066_p10), %v1398_v61, %v4652_v62  ;;  %v3991_v4 = vld [vmem:[%s5059_s2 + $0x30] sm:$0xff] (!%p3066_p10)   ;;  %v3992_v7 = vld [vmem:[%s5059_s2 + $0x78] sm:$0xff] (!%p3066_p10)   ;;  %v3995_v10 = vld [vmem:[%s5059_s2 + $0x80] sm:$0xff] (!%p3066_p10)  }
 0x1b8   : > { %3656 = vmatpush3.bf16.msra.mxu0 (!%p3066_p10), %v3980_v53  ;;  %v3993_v8 = vld [vmem:[%s5059_s2 + $0x38] sm:$0xff] (!%p3066_p10)   ;;  %v3996_v11 = vld [vmem:[%s5059_s2 + $0xc0] sm:$0xff] (!%p3066_p10)   ;;  %v3997_v12 = vld [vmem:[%s5059_s2 + $0x88] sm:$0xff] (!%p3066_p10)  }
 0x1b9   : > { %3676 = vmatpush3.bf16.msra.mxu1 (!%p3066_p10), %v3981_v54  ;;  %3657 = vmatprep.subr.bf16.mxu0 (!%p3066_p10), %v4167_v51  ;;  %v1441_v1 = vshll.u32 (!%p3066_p10), %v3083_v63, 16  ;;  %v1439_v5 = vshrl.u32 (!%p3066_p10), %v3083_v63, 16  ;;  %v3998_v13 = vld [vmem:[%s5059_s2 + $0xc8] sm:$0xff] (!%p3066_p10)   ;;  %v3999_v14 = vld [vmem:[%s5059_s2 + $0x90] sm:$0xff] (!%p3066_p10)   ;;  %v4001_v16 = vld [vmem:[%s5059_s2 + $0x98] sm:$0xff] (!%p3066_p10)  }
 0x1ba   : > { %3677 = vmatprep.subr.bf16.mxu1 %v4167_v51  ;;  %v4000_v15 = vld [vmem:[%s5059_s2 + $0xd0] sm:$0xff]   ;;  %v4002_v17 = vld [vmem:[%s5059_s2 + $0xd8] sm:$0xff]   ;;  %v4003_v18 = vld [vmem:[%s5059_s2 + $0xa0] sm:$0xff]  }
 0x1bb   : > { %v1443_v6 = vrot.slane %v1441_v1, 1  ;;  %v4004_v19 = vld [vmem:[%s5059_s2 + $0xe0] sm:$0xff]   ;;  %v4005_v20 = vld [vmem:[%s5059_s2 + $0xa8] sm:$0xff]   ;;  %v4007_v22 = vld [vmem:[%s5059_s2 + $0xb0] sm:$0xff]  }
 0x1bc   : > { %3658 = vmatpush3.bf16.msra.mxu0 %v3982_v55  ;;  %v4006_v21 = vld [vmem:[%s5059_s2 + $0xe8] sm:$0xff]   ;;  %v4008_v23 = vld [vmem:[%s5059_s2 + $0xf0] sm:$0xff]   ;;  %v1622_v24 = vld [vmem:[%s4266_s9] sm:$0xe] }
 0x1bd   : > { %3678 = vmatpush3.bf16.msra.mxu1 %v3983_v56  ;;  %3659 = vmatprep.subr.bf16.mxu0 %v4167_v51  ;;  %v1444_v9 = vor.u32 %v1443_v6, %v1439_v5  ;;  %v1734_v25 = vld [vmem:[%s4266_s9] sm:$0xc]  ;;  %v1735_v26 = vld [vmem:[%s4266_s9 + $0x4] sm:$0x3]  ;;  %v3116_v27 = vcombine.low %v1622_v24, %v4652_v62  ;;  %v4009_v28 = vld [vmem:[%s5059_s2 + $0xb8] sm:$0xff]  }
 0x1be   : > { %3679 = vmatprep.subr.bf16.mxu1 %v4167_v51  ;;  %v3141_v29 = vcombine.low %v1734_v25, %v1735_v26  ;;  %v4010_v30 = vld [vmem:[%s5059_s2 + $0xf8] sm:$0xff]   ;;  %v4012_v32 = vld [vmem:[%s5059_s2 + $0x100] sm:$0xff]   ;;  %v4016_v35 = vld [vmem:[%s5059_s2 + $0x108] sm:$0xff]  }
 0x1bf   : > { %v1643_v31 = vrot.slane %v3116_v27, 1  ;;  %v4015_v34 = vld [vmem:[%s5059_s2 + $0x140] sm:$0xff]   ;;  %v4017_v36 = vld [vmem:[%s5059_s2 + $0x148] sm:$0xff]   ;;  %v4018_v37 = vld [vmem:[%s5059_s2 + $0x110] sm:$0xff]  }
 0x1c0   : > { %3660 = vmatpush3.bf16.msra.mxu0 %v3984_v57  ;;  %v1758_v33 = vrot.slane %v3141_v29, 2  ;;  %v4019_v38 = vld [vmem:[%s5059_s2 + $0x150] sm:$0xff]   ;;  %v4020_v39 = vld [vmem:[%s5059_s2 + $0x118] sm:$0xff]   ;;  %v1849_v41 = vld [vmem:[%s4266_s9 + $0x4] sm:$0x7] }
 0x1c1   : > { %3680 = vmatpush3.bf16.msra.mxu1 %v3985_v58  ;;  %3661 = vmatprep.subr.bf16.mxu0 %v4167_v51  ;;  %v4021_v40 = vld [vmem:[%s5059_s2 + $0x158] sm:$0xff]   ;;  %v4022_v42 = vld [vmem:[%s5059_s2 + $0x120] sm:$0xff]   ;;  %v4024_v44 = vld [vmem:[%s5059_s2 + $0x128] sm:$0xff]   ;;  %v3166_v45 = vcombine.low %v1734_v25, %v1849_v41 }
 0x1c2   : > { %3681 = vmatprep.subr.bf16.mxu1 %v4167_v51  ;;  %v4023_v43 = vld [vmem:[%s5059_s2 + $0x160] sm:$0xff]   ;;  %v4025_v46 = vld [vmem:[%s5059_s2 + $0x168] sm:$0xff]   ;;  %v4026_v49 = vld [vmem:[%s5059_s2 + $0x130] sm:$0xff]  }
 0x1c3   : > { %v1871_v47 = vshrl.u32 %v3166_v45, 16  ;;  %v1874_v48 = vshll.u32 %v3166_v45, 16  ;;  %v4027_v50 = vld [vmem:[%s5059_s2 + $0x170] sm:$0xff]   ;;  %v1968_v52 = vld [vmem:[%s4266_s9] sm:$0x8]  ;;  %v4028_v55 = vld [vmem:[%s5059_s2 + $0x138] sm:$0xff]  }
 0x1c4   : > { %3662 = vmatpush3.bf16.msra.mxu0 %v3986_v59  ;;  %v3191_v56 = vcombine.low %v1968_v52, %v1849_v41  ;;  %v4029_v57 = vld [vmem:[%s5059_s2 + $0x178] sm:$0xff]   ;;  %v4030_v59 = vld [vmem:[%s5059_s2 + $0x180] sm:$0xff]   ;;  %v4033_v62 = vld [vmem:[%s5059_s2 + $0x188] sm:$0xff]  }
 0x1c5   : > { %3682 = vmatpush3.bf16.msra.mxu1 %v3987_v60  ;;  %3663 = vmatprep.subr.bf16.mxu0 %v4167_v51  ;;  %v1873_v53 = vrot.slane %v1871_v47, 2  ;;  %v1876_v54 = vrot.slane %v1874_v48, 3  ;;  %v4034_v63 = vld [vmem:[%s5059_s2 + $0x1c8] sm:$0xff]   ;;  %v4037_v1 = vld [vmem:[%s5059_s2 + $0x198] sm:$0xff]   ;;  %v4040_v5 = vld [vmem:[%s5059_s2 + $0x1e0] sm:$0xff]  }
 0x1c6   : > { %3683 = vmatprep.subr.bf16.mxu1 %v4167_v51  ;;  %v1989_v60 = vrot.slane %v3191_v56, 3  ;;  %v2187_v6 = vld [vmem:[%s4266_s9 + $0x4] sm:$0xf]  ;;  %v4053_v25 = vld [vmem:[%s5059_s2 + $0x228] sm:$0xff]   ;;  %v4054_v26 = vld [vmem:[%s5059_s2 + $0x230] sm:$0xff]  }
 0x1c7   : > { %v1877_v58 = vor.u32 %v1876_v54, %v1873_v53  ;;  %v4052_v24 = vld [vmem:[%s5059_s2 + $0x220] sm:$0xff]   ;;  %v4055_v29 = vld [vmem:[%s5059_s2 + $0x238] sm:$0xff]  }
 0x1c8   : > { %3664 = vmatpush3.bf16.msra.mxu0 %v3988_v2  ;;  %v4035_v2 = vld [vmem:[%s5059_s2 + $0x190] sm:$0xff]   ;;  %v2308_v27 = vld [vmem:[%s4266_s9 + $0x4] sm:$0xe]  ;;  %v4072_v41 = vld [vmem:[%s5063_s6 + $0x48] ss:$16 sps:$4 sm:$0xff]  }
 0x1c9   : > { %3684 = vmatpush3.bf16.msra.mxu1 %v3989_v0  ;;  %3665 = vmatprep.subr.bf16.mxu0 %v4167_v51  ;;  %v4036_v0 = vld [vmem:[%s5059_s2 + $0x1d0] sm:$0xff]   ;;  %v4078_v45 = vld [vmem:[%s5063_s6 + $0x68] ss:$16 sps:$4 sm:$0xff]   ;;  %v4086_v47 = vld [vmem:[%s5063_s6 + $0x8c] ss:$16 sps:$4 sm:$0xff]  }
 0x1ca   : > { %3685 = vmatprep.subr.bf16.mxu1 %v4167_v51 }
 0x1cc   : > { %3666 = vmatpush3.bf16.msra.mxu0 %v3990_v3  ;;  %v4038_v3 = vld [vmem:[%s5059_s2 + $0x1d8] sm:$0xff]  }
 0x1cd   : > { %3686 = vmatpush3.bf16.msra.mxu1 %v3991_v4  ;;  %3667 = vmatprep.subr.bf16.mxu0 %v4167_v51  ;;  %v4039_v4 = vld [vmem:[%s5059_s2 + $0x1a0] sm:$0xff]  }
 0x1ce   : > { %3687 = vmatprep.subr.bf16.mxu1 %v4167_v51 }
 0x1d0   : > { %3668 = vmatpush3.bf16.msra.mxu0 %v3992_v7  ;;  %v2188_v7 = vld [vmem:[%s4266_s9 + $0x8] sm:$0x1] }
 0x1d1   : > { %3688 = vmatpush3.bf16.msra.mxu1 %v3993_v8  ;;  %3693 = vmatprep.subr.bf16.mxu0 %v4167_v51  ;;  %v4041_v8 = vld [vmem:[%s5059_s2 + $0x1a8] sm:$0xff]  }
 0x1d2   : > { %3713 = vmatprep.subr.bf16.mxu1 %v4167_v51 }
 0x1d3   : > { %3670 = vmatmul.mubr.bf16.vlgmr.msra.gmra.mrb[0].mxu0 %v1444_v9  ;;  %v3240_v9 = vcombine.low %v2187_v6, %v2188_v7  ;;  %v4102_v6 = vld [vmem:[%s5063_s6 + $0xe8] ss:$16 sps:$4 sm:$0xff]  }
 0x1d4   : > { %3690 = vmatmul.mubr.bf16.vlgmr.msra.gmra.mrb[0].mxu1 %v1398_v61  ;;  %3694 = vmatpush3.bf16.msra.mxu0 %v3995_v10  ;;  %v4032_v61 = vld [vmem:[%s5059_s2 + $0x1c0] sm:$0xff]   ;;  %v4042_v10 = vld [vmem:[%s5059_s2 + $0x1e8] sm:$0xff]  }
 0x1d5   : > { %3714 = vmatpush3.bf16.msra.mxu1 %v3996_v11  ;;  %3695 = vmatprep.subr.bf16.mxu0 %v4167_v51  ;;  %v4043_v11 = vld [vmem:[%s5059_s2 + $0x1b0] sm:$0xff]  }
 0x1d6   : > { %3715 = vmatprep.subr.bf16.mxu1 %v4167_v51  ;;  %3709 = vmatprep.mubr.msk.bf16.mxu0 %vm4168_vm1, %v4167_v51 }
 0x1d7   : > { %3729 = vmatprep.mubr.msk.bf16.mxu1 %vm4168_vm1, %v4167_v51 }
 0x1d8   : > { %3696 = vmatpush3.bf16.msra.mxu0 %v3997_v12  ;;  %v2214_v12 = vshll.u32 %v3240_v9, 16 }
 0x1d9   : > { %3716 = vmatpush3.bf16.msra.mxu1 %v3998_v13  ;;  %3697 = vmatprep.subr.bf16.mxu0 %v4167_v51  ;;  %v4044_v13 = vld [vmem:[%s5059_s2 + $0x1f0] sm:$0xff]  }
 0x1da   : > { %3717 = vmatprep.subr.bf16.mxu1 %v4167_v51 }
 0x1dc   : > { %3698 = vmatpush3.bf16.msra.mxu0 %v3999_v14  ;;  %v4045_v14 = vld [vmem:[%s5059_s2 + $0x1b8] sm:$0xff]  }
 0x1dd   : > { %3718 = vmatpush3.bf16.msra.mxu1 %v4000_v15  ;;  %3699 = vmatprep.subr.bf16.mxu0 %v4167_v51  ;;  %v2212_v15 = vshrl.u32 %v3240_v9, 16 }
 0x1de   : > { %3719 = vmatprep.subr.bf16.mxu1 %v4167_v51 }
 0x1e0   : > { %3700 = vmatpush3.bf16.msra.mxu0 %v4001_v16  ;;  %v2216_v16 = vrot.slane %v2214_v12, 1 }
 0x1e1   : > { %3720 = vmatpush3.bf16.msra.mxu1 %v4002_v17  ;;  %3701 = vmatprep.subr.bf16.mxu0 %v4167_v51  ;;  %v4046_v17 = vld [vmem:[%s5059_s2 + $0x1f8] sm:$0xff]  }
 0x1e2   : > { %3721 = vmatprep.subr.bf16.mxu1 %v4167_v51 }
 0x1e4   : > { %3702 = vmatpush3.bf16.msra.mxu0 %v4003_v18  ;;  %v2080_v18 = vld [vmem:[%s4266_s9 + $0x4] sm:$0xf] }
 0x1e5   : > { %3722 = vmatpush3.bf16.msra.mxu1 %v4004_v19  ;;  %3703 = vmatprep.subr.bf16.mxu0 %v4167_v51  ;;  %v4047_v19 = vld [vmem:[%s5059_s2 + $0x200] sm:$0xff]  }
 0x1e6   : > { %3723 = vmatprep.subr.bf16.mxu1 %v4167_v51 }
 0x1e8   : > { %3704 = vmatpush3.bf16.msra.mxu0 %v4005_v20  ;;  %v2217_v20 = vor.u32 %v2216_v16, %v2212_v15 }
 0x1e9   : > { %3724 = vmatpush3.bf16.msra.mxu1 %v4006_v21  ;;  %3705 = vmatprep.subr.bf16.mxu0 %v4167_v51  ;;  %v4049_v21 = vld [vmem:[%s5059_s2 + $0x208] sm:$0xff]  }
 0x1ea   : > { %3725 = vmatprep.subr.bf16.mxu1 %v4167_v51 }
 0x1ec   : > { %3706 = vmatpush3.bf16.msra.mxu0 %v4007_v22  ;;  %v4050_v22 = vld [vmem:[%s5059_s2 + $0x210] sm:$0xff]  }
 0x1ed   : > { %3726 = vmatpush3.bf16.msra.mxu1 %v4008_v23  ;;  %3707 = vmatprep.subr.bf16.mxu0 %v4167_v51  ;;  %v4051_v23 = vld [vmem:[%s5059_s2 + $0x218] sm:$0xff]  }
 0x1ee   : > { %3727 = vmatprep.subr.bf16.mxu1 %v4167_v51 }
 0x1f0   : > { %3708 = vmatpush3.bf16.msra.mxu0 %v4009_v28  ;;  %v3265_v28 = vcombine.low %v2308_v27, %v2188_v7  ;;  %v4104_v7 = vld [vmem:[%s5063_s6 + $0xec] ss:$16 sps:$4 sm:$0xff]  }
 0x1f1   : > { %3728 = vmatpush3.bf16.msra.mxu1 %v4010_v30  ;;  %3733 = vmatprep.subr.bf16.mxu0 %v4167_v51 }
 0x1f2   : > { %3753 = vmatprep.subr.bf16.mxu1 %v4167_v51  ;;  %v2329_v30 = vrot.slane %v3265_v28, 1 }
 0x1f3   : > { %3710 = vmatmul.mubr.bf16.vlgmr.msra.gmra.mrb[4].mxu0 %v1643_v31  ;;  %v4057_v31 = vld [vmem:[%s5063_s6] ss:$16 sps:$4 sm:$0xff]  }
 0x1f4   : > { %3734 = vmatpush3.bf16.msra.mxu0 %v4012_v32  ;;  %3730 = vmatmul.mubr.bf16.vlgmr.msra.gmra.mrb[4].mxu1 %v1758_v33  ;;  %v4059_v32 = vld [vmem:[%s5063_s6 + $0x4] ss:$16 sps:$4 sm:$0xff]   ;;  %v4060_v33 = vld [vmem:[%s5063_s6 + $0x8] ss:$16 sps:$4 sm:$0xff]  }
 0x1f5   : > { %3754 = vmatpush3.bf16.msra.mxu1 %v4015_v34  ;;  %3735 = vmatprep.subr.bf16.mxu0 %v4167_v51  ;;  %v4062_v34 = vld [vmem:[%s5063_s6 + $0xc] ss:$16 sps:$4 sm:$0xff]  }
 0x1f6   : > { %3755 = vmatprep.subr.bf16.mxu1 %v4167_v51  ;;  %3749 = vmatprep.mubr.msk.bf16.mxu0 %vm4168_vm1, %v4167_v51 }
 0x1f7   : > { %3769 = vmatprep.mubr.msk.bf16.mxu1 %vm4168_vm1, %v4167_v51 }
 0x1f8   : > { %3736 = vmatpush3.bf16.msra.mxu0 %v4016_v35  ;;  %v4068_v35 = vld [vmem:[%s5063_s6 + $0x2c] ss:$16 sps:$4 sm:$0xff]  }
 0x1f9   : > { %3756 = vmatpush3.bf16.msra.mxu1 %v4017_v36  ;;  %3737 = vmatprep.subr.bf16.mxu0 %v4167_v51  ;;  %v4063_v36 = vld [vmem:[%s5063_s6 + $0x20] ss:$16 sps:$4 sm:$0xff]  }
 0x1fa   : > { %3757 = vmatprep.subr.bf16.mxu1 %v4167_v51 }
 0x1fc   : > { %3738 = vmatpush3.bf16.msra.mxu0 %v4018_v37  ;;  %v4066_v37 = vld [vmem:[%s5063_s6 + $0x28] ss:$16 sps:$4 sm:$0xff]  }
 0x1fd   : > { %3758 = vmatpush3.bf16.msra.mxu1 %v4019_v38  ;;  %3739 = vmatprep.subr.bf16.mxu0 %v4167_v51  ;;  %v4071_v38 = vld [vmem:[%s5063_s6 + $0x44] ss:$16 sps:$4 sm:$0xff]  }
 0x1fe   : > { %3759 = vmatprep.subr.bf16.mxu1 %v4167_v51 }
 0x200   : > { %3740 = vmatpush3.bf16.msra.mxu0 %v4020_v39  ;;  %v4074_v39 = vld [vmem:[%s5063_s6 + $0x4c] ss:$16 sps:$4 sm:$0xff]  }
 0x201   : > { %3760 = vmatpush3.bf16.msra.mxu1 %v4021_v40  ;;  %3741 = vmatprep.subr.bf16.mxu0 %v4167_v51  ;;  %v4069_v40 = vld [vmem:[%s5063_s6 + $0x40] ss:$16 sps:$4 sm:$0xff]  }
 0x202   : > { %3761 = vmatprep.subr.bf16.mxu1 %v4167_v51 }
 0x204   : > { %3742 = vmatpush3.bf16.msra.mxu0 %v4022_v42  ;;  %v4077_v42 = vld [vmem:[%s5063_s6 + $0x64] ss:$16 sps:$4 sm:$0xff]  }
 0x205   : > { %3762 = vmatpush3.bf16.msra.mxu1 %v4023_v43  ;;  %3743 = vmatprep.subr.bf16.mxu0 %v4167_v51  ;;  %v4080_v43 = vld [vmem:[%s5063_s6 + $0x6c] ss:$16 sps:$4 sm:$0xff]  }
 0x206   : > { %3763 = vmatprep.subr.bf16.mxu1 %v4167_v51 }
 0x208   : > { %3744 = vmatpush3.bf16.msra.mxu0 %v4024_v44  ;;  %v4075_v44 = vld [vmem:[%s5063_s6 + $0x60] ss:$16 sps:$4 sm:$0xff]  }
 0x209   : > { %3764 = vmatpush3.bf16.msra.mxu1 %v4025_v46  ;;  %3745 = vmatprep.subr.bf16.mxu0 %v4167_v51  ;;  %v4083_v46 = vld [vmem:[%s5063_s6 + $0x84] ss:$16 sps:$4 sm:$0xff]  }
 0x20a   : > { %3765 = vmatprep.subr.bf16.mxu1 %v4167_v51 }
 0x20c   : > { %3746 = vmatpush3.bf16.msra.mxu0 %v4026_v49  ;;  %v4081_v49 = vld [vmem:[%s5063_s6 + $0x80] ss:$16 sps:$4 sm:$0xff]  }
 0x20d   : > { %3766 = vmatpush3.bf16.msra.mxu1 %v4027_v50  ;;  %3747 = vmatprep.subr.bf16.mxu0 %v4167_v51  ;;  %v4084_v50 = vld [vmem:[%s5063_s6 + $0x88] ss:$16 sps:$4 sm:$0xff]  }
 0x20e   : > { %3767 = vmatprep.subr.bf16.mxu1 %v4167_v51 }
 0x210   : > { %3748 = vmatpush3.bf16.msra.mxu0 %v4028_v55 }
 0x211   : > { %3768 = vmatpush3.bf16.msra.mxu1 %v4029_v57  ;;  %3773 = vmatprep.subr.bf16.mxu0 %v4167_v51 }
 0x212   : > { %3793 = vmatprep.subr.bf16.mxu1 %v4167_v51 }
 0x213   : > { %3750 = vmatmul.mubr.bf16.vlgmr.msra.gmra.mrb[8].mxu0 %v1877_v58 }
 0x214   : > { %3774 = vmatpush3.bf16.msra.mxu0 %v4030_v59  ;;  %3770 = vmatmul.mubr.bf16.vlgmr.msra.gmra.mrb[8].mxu1 %v1989_v60  ;;  %v4089_v59 = vld [vmem:[%s5063_s6 + $0xa4] ss:$16 sps:$4 sm:$0xff]   ;;  %v4092_v60 = vld [vmem:[%s5063_s6 + $0xac] ss:$16 sps:$4 sm:$0xff]  }
 0x215   : > { %3794 = vmatpush3.bf16.msra.mxu1 %v4032_v61  ;;  %3775 = vmatprep.subr.bf16.mxu0 %v4167_v51 }
 0x216   : > { %3795 = vmatprep.subr.bf16.mxu1 %v4167_v51  ;;  %3789 = vmatprep.mubr.msk.bf16.mxu0 %vm4168_vm1, %v4167_v51 }
 0x217   : > { %3809 = vmatprep.mubr.msk.bf16.mxu1 %vm4168_vm1, %v4167_v51 }
 0x218   : > { %3776 = vmatpush3.bf16.msra.mxu0 %v4033_v62  ;;  %v4087_v62 = vld [vmem:[%s5063_s6 + $0xa0] ss:$16 sps:$4 sm:$0xff]  }
 0x219   : > { %3796 = vmatpush3.bf16.msra.mxu1 %v4034_v63  ;;  %3777 = vmatprep.subr.bf16.mxu0 %v4167_v51  ;;  %v4090_v63 = vld [vmem:[%s5063_s6 + $0xa8] ss:$16 sps:$4 sm:$0xff]  }
 0x21a   : > { %3797 = vmatprep.subr.bf16.mxu1 %v4167_v51 }
 0x21c   : > { %3778 = vmatpush3.bf16.msra.mxu0 %v4035_v2  ;;  %v4095_v2 = vld [vmem:[%s5063_s6 + $0xc4] ss:$16 sps:$4 sm:$0xff]  }
 0x21d   : > { %3798 = vmatpush3.bf16.msra.mxu1 %v4036_v0  ;;  %3779 = vmatprep.subr.bf16.mxu0 %v4167_v51  ;;  %v4098_v0 = vld [vmem:[%s5063_s6 + $0xcc] ss:$16 sps:$4 sm:$0xff]  }
 0x21e   : > { %3799 = vmatprep.subr.bf16.mxu1 %v4167_v51 }
 0x220   : > { %3780 = vmatpush3.bf16.msra.mxu0 %v4037_v1  ;;  %v4093_v1 = vld [vmem:[%s5063_s6 + $0xc0] ss:$16 sps:$4 sm:$0xff]  }
 0x221   : > { %3800 = vmatpush3.bf16.msra.mxu1 %v4038_v3  ;;  %3781 = vmatprep.subr.bf16.mxu0 %v4167_v51  ;;  %v4096_v3 = vld [vmem:[%s5063_s6 + $0xc8] ss:$16 sps:$4 sm:$0xff]  }
 0x222   : > { %3801 = vmatprep.subr.bf16.mxu1 %v4167_v51 }
 0x224   : > { %3782 = vmatpush3.bf16.msra.mxu0 %v4039_v4  ;;  %v4099_v4 = vld [vmem:[%s5063_s6 + $0xe0] ss:$16 sps:$4 sm:$0xff]  }
 0x225   : > { %3802 = vmatpush3.bf16.msra.mxu1 %v4040_v5  ;;  %3783 = vmatprep.subr.bf16.mxu0 %v4167_v51  ;;  %v4101_v5 = vld [vmem:[%s5063_s6 + $0xe4] ss:$16 sps:$4 sm:$0xff]  }
 0x226   : > { %3803 = vmatprep.subr.bf16.mxu1 %v4167_v51 }
 0x228   : > { %3784 = vmatpush3.bf16.msra.mxu0 %v4041_v8  ;;  %v4169_v8 = vmov 0  }
 0x229   : > { %3804 = vmatpush3.bf16.msra.mxu1 %v4042_v10  ;;  %3785 = vmatprep.subr.bf16.mxu0 %v4167_v51 }
 0x22a   : > { %3805 = vmatprep.subr.bf16.mxu1 %v4167_v51 }
 0x22c   : > { %3786 = vmatpush3.bf16.msra.mxu0 %v4043_v11 }
 0x22d   : > { %3806 = vmatpush3.bf16.msra.mxu1 %v4044_v13  ;;  %3787 = vmatprep.subr.bf16.mxu0 %v4167_v51 }
 0x22e   : > { %3807 = vmatprep.subr.bf16.mxu1 %v4167_v51 }
 0x230   : > { %3788 = vmatpush3.bf16.msra.mxu0 %v4045_v14 }
 0x231   : > { %3808 = vmatpush3.bf16.msra.mxu1 %v4046_v17  ;;  %3813 = vmatprep.subr.bf16.mxu0 %v4167_v51 }
 0x232   : > { %2660 = vmatprep.subr.bf16.mxu1 %v4059_v32 }
 0x233   : > { %3790 = vmatmul.mubr.bf16.vlgmr.msra.gmra.mrb[12].mxu0 %v2080_v18 }
 0x234   : > { %3814 = vmatpush3.bf16.msra.mxu0 %v4047_v19  ;;  %3810 = vmatmul.mubr.bf16.vlgmr.msra.gmra.mrb[12].mxu1 %v2217_v20 }
 0x235   : > { %3815 = vmatprep.subr.bf16.mxu0 %v4167_v51  ;;  %3829 = vmatprep.mubr.msk.bf16.mxu0 %vm4168_vm1, %v4167_v51 }
 0x236   : > { %2661 = vmatpush1.bf16.msra.mxu1 %v4057_v31  ;;  %2692 = vmatprep.mubr.bf16.mxu1 %v4169_v8 }
 0x238   : > { %3816 = vmatpush3.bf16.msra.mxu0 %v4049_v21 }
 0x239   : > { %3817 = vmatprep.subr.bf16.mxu0 %v4167_v51 }
 0x23c   : > { %3818 = vmatpush3.bf16.msra.mxu0 %v4050_v22 }
 0x23d   : > { %3819 = vmatprep.subr.bf16.mxu0 %v4167_v51 }
 0x240   : > { %3820 = vmatpush3.bf16.msra.mxu0 %v4051_v23 }
 0x241   : > { %3821 = vmatprep.subr.bf16.mxu0 %v4167_v51 }
 0x244   : > { %3822 = vmatpush3.bf16.msra.mxu0 %v4052_v24 }
 0x245   : > { %3823 = vmatprep.subr.bf16.mxu0 %v4167_v51 }
 0x248   : > { %3824 = vmatpush3.bf16.msra.mxu0 %v4053_v25 }
 0x249   : > { %3825 = vmatprep.subr.bf16.mxu0 %v4167_v51 }
 0x24c   : > { %3826 = vmatpush3.bf16.msra.mxu0 %v4054_v26 }
 0x24d   : > { %3827 = vmatprep.subr.bf16.mxu0 %v4167_v51  ;;  %v4065_v51 = vld [vmem:[%s5063_s6 + $0x24] ss:$16 sps:$4 sm:$0xff]  }
 0x24e   : > { %2662 = vmatprep.subr.bf16.mxu1 %v4065_v51 }
 0x24f   : > { %2663 = vmatpush1.bf16.msra.mxu1 %v4063_v36 }
 0x250   : > { %3828 = vmatpush3.bf16.msra.mxu0 %v4055_v29  ;;  %2664 = vmatprep.subr.bf16.mxu1 %v4071_v38 }
 0x251   : > { %2701 = vmatprep.subr.bf16.mxu0 %v4062_v34 }
 0x253   : > { %3830 = vmatmul.mubr.bf16.vlgmr.msra.gmra.mrb[16].mxu0 %v2329_v30  ;;  %2665 = vmatpush1.bf16.msra.mxu1 %v4069_v40  ;;  %v2430_v40 = vld [vmem:[#allocation3] sm:$0x1] }
 0x254   : > { %2702 = vmatpush1.bf16.msra.mxu0 %v4060_v33  ;;  %2666 = vmatprep.subr.bf16.mxu1 %v4077_v42 }
 0x255   : > { %2703 = vmatprep.subr.bf16.mxu0 %v4068_v35  ;;  %2733 = vmatprep.mubr.bf16.mxu0 %v4169_v8 }
 0x257   : > { %2667 = vmatpush1.bf16.msra.mxu1 %v4075_v44 }
 0x258   : > { %2704 = vmatpush1.bf16.msra.mxu0 %v4066_v37  ;;  %2668 = vmatprep.subr.bf16.mxu1 %v4083_v46  ;;  %v2428_v37 = vld [vmem:[#allocation2] sm:$0x1] }
 0x259   : > { %2705 = vmatprep.subr.bf16.mxu0 %v4074_v39  ;;  %v2429_v39 = vmul.f32 0.125, %v2428_v37 }
 0x25b   : > { %2669 = vmatpush1.bf16.msra.mxu1 %v4081_v49  ;;  %v2432_v42 = vmul.f32 %v2429_v39, %v2429_v39 }
 0x25c   : > { %2706 = vmatpush1.bf16.msra.mxu0 %v4072_v41  ;;  %2670 = vmatprep.subr.bf16.mxu1 %v4089_v59  ;;  %v2431_v41 = vmul.f32 0.125, %v2430_v40 }
 0x25d   : > { %2707 = vmatprep.subr.bf16.mxu0 %v4080_v43 }
 0x25e   : > { %v2433_v43 = vsub.f32 %v2431_v41, %v2432_v42 }
 0x25f   : > { %2671 = vmatpush1.bf16.msra.mxu1 %v4087_v62  ;;  %v3276_v62 = vld [vmem:[%s5062_s5] ss:$0 sm:$0xff] }
 0x260   : > { %2708 = vmatpush1.bf16.msra.mxu0 %v4078_v45  ;;  %2672 = vmatprep.subr.bf16.mxu1 %v4095_v2  ;;  %v2441_v44 = vadd.f32 1e-05, %v2433_v43  ;;  %v2435_v45 = vlaneseq }
 0x261   : > { %2709 = vmatprep.subr.bf16.mxu0 %v4086_v47 }
 0x262   : > { %4105 = vrsqrt.f32 %v2441_v44  ;;  %v2436_v46 = vshrl.u32 %v2435_v45, 7 }
 0x263   : > { %2673 = vmatpush1.bf16.msra.mxu1 %v4093_v1 }
 0x264   : > { %2710 = vmatpush1.bf16.msra.mxu0 %v4084_v50  ;;  %2674 = vmatprep.subr.bf16.mxu1 %v4101_v5  ;;  %v2437_v47 = vsub.s32 0, %v2436_v46  ;;  %v3274_v50 = vld [vmem:[%s5060_s3] ss:$0 sm:$0xff] }
 0x265   : > { %2711 = vmatprep.subr.bf16.mxu0 %v4092_v60  ;;  %v3275_v60 = vld [vmem:[%s5061_s4] ss:$0 sm:$0xff] }
 0x267   : > { %2675 = vmatpush1.bf16.msra.mxu1 %v4099_v4 }
 0x268   : > { %2712 = vmatpush1.bf16.msra.mxu0 %v4090_v63 }
 0x269   : > { %2713 = vmatprep.subr.bf16.mxu0 %v4098_v0 }
 0x26c   : > { %2714 = vmatpush1.bf16.msra.mxu0 %v4096_v3 }
 0x26d   : > { %2715 = vmatprep.subr.bf16.mxu0 %v4104_v7 }
 0x270   : > { %2716 = vmatpush1.bf16.msra.mxu0 %v4102_v6 }
 0x2a6   : > { %v1528_v48 = vpop.f32.mrb[0].mxu0 }
 0x2a7   : > { %v3671_v52 = vpop.f32.mrb[1].mxu0  ;;  %v1616_v53 = vpop.f32.mrb[0].mxu1 }
 0x2a8   : > { %v1617_v54 = vadd.f32 %v1616_v53, %v1528_v48  ;;  %v1531_v55 = vpop.f32.mrb[2].mxu0  ;;  %v3691_v56 = vpop.f32.mrb[1].mxu1  ;;  %v2438_v53 = vrot.slane %v2429_v39, %v2437_v47 }
 0x2a9   : > { %v3672_v57 = vpop.f32.mrb[3].mxu0  ;;  %v1619_v58 = vpop.f32.mrb[2].mxu1 }
 0x2aa   : > { %v3692_v61 = vpop.f32.mrb[3].mxu1  ;;  %v4106_v48 = vpop.eup %4105 }
 0x2ab   : > { %v2447_v57 = vrot.slane %v4106_v48, %v2437_v47 }
 0x2c6   : > { %v1727_v9 = vpop.f32.mrb[4].mxu0 }
 0x2c7   : > { %v1733_v10 = vadd.f32 %v1727_v9, %v1617_v54  ;;  %v3711_v11 = vpop.f32.mrb[5].mxu0  ;;  %v1842_v12 = vpop.f32.mrb[4].mxu1 }
 0x2c8   : > { %v1730_v13 = vpop.f32.mrb[6].mxu0  ;;  %v3731_v14 = vpop.f32.mrb[5].mxu1 }
 0x2c9   : > { %v1848_v15 = vadd.f32 %v1842_v12, %v1733_v10  ;;  %v3712_v16 = vpop.f32.mrb[7].mxu0  ;;  %v1845_v17 = vpop.f32.mrb[6].mxu1 }
 0x2ca   : > { %v3732_v18 = vpop.f32.mrb[7].mxu1 }
 0x2e6   : > { %v1961_v19 = vpop.f32.mrb[8].mxu0 }
 0x2e7   : > { %v1967_v20 = vadd.f32 %v1961_v19, %v1848_v15  ;;  %v3751_v21 = vpop.f32.mrb[9].mxu0  ;;  %v2073_v22 = vpop.f32.mrb[8].mxu1 }
 0x2e8   : > { %v1964_v23 = vpop.f32.mrb[10].mxu0  ;;  %v3771_v24 = vpop.f32.mrb[9].mxu1 }
 0x2e9   : > { %v2079_v25 = vadd.f32 %v2073_v22, %v1967_v20  ;;  %v3752_v26 = vpop.f32.mrb[11].mxu0  ;;  %v2076_v27 = vpop.f32.mrb[10].mxu1 }
 0x2ea   : > { %v3772_v28 = vpop.f32.mrb[11].mxu1 }
 0x306   : > { %v2180_v29 = vpop.f32.mrb[12].mxu0 }
 0x307   : > { %v2186_v30 = vadd.f32 %v2180_v29, %v2079_v25  ;;  %v3791_v31 = vpop.f32.mrb[13].mxu0  ;;  %v2301_v32 = vpop.f32.mrb[12].mxu1 }
 0x308   : > { %v2183_v33 = vpop.f32.mrb[14].mxu0  ;;  %v3811_v34 = vpop.f32.mrb[13].mxu1 }
 0x309   : > { %v2307_v51 = vadd.f32 %v2301_v32, %v2186_v30  ;;  %v3792_v35 = vpop.f32.mrb[15].mxu0  ;;  %v2304_v36 = vpop.f32.mrb[14].mxu1 }
 0x30a   : > { %v3812_v38 = vpop.f32.mrb[15].mxu1 }
 0x326   : > { %v2413_v49 = vpop.f32.mrb[16].mxu0 }
 0x327   : > { %v2419_v52 = vadd.f32 %v2413_v49, %v2307_v51  ;;  %v3831_v54 = vpop.f32.mrb[17].mxu0 }
 0x328   : > { %v2416_v55 = vpop.f32.mrb[18].mxu0 }
 0x329   : > { %v2427_v56 = vadd.f32 %v3274_v50, %v2419_v52  ;;  %v3832_v58 = vpop.f32.mrb[19].mxu0 }
 0x32b   : > { %v2440_v59 = vsub.f32 %v2427_v56, %v2438_v53 }
 0x32d   : > { %v2449_v61 = vmul.f32 %v2447_v57, %v2440_v59 }
 0x32f   : > { %v2457_v63 = vmul.f32 %v3275_v60, %v2449_v61 }
 0x331   : > { %v2465_v2 = vadd.f32 %v3276_v62, %v2457_v63 }
 0x333   : > { %v2466_v0 = vmax.f32 %v2465_v2, 0.0 }
 0x335   : > { %v2467_v1 = vpack.c.bf16 %v2466_v0, %v2466_v0 }
 0x337   : > { %2693 = vmatmul.mubr.bf16.vlgmr.msra.gmra.mrb[16].mxu1 %v2467_v1  ;;  %2734 = vmatmul.mubr.bf16.vlgmr.msra.gmra.mrb[20].mxu0 %v2467_v1 }
 0x40a   : > { %v2694_v3 = vpop.f32.mrb[16].mxu1  ;;  %v2735_v4 = vpop.f32.mrb[20].mxu0 }
 0x40b   : > { %2742 = vst [vmem:[%s4261_s22] sm:$0xff] %v2694_v3  ;;  %2744 = vst [vmem:[%s4261_s22 + $0x10] sm:$0xff] %v2735_v4  ;;  %v2696_v5 = vpop.f32.mrb[17].mxu1  ;;  %v2737_v6 = vpop.f32.mrb[21].mxu0 }
 0x40c   : > { %2743 = vst [vmem:[%s4261_s22 + $0x8] sm:$0xff] %v2696_v5  ;;  %2745 = vst [vmem:[%s4261_s22 + $0x18] sm:$0xff] %v2737_v6  ;;  %v2698_v7 = vpop.f32.mrb[18].mxu1  ;;  %v2739_v8 = vpop.f32.mrb[22].mxu0 }
 0x40d   : > { %v2699_v9 = vpop.f32.mrb[19].mxu1  ;;  %v2740_v10 = vpop.f32.mrb[23].mxu0 }
 0x40e PF: > { %s17_s30 = sadd.s32 1, %s4161_s30   ;;  %s5067_s11 = sld [smem:[#allocation4_spill]] }
 0x40f   : > { %p14_p11 = scmp.ge.s32.totalorder %s17_s30, 14   ;;  %s5068_s9 = sld [smem:[#allocation5_spill]] }
 0x410   : > { %s5069_s24 = smov %s4149_s27  ;;  %s5070_s25 = smov %s4153_s28 }
 0x411   : > { %s5071_s26 = smov %s4157_s29  ;;  %s5072_s27 = smov %s5076_s8 }
 0x412   :  { %16 = sbr.rel (!%p14_p11) target bundleno = 4 (0x4), region = 106 }
 0x414   : > { %s5073_s28 = smov %s5067_s11 }
 0x415   : > { %s5074_s29 = smov %s5068_s9 }

// kernel: msc_forward.5
= control target key start
LH: loop header
LB: loop body
LE: loop exit
PB: predicated region body
PF: predicated region fallthrough
CT: control target
= control target key end

     0   :  { %s4609_s24 = smov 0   ;;  %s4611_s25 = smov 0   ;;  %s5451_s0 = inlined_call_operand.vmem [shape: bf16[1,2,38,128], index: 0, kind: input, shape index: {}]   ;;  %s5452_s1 = inlined_call_operand.vmem [shape: f32[24,1], index: 1, kind: input, shape index: {}]   ;;  %s5453_s2 = inlined_call_operand.vmem [shape: bf16[9,128,128], index: 2, kind: input, shape index: {}]   ;;  %s5454_s3 = inlined_call_operand.vmem [shape: f32[1,128], index: 3, kind: input, shape index: {}]   ;;  %s5455_s4 = inlined_call_operand.vmem [shape: f32[1,128], index: 4, kind: input, shape index: {}]   ;;  %s5456_s5 = inlined_call_operand.vmem [shape: f32[1,128], index: 5, kind: input, shape index: {}]   ;;  %s5457_s6 = inlined_call_operand.vmem [shape: bf16[128,512], index: 6, kind: input, shape index: {}]   ;;  %s5458_s7 = inlined_call_operand.vmem [shape: f32[1,2,24,512], index: 7, kind: output, shape index: {}]  }
   0x1   :  { %s4613_s26 = smov 0   ;;  %s4615_s27 = smov 0  }
   0x2   :  { %s4617_s28 = smov 0  }
   0x3 LB: > { %s29_s29 = sadd.s32 1, %s4555_s26  ;;  %s32_s30 = sadd.s32 1, %s4559_s27  ;;  %s4563_s28 = sphi %s4617_s28, %s17_s28   ;;  %s4559_s27 = sphi %s4615_s27, %s5462_s27   ;;  %s4555_s26 = sphi %s4613_s26, %s5461_s26   ;;  %s4551_s25 = sphi %s4611_s25, %s5460_s25   ;;  %s4547_s24 = sphi %s4609_s24, %s5459_s24  }
   0x4   : > { %p30_p0 = scmp.ge.s32.totalorder %s29_s29, 2  ;;  %p3231_p1 = scmp.ge.s32.totalorder %s4563_s28, 1 }
   0x5   : > { %p264_p2 = scmp.lt.s32.totalorder %s4563_s28, 5 }
   0x6   : > { %s5464_s29 = smov (%p30_p0, %s29_s29), 0  ;;  %s5466_s30 = smov (!%p30_p0, %s32_s30), %s4559_s27 }
   0x7   : > { %p265_p3 = pnand %p3231_p1, %p264_p2  ;;  %p34_p4 = scmp.ge.s32.totalorder %s5466_s30, 2 }
   0x8   : > { %p306_p5 = scmp.lt.s32.totalorder (!%p265_p3), %s4547_s24, 1  ;;  %p3234_p6 = scmp.ne.s32.totalorder (!%p265_p3), %s4551_s25, 0 }
   0x9   : > { %s5468_s30 = smov (%p34_p4, %s5466_s30), 0  ;;  %268 = sbr.rel (%p265_p3) target bundleno = 1074 (0x432), region = 48 }
  0x10   : > { %s307_s8 = scalar_select %p306_p5, %s4547_s24, 1 }
  0x11   : > { %326 = sbr.rel (%p3234_p6) target bundleno = 434 (0x1b2), region = 52  ;;  %p3235_p7 = scmp.ne.s32.totalorder (!%p3234_p6), %s4547_s24, 0 }
  0x12   : > { %s4257_s9 = smul.u32 20, %s307_s8 }
  0x13   : > { %s4258_s10 = smul.u32 96, %s307_s8 }
  0x14   : > { %s4644_s13 = scalar_lea.vmem %s5451_s0, %s4257_s9 }
  0x15   : > { %s4649_s16 = scalar_lea.vmem %s5458_s7, %s4258_s10 }
  0x18   : > { %330 = sbr.rel (%p3235_p7) target bundleno = 31 (0x1f), region = 56  ;;  %v4565_v0 = vmov (!%p3235_p7), 0.0  }
  0x19   : > { %331 = vst [vmem:[#allocation2] sm:$0x1] (!%p3235_p7), %v4565_v0  ;;  %332 = vst [vmem:[#allocation3] sm:$0x1] (!%p3235_p7), %v4565_v0 }
  0x1f PF: > { %v4305_v1 = vld [vmem:[%s5453_s2 + $0x40] sm:$0xff]   ;;  %v4307_v3 = vld [vmem:[%s5453_s2 + $0x48] sm:$0xff]   ;;  %v4309_v5 = vld [vmem:[%s5453_s2 + $0x50] sm:$0xff]   ;;  %vm380_vm0 = vsmask.f32 7424  ;;  %vm614_vm1 = vcmask 1046528  }
  0x20   : > { %v4306_v2 = vld [vmem:[%s5453_s2] sm:$0xff]   ;;  %3881 = vmatprep.subr.bf16.mxu0 %v4305_v1  ;;  %v4308_v4 = vld [vmem:[%s5453_s2 + $0x8] sm:$0xff]   ;;  %v4310_v6 = vld [vmem:[%s5453_s2 + $0x10] sm:$0xff]   ;;  %vm744_vm2 = vcmask 1044480   ;;  %vm870_vm3 = vsmask.f32 4352 }
  0x21   : > { %3901 = vmatprep.subr.bf16.mxu1 %v4306_v2  ;;  %3882 = vmatpush3.bf16.msra.mxu0 %v4305_v1  ;;  %v4311_v7 = vld [vmem:[%s5453_s2 + $0x58] sm:$0xff]   ;;  %v4313_v9 = vld [vmem:[%s5453_s2 + $0x60] sm:$0xff]   ;;  %v4315_v11 = vld [vmem:[%s5453_s2 + $0x68] sm:$0xff]   ;;  %vm1140_vm4 = vcmask 1045504   ;;  %vm1266_vm5 = vsmask.f32 5376 }
  0x22   : > { %3902 = vmatpush3.bf16.msra.mxu1 %v4306_v2  ;;  %3883 = vmatprep.subr.bf16.mxu0 %v4307_v3  ;;  %v4312_v8 = vld [vmem:[%s5453_s2 + $0x18] sm:$0xff]   ;;  %v4314_v10 = vld [vmem:[%s5453_s2 + $0x20] sm:$0xff]   ;;  %v4690_v14 = vld [vmem:[%s4644_s13 + $0x8] sm:$0xf] }
  0x23   : > { %3903 = vmatprep.subr.bf16.mxu1 %v4308_v4  ;;  %v333_v12 = vld [vmem:[%s4644_s13] sm:$0xf]  ;;  %v4687_v13 = vld [vmem:[%s4644_s13 + $0x4] sm:$0xf]  ;;  %v4316_v15 = vld [vmem:[%s5453_s2 + $0x28] sm:$0xff]   ;;  %v3262_v34 = vcombine.low %v4690_v14, %v4690_v14 }
  0x24   : > { %v352_v16 = vld [vmem:[%s4644_s13 + $0xc] sm:$0x1]  ;;  %v3252_v17 = vcombine.low %v333_v12, %v4687_v13  ;;  %v4317_v21 = vld [vmem:[%s5453_s2 + $0x70] sm:$0xff]   ;;  %v4319_v27 = vld [vmem:[%s5453_s2 + $0x78] sm:$0xff]  }
  0x25   : > { %3884 = vmatpush3.bf16.msra.mxu0 %v4307_v3  ;;  %v4698_v18 = vcombine.low %v4690_v14, %v352_v16  ;;  %v4318_v23 = vld [vmem:[%s5453_s2 + $0x30] sm:$0xff]   ;;  %v4320_v28 = vld [vmem:[%s5453_s2 + $0x38] sm:$0xff]   ;;  %v4324_v31 = vld [vmem:[%s5453_s2 + $0x80] sm:$0xff]   ;;  %v3363_v16 = vcombine.low %v4687_v13, %v4690_v14 }
  0x26   : > { %3904 = vmatpush3.bf16.msra.mxu1 %v4308_v4  ;;  %3885 = vmatprep.subr.bf16.mxu0 %v4309_v5  ;;  %v382_v19 = vshrl.u32 %v3252_v17, 16  ;;  %v384_v20 = vshll.u32 %v3252_v17, 16  ;;  %v4325_v32 = vld [vmem:[%s5453_s2 + $0xc0] sm:$0xff]   ;;  %v4326_v35 = vld [vmem:[%s5453_s2 + $0x88] sm:$0xff]   ;;  %v4328_v42 = vld [vmem:[%s5453_s2 + $0x90] sm:$0xff]  }
  0x27   : > { %3905 = vmatprep.subr.bf16.mxu1 %v4310_v6  ;;  %3917 = vmatprep.mubr.bf16.mxu1 %v3252_v17  ;;  %v389_v22 = vshll.u32 %v4698_v18, 16  ;;  %v393_v30 = vshrl.u32 %v4698_v18, 16  ;;  %v4327_v36 = vld [vmem:[%s5453_s2 + $0xc8] sm:$0xff]   ;;  %v593_v37 = vld [vmem:[%s4644_s13] sm:$0xe]  ;;  %v616_v39 = vrot.slane %v4698_v18, 1 }
  0x28   : > { %v386_v24 = vrot.slane %v384_v20, 1  ;;  %v3287_v38 = vcombine.low %v593_v37, %v4687_v13  ;;  %v719_v40 = vld [vmem:[%s4644_s13] sm:$0x8]  ;;  %v720_v41 = vld [vmem:[%s4644_s13 + $0xc] sm:$0x7]  ;;  %v4329_v45 = vld [vmem:[%s5453_s2 + $0xd0] sm:$0xff]  }
  0x29   : > { %3886 = vmatpush3.bf16.msra.mxu0 %v4309_v5  ;;  %v391_v25 = vrot.slane %v389_v22, 1  ;;  %v3312_v43 = vcombine.low %v719_v40, %v4687_v13  ;;  %v3313_v44 = vcombine.low %v4690_v14, %v720_v41  ;;  %v4330_v50 = vld [vmem:[%s5453_s2 + $0x98] sm:$0xff]   ;;  %v4332_v53 = vld [vmem:[%s5453_s2 + $0xa0] sm:$0xff]   ;;  %v4334_v55 = vld [vmem:[%s5453_s2 + $0xa8] sm:$0xff]  }
  0x2a   : > { %3906 = vmatpush3.bf16.msra.mxu1 %v4310_v6  ;;  %3887 = vmatprep.subr.bf16.mxu0 %v4311_v7  ;;  %v387_v26 = vor.u32 %v386_v24, %v382_v19  ;;  %v615_v46 = vrot.slane %v3287_v38, 1  ;;  %v4331_v52 = vld [vmem:[%s5453_s2 + $0xd8] sm:$0xff]   ;;  %v4333_v54 = vld [vmem:[%s5453_s2 + $0xe0] sm:$0xff]   ;;  %v4335_v56 = vld [vmem:[%s5453_s2 + $0xe8] sm:$0xff]  }
  0x2b   : > { %3907 = vmatprep.subr.bf16.mxu1 %v4312_v8  ;;  %v395_v33 = vor.u32 %v393_v30, %v391_v25  ;;  %v745_v47 = vrot.slane %v3312_v43, 3  ;;  %v4742_v48 = vrot.slane %v3313_v44, 3  ;;  %v4336_v57 = vld [vmem:[%s5453_s2 + $0xb0] sm:$0xff]   ;;  %v4771_v58 = vld [vmem:[%s4644_s13 + $0xc] sm:$0xf]  ;;  %v872_v59 = vshrl.u32 %v3312_v43, 16 }
  0x2c   : > { %v392_v29 = vsel %vm380_vm0, %v387_v26, %v391_v25  ;;  %v617_v49 = vsel %vm614_vm1, %v615_v46, %v616_v39  ;;  %v875_v60 = vshll.u32 %v3312_v43, 16  ;;  %v3338_v61 = vcombine.low %v4690_v14, %v4771_v58  ;;  %v4337_v62 = vld [vmem:[%s5453_s2 + $0xf0] sm:$0xff]   ;;  %v4338_v1 = vld [vmem:[%s5453_s2 + $0xb8] sm:$0xff]   ;;  %v4346_v12 = vld [vmem:[%s5453_s2 + $0x148] sm:$0xff]  }
  0x2d   : > { %3888 = vmatpush3.bf16.msra.mxu0 %v4311_v7  ;;  %3897 = vmatprep.mubr.bf16.mxu0 %v392_v29  ;;  %v747_v51 = vsel %vm744_vm2, %v745_v47, %v4742_v48  ;;  %v4339_v2 = vld [vmem:[%s5453_s2 + $0xf8] sm:$0xff]   ;;  %v874_v3 = vrot.slane %v872_v59, 3  ;;  %v4341_v7 = vld [vmem:[%s5453_s2 + $0x100] sm:$0xff]   ;;  %v4347_v17 = vld [vmem:[%s5453_s2 + $0x110] sm:$0xff]   ;;  %v3364_v47 = vcombine.low %v4771_v58, %v4771_v58 }
  0x2e   : > { %3908 = vmatpush3.bf16.msra.mxu1 %v4312_v8  ;;  %3889 = vmatprep.subr.bf16.mxu0 %v4313_v9  ;;  %v880_v63 = vshrl.u32 %v3338_v61, 16  ;;  %v883_v0 = vshll.u32 %v3338_v61, 16  ;;  %v877_v4 = vrot.slane %v875_v60, 4  ;;  %v4344_v8 = vld [vmem:[%s5453_s2 + $0x140] sm:$0xff]   ;;  %v4348_v18 = vld [vmem:[%s5453_s2 + $0x150] sm:$0xff]   ;;  %v4349_v13 = vld [vmem:[%s5453_s2 + $0x118] sm:$0xff]  }
  0x2f   : > { %3909 = vmatprep.subr.bf16.mxu1 %v4314_v10  ;;  %v4350_v14 = vld [vmem:[%s5453_s2 + $0x158] sm:$0xff]   ;;  %v4351_v19 = vld [vmem:[%s5453_s2 + $0x120] sm:$0xff]   ;;  %v1111_v24 = vld [vmem:[%s4644_s13 + $0xc] sm:$0xf] }
  0x30   : > { %v882_v5 = vrot.slane %v880_v63, 3  ;;  %v885_v6 = vrot.slane %v883_v0, 4  ;;  %v4352_v20 = vld [vmem:[%s5453_s2 + $0x160] sm:$0xff]   ;;  %v1245_v25 = vld [vmem:[%s4644_s13 + $0x10] sm:$0x7]  ;;  %v4354_v26 = vld [vmem:[%s5453_s2 + $0x168] sm:$0xff]  }
  0x31   : > { %3890 = vmatpush3.bf16.msra.mxu0 %v4313_v9  ;;  %v878_v9 = vor.u32 %v877_v4, %v874_v3  ;;  %v1109_v22 = vld [vmem:[%s4644_s13 + $0x4] sm:$0xc]  ;;  %v4355_v29 = vld [vmem:[%s5453_s2 + $0x130] sm:$0xff]   ;;  %v4358_v37 = vld [vmem:[%s5453_s2 + $0x178] sm:$0xff]  }
  0x32   : > { %3910 = vmatpush3.bf16.msra.mxu1 %v4314_v10  ;;  %3891 = vmatprep.subr.bf16.mxu0 %v4315_v11  ;;  %v4790_v10 = vor.u32 %v885_v6, %v882_v5  ;;  %v4356_v30 = vld [vmem:[%s5453_s2 + $0x170] sm:$0xff]   ;;  %v4360_v43 = vld [vmem:[%s5453_s2 + $0x180] sm:$0xff]   ;;  %v4372_v60 = vld [vmem:[%s5453_s2 + $0x1a8] sm:$0xff]  }
  0x33   : > { %3911 = vmatprep.subr.bf16.mxu1 %v4316_v15  ;;  %v4363_v44 = vld [vmem:[%s5453_s2 + $0x1c0] sm:$0xff]   ;;  %v4373_v61 = vld [vmem:[%s5453_s2 + $0x1e8] sm:$0xff]   ;;  %v4375_v63 = vld [vmem:[%s5453_s2 + $0x1f0] sm:$0xff]  }
  0x34   : > { %v4370_v58 = vld [vmem:[%s5453_s2 + $0x1a0] sm:$0xff]   ;;  %v4376_v3 = vld [vmem:[%s5453_s2 + $0x1b8] sm:$0xff]   ;;  %v1522_v6 = vld [vmem:[%s5452_s1 + $0x10] sm:$0xff] }
  0x35   : > { %3892 = vmatpush3.bf16.msra.mxu0 %v4315_v11  ;;  %v4345_v11 = vld [vmem:[%s5453_s2 + $0x108] sm:$0xff]   ;;  %v4371_v59 = vld [vmem:[%s5453_s2 + $0x1e0] sm:$0xff]   ;;  %v4377_v4 = vld [vmem:[%s5453_s2 + $0x1f8] sm:$0xff]  }
  0x36   : > { %3912 = vmatpush3.bf16.msra.mxu1 %v4316_v15  ;;  %3893 = vmatprep.subr.bf16.mxu0 %v4317_v21  ;;  %v887_v15 = vsel %vm870_vm3, %v878_v9, %v4790_v10  ;;  %v1385_v0 = vld [vmem:[%s4644_s13 + $0x4] sm:$0x8] }
  0x37   : > { %3913 = vmatprep.subr.bf16.mxu1 %v4318_v23 }
  0x39   : > { %3894 = vmatpush3.bf16.msra.mxu0 %v4317_v21  ;;  %v4353_v21 = vld [vmem:[%s5453_s2 + $0x128] sm:$0xff]  }
  0x3a   : > { %3914 = vmatpush3.bf16.msra.mxu1 %v4318_v23  ;;  %3895 = vmatprep.subr.bf16.mxu0 %v4319_v27  ;;  %v4827_v23 = vld [vmem:[%s4644_s13 + $0x8] sm:$0xf] }
  0x3b   : > { %3915 = vmatprep.subr.bf16.mxu1 %v4320_v28  ;;  %v3440_v5 = vcombine.low %v1385_v0, %v4827_v23 }
  0x3d   : > { %3896 = vmatpush3.bf16.msra.mxu0 %v4319_v27  ;;  %v3389_v27 = vcombine.low %v1109_v22, %v4827_v23  ;;  %v1406_v9 = vrot.slane %v3440_v5, 3 }
  0x3e   : > { %3916 = vmatpush3.bf16.msra.mxu1 %v4320_v28  ;;  %3921 = vmatprep.subr.bf16.mxu0 %v4324_v31  ;;  %v4835_v28 = vcombine.low %v1111_v24, %v1245_v25 }
  0x3f   : > { %3941 = vmatprep.subr.bf16.mxu1 %v4325_v32 }
  0x40   : > { %3898 = vmatmul.mubr.bf16.vlgmr.msra.gmra.mrb[0].mxu0 %v395_v33  ;;  %v1271_v33 = vshll.u32 %v3389_v27, 16 }
  0x41   : > { %3918 = vmatmul.mubr.bf16.vlgmr.msra.gmra.mrb[0].mxu1 %v3262_v34  ;;  %3922 = vmatpush3.bf16.msra.mxu0 %v4324_v31  ;;  %v1112_v31 = vld [vmem:[%s4644_s13 + $0x10] sm:$0x3]  ;;  %v1276_v34 = vshrl.u32 %v4835_v28, 16 }
  0x42   : > { %3942 = vmatpush3.bf16.msra.mxu1 %v4325_v32  ;;  %3923 = vmatprep.subr.bf16.mxu0 %v4326_v35  ;;  %v1268_v32 = vshrl.u32 %v3389_v27, 16  ;;  %v3390_v38 = vcombine.low %v1111_v24, %v1112_v31  ;;  %v1273_v40 = vrot.slane %v1271_v33, 3 }
  0x43   : > { %3943 = vmatprep.subr.bf16.mxu1 %v4327_v36  ;;  %3937 = vmatprep.mubr.bf16.mxu0 %v617_v49  ;;  %v1278_v41 = vrot.slane %v1276_v34, 2 }
  0x44   : > { %3957 = vmatprep.mubr.bf16.mxu1 %v747_v51  ;;  %v4858_v46 = vrot.slane %v3390_v38, 2  ;;  %v4365_v51 = vld [vmem:[%s5453_s2 + $0x1c8] sm:$0xff]  }
  0x45   : > { %3924 = vmatpush3.bf16.msra.mxu0 %v4326_v35  ;;  %v1279_v35 = vshll.u32 %v4835_v28, 16 }
  0x46   : > { %3944 = vmatpush3.bf16.msra.mxu1 %v4327_v36  ;;  %3925 = vmatprep.subr.bf16.mxu0 %v4328_v42  ;;  %v4357_v36 = vld [vmem:[%s5453_s2 + $0x138] sm:$0xff]  }
  0x47   : > { %3945 = vmatprep.subr.bf16.mxu1 %v4329_v45 }
  0x49   : > { %3926 = vmatpush3.bf16.msra.mxu0 %v4328_v42  ;;  %v1281_v42 = vrot.slane %v1279_v35, 3 }
  0x4a   : > { %3946 = vmatpush3.bf16.msra.mxu1 %v4329_v45  ;;  %3927 = vmatprep.subr.bf16.mxu0 %v4330_v50  ;;  %v1141_v45 = vrot.slane %v3389_v27, 2 }
  0x4b   : > { %3947 = vmatprep.subr.bf16.mxu1 %v4331_v52  ;;  %v4862_v49 = vor.u32 %v1281_v42, %v1278_v41 }
  0x4d   : > { %3928 = vmatpush3.bf16.msra.mxu0 %v4330_v50  ;;  %v4364_v50 = vld [vmem:[%s5453_s2 + $0x188] sm:$0xff]  }
  0x4e   : > { %3948 = vmatpush3.bf16.msra.mxu1 %v4331_v52  ;;  %3929 = vmatprep.subr.bf16.mxu0 %v4332_v53  ;;  %v1143_v52 = vsel %vm1140_vm4, %v1141_v45, %v4858_v46 }
  0x4f   : > { %3949 = vmatprep.subr.bf16.mxu1 %v4333_v54 }
  0x51   : > { %3930 = vmatpush3.bf16.msra.mxu0 %v4332_v53 }
  0x52   : > { %3950 = vmatpush3.bf16.msra.mxu1 %v4333_v54  ;;  %3931 = vmatprep.subr.bf16.mxu0 %v4334_v55  ;;  %v4366_v54 = vld [vmem:[%s5453_s2 + $0x190] sm:$0xff]  }
  0x53   : > { %3951 = vmatprep.subr.bf16.mxu1 %v4335_v56 }
  0x55   : > { %3932 = vmatpush3.bf16.msra.mxu0 %v4334_v55  ;;  %v4367_v55 = vld [vmem:[%s5453_s2 + $0x1d0] sm:$0xff]  }
  0x56   : > { %3952 = vmatpush3.bf16.msra.mxu1 %v4335_v56  ;;  %3933 = vmatprep.subr.bf16.mxu0 %v4336_v57  ;;  %v4368_v56 = vld [vmem:[%s5453_s2 + $0x198] sm:$0xff]  }
  0x57   : > { %3953 = vmatprep.subr.bf16.mxu1 %v4337_v62 }
  0x59   : > { %3934 = vmatpush3.bf16.msra.mxu0 %v4336_v57  ;;  %v4369_v57 = vld [vmem:[%s5453_s2 + $0x1d8] sm:$0xff]  }
  0x5a   : > { %3954 = vmatpush3.bf16.msra.mxu1 %v4337_v62  ;;  %3935 = vmatprep.subr.bf16.mxu0 %v4338_v1  ;;  %v4374_v62 = vld [vmem:[%s5453_s2 + $0x1b0] sm:$0xff]  }
  0x5b   : > { %3955 = vmatprep.subr.bf16.mxu1 %v4339_v2 }
  0x5d   : > { %3936 = vmatpush3.bf16.msra.mxu0 %v4338_v1  ;;  %v4566_v1 = vmov 0  }
  0x5e   : > { %3956 = vmatpush3.bf16.msra.mxu1 %v4339_v2  ;;  %3961 = vmatprep.subr.bf16.mxu0 %v4341_v7  ;;  %v1520_v2 = vld [vmem:[%s5452_s1] sm:$0xff] }
  0x5f   : > { %3981 = vmatprep.subr.bf16.mxu1 %v4344_v8  ;;  %4303 = vset.pattern.permute.xlu0 %v4566_v1 }
  0x60   : > { %3938 = vmatmul.mubr.bf16.vlgmr.msra.gmra.mrb[4].mxu0 %v616_v39  ;;  %v1270_v39 = vrot.slane %v1268_v32, 2  ;;  %1526 = vperm.xlu0 %4303, %v1520_v2  }
  0x61   : > { %3962 = vmatpush3.bf16.msra.mxu0 %v4341_v7  ;;  %3958 = vmatmul.mubr.bf16.vlgmr.msra.gmra.mrb[4].mxu1 %v4742_v48  ;;  %v1521_v7 = vld [vmem:[%s5452_s1 + $0x8] sm:$0xff] }
  0x62   : > { %3982 = vmatpush3.bf16.msra.mxu1 %v4344_v8  ;;  %3963 = vmatprep.subr.bf16.mxu0 %v4345_v11  ;;  %v1274_v48 = vor.u32 %v1273_v40, %v1270_v39  ;;  %v4381_v8 = vld [vmem:[%s5453_s2 + $0x200] sm:$0xff]  }
  0x63   : > { %3983 = vmatprep.subr.bf16.mxu1 %v4346_v12  ;;  %3977 = vmatprep.mubr.bf16.mxu0 %v887_v15  ;;  %v4383_v15 = vld [vmem:[%s5453_s2 + $0x210] sm:$0xff]  }
  0x64   : > { %3997 = vmatprep.mubr.bf16.mxu1 %v3363_v16  ;;  %v1283_v53 = vsel %vm1266_vm5, %v1274_v48, %v4862_v49  ;;  %4304 = vset.pattern.permute.xlu1 %v4566_v1  ;;  %v4384_v16 = vld [vmem:[%s5453_s2 + $0x218] sm:$0xff]  }
  0x65   : > { %3964 = vmatpush3.bf16.msra.mxu0 %v4345_v11  ;;  %1536 = vperm.xlu1 %4304, %v1522_v6   ;;  %v4382_v11 = vld [vmem:[%s5453_s2 + $0x208] sm:$0xff]  }
  0x66   : > { %3984 = vmatpush3.bf16.msra.mxu1 %v4346_v12  ;;  %3965 = vmatprep.subr.bf16.mxu0 %v4347_v17 }
  0x67   : > { %3985 = vmatprep.subr.bf16.mxu1 %v4348_v18  ;;  %1531 = vperm.xlu0 %4303, %v1521_v7  }
  0x69   : > { %3966 = vmatpush3.bf16.msra.mxu0 %v4347_v17  ;;  %v4385_v17 = vld [vmem:[%s5453_s2 + $0x220] sm:$0xff]  }
  0x6a   : > { %3986 = vmatpush3.bf16.msra.mxu1 %v4348_v18  ;;  %3967 = vmatprep.subr.bf16.mxu0 %v4349_v13  ;;  %v4386_v18 = vld [vmem:[%s5453_s2 + $0x228] sm:$0xff]  }
  0x6b   : > { %3987 = vmatprep.subr.bf16.mxu1 %v4350_v14 }
  0x6d   : > { %3968 = vmatpush3.bf16.msra.mxu0 %v4349_v13  ;;  %v4387_v13 = vld [vmem:[%s5453_s2 + $0x230] sm:$0xff]  }
  0x6e   : > { %3988 = vmatpush3.bf16.msra.mxu1 %v4350_v14  ;;  %3969 = vmatprep.subr.bf16.mxu0 %v4351_v19  ;;  %v4388_v14 = vld [vmem:[%s5453_s2 + $0x238] sm:$0xff]  }
  0x6f   : > { %3989 = vmatprep.subr.bf16.mxu1 %v4352_v20 }
  0x71   : > { %3970 = vmatpush3.bf16.msra.mxu0 %v4351_v19 }
  0x72   : > { %3990 = vmatpush3.bf16.msra.mxu1 %v4352_v20  ;;  %3971 = vmatprep.subr.bf16.mxu0 %v4353_v21 }
  0x73   : > { %3991 = vmatprep.subr.bf16.mxu1 %v4354_v26 }
  0x75   : > { %3972 = vmatpush3.bf16.msra.mxu0 %v4353_v21 }
  0x76   : > { %3992 = vmatpush3.bf16.msra.mxu1 %v4354_v26  ;;  %3973 = vmatprep.subr.bf16.mxu0 %v4355_v29 }
  0x77   : > { %3993 = vmatprep.subr.bf16.mxu1 %v4356_v30 }
  0x79   : > { %3974 = vmatpush3.bf16.msra.mxu0 %v4355_v29 }
  0x7a   : > { %3994 = vmatpush3.bf16.msra.mxu1 %v4356_v30  ;;  %3975 = vmatprep.subr.bf16.mxu0 %v4357_v36  ;;  %v4567_v30 = vmov 0.0  }
  0x7b   : > { %3995 = vmatprep.subr.bf16.mxu1 %v4358_v37  ;;  %1569 = vst [vmem:[%s4649_s16] sm:$0xff] %v4567_v30  ;;  %1570 = vst [vmem:[%s4649_s16 + $0x8] sm:$0xff] %v4567_v30 }
  0x7c   : > { %1571 = vst [vmem:[%s4649_s16 + $0x10] sm:$0xff] %v4567_v30  ;;  %1572 = vst [vmem:[%s4649_s16 + $0x18] sm:$0xff] %v4567_v30 }
  0x7d   : > { %3976 = vmatpush3.bf16.msra.mxu0 %v4357_v36  ;;  %1573 = vst [vmem:[%s4649_s16 + $0x20] sm:$0xff] %v4567_v30  ;;  %1574 = vst [vmem:[%s4649_s16 + $0x28] sm:$0xff] %v4567_v30 }
  0x7e   : > { %3996 = vmatpush3.bf16.msra.mxu1 %v4358_v37  ;;  %4001 = vmatprep.subr.bf16.mxu0 %v4360_v43  ;;  %1575 = vst [vmem:[%s4649_s16 + $0x30] sm:$0xff] %v4567_v30  ;;  %1576 = vst [vmem:[%s4649_s16 + $0x38] sm:$0xff] %v4567_v30 }
  0x7f   : > { %4021 = vmatprep.subr.bf16.mxu1 %v4363_v44  ;;  %1577 = vst [vmem:[%s4649_s16 + $0x40] sm:$0xff] %v4567_v30  ;;  %1578 = vst [vmem:[%s4649_s16 + $0x48] sm:$0xff] %v4567_v30 }
  0x80   : > { %3978 = vmatmul.mubr.bf16.vlgmr.msra.gmra.mrb[8].mxu0 %v4790_v10  ;;  %v1407_v10 = vrot.slane %v4835_v28, 3  ;;  %1579 = vst [vmem:[%s4649_s16 + $0x50] sm:$0xff] %v4567_v30  ;;  %1580 = vst [vmem:[%s4649_s16 + $0x58] sm:$0xff] %v4567_v30 }
  0x81   : > { %4002 = vmatpush3.bf16.msra.mxu0 %v4360_v43  ;;  %3998 = vmatmul.mubr.bf16.vlgmr.msra.gmra.mrb[8].mxu1 %v3364_v47 }
  0x82   : > { %4022 = vmatpush3.bf16.msra.mxu1 %v4363_v44  ;;  %4003 = vmatprep.subr.bf16.mxu0 %v4364_v50  ;;  %v1408_v12 = vsel %vm744_vm2, %v1406_v9, %v1407_v10 }
  0x83   : > { %4023 = vmatprep.subr.bf16.mxu1 %v4365_v51  ;;  %4017 = vmatprep.mubr.bf16.mxu0 %v1143_v52 }
  0x84   : > { %4037 = vmatprep.mubr.bf16.mxu1 %v1283_v53 }
  0x85   : > { %4004 = vmatpush3.bf16.msra.mxu0 %v4364_v50 }
  0x86   : > { %4024 = vmatpush3.bf16.msra.mxu1 %v4365_v51  ;;  %4005 = vmatprep.subr.bf16.mxu0 %v4366_v54 }
  0x87   : > { %4025 = vmatprep.subr.bf16.mxu1 %v4367_v55 }
  0x89   : > { %4006 = vmatpush3.bf16.msra.mxu0 %v4366_v54 }
  0x8a   : > { %4026 = vmatpush3.bf16.msra.mxu1 %v4367_v55  ;;  %4007 = vmatprep.subr.bf16.mxu0 %v4368_v56 }
  0x8b   : > { %4027 = vmatprep.subr.bf16.mxu1 %v4369_v57 }
  0x8d   : > { %4008 = vmatpush3.bf16.msra.mxu0 %v4368_v56 }
  0x8e   : > { %4028 = vmatpush3.bf16.msra.mxu1 %v4369_v57  ;;  %4009 = vmatprep.subr.bf16.mxu0 %v4370_v58 }
  0x8f   : > { %4029 = vmatprep.subr.bf16.mxu1 %v4371_v59 }
  0x91   : > { %4010 = vmatpush3.bf16.msra.mxu0 %v4370_v58 }
  0x92   : > { %4030 = vmatpush3.bf16.msra.mxu1 %v4371_v59  ;;  %4011 = vmatprep.subr.bf16.mxu0 %v4372_v60 }
  0x93   : > { %4031 = vmatprep.subr.bf16.mxu1 %v4373_v61 }
  0x95   : > { %4012 = vmatpush3.bf16.msra.mxu0 %v4372_v60 }
  0x96   : > { %4032 = vmatpush3.bf16.msra.mxu1 %v4373_v61  ;;  %4013 = vmatprep.subr.bf16.mxu0 %v4374_v62 }
  0x97   : > { %4033 = vmatprep.subr.bf16.mxu1 %v4375_v63 }
  0x99   : > { %4014 = vmatpush3.bf16.msra.mxu0 %v4374_v62 }
  0x9a   : > { %4034 = vmatpush3.bf16.msra.mxu1 %v4375_v63  ;;  %4015 = vmatprep.subr.bf16.mxu0 %v4376_v3 }
  0x9b   : > { %4035 = vmatprep.subr.bf16.mxu1 %v4377_v4 }
  0x9d   : > { %4016 = vmatpush3.bf16.msra.mxu0 %v4376_v3 }
  0x9e   : > { %4036 = vmatpush3.bf16.msra.mxu1 %v4377_v4  ;;  %4041 = vmatprep.subr.bf16.mxu0 %v4381_v8 }
  0xa0   : > { %4018 = vmatmul.mubr.bf16.vlgmr.msra.gmra.mrb[12].mxu0 %v4858_v46 }
  0xa1   : > { %4042 = vmatpush3.bf16.msra.mxu0 %v4381_v8  ;;  %4038 = vmatmul.mubr.bf16.vlgmr.msra.gmra.mrb[12].mxu1 %v4862_v49 }
  0xa2   : > { %4043 = vmatprep.subr.bf16.mxu0 %v4382_v11  ;;  %4057 = vmatprep.mubr.bf16.mxu0 %v1408_v12 }
  0xa5   : > { %4044 = vmatpush3.bf16.msra.mxu0 %v4382_v11 }
  0xa6   : > { %4045 = vmatprep.subr.bf16.mxu0 %v4383_v15 }
  0xa9   : > { %4046 = vmatpush3.bf16.msra.mxu0 %v4383_v15  ;;  %v3449_v15 = vld [vmem:[%s5454_s3] ss:$0 sm:$0xff] }
  0xaa   : > { %4047 = vmatprep.subr.bf16.mxu0 %v4384_v16 }
  0xad   : > { %4048 = vmatpush3.bf16.msra.mxu0 %v4384_v16 }
  0xae   : > { %4049 = vmatprep.subr.bf16.mxu0 %v4385_v17 }
  0xb1   : > { %4050 = vmatpush3.bf16.msra.mxu0 %v4385_v17 }
  0xb2   : > { %4051 = vmatprep.subr.bf16.mxu0 %v4386_v18 }
  0xb5   : > { %4052 = vmatpush3.bf16.msra.mxu0 %v4386_v18 }
  0xb6   : > { %4053 = vmatprep.subr.bf16.mxu0 %v4387_v13 }
  0xb9   : > { %4054 = vmatpush3.bf16.msra.mxu0 %v4387_v13 }
  0xba   : > { %4055 = vmatprep.subr.bf16.mxu0 %v4388_v14 }
  0xbd   : > { %4056 = vmatpush3.bf16.msra.mxu0 %v4388_v14 }
  0xc0   : > { %4058 = vmatmul.mubr.bf16.vlgmr.msra.gmra.mrb[16].mxu0 %v1407_v10 }
  0xdf   : > { %v1527_v11 = vpop.permute.xlu0 %1526 }
 0x113   : > { %v3899_v19 = vpop.f32.mrb[0].mxu0 }
 0x114   : > { %v3919_v20 = vpop.f32.mrb[0].mxu1  ;;  %v480_v21 = vpop.f32.mrb[1].mxu0 }
 0x115   : > { %v588_v22 = vadd.f32 %v3919_v20, %v3899_v19  ;;  %v579_v23 = vpop.f32.mrb[1].mxu1  ;;  %v3900_v24 = vpop.f32.mrb[2].mxu0 }
 0x116   : > { %v580_v25 = vadd.f32 %v579_v23, %v480_v21  ;;  %v3920_v26 = vpop.f32.mrb[2].mxu1  ;;  %v483_v27 = vpop.f32.mrb[3].mxu0 }
 0x117   : > { %v582_v28 = vpop.f32.mrb[3].mxu1  ;;  %v1532_v23 = vpop.permute.xlu0 %1531 }
 0x118   : > { %v583_v29 = vadd.f32 %v582_v28, %v483_v27 }
 0x133   : > { %v3939_v31 = vpop.f32.mrb[4].mxu0 }
 0x134   : > { %v718_v32 = vadd.f32 %v3939_v31, %v588_v22  ;;  %v702_v33 = vpop.f32.mrb[5].mxu0  ;;  %v3959_v34 = vpop.f32.mrb[4].mxu1 }
 0x135   : > { %v716_v35 = vadd.f32 %v702_v33, %v580_v25  ;;  %v3940_v36 = vpop.f32.mrb[6].mxu0  ;;  %v832_v37 = vpop.f32.mrb[5].mxu1 }
 0x136   : > { %v848_v38 = vadd.f32 %v3959_v34, %v718_v32  ;;  %v705_v39 = vpop.f32.mrb[7].mxu0  ;;  %v3960_v40 = vpop.f32.mrb[6].mxu1 }
 0x137   : > { %v717_v41 = vadd.f32 %v705_v39, %v583_v29  ;;  %v846_v42 = vadd.f32 %v832_v37, %v716_v35  ;;  %v835_v43 = vpop.f32.mrb[7].mxu1  ;;  %v1537_v22 = vpop.permute.xlu1 %1536 }
 0x139   : > { %v847_v44 = vadd.f32 %v835_v43, %v717_v41 }
 0x153   : > { %v3979_v45 = vpop.f32.mrb[8].mxu0 }
 0x154   : > { %v988_v46 = vadd.f32 %v3979_v45, %v848_v38  ;;  %v972_v47 = vpop.f32.mrb[9].mxu0  ;;  %v3999_v48 = vpop.f32.mrb[8].mxu1  ;;  %v1523_v45 = vld [vmem:[#allocation2] sm:$0x1] }
 0x155   : > { %v986_v49 = vadd.f32 %v972_v47, %v846_v42  ;;  %v3980_v50 = vpop.f32.mrb[10].mxu0  ;;  %v1092_v51 = vpop.f32.mrb[9].mxu1 }
 0x156   : > { %v1108_v52 = vadd.f32 %v3999_v48, %v988_v46  ;;  %v975_v53 = vpop.f32.mrb[11].mxu0  ;;  %v4000_v54 = vpop.f32.mrb[10].mxu1  ;;  %v1552_v48 = vld [vmem:[#allocation3] sm:$0x1] }
 0x157   : > { %v987_v55 = vadd.f32 %v975_v53, %v847_v44  ;;  %v1106_v56 = vadd.f32 %v1092_v51, %v986_v49  ;;  %v1095_v57 = vpop.f32.mrb[11].mxu1 }
 0x159   : > { %v1107_v58 = vadd.f32 %v1095_v57, %v987_v55 }
 0x173   : > { %v4019_v59 = vpop.f32.mrb[12].mxu0 }
 0x174   : > { %v1244_v60 = vadd.f32 %v4019_v59, %v1108_v52  ;;  %v1228_v61 = vpop.f32.mrb[13].mxu0  ;;  %v4039_v62 = vpop.f32.mrb[12].mxu1 }
 0x175   : > { %v1242_v63 = vadd.f32 %v1228_v61, %v1106_v56  ;;  %v4020_v0 = vpop.f32.mrb[14].mxu0  ;;  %v1368_v1 = vpop.f32.mrb[13].mxu1 }
 0x176   : > { %v1384_v2 = vadd.f32 %v4039_v62, %v1244_v60  ;;  %v1231_v3 = vpop.f32.mrb[15].mxu0  ;;  %v4040_v4 = vpop.f32.mrb[14].mxu1 }
 0x177   : > { %v1243_v5 = vadd.f32 %v1231_v3, %v1107_v58  ;;  %v1382_v6 = vadd.f32 %v1368_v1, %v1242_v63  ;;  %v1371_v7 = vpop.f32.mrb[15].mxu1 }
 0x179   : > { %v1383_v8 = vadd.f32 %v1371_v7, %v1243_v5 }
 0x193   : > { %v4059_v9 = vpop.f32.mrb[16].mxu0 }
 0x194   : > { %v1509_v10 = vadd.f32 %v4059_v9, %v1384_v2  ;;  %v1493_v12 = vpop.f32.mrb[17].mxu0 }
 0x195   : > { %v1507_v16 = vadd.f32 %v1493_v12, %v1382_v6  ;;  %v4060_v17 = vpop.f32.mrb[18].mxu0 }
 0x196   : > { %v1496_v18 = vpop.f32.mrb[19].mxu0  ;;  %v1519_v19 = vadd.f32 %v3449_v15, %v1509_v10 }
 0x197   : > { %v1517_v13 = vadd.f32 %v3449_v15, %v1507_v16  ;;  %v1508_v14 = vadd.f32 %v1496_v18, %v1383_v8 }
 0x198   : > { %v1555_v24 = vmul.f32 %v1519_v19, %v1519_v19  ;;  %v1541_v28 = vmul.f32 %v1537_v22, %v1519_v19 }
 0x199   : > { %v1553_v20 = vmul.f32 %v1517_v13, %v1517_v13  ;;  %v1518_v21 = vadd.f32 %v3449_v15, %v1508_v14  ;;  %v1539_v25 = vmul.f32 %v1527_v11, %v1517_v13 }
 0x19a   : > { %v1558_v32 = vmul.f32 %v1555_v24, %v1537_v22 }
 0x19b   : > { %v1540_v26 = vmul.f32 %v1532_v23, %v1518_v21  ;;  %v1554_v27 = vmul.f32 %v1518_v21, %v1518_v21  ;;  %v1556_v30 = vmul.f32 %v1553_v20, %v1527_v11 }
 0x19d   : > { %v1542_v29 = vadd.f32 %v1540_v26, %v1539_v25  ;;  %v1557_v31 = vmul.f32 %v1554_v27, %v1532_v23 }
 0x19f   : > { %v1543_v33 = vadd.f32 %v1542_v29, %v1541_v28  ;;  %v1559_v34 = vadd.f32 %v1557_v31, %v1556_v30 }
 0x1a1   : > { %v1544_v35 = vrot.slane %v1543_v33, 4  ;;  %v1560_v36 = vadd.f32 %v1559_v34, %v1558_v32 }
 0x1a3   : > { %v1545_v37 = vadd.f32 %v1544_v35, %v1543_v33  ;;  %v1561_v38 = vrot.slane %v1560_v36, 4 }
 0x1a5   : > { %v1546_v39 = vrot.slane %v1545_v37, 2  ;;  %v1562_v40 = vadd.f32 %v1561_v38, %v1560_v36 }
 0x1a7   : > { %v1547_v41 = vadd.f32 %v1546_v39, %v1545_v37  ;;  %v1563_v42 = vrot.slane %v1562_v40, 2 }
 0x1a9   : > { %v1548_v43 = vrot.slane %v1547_v41, 1  ;;  %v1564_v44 = vadd.f32 %v1563_v42, %v1562_v40 }
 0x1ab   : > { %v1549_v46 = vadd.f32 %v1548_v43, %v1547_v41  ;;  %v1565_v47 = vrot.slane %v1564_v44, 1 }
 0x1ad   : > { %v1550_v49 = vadd.f32 %v1549_v46, %v1523_v45  ;;  %v1566_v50 = vadd.f32 %v1565_v47, %v1564_v44 }
 0x1af   : > { %1551 = vst [vmem:[#allocation2] sm:$0x1] %v1550_v49  ;;  %v1567_v51 = vadd.f32 %v1566_v50, %v1552_v48 }
 0x1b1   : > { %1568 = vst [vmem:[#allocation3] sm:$0x1] %v1567_v51 }
 0x1b2 PF: > { %p3450_p8 = scmp.ne.s32.totalorder %s4551_s25, 1 }
 0x1b3   : > { %v4390_v52 = vld [vmem:[%s5453_s2 + $0x40] sm:$0xff] (!%p3450_p8)   ;;  %v4392_v54 = vld [vmem:[%s5453_s2 + $0x48] sm:$0xff] (!%p3450_p8)   ;;  %v4394_v56 = vld [vmem:[%s5453_s2 + $0x50] sm:$0xff] (!%p3450_p8)   ;;  %vm1632_vm6 = vsmask.f32 (!%p3450_p8), 7424  ;;  %vm1866_vm7 = vcmask (!%p3450_p8), 1046528  }
 0x1b4   : > { %1584 = sbr.rel (%p3450_p8) target bundleno = 1074 (0x432), region = 60  ;;  %v4391_v53 = vld [vmem:[%s5453_s2] sm:$0xff] (!%p3450_p8)   ;;  %4061 = vmatprep.subr.bf16.mxu0 (!%p3450_p8), %v4390_v52  ;;  %v4393_v55 = vld [vmem:[%s5453_s2 + $0x8] sm:$0xff] (!%p3450_p8)   ;;  %v4395_v57 = vld [vmem:[%s5453_s2 + $0x10] sm:$0xff] (!%p3450_p8)   ;;  %vm1996_vm8 = vcmask (!%p3450_p8), 1044480   ;;  %vm2392_vm10 = vcmask (!%p3450_p8), 1045504  }
 0x1b5   : > { %4081 = vmatprep.subr.bf16.mxu1 (!%p3450_p8), %v4391_v53  ;;  %4062 = vmatpush3.bf16.msra.mxu0 (!%p3450_p8), %v4390_v52  ;;  %v4396_v58 = vld [vmem:[%s5453_s2 + $0x58] sm:$0xff] (!%p3450_p8)   ;;  %v4398_v60 = vld [vmem:[%s5453_s2 + $0x60] sm:$0xff] (!%p3450_p8)   ;;  %v4400_v62 = vld [vmem:[%s5453_s2 + $0x68] sm:$0xff] (!%p3450_p8)   ;;  %vm2122_vm9 = vsmask.f32 (!%p3450_p8), 4352 }
 0x1b6   : > { %4082 = vmatpush3.bf16.msra.mxu1 (!%p3450_p8), %v4391_v53  ;;  %4063 = vmatprep.subr.bf16.mxu0 (!%p3450_p8), %v4392_v54  ;;  %v4397_v59 = vld [vmem:[%s5453_s2 + $0x18] sm:$0xff] (!%p3450_p8)   ;;  %v4399_v61 = vld [vmem:[%s5453_s2 + $0x20] sm:$0xff] (!%p3450_p8)   ;;  %v5002_v1 = vld [vmem:[%s4644_s13 + $0x8] sm:$0xf] (!%p3450_p8)  ;;  %vm2518_vm11 = vsmask.f32 (!%p3450_p8), 5376 }
 0x1b7   : > { %4083 = vmatprep.subr.bf16.mxu1 (!%p3450_p8), %v4393_v55  ;;  %v1585_v63 = vld [vmem:[%s4644_s13] sm:$0xf] (!%p3450_p8)  ;;  %v4999_v0 = vld [vmem:[%s4644_s13 + $0x4] sm:$0xf] (!%p3450_p8)  ;;  %v4401_v2 = vld [vmem:[%s5453_s2 + $0x28] sm:$0xff] (!%p3450_p8)   ;;  %v3477_v21 = vcombine.low (!%p3450_p8), %v5002_v1, %v5002_v1 }
 0x1b8   : > { %v1604_v3 = vld [vmem:[%s4644_s13 + $0xc] sm:$0x1] (!%p3450_p8)  ;;  %v3467_v4 = vcombine.low (!%p3450_p8), %v1585_v63, %v4999_v0  ;;  %v4402_v8 = vld [vmem:[%s5453_s2 + $0x70] sm:$0xff] (!%p3450_p8)   ;;  %v4404_v16 = vld [vmem:[%s5453_s2 + $0x78] sm:$0xff] (!%p3450_p8)  }
 0x1b9   : > { %4064 = vmatpush3.bf16.msra.mxu0 (!%p3450_p8), %v4392_v54  ;;  %v5010_v5 = vcombine.low (!%p3450_p8), %v5002_v1, %v1604_v3  ;;  %v4403_v10 = vld [vmem:[%s5453_s2 + $0x30] sm:$0xff] (!%p3450_p8)   ;;  %v4405_v17 = vld [vmem:[%s5453_s2 + $0x38] sm:$0xff] (!%p3450_p8)   ;;  %v4409_v14 = vld [vmem:[%s5453_s2 + $0x80] sm:$0xff] (!%p3450_p8)   ;;  %v3578_v3 = vcombine.low (!%p3450_p8), %v4999_v0, %v5002_v1 }
 0x1ba   : > { %4084 = vmatpush3.bf16.msra.mxu1 (!%p3450_p8), %v4393_v55  ;;  %4065 = vmatprep.subr.bf16.mxu0 (!%p3450_p8), %v4394_v56  ;;  %v1634_v6 = vshrl.u32 (!%p3450_p8), %v3467_v4, 16  ;;  %v1636_v7 = vshll.u32 (!%p3450_p8), %v3467_v4, 16  ;;  %v4410_v19 = vld [vmem:[%s5453_s2 + $0xc0] sm:$0xff] (!%p3450_p8)   ;;  %v4411_v22 = vld [vmem:[%s5453_s2 + $0x88] sm:$0xff] (!%p3450_p8)   ;;  %v4413_v29 = vld [vmem:[%s5453_s2 + $0x90] sm:$0xff] (!%p3450_p8)  }
 0x1bb   : > { %4085 = vmatprep.subr.bf16.mxu1 %v4395_v57  ;;  %4097 = vmatprep.mubr.bf16.mxu1 %v3467_v4  ;;  %v1641_v9 = vshll.u32 %v5010_v5, 16  ;;  %v1645_v13 = vshrl.u32 %v5010_v5, 16  ;;  %v4412_v23 = vld [vmem:[%s5453_s2 + $0xc8] sm:$0xff]   ;;  %v1845_v24 = vld [vmem:[%s4644_s13] sm:$0xe]  ;;  %v1868_v26 = vrot.slane %v5010_v5, 1 }
 0x1bc   : > { %v1638_v11 = vrot.slane %v1636_v7, 1  ;;  %v3502_v25 = vcombine.low %v1845_v24, %v4999_v0  ;;  %v1971_v27 = vld [vmem:[%s4644_s13] sm:$0x8]  ;;  %v1972_v28 = vld [vmem:[%s4644_s13 + $0xc] sm:$0x7]  ;;  %v4414_v32 = vld [vmem:[%s5453_s2 + $0xd0] sm:$0xff]  }
 0x1bd   : > { %4066 = vmatpush3.bf16.msra.mxu0 %v4394_v56  ;;  %v1643_v12 = vrot.slane %v1641_v9, 1  ;;  %v3527_v30 = vcombine.low %v1971_v27, %v4999_v0  ;;  %v3528_v31 = vcombine.low %v5002_v1, %v1972_v28  ;;  %v4415_v37 = vld [vmem:[%s5453_s2 + $0x98] sm:$0xff]   ;;  %v4417_v40 = vld [vmem:[%s5453_s2 + $0xa0] sm:$0xff]   ;;  %v4419_v42 = vld [vmem:[%s5453_s2 + $0xa8] sm:$0xff]  }
 0x1be   : > { %4086 = vmatpush3.bf16.msra.mxu1 %v4395_v57  ;;  %4067 = vmatprep.subr.bf16.mxu0 %v4396_v58  ;;  %v1639_v15 = vor.u32 %v1638_v11, %v1634_v6  ;;  %v1867_v33 = vrot.slane %v3502_v25, 1  ;;  %v4416_v39 = vld [vmem:[%s5453_s2 + $0xd8] sm:$0xff]   ;;  %v4418_v41 = vld [vmem:[%s5453_s2 + $0xe0] sm:$0xff]   ;;  %v4420_v43 = vld [vmem:[%s5453_s2 + $0xe8] sm:$0xff]  }
 0x1bf   : > { %4087 = vmatprep.subr.bf16.mxu1 %v4397_v59  ;;  %v1647_v20 = vor.u32 %v1645_v13, %v1643_v12  ;;  %v1997_v34 = vrot.slane %v3527_v30, 3  ;;  %v5054_v35 = vrot.slane %v3528_v31, 3  ;;  %v4421_v44 = vld [vmem:[%s5453_s2 + $0xb0] sm:$0xff]   ;;  %v5083_v45 = vld [vmem:[%s4644_s13 + $0xc] sm:$0xf]  ;;  %v2124_v46 = vshrl.u32 %v3527_v30, 16 }
 0x1c0   : > { %v1644_v18 = vsel %vm1632_vm6, %v1639_v15, %v1643_v12  ;;  %v1869_v36 = vsel %vm1866_vm7, %v1867_v33, %v1868_v26  ;;  %v2127_v47 = vshll.u32 %v3527_v30, 16  ;;  %v3553_v48 = vcombine.low %v5002_v1, %v5083_v45  ;;  %v4422_v49 = vld [vmem:[%s5453_s2 + $0xf0] sm:$0xff]   ;;  %v4423_v52 = vld [vmem:[%s5453_s2 + $0xb8] sm:$0xff]   ;;  %v4431_v63 = vld [vmem:[%s5453_s2 + $0x148] sm:$0xff]  }
 0x1c1   : > { %4068 = vmatpush3.bf16.msra.mxu0 %v4396_v58  ;;  %4077 = vmatprep.mubr.bf16.mxu0 %v1644_v18  ;;  %v1999_v38 = vsel %vm1996_vm8, %v1997_v34, %v5054_v35  ;;  %v4424_v53 = vld [vmem:[%s5453_s2 + $0xf8] sm:$0xff]   ;;  %v2126_v54 = vrot.slane %v2124_v46, 3  ;;  %v4426_v58 = vld [vmem:[%s5453_s2 + $0x100] sm:$0xff]   ;;  %v4432_v4 = vld [vmem:[%s5453_s2 + $0x110] sm:$0xff]   ;;  %v3579_v34 = vcombine.low %v5083_v45, %v5083_v45 }
 0x1c2   : > { %4088 = vmatpush3.bf16.msra.mxu1 %v4397_v59  ;;  %4069 = vmatprep.subr.bf16.mxu0 %v4398_v60  ;;  %v2132_v50 = vshrl.u32 %v3553_v48, 16  ;;  %v2135_v51 = vshll.u32 %v3553_v48, 16  ;;  %v2129_v55 = vrot.slane %v2127_v47, 4  ;;  %v4429_v59 = vld [vmem:[%s5453_s2 + $0x140] sm:$0xff]   ;;  %v4433_v5 = vld [vmem:[%s5453_s2 + $0x150] sm:$0xff]   ;;  %v4434_v0 = vld [vmem:[%s5453_s2 + $0x118] sm:$0xff]  }
 0x1c3   : > { %4089 = vmatprep.subr.bf16.mxu1 %v4399_v61  ;;  %v4435_v1 = vld [vmem:[%s5453_s2 + $0x158] sm:$0xff]   ;;  %v4436_v6 = vld [vmem:[%s5453_s2 + $0x120] sm:$0xff]   ;;  %v5136_v9 = vld [vmem:[%s4644_s13 + $0x8] sm:$0xf] }
 0x1c4   : > { %v2134_v56 = vrot.slane %v2132_v50, 3  ;;  %v2137_v57 = vrot.slane %v2135_v51, 4  ;;  %v4437_v7 = vld [vmem:[%s5453_s2 + $0x160] sm:$0xff]   ;;  %v2363_v11 = vld [vmem:[%s4644_s13 + $0xc] sm:$0xf]  ;;  %v4441_v18 = vld [vmem:[%s5453_s2 + $0x170] sm:$0xff]  }
 0x1c5   : > { %4070 = vmatpush3.bf16.msra.mxu0 %v4398_v60  ;;  %v2130_v60 = vor.u32 %v2129_v55, %v2126_v54  ;;  %v2497_v12 = vld [vmem:[%s4644_s13 + $0x10] sm:$0x7]  ;;  %v4439_v15 = vld [vmem:[%s5453_s2 + $0x168] sm:$0xff]   ;;  %v4443_v24 = vld [vmem:[%s5453_s2 + $0x178] sm:$0xff]  }
 0x1c6   : > { %4090 = vmatpush3.bf16.msra.mxu1 %v4399_v61  ;;  %4071 = vmatprep.subr.bf16.mxu0 %v4400_v62  ;;  %v5102_v61 = vor.u32 %v2137_v57, %v2134_v56  ;;  %v5153_v13 = vcombine.low %v2363_v11, %v2497_v12  ;;  %v4445_v30 = vld [vmem:[%s5453_s2 + $0x180] sm:$0xff]   ;;  %v4457_v47 = vld [vmem:[%s5453_s2 + $0x1a8] sm:$0xff]   ;;  %v4460_v50 = vld [vmem:[%s5453_s2 + $0x1f0] sm:$0xff]  }
 0x1c7   : > { %4091 = vmatprep.subr.bf16.mxu1 %v4401_v2  ;;  %v4448_v31 = vld [vmem:[%s5453_s2 + $0x1c0] sm:$0xff]   ;;  %v4458_v48 = vld [vmem:[%s5453_s2 + $0x1e8] sm:$0xff]  }
 0x1c8   : > { %v4455_v45 = vld [vmem:[%s5453_s2 + $0x1a0] sm:$0xff]   ;;  %v2659_v57 = vrot.slane %v5153_v13, 3 }
 0x1c9   : > { %4072 = vmatpush3.bf16.msra.mxu0 %v4400_v62  ;;  %v4430_v62 = vld [vmem:[%s5453_s2 + $0x108] sm:$0xff]   ;;  %v4456_v46 = vld [vmem:[%s5453_s2 + $0x1e0] sm:$0xff]  }
 0x1ca   : > { %4092 = vmatpush3.bf16.msra.mxu1 %v4401_v2  ;;  %4073 = vmatprep.subr.bf16.mxu0 %v4402_v8  ;;  %v2139_v2 = vsel %vm2122_vm9, %v2130_v60, %v5102_v61  ;;  %v2637_v51 = vld [vmem:[%s4644_s13 + $0x4] sm:$0x8]  ;;  %v4468_v60 = vld [vmem:[%s5453_s2 + $0x210] sm:$0xff]  }
 0x1cb   : > { %4093 = vmatprep.subr.bf16.mxu1 %v4403_v10  ;;  %v3655_v54 = vcombine.low %v2637_v51, %v5136_v9  ;;  %v4466_v55 = vld [vmem:[%s5453_s2 + $0x200] sm:$0xff]  }
 0x1cc   : > { %v4487_v12 = vld [vmem:[%s5457_s6 + $0x40] ss:$16 sps:$4 sm:$0xff]  }
 0x1cd   : > { %4074 = vmatpush3.bf16.msra.mxu0 %v4402_v8  ;;  %v2361_v8 = vld [vmem:[%s4644_s13 + $0x4] sm:$0xc]  ;;  %v2658_v56 = vrot.slane %v3655_v54, 3 }
 0x1ce   : > { %4094 = vmatpush3.bf16.msra.mxu1 %v4403_v10  ;;  %4075 = vmatprep.subr.bf16.mxu0 %v4404_v16  ;;  %v4438_v10 = vld [vmem:[%s5453_s2 + $0x128] sm:$0xff]  }
 0x1cf   : > { %4095 = vmatprep.subr.bf16.mxu1 %v4405_v17 }
 0x1d1   : > { %4076 = vmatpush3.bf16.msra.mxu0 %v4404_v16  ;;  %v4440_v16 = vld [vmem:[%s5453_s2 + $0x130] sm:$0xff]  }
 0x1d2   : > { %4096 = vmatpush3.bf16.msra.mxu1 %v4405_v17  ;;  %4101 = vmatprep.subr.bf16.mxu0 %v4409_v14  ;;  %v3604_v17 = vcombine.low %v2361_v8, %v5136_v9  ;;  %v4481_v8 = vld [vmem:[%s5457_s6 + $0x20] ss:$16 sps:$4 sm:$0xff]   ;;  %v5283_v9 = vld [vmem:[%s5457_s6 + $0x28] ss:$16 sps:$4 sm:$0xff]  }
 0x1d3   : > { %4121 = vmatprep.subr.bf16.mxu1 %v4410_v19 }
 0x1d4   : > { %4078 = vmatmul.mubr.bf16.vlgmr.msra.gmra.mrb[0].mxu0 %v1647_v20  ;;  %v2520_v20 = vshrl.u32 %v3604_v17, 16 }
 0x1d5   : > { %4098 = vmatmul.mubr.bf16.vlgmr.msra.gmra.mrb[0].mxu1 %v3477_v21  ;;  %4102 = vmatpush3.bf16.msra.mxu0 %v4409_v14  ;;  %v2364_v14 = vld [vmem:[%s4644_s13 + $0x10] sm:$0x3]  ;;  %v2523_v21 = vshll.u32 %v3604_v17, 16 }
 0x1d6   : > { %4122 = vmatpush3.bf16.msra.mxu1 %v4410_v19  ;;  %4103 = vmatprep.subr.bf16.mxu0 %v4411_v22  ;;  %v4442_v19 = vld [vmem:[%s5453_s2 + $0x138] sm:$0xff]   ;;  %v3605_v25 = vcombine.low %v2363_v11, %v2364_v14 }
 0x1d7   : > { %4123 = vmatprep.subr.bf16.mxu1 %v4412_v23  ;;  %4117 = vmatprep.mubr.bf16.mxu0 %v1869_v36  ;;  %v2525_v27 = vrot.slane %v2523_v21, 3  ;;  %v5292_v11 = vld [vmem:[%s5457_s6 + $0x4c] ss:$16 sps:$4 sm:$0xff]   ;;  %v5319_v14 = vld [vmem:[%s5457_s6 + $0x68] ss:$16 sps:$4 sm:$0xff]  }
 0x1d8   : > { %4137 = vmatprep.mubr.bf16.mxu1 %v1999_v38  ;;  %v5170_v33 = vrot.slane %v3605_v25, 2  ;;  %v4450_v38 = vld [vmem:[%s5453_s2 + $0x1c8] sm:$0xff]  }
 0x1d9   : > { %4104 = vmatpush3.bf16.msra.mxu0 %v4411_v22  ;;  %v2528_v22 = vshrl.u32 %v5153_v13, 16 }
 0x1da   : > { %4124 = vmatpush3.bf16.msra.mxu1 %v4412_v23  ;;  %4105 = vmatprep.subr.bf16.mxu0 %v4413_v29  ;;  %v2531_v23 = vshll.u32 %v5153_v13, 16 }
 0x1db   : > { %4125 = vmatprep.subr.bf16.mxu1 %v4414_v32  ;;  %v2530_v28 = vrot.slane %v2528_v22, 2 }
 0x1dd   : > { %4106 = vmatpush3.bf16.msra.mxu0 %v4413_v29  ;;  %v2533_v29 = vrot.slane %v2531_v23, 3 }
 0x1de   : > { %4126 = vmatpush3.bf16.msra.mxu1 %v4414_v32  ;;  %4107 = vmatprep.subr.bf16.mxu0 %v4415_v37  ;;  %v2393_v32 = vrot.slane %v3604_v17, 2  ;;  %v4493_v17 = vld [vmem:[%s5457_s6 + $0x60] ss:$16 sps:$4 sm:$0xff]  }
 0x1df   : > { %4127 = vmatprep.subr.bf16.mxu1 %v4416_v39  ;;  %v5174_v36 = vor.u32 %v2533_v29, %v2530_v28  ;;  %v4499_v28 = vld [vmem:[%s5457_s6 + $0x80] ss:$16 sps:$4 sm:$0xff]   ;;  %v5332_v29 = vld [vmem:[%s5457_s6 + $0x8c] ss:$16 sps:$4 sm:$0xff]  }
 0x1e1   : > { %4108 = vmatpush3.bf16.msra.mxu0 %v4415_v37  ;;  %v4449_v37 = vld [vmem:[%s5453_s2 + $0x188] sm:$0xff]  }
 0x1e2   : > { %4128 = vmatpush3.bf16.msra.mxu1 %v4416_v39  ;;  %4109 = vmatprep.subr.bf16.mxu0 %v4417_v40  ;;  %v2395_v39 = vsel %vm2392_vm10, %v2393_v32, %v5170_v33 }
 0x1e3   : > { %4129 = vmatprep.subr.bf16.mxu1 %v4418_v41 }
 0x1e5   : > { %4110 = vmatpush3.bf16.msra.mxu0 %v4417_v40 }
 0x1e6   : > { %4130 = vmatpush3.bf16.msra.mxu1 %v4418_v41  ;;  %4111 = vmatprep.subr.bf16.mxu0 %v4419_v42  ;;  %v4451_v41 = vld [vmem:[%s5453_s2 + $0x190] sm:$0xff]  }
 0x1e7   : > { %4131 = vmatprep.subr.bf16.mxu1 %v4420_v43 }
 0x1e9   : > { %4112 = vmatpush3.bf16.msra.mxu0 %v4419_v42  ;;  %v4452_v42 = vld [vmem:[%s5453_s2 + $0x1d0] sm:$0xff]  }
 0x1ea   : > { %4132 = vmatpush3.bf16.msra.mxu1 %v4420_v43  ;;  %4113 = vmatprep.subr.bf16.mxu0 %v4421_v44  ;;  %v4453_v43 = vld [vmem:[%s5453_s2 + $0x198] sm:$0xff]  }
 0x1eb   : > { %4133 = vmatprep.subr.bf16.mxu1 %v4422_v49 }
 0x1ed   : > { %4114 = vmatpush3.bf16.msra.mxu0 %v4421_v44  ;;  %v4454_v44 = vld [vmem:[%s5453_s2 + $0x1d8] sm:$0xff]  }
 0x1ee   : > { %4134 = vmatpush3.bf16.msra.mxu1 %v4422_v49  ;;  %4115 = vmatprep.subr.bf16.mxu0 %v4423_v52  ;;  %v4459_v49 = vld [vmem:[%s5453_s2 + $0x1b0] sm:$0xff]  }
 0x1ef   : > { %4135 = vmatprep.subr.bf16.mxu1 %v4424_v53 }
 0x1f1   : > { %4116 = vmatpush3.bf16.msra.mxu0 %v4423_v52  ;;  %v4461_v52 = vld [vmem:[%s5453_s2 + $0x1b8] sm:$0xff]  }
 0x1f2   : > { %4136 = vmatpush3.bf16.msra.mxu1 %v4424_v53  ;;  %4141 = vmatprep.subr.bf16.mxu0 %v4426_v58  ;;  %v4462_v53 = vld [vmem:[%s5453_s2 + $0x1f8] sm:$0xff]  }
 0x1f3   : > { %4161 = vmatprep.subr.bf16.mxu1 %v4429_v59 }
 0x1f4   : > { %4118 = vmatmul.mubr.bf16.vlgmr.msra.gmra.mrb[4].mxu0 %v1868_v26  ;;  %v2522_v26 = vrot.slane %v2520_v20, 2 }
 0x1f5   : > { %4142 = vmatpush3.bf16.msra.mxu0 %v4426_v58  ;;  %4138 = vmatmul.mubr.bf16.vlgmr.msra.gmra.mrb[4].mxu1 %v5054_v35  ;;  %v4467_v58 = vld [vmem:[%s5453_s2 + $0x208] sm:$0xff]  }
 0x1f6   : > { %4162 = vmatpush3.bf16.msra.mxu1 %v4429_v59  ;;  %4143 = vmatprep.subr.bf16.mxu0 %v4430_v62  ;;  %v2526_v35 = vor.u32 %v2525_v27, %v2522_v26  ;;  %v2660_v59 = vsel %vm1996_vm8, %v2658_v56, %v2659_v57 }
 0x1f7   : > { %4163 = vmatprep.subr.bf16.mxu1 %v4431_v63  ;;  %4157 = vmatprep.mubr.bf16.mxu0 %v2139_v2  ;;  %v4472_v2 = vld [vmem:[%s5453_s2 + $0x230] sm:$0xff]  }
 0x1f8   : > { %4177 = vmatprep.mubr.bf16.mxu1 %v3578_v3  ;;  %v2535_v40 = vsel %vm2518_vm11, %v2526_v35, %v5174_v36  ;;  %v4473_v3 = vld [vmem:[%s5453_s2 + $0x238] sm:$0xff]  }
 0x1f9   : > { %4144 = vmatpush3.bf16.msra.mxu0 %v4430_v62  ;;  %v4470_v62 = vld [vmem:[%s5453_s2 + $0x220] sm:$0xff]   ;;  %v5350_v35 = vld [vmem:[%s5457_s6 + $0xac] ss:$16 sps:$4 sm:$0xff]  }
 0x1fa   : > { %4164 = vmatpush3.bf16.msra.mxu1 %v4431_v63  ;;  %4145 = vmatprep.subr.bf16.mxu0 %v4432_v4  ;;  %v4471_v63 = vld [vmem:[%s5453_s2 + $0x228] sm:$0xff]  }
 0x1fb   : > { %4165 = vmatprep.subr.bf16.mxu1 %v4433_v5 }
 0x1fd   : > { %4146 = vmatpush3.bf16.msra.mxu0 %v4432_v4  ;;  %v4475_v4 = vld [vmem:[%s5457_s6] ss:$16 sps:$4 sm:$0xff]  }
 0x1fe   : > { %4166 = vmatpush3.bf16.msra.mxu1 %v4433_v5  ;;  %4147 = vmatprep.subr.bf16.mxu0 %v4434_v0  ;;  %v4477_v5 = vld [vmem:[%s5457_s6 + $0x4] ss:$16 sps:$4 sm:$0xff]  }
 0x1ff   : > { %4167 = vmatprep.subr.bf16.mxu1 %v4435_v1 }
 0x201   : > { %4148 = vmatpush3.bf16.msra.mxu0 %v4434_v0  ;;  %v5260_v0 = vld [vmem:[%s5457_s6 + $0x8] ss:$16 sps:$4 sm:$0xff]  }
 0x202   : > { %4168 = vmatpush3.bf16.msra.mxu1 %v4435_v1  ;;  %4149 = vmatprep.subr.bf16.mxu0 %v4436_v6  ;;  %v5265_v1 = vld [vmem:[%s5457_s6 + $0xc] ss:$16 sps:$4 sm:$0xff]  }
 0x203   : > { %4169 = vmatprep.subr.bf16.mxu1 %v4437_v7 }
 0x205   : > { %4150 = vmatpush3.bf16.msra.mxu0 %v4436_v6  ;;  %v4483_v6 = vld [vmem:[%s5457_s6 + $0x24] ss:$16 sps:$4 sm:$0xff]  }
 0x206   : > { %4170 = vmatpush3.bf16.msra.mxu1 %v4437_v7  ;;  %4151 = vmatprep.subr.bf16.mxu0 %v4438_v10  ;;  %v5273_v7 = vld [vmem:[%s5457_s6 + $0x2c] ss:$16 sps:$4 sm:$0xff]  }
 0x207   : > { %4171 = vmatprep.subr.bf16.mxu1 %v4439_v15 }
 0x209   : > { %4152 = vmatpush3.bf16.msra.mxu0 %v4438_v10  ;;  %v4489_v10 = vld [vmem:[%s5457_s6 + $0x44] ss:$16 sps:$4 sm:$0xff]  }
 0x20a   : > { %4172 = vmatpush3.bf16.msra.mxu1 %v4439_v15  ;;  %4153 = vmatprep.subr.bf16.mxu0 %v4440_v16  ;;  %v5301_v15 = vld [vmem:[%s5457_s6 + $0x48] ss:$16 sps:$4 sm:$0xff]  }
 0x20b   : > { %4173 = vmatprep.subr.bf16.mxu1 %v4441_v18 }
 0x20d   : > { %4154 = vmatpush3.bf16.msra.mxu0 %v4440_v16  ;;  %v4495_v16 = vld [vmem:[%s5457_s6 + $0x64] ss:$16 sps:$4 sm:$0xff]  }
 0x20e   : > { %4174 = vmatpush3.bf16.msra.mxu1 %v4441_v18  ;;  %4155 = vmatprep.subr.bf16.mxu0 %v4442_v19  ;;  %v5314_v18 = vld [vmem:[%s5457_s6 + $0x6c] ss:$16 sps:$4 sm:$0xff]  }
 0x20f   : > { %4175 = vmatprep.subr.bf16.mxu1 %v4443_v24 }
 0x211   : > { %4156 = vmatpush3.bf16.msra.mxu0 %v4442_v19 }
 0x212   : > { %4176 = vmatpush3.bf16.msra.mxu1 %v4443_v24  ;;  %4181 = vmatprep.subr.bf16.mxu0 %v4445_v30  ;;  %v4501_v24 = vld [vmem:[%s5457_s6 + $0x84] ss:$16 sps:$4 sm:$0xff]  }
 0x213   : > { %4201 = vmatprep.subr.bf16.mxu1 %v4448_v31 }
 0x214   : > { %4158 = vmatmul.mubr.bf16.vlgmr.msra.gmra.mrb[8].mxu0 %v5102_v61  ;;  %v4469_v61 = vld [vmem:[%s5453_s2 + $0x218] sm:$0xff]  }
 0x215   : > { %4182 = vmatpush3.bf16.msra.mxu0 %v4445_v30  ;;  %4178 = vmatmul.mubr.bf16.vlgmr.msra.gmra.mrb[8].mxu1 %v3579_v34  ;;  %v4505_v34 = vld [vmem:[%s5457_s6 + $0xa0] ss:$16 sps:$4 sm:$0xff]  }
 0x216   : > { %4202 = vmatpush3.bf16.msra.mxu1 %v4448_v31  ;;  %4183 = vmatprep.subr.bf16.mxu0 %v4449_v37  ;;  %v5337_v31 = vld [vmem:[%s5457_s6 + $0x88] ss:$16 sps:$4 sm:$0xff]  }
 0x217   : > { %4203 = vmatprep.subr.bf16.mxu1 %v4450_v38  ;;  %4197 = vmatprep.mubr.bf16.mxu0 %v2395_v39  ;;  %v5368_v39 = vld [vmem:[%s5457_s6 + $0xcc] ss:$16 sps:$4 sm:$0xff]  }
 0x218   : > { %4217 = vmatprep.mubr.bf16.mxu1 %v2535_v40  ;;  %v5373_v40 = vld [vmem:[%s5457_s6 + $0xc8] ss:$16 sps:$4 sm:$0xff]  }
 0x219   : > { %4184 = vmatpush3.bf16.msra.mxu0 %v4449_v37  ;;  %v4513_v37 = vld [vmem:[%s5457_s6 + $0xc4] ss:$16 sps:$4 sm:$0xff]  }
 0x21a   : > { %4204 = vmatpush3.bf16.msra.mxu1 %v4450_v38  ;;  %4185 = vmatprep.subr.bf16.mxu0 %v4451_v41  ;;  %v4511_v38 = vld [vmem:[%s5457_s6 + $0xc0] ss:$16 sps:$4 sm:$0xff]  }
 0x21b   : > { %4205 = vmatprep.subr.bf16.mxu1 %v4452_v42 }
 0x21d   : > { %4186 = vmatpush3.bf16.msra.mxu0 %v4451_v41  ;;  %v4519_v41 = vld [vmem:[%s5457_s6 + $0xe4] ss:$16 sps:$4 sm:$0xff]  }
 0x21e   : > { %4206 = vmatpush3.bf16.msra.mxu1 %v4452_v42  ;;  %4187 = vmatprep.subr.bf16.mxu0 %v4453_v43  ;;  %v4517_v42 = vld [vmem:[%s5457_s6 + $0xe0] ss:$16 sps:$4 sm:$0xff]  }
 0x21f   : > { %4207 = vmatprep.subr.bf16.mxu1 %v4454_v44 }
 0x221   : > { %4188 = vmatpush3.bf16.msra.mxu0 %v4453_v43  ;;  %v5385_v43 = vld [vmem:[%s5457_s6 + $0xec] ss:$16 sps:$4 sm:$0xff]  }
 0x222   : > { %4208 = vmatpush3.bf16.msra.mxu1 %v4454_v44  ;;  %4189 = vmatprep.subr.bf16.mxu0 %v4455_v45  ;;  %v5391_v44 = vld [vmem:[%s5457_s6 + $0xe8] ss:$16 sps:$4 sm:$0xff]  }
 0x223   : > { %4209 = vmatprep.subr.bf16.mxu1 %v4456_v46 }
 0x225   : > { %4190 = vmatpush3.bf16.msra.mxu0 %v4455_v45  ;;  %v4568_v45 = vmov 0  }
 0x226   : > { %4210 = vmatpush3.bf16.msra.mxu1 %v4456_v46  ;;  %4191 = vmatprep.subr.bf16.mxu0 %v4457_v47 }
 0x227   : > { %4211 = vmatprep.subr.bf16.mxu1 %v4458_v48 }
 0x229   : > { %4192 = vmatpush3.bf16.msra.mxu0 %v4457_v47 }
 0x22a   : > { %4212 = vmatpush3.bf16.msra.mxu1 %v4458_v48  ;;  %4193 = vmatprep.subr.bf16.mxu0 %v4459_v49 }
 0x22b   : > { %4213 = vmatprep.subr.bf16.mxu1 %v4460_v50 }
 0x22d   : > { %4194 = vmatpush3.bf16.msra.mxu0 %v4459_v49 }
 0x22e   : > { %4214 = vmatpush3.bf16.msra.mxu1 %v4460_v50  ;;  %4195 = vmatprep.subr.bf16.mxu0 %v4461_v52 }
 0x22f   : > { %4215 = vmatprep.subr.bf16.mxu1 %v4462_v53 }
 0x231   : > { %4196 = vmatpush3.bf16.msra.mxu0 %v4461_v52 }
 0x232   : > { %4216 = vmatpush3.bf16.msra.mxu1 %v4462_v53  ;;  %4221 = vmatprep.subr.bf16.mxu0 %v4466_v55 }
 0x233   : > { %3015 = vmatprep.subr.bf16.mxu1 %v4477_v5 }
 0x234   : > { %4198 = vmatmul.mubr.bf16.vlgmr.msra.gmra.mrb[12].mxu0 %v5170_v33  ;;  %v4507_v33 = vld [vmem:[%s5457_s6 + $0xa4] ss:$16 sps:$4 sm:$0xff]  }
 0x235   : > { %4222 = vmatpush3.bf16.msra.mxu0 %v4466_v55  ;;  %4218 = vmatmul.mubr.bf16.vlgmr.msra.gmra.mrb[12].mxu1 %v5174_v36  ;;  %v5355_v36 = vld [vmem:[%s5457_s6 + $0xa8] ss:$16 sps:$4 sm:$0xff]  }
 0x236   : > { %4223 = vmatprep.subr.bf16.mxu0 %v4467_v58  ;;  %4237 = vmatprep.mubr.bf16.mxu0 %v2660_v59 }
 0x237   : > { %3016 = vmatpush1.bf16.msra.mxu1 %v4475_v4  ;;  %3047 = vmatprep.mubr.bf16.mxu1 %v4568_v45 }
 0x238   : > { %3017 = vmatprep.subr.bf16.mxu1 %v4483_v6 }
 0x239   : > { %4224 = vmatpush3.bf16.msra.mxu0 %v4467_v58 }
 0x23a   : > { %4225 = vmatprep.subr.bf16.mxu0 %v4468_v60 }
 0x23b   : > { %3018 = vmatpush1.bf16.msra.mxu1 %v4481_v8 }
 0x23c   : > { %3019 = vmatprep.subr.bf16.mxu1 %v4489_v10 }
 0x23d   : > { %4226 = vmatpush3.bf16.msra.mxu0 %v4468_v60 }
 0x23e   : > { %4227 = vmatprep.subr.bf16.mxu0 %v4469_v61 }
 0x23f   : > { %3020 = vmatpush1.bf16.msra.mxu1 %v4487_v12 }
 0x240   : > { %3021 = vmatprep.subr.bf16.mxu1 %v4495_v16 }
 0x241   : > { %4228 = vmatpush3.bf16.msra.mxu0 %v4469_v61 }
 0x242   : > { %4229 = vmatprep.subr.bf16.mxu0 %v4470_v62 }
 0x243   : > { %3022 = vmatpush1.bf16.msra.mxu1 %v4493_v17 }
 0x244   : > { %3023 = vmatprep.subr.bf16.mxu1 %v4501_v24 }
 0x245   : > { %4230 = vmatpush3.bf16.msra.mxu0 %v4470_v62 }
 0x246   : > { %4231 = vmatprep.subr.bf16.mxu0 %v4471_v63 }
 0x247   : > { %3024 = vmatpush1.bf16.msra.mxu1 %v4499_v28 }
 0x248   : > { %3025 = vmatprep.subr.bf16.mxu1 %v4507_v33 }
 0x249   : > { %4232 = vmatpush3.bf16.msra.mxu0 %v4471_v63 }
 0x24a   : > { %4233 = vmatprep.subr.bf16.mxu0 %v4472_v2 }
 0x24b   : > { %3026 = vmatpush1.bf16.msra.mxu1 %v4505_v34 }
 0x24c   : > { %3027 = vmatprep.subr.bf16.mxu1 %v4513_v37  ;;  %v2774_v37 = vld [vmem:[#allocation3] sm:$0x1] }
 0x24d   : > { %4234 = vmatpush3.bf16.msra.mxu0 %v4472_v2 }
 0x24e   : > { %4235 = vmatprep.subr.bf16.mxu0 %v4473_v3 }
 0x24f   : > { %3028 = vmatpush1.bf16.msra.mxu1 %v4511_v38  ;;  %v2775_v38 = vmul.f32 0.03125, %v2774_v37 }
 0x250   : > { %3029 = vmatprep.subr.bf16.mxu1 %v4519_v41 }
 0x251   : > { %4236 = vmatpush3.bf16.msra.mxu0 %v4473_v3 }
 0x252   : > { %3066 = vmatprep.subr.bf16.mxu0 %v5265_v1 }
 0x253   : > { %3030 = vmatpush1.bf16.msra.mxu1 %v4517_v42 }
 0x254   : > { %4238 = vmatmul.mubr.bf16.vlgmr.msra.gmra.mrb[16].mxu0 %v2659_v57  ;;  %4241 = vmatprep.subr.bf16.mxu1 %v5265_v1 }
 0x255   : > { %3067 = vmatpush1.bf16.msra.mxu0 %v5260_v0  ;;  %3098 = vmatprep.mubr.bf16.mxu0 %v4568_v45 }
 0x256   : > { %3068 = vmatprep.subr.bf16.mxu0 %v5273_v7 }
 0x259   : > { %3069 = vmatpush1.bf16.msra.mxu0 %v5283_v9 }
 0x25a   : > { %3070 = vmatprep.subr.bf16.mxu0 %v5292_v11 }
 0x25d   : > { %3071 = vmatpush1.bf16.msra.mxu0 %v5301_v15 }
 0x25e   : > { %3072 = vmatprep.subr.bf16.mxu0 %v5314_v18 }
 0x261   : > { %3073 = vmatpush1.bf16.msra.mxu0 %v5319_v14 }
 0x262   : > { %3074 = vmatprep.subr.bf16.mxu0 %v5332_v29 }
 0x265   : > { %3075 = vmatpush1.bf16.msra.mxu0 %v5337_v31 }
 0x266   : > { %3076 = vmatprep.subr.bf16.mxu0 %v5350_v35 }
 0x269   : > { %3077 = vmatpush1.bf16.msra.mxu0 %v5355_v36 }
 0x26a   : > { %3078 = vmatprep.subr.bf16.mxu0 %v5368_v39 }
 0x26d   : > { %3079 = vmatpush1.bf16.msra.mxu0 %v5373_v40 }
 0x26e   : > { %3080 = vmatprep.subr.bf16.mxu0 %v5385_v43 }
 0x271   : > { %3081 = vmatpush1.bf16.msra.mxu0 %v5391_v44 }
 0x2a7   : > { %v4079_v13 = vpop.f32.mrb[0].mxu0 }
 0x2a8   : > { %v4099_v19 = vpop.f32.mrb[0].mxu1  ;;  %v1732_v20 = vpop.f32.mrb[1].mxu0 }
 0x2a9   : > { %v1840_v21 = vadd.f32 %v4099_v19, %v4079_v13  ;;  %v1831_v22 = vpop.f32.mrb[1].mxu1  ;;  %v4080_v23 = vpop.f32.mrb[2].mxu0 }
 0x2aa   : > { %v1832_v25 = vadd.f32 %v1831_v22, %v1732_v20  ;;  %v4100_v26 = vpop.f32.mrb[2].mxu1  ;;  %v1735_v27 = vpop.f32.mrb[3].mxu0 }
 0x2ab   : > { %v1834_v30 = vpop.f32.mrb[3].mxu1 }
 0x2ac   : > { %v1835_v32 = vadd.f32 %v1834_v30, %v1735_v27 }
 0x2c7   : > { %v4119_v46 = vpop.f32.mrb[4].mxu0 }
 0x2c8   : > { %v1970_v47 = vadd.f32 %v4119_v46, %v1840_v21  ;;  %v1954_v48 = vpop.f32.mrb[5].mxu0  ;;  %v4139_v49 = vpop.f32.mrb[4].mxu1 }
 0x2c9   : > { %v1968_v50 = vadd.f32 %v1954_v48, %v1832_v25  ;;  %v4120_v51 = vpop.f32.mrb[6].mxu0  ;;  %v2084_v52 = vpop.f32.mrb[5].mxu1 }
 0x2ca   : > { %v2100_v53 = vadd.f32 %v4139_v49, %v1970_v47  ;;  %v1957_v54 = vpop.f32.mrb[7].mxu0  ;;  %v4140_v55 = vpop.f32.mrb[6].mxu1  ;;  %v2779_v47 = vlaneseq  ;;  %v3664_v51 = vld [vmem:[%s5454_s3] ss:$0 sm:$0xff] }
 0x2cb   : > { %v1969_v56 = vadd.f32 %v1957_v54, %v1835_v32  ;;  %v2098_v57 = vadd.f32 %v2084_v52, %v1968_v50  ;;  %v2087_v58 = vpop.f32.mrb[7].mxu1  ;;  %v2772_v32 = vld [vmem:[#allocation2] sm:$0x1] }
 0x2cc   : > { %v2773_v34 = vmul.f32 0.03125, %v2772_v32  ;;  %v2780_v48 = vshrl.u32 %v2779_v47, 7 }
 0x2cd   : > { %v2099_v59 = vadd.f32 %v2087_v58, %v1969_v56 }
 0x2ce   : > { %v2776_v41 = vmul.f32 %v2773_v34, %v2773_v34  ;;  %v2781_v49 = vsub.s32 0, %v2780_v48 }
 0x2d0   : > { %v2777_v42 = vsub.f32 %v2775_v38, %v2776_v41  ;;  %v2782_v55 = vrot.slane %v2773_v34, %v2781_v49 }
 0x2d2   : > { %v2787_v46 = vadd.f32 1e-05, %v2777_v42 }
 0x2d4   : > { %4523 = vrsqrt.f32 %v2787_v46 }
 0x2de   : > { %v4524_v52 = vpop.eup %4523 }
 0x2e7   : > { %v4159_v60 = vpop.f32.mrb[8].mxu0 }
 0x2e8   : > { %v2240_v61 = vadd.f32 %v4159_v60, %v2100_v53  ;;  %v2224_v62 = vpop.f32.mrb[9].mxu0  ;;  %v4179_v63 = vpop.f32.mrb[8].mxu1  ;;  %v2793_v60 = vrot.slane %v4524_v52, %v2781_v49 }
 0x2e9   : > { %v2238_v2 = vadd.f32 %v2224_v62, %v2098_v57  ;;  %v4160_v3 = vpop.f32.mrb[10].mxu0  ;;  %v2344_v4 = vpop.f32.mrb[9].mxu1 }
 0x2ea   : > { %v2360_v5 = vadd.f32 %v4179_v63, %v2240_v61  ;;  %v2227_v1 = vpop.f32.mrb[11].mxu0  ;;  %v4180_v6 = vpop.f32.mrb[10].mxu1 }
 0x2eb   : > { %v2239_v8 = vadd.f32 %v2227_v1, %v2099_v59  ;;  %v2358_v10 = vadd.f32 %v2344_v4, %v2238_v2  ;;  %v2347_v12 = vpop.f32.mrb[11].mxu1  ;;  %v3665_v4 = vld [vmem:[%s5455_s4] ss:$0 sm:$0xff] }
 0x2ec   : > { %v3666_v6 = vld [vmem:[%s5456_s5] ss:$0 sm:$0xff] }
 0x2ed   : > { %v2359_v16 = vadd.f32 %v2347_v12, %v2239_v8 }
 0x307   : > { %v4199_v17 = vpop.f32.mrb[12].mxu0 }
 0x308   : > { %v2496_v13 = vadd.f32 %v4199_v17, %v2360_v5  ;;  %v2480_v19 = vpop.f32.mrb[13].mxu0  ;;  %v4219_v20 = vpop.f32.mrb[12].mxu1 }
 0x309   : > { %v2494_v21 = vadd.f32 %v2480_v19, %v2358_v10  ;;  %v4200_v22 = vpop.f32.mrb[14].mxu0  ;;  %v2620_v23 = vpop.f32.mrb[13].mxu1 }
 0x30a   : > { %v2636_v24 = vadd.f32 %v4219_v20, %v2496_v13  ;;  %v2483_v25 = vpop.f32.mrb[15].mxu0  ;;  %v4220_v26 = vpop.f32.mrb[14].mxu1 }
 0x30b   : > { %v2495_v27 = vadd.f32 %v2483_v25, %v2359_v16  ;;  %v2634_v28 = vadd.f32 %v2620_v23, %v2494_v21  ;;  %v2623_v30 = vpop.f32.mrb[15].mxu1 }
 0x30d   : > { %v2635_v33 = vadd.f32 %v2623_v30, %v2495_v27 }
 0x327   : > { %v4239_v50 = vpop.f32.mrb[16].mxu0 }
 0x328   : > { %v2761_v53 = vadd.f32 %v4239_v50, %v2636_v24  ;;  %v2745_v54 = vpop.f32.mrb[17].mxu0 }
 0x329   : > { %v2759_v56 = vadd.f32 %v2745_v54, %v2634_v28  ;;  %v4240_v57 = vpop.f32.mrb[18].mxu0 }
 0x32a   : > { %v2771_v58 = vadd.f32 %v3664_v51, %v2761_v53  ;;  %v2748_v59 = vpop.f32.mrb[19].mxu0 }
 0x32b   : > { %v2769_v61 = vadd.f32 %v3664_v51, %v2759_v56  ;;  %v2760_v62 = vadd.f32 %v2748_v59, %v2635_v33 }
 0x32c   : > { %v2786_v63 = vsub.f32 %v2771_v58, %v2782_v55 }
 0x32d   : > { %v2784_v2 = vsub.f32 %v2769_v61, %v2782_v55  ;;  %v2770_v3 = vadd.f32 %v3664_v51, %v2760_v62 }
 0x32e   : > { %v2797_v8 = vmul.f32 %v2793_v60, %v2786_v63 }
 0x32f   : > { %v2795_v5 = vmul.f32 %v2793_v60, %v2784_v2  ;;  %v2785_v1 = vsub.f32 %v2770_v3, %v2782_v55 }
 0x330   : > { %v2807_v19 = vmul.f32 %v3665_v4, %v2797_v8 }
 0x331   : > { %v2805_v10 = vmul.f32 %v3665_v4, %v2795_v5  ;;  %v2796_v12 = vmul.f32 %v2793_v60, %v2785_v1 }
 0x332   : > { %v2817_v23 = vadd.f32 %v3666_v6, %v2807_v19 }
 0x333   : > { %v2806_v16 = vmul.f32 %v3665_v4, %v2796_v12  ;;  %v2815_v17 = vadd.f32 %v3666_v6, %v2805_v10 }
 0x334   : > { %v2820_v24 = vmax.f32 %v2817_v23, 0.0 }
 0x335   : > { %v2816_v13 = vadd.f32 %v3666_v6, %v2806_v16  ;;  %v2818_v20 = vmax.f32 %v2815_v17, 0.0 }
 0x336   : > { %v2822_v25 = vpack.c.bf16 %v2820_v24, %v2820_v24 }
 0x337   : > { %v2819_v21 = vmax.f32 %v2816_v13, 0.0 }
 0x339   : > { %v2821_v22 = vpack.c.bf16 %v2819_v21, %v2818_v20 }
 0x33b   : > { %3048 = vmatmul.mubr.bf16.vlgmr.msra.gmra.mrb[16].mxu1 %v2821_v22  ;;  %3099 = vmatmul.mubr.bf16.vlgmr.msra.gmra.mrb[20].mxu0 %v2821_v22 }
 0x33c   : > { %4249 = vmatpush1.bf16.msra.mxu1 %v5260_v0  ;;  %3057 = vmatprep.mubr.bf16.mxu1 %v4568_v45 }
 0x33d   : > { %4242 = vmatprep.subr.bf16.mxu1 %v5273_v7 }
 0x340   : > { %4250 = vmatpush1.bf16.msra.mxu1 %v5283_v9 }
 0x341   : > { %4243 = vmatprep.subr.bf16.mxu1 %v5292_v11 }
 0x343   : > { %3058 = vmatmul.mubr.bf16.gmra.mrb[20].mxu1 %v2822_v25 }
 0x344   : > { %4251 = vmatpush1.bf16.msra.mxu1 %v5301_v15  ;;  %3108 = vmatprep.mubr.bf16.mxu1 %v4568_v45 }
 0x345   : > { %4244 = vmatprep.subr.bf16.mxu1 %v5314_v18 }
 0x348   : > { %4252 = vmatpush1.bf16.msra.mxu1 %v5319_v14 }
 0x349   : > { %4245 = vmatprep.subr.bf16.mxu1 %v5332_v29 }
 0x34c   : > { %4253 = vmatpush1.bf16.msra.mxu1 %v5337_v31 }
 0x34d   : > { %4246 = vmatprep.subr.bf16.mxu1 %v5350_v35 }
 0x350   : > { %4254 = vmatpush1.bf16.msra.mxu1 %v5355_v36 }
 0x351   : > { %4247 = vmatprep.subr.bf16.mxu1 %v5368_v39 }
 0x354   : > { %4255 = vmatpush1.bf16.msra.mxu1 %v5373_v40 }
 0x355   : > { %4248 = vmatprep.subr.bf16.mxu1 %v5385_v43 }
 0x358   : > { %4256 = vmatpush1.bf16.msra.mxu1 %v5391_v44 }
 0x35b   : > { %3109 = vmatmul.mubr.bf16.vlgmr.msra.gmra.mrb[24].mxu1 %v2822_v25 }
 0x40e   : > { %v3049_v0 = vpop.f32.mrb[16].mxu1  ;;  %v3100_v7 = vpop.f32.mrb[20].mxu0 }
 0x40f   : > { %3117 = vst [vmem:[%s4649_s16] sm:$0xff] %v3049_v0  ;;  %3119 = vst [vmem:[%s4649_s16 + $0x10] sm:$0xff] %v3100_v7  ;;  %v3051_v9 = vpop.f32.mrb[17].mxu1  ;;  %v3102_v11 = vpop.f32.mrb[21].mxu0 }
 0x410   : > { %3118 = vst [vmem:[%s4649_s16 + $0x8] sm:$0xff] %v3051_v9  ;;  %3120 = vst [vmem:[%s4649_s16 + $0x18] sm:$0xff] %v3102_v11  ;;  %v3053_v15 = vpop.f32.mrb[18].mxu1  ;;  %v3104_v18 = vpop.f32.mrb[22].mxu0 }
 0x411   : > { %3121 = vst [vmem:[%s4649_s16 + $0x20] sm:$0xff] %v3053_v15  ;;  %3123 = vst [vmem:[%s4649_s16 + $0x30] sm:$0xff] %v3104_v18  ;;  %v3055_v14 = vpop.f32.mrb[19].mxu1  ;;  %v3106_v29 = vpop.f32.mrb[23].mxu0 }
 0x412   : > { %3122 = vst [vmem:[%s4649_s16 + $0x28] sm:$0xff] %v3055_v14  ;;  %3124 = vst [vmem:[%s4649_s16 + $0x38] sm:$0xff] %v3106_v29 }
 0x416   : > { %v3059_v31 = vpop.f32.mrb[20].mxu1 }
 0x417   : > { %3125 = vst [vmem:[%s4649_s16 + $0x40] sm:$0xff] %v3059_v31  ;;  %v3061_v35 = vpop.f32.mrb[21].mxu1 }
 0x418   : > { %3126 = vst [vmem:[%s4649_s16 + $0x48] sm:$0xff] %v3061_v35  ;;  %v3063_v36 = vpop.f32.mrb[22].mxu1 }
 0x419   : > { %v3064_v39 = vpop.f32.mrb[23].mxu1 }
 0x42e   : > { %v3110_v40 = vpop.f32.mrb[24].mxu1 }
 0x42f   : > { %3127 = vst [vmem:[%s4649_s16 + $0x50] sm:$0xff] %v3110_v40  ;;  %v3112_v43 = vpop.f32.mrb[25].mxu1 }
 0x430   : > { %3128 = vst [vmem:[%s4649_s16 + $0x58] sm:$0xff] %v3112_v43  ;;  %v3114_v44 = vpop.f32.mrb[26].mxu1 }
 0x431   : > { %v3115_v45 = vpop.f32.mrb[27].mxu1 }
 0x432 PF: > { %s17_s28 = sadd.s32 1, %s4563_s28   ;;  %s5459_s24 = smov %s4555_s26 }
 0x433   : > { %p14_p9 = scmp.ge.s32.totalorder %s17_s28, 6   ;;  %s5460_s25 = smov %s4559_s27 }
 0x434   : > { %s5461_s26 = smov %s5464_s29  ;;  %s5462_s27 = smov %s5468_s30 }
 0x435   :  { %16 = sbr.rel (!%p14_p9) target bundleno = 3 (0x3), region = 106 }

// kernel: msc_forward.7
= control target key start
LH: loop header
LB: loop body
LE: loop exit
PB: predicated region body
PF: predicated region fallthrough
CT: control target
= control target key end

     0   :  { %s3959_s12 = smov 0   ;;  %s3961_s13 = smov 0   ;;  %s4841_s0 = inlined_call_operand.vmem [shape: bf16[6,4,182,128], index: 0, kind: input, shape index: {}]   ;;  %s4842_s1 = inlined_call_operand.vmem [shape: bf16[6,9,128,128], index: 1, kind: input, shape index: {}]   ;;  %s4843_s2 = inlined_call_operand.vmem [shape: f32[1,128], index: 2, kind: input, shape index: {}]   ;;  %s4844_s3 = inlined_call_operand.vmem [shape: f32[4,144,128], index: 3, kind: output, shape index: {}]  }
   0x1   :  { %s3963_s14 = smov 0   ;;  %s3965_s15 = smov 0  }
   0x2   :  { %s3967_s16 = smov 0  }
   0x3 LB: > { %s22_s17 = sadd.s32 1, %s3926_s14  ;;  %s25_s18 = sadd.s32 1, %s3930_s15  ;;  %s3934_s16 = sphi %s3967_s16, %s13_s16   ;;  %s3930_s15 = sphi %s3965_s15, %s4848_s15   ;;  %s3926_s14 = sphi %s3963_s14, %s4847_s14   ;;  %s3922_s13 = sphi %s3961_s13, %s4846_s13   ;;  %s3918_s12 = sphi %s3959_s12, %s4845_s12  }
   0x4   : > { %p23_p0 = scmp.ge.s32.totalorder %s22_s17, 6  ;;  %p2843_p1 = scmp.ge.s32.totalorder %s3934_s16, 1 }
   0x5   : > { %p165_p2 = scmp.lt.s32.totalorder %s3934_s16, 25 }
   0x6   : > { %s4850_s17 = smov (%p23_p0, %s22_s17), 0  ;;  %s4852_s18 = smov (!%p23_p0, %s25_s18), %s3930_s15 }
   0x7   : > { %p166_p3 = pnand %p2843_p1, %p165_p2  ;;  %p27_p4 = scmp.ge.s32.totalorder %s4852_s18, 4 }
   0x8   : > { %p198_p5 = scmp.lt.s32.totalorder (!%p166_p3), %s3918_s12, 5  ;;  %p200_p6 = scmp.lt.s32.totalorder (!%p166_p3), %s3922_s13, 3 }
   0x9   : > { %s4854_s18 = smov (%p27_p4, %s4852_s18), 0  ;;  %169 = sbr.rel (%p166_p3) target bundleno = 610 (0x262), region = 32 }
   0xa   : > { %p2847_p7 = scmp.ne.s32.totalorder (!%p166_p3), %s3918_s12, 0 }
  0x10   : > { %s199_s19 = scalar_select %p198_p5, %s3918_s12, 5 }
  0x11   : > { %s4856_s13 = smov (!%p200_p6, %s3922_s13), 3  ;;  %221 = sbr.rel (%p2847_p7) target bundleno = 28 (0x1c), region = 36 }
  0x12   : > { %s3734_s20 = smul.u32 92, %s199_s19  ;;  %v3936_v0 = vmov (!%p2847_p7), 0.0  }
  0x13   : > { %s3733_s21 = smul.u32 23, %s4856_s13  ;;  %222 = vst [vmem:[#allocation2] sm:$0xff] (!%p2847_p7), %v3936_v0  ;;  %223 = vst [vmem:[#allocation2 + $0x8] sm:$0xff] (!%p2847_p7), %v3936_v0 }
  0x14   : > { %s3735_s22 = smul.u32 576, %s199_s19  ;;  %224 = vst [vmem:[#allocation2 + $0x10] sm:$0xff] (!%p2847_p7), %v3936_v0  ;;  %225 = vst [vmem:[#allocation2 + $0x18] sm:$0xff] (!%p2847_p7), %v3936_v0 }
  0x15   : > { %s204_s23 = sadd.s32 %s3734_s20, %s3733_s21  ;;  %s3736_s24 = smul.u32 144, %s4856_s13  ;;  %226 = vst [vmem:[#allocation2 + $0x20] sm:$0xff] (!%p2847_p7), %v3936_v0  ;;  %227 = vst [vmem:[#allocation2 + $0x28] sm:$0xff] (!%p2847_p7), %v3936_v0 }
  0x16   : > { %s2844_s25 = sshll.u32 %s204_s23, 2  ;;  %s3996_s28 = scalar_lea.vmem %s4842_s1, %s3735_s22  ;;  %228 = vst [vmem:[#allocation2 + $0x30] sm:$0xff] (!%p2847_p7), %v3936_v0  ;;  %229 = vst [vmem:[#allocation2 + $0x38] sm:$0xff] (!%p2847_p7), %v3936_v0 }
  0x17   : > { %s4001_s4 = scalar_lea.vmem %s4841_s0, %s2844_s25  ;;  %s4006_s7 = scalar_lea.vmem %s4844_s3, %s3736_s24  ;;  %230 = vst [vmem:[#allocation2 + $0x40] sm:$0xff] (!%p2847_p7), %v3936_v0  ;;  %231 = vst [vmem:[#allocation2 + $0x48] sm:$0xff] (!%p2847_p7), %v3936_v0 }
  0x18   : > { %232 = vst [vmem:[#allocation2 + $0x50] sm:$0xff] %v3936_v0  ;;  %233 = vst [vmem:[#allocation2 + $0x58] sm:$0xff] %v3936_v0 }
  0x19   : > { %234 = vst [vmem:[#allocation2 + $0x60] sm:$0xff] %v3936_v0  ;;  %235 = vst [vmem:[#allocation2 + $0x68] sm:$0xff] %v3936_v0 }
  0x1a   : > { %236 = vst [vmem:[#allocation2 + $0x70] sm:$0xff] %v3936_v0  ;;  %237 = vst [vmem:[#allocation2 + $0x78] sm:$0xff] %v3936_v0 }
  0x1b   : > { %238 = vst [vmem:[#allocation2 + $0x80] sm:$0xff] %v3936_v0  ;;  %239 = vst [vmem:[#allocation2 + $0x88] sm:$0xff] %v3936_v0 }
  0x1c PF: > { %v3780_v1 = vld [vmem:[%s3996_s28] sm:$0xff]   ;;  %v3937_v2 = vmov 0.0   ;;  %v3781_v3 = vld [vmem:[%s3996_s28 + $0x8] sm:$0xff]   ;;  %vm3938_vm0 = vmmov 0   ;;  %v3782_v4 = vld [vmem:[%s3996_s28 + $0x10] sm:$0xff]   ;;  %vm879_vm1 = vcmask 1046528  }
  0x1d   : > { %3717 = vmatprep.subr.bf16.mxu1 %v3937_v2  ;;  %3249 = vmatprep.subr.bf16.mxu0 %v3937_v2  ;;  %v3783_v5 = vld [vmem:[%s3996_s28 + $0x18] sm:$0xff]   ;;  %v3784_v6 = vld [vmem:[%s3996_s28 + $0x20] sm:$0xff]   ;;  %v3785_v7 = vld [vmem:[%s3996_s28 + $0x28] sm:$0xff]   ;;  %vm601_vm2 = vsmask.f32 7424  ;;  %vm1674_vm3 = vcmask 1045504  }
  0x1e   : > { %3725 = vmatpush3.bf16.msra.mxu1 %v3780_v1  ;;  %3250 = vmatpush3.bf16.msra.mxu0 %v3780_v1  ;;  %v3786_v8 = vld [vmem:[%s3996_s28 + $0x30] sm:$0xff]   ;;  %v3787_v9 = vld [vmem:[%s3996_s28 + $0x38] sm:$0xff]   ;;  %v3788_v10 = vld [vmem:[%s4001_s4 + $0x20] sm:$0xff]   ;;  %vm1383_vm4 = vsmask.f32 6400  ;;  %vm2469_vm5 = vcmask 1044480  }
  0x1f   : > { %3718 = vmatprep.subr.bf16.mxu1 %v3937_v2  ;;  %3251 = vmatprep.subr.bf16.mxu0 %v3937_v2  ;;  %v3791_v11 = vld [vmem:[%s4001_s4] sm:$0xff]   ;;  %v3790_v14 = vld [vmem:[%s3996_s28 + $0x48] sm:$0xff]   ;;  %v3794_v18 = vld [vmem:[%s3996_s28 + $0x50] sm:$0xff]   ;;  %vm2178_vm6 = vsmask.f32 5376  ;;  %p3092_p8 = scmp.ne.s32.totalorder %s3918_s12, 5 }
  0x20   : > { %3281 = vmatprep.mubr.msk.bf16.mxu1 %vm3938_vm0, %v3937_v2  ;;  %3265 = vmatprep.mubr.msk.bf16.mxu0 %vm3938_vm0, %v3937_v2  ;;  %v3789_v12 = vld [vmem:[%s3996_s28 + $0x40] sm:$0xff]   ;;  %v3795_v15 = vld [vmem:[%s3996_s28 + $0x88] sm:$0xff]   ;;  %v3799_v19 = vld [vmem:[%s3996_s28 + $0x90] sm:$0xff]  }
  0x21   : > { %v3793_v13 = vld [vmem:[%s3996_s28 + $0x80] sm:$0xff]   ;;  %v3792_v16 = vld [vmem:[%s4001_s4 + $0x28] sm:$0xff]   ;;  %v3798_v20 = vld [vmem:[%s3996_s28 + $0x58] sm:$0xff]  }
  0x22   : > { %3726 = vmatpush3.bf16.msra.mxu1 %v3781_v3  ;;  %3252 = vmatpush3.bf16.msra.mxu0 %v3781_v3  ;;  %v3796_v17 = vld [vmem:[%s4001_s4 + $0x8] sm:$0xff]   ;;  %v3801_v21 = vld [vmem:[%s3996_s28 + $0x98] sm:$0xff]   ;;  %v3797_v22 = vld [vmem:[%s4001_s4 + $0x30] sm:$0xff]  }
  0x23   : > { %3719 = vmatprep.subr.bf16.mxu1 %v3937_v2  ;;  %3253 = vmatprep.subr.bf16.mxu0 %v3937_v2  ;;  %v3802_v23 = vld [vmem:[%s4001_s4 + $0x10] sm:$0xff]   ;;  %v3800_v24 = vld [vmem:[%s3996_s28 + $0x60] sm:$0xff]   ;;  %v3805_v26 = vld [vmem:[%s3996_s28 + $0x68] sm:$0xff]  }
  0x24   : > { %v3804_v25 = vld [vmem:[%s3996_s28 + $0xa0] sm:$0xff]   ;;  %v3803_v29 = vld [vmem:[%s4001_s4 + $0x38] sm:$0xff]   ;;  %v3806_v30 = vld [vmem:[%s3996_s28 + $0xa8] sm:$0xff]  }
  0x25   : > { %v517_v27 = vld [vmem:[%s4001_s4] sm:$0xf]  ;;  %v518_v28 = vld [vmem:[%s4001_s4 + $0x4] sm:$0xf]  ;;  %v3808_v31 = vld [vmem:[%s4001_s4 + $0x18] sm:$0xff]  }
  0x26   : > { %3727 = vmatpush3.bf16.msra.mxu1 %v3782_v4  ;;  %3254 = vmatpush3.bf16.msra.mxu0 %v3782_v4  ;;  %v858_v32 = vld [vmem:[%s4001_s4] sm:$0xe]  ;;  %v2881_v33 = vcombine.low %v517_v27, %v518_v28  ;;  %v3807_v34 = vld [vmem:[%s3996_s28 + $0x70] sm:$0xff]   ;;  %v3814_v36 = vld [vmem:[%s4001_s4 + $0x8] sm:$0xff]  }
  0x27   : > { %3720 = vmatprep.subr.bf16.mxu1 %v3937_v2  ;;  %3255 = vmatprep.subr.bf16.mxu0 %v3937_v2  ;;  %v3810_v35 = vld [vmem:[%s3996_s28 + $0xb0] sm:$0xff]   ;;  %v2915_v37 = vcombine.low %v858_v32, %v518_v28  ;;  %v3811_v38 = vld [vmem:[%s3996_s28 + $0x78] sm:$0xff]   ;;  %v881_v42 = vrot.slane %v3814_v36, 1  ;;  %v3809_v43 = vld [vmem:[%s4001_s4 + $0x40] sm:$0xff]   ;;  %v610_v46 = vshll.u32 %v3814_v36, 16  ;;  %v614_v55 = vshrl.u32 %v3814_v36, 16 }
  0x28   : > { %v605_v39 = vshll.u32 %v2881_v33, 16  ;;  %v3812_v40 = vld [vmem:[%s3996_s28 + $0xb8] sm:$0xff]   ;;  %v603_v44 = vshrl.u32 %v2881_v33, 16  ;;  %v3817_v48 = vld [vmem:[%s3996_s28 + $0x100] sm:$0xff]   ;;  %v3818_v49 = vld [vmem:[%s4001_s4 + $0x10] sm:$0xff]  }
  0x29   : > { %v880_v41 = vrot.slane %v2915_v37, 1  ;;  %v612_v51 = vrot.slane %v610_v46, 1  ;;  %v3820_v52 = vld [vmem:[%s3996_s28 + $0x108] sm:$0xff]   ;;  %v883_v53 = vrot.slane %v3818_v49, 1  ;;  %v3816_v54 = vld [vmem:[%s3996_s28 + $0xc0] sm:$0xff]   ;;  %v618_v56 = vshll.u32 %v3818_v49, 16 }
  0x2a   : > { %3728 = vmatpush3.bf16.msra.mxu1 %v3783_v5  ;;  %3256 = vmatpush3.bf16.msra.mxu0 %v3783_v5  ;;  %v607_v45 = vrot.slane %v605_v39, 1  ;;  %v3821_v58 = vld [vmem:[%s4001_s4 + $0x18] sm:$0xff]   ;;  %v3823_v60 = vld [vmem:[%s3996_s28 + $0x110] sm:$0xff]   ;;  %v3819_v63 = vld [vmem:[%s3996_s28 + $0xc8] sm:$0xff]   ;;  %v622_v5 = vshrl.u32 %v3818_v49, 16 }
  0x2b   : > { %3721 = vmatprep.subr.bf16.mxu1 %v3937_v2  ;;  %3257 = vmatprep.subr.bf16.mxu0 %v3937_v2  ;;  %v882_v47 = vsel %vm879_vm1, %v880_v41, %v881_v42  ;;  %v884_v59 = vsel %vm879_vm1, %v881_v42, %v883_v53  ;;  %v616_v61 = vor.u32 %v614_v55, %v612_v51  ;;  %v620_v62 = vrot.slane %v618_v56, 1  ;;  %v3826_v1 = vld [vmem:[%s3996_s28 + $0x118] sm:$0xff]   ;;  %v3830_v32 = vld [vmem:[%s4001_s4 + $0x30] sm:$0xff]   ;;  %v4165_v33 = vld [vmem:[%s4001_s4 + $0xc] sm:$0xf] }
  0x2c   : > { %v608_v50 = vor.u32 %v607_v45, %v603_v44  ;;  %v885_v0 = vrot.slane %v3821_v58, 1  ;;  %v626_v3 = vshll.u32 %v3821_v58, 16  ;;  %v3839_v27 = vld [vmem:[%s3996_s28 + $0x138] sm:$0xff]   ;;  %v4181_v44 = vld [vmem:[%s4001_s4 + $0x20] sm:$0xff]  }
  0x2d   : > { %v621_v4 = vsel %vm601_vm2, %v616_v61, %v620_v62  ;;  %v3838_v39 = vld [vmem:[%s3996_s28 + $0xf8] sm:$0xff]   ;;  %v1680_v49 = vrot.slane %v4181_v44, 2  ;;  %v654_v61 = vshrl.u32 %v3830_v32, 16 }
  0x2e   : > { %3729 = vmatpush3.bf16.msra.mxu1 %v3784_v6  ;;  %3258 = vmatpush3.bf16.msra.mxu0 %v3784_v6  ;;  %v613_v57 = vsel %vm601_vm2, %v608_v50, %v612_v51  ;;  %v3822_v6 = vld [vmem:[%s3996_s28 + $0xd0] sm:$0xff]   ;;  %v3832_v50 = vld [vmem:[%s4001_s4 + $0x38] sm:$0xff]  }
  0x2f   : > { %3722 = vmatprep.subr.bf16.mxu1 %v3937_v2  ;;  %3259 = vmatprep.subr.bf16.mxu0 %v3937_v2 }
  0x32   : > { %3730 = vmatpush3.bf16.msra.mxu1 %v3785_v7  ;;  %3260 = vmatpush3.bf16.msra.mxu0 %v3785_v7  ;;  %v4127_v7 = vld [vmem:[%s4001_s4 + $0x20] sm:$0xff]  }
  0x33   : > { %3723 = vmatprep.subr.bf16.mxu1 %v3937_v2  ;;  %3261 = vmatprep.subr.bf16.mxu0 %v3937_v2  ;;  %v638_v28 = vshrl.u32 %v4127_v7, 16 }
  0x36   : > { %3731 = vmatpush3.bf16.msra.mxu1 %v3786_v8  ;;  %3262 = vmatpush3.bf16.msra.mxu0 %v3786_v8  ;;  %v886_v8 = vsel %vm879_vm1, %v883_v53, %v885_v0  ;;  %v4196_v53 = vld [vmem:[%s4001_s4 + $0x28] sm:$0xff]  }
  0x37   : > { %3724 = vmatprep.subr.bf16.mxu1 %v3937_v2  ;;  %3263 = vmatprep.subr.bf16.mxu0 %v3937_v2 }
  0x3a   : > { %3732 = vmatpush3.bf16.msra.mxu1 %v3787_v9  ;;  %3264 = vmatpush3.bf16.msra.mxu0 %v3787_v9  ;;  %v3829_v9 = vld [vmem:[%s3996_s28 + $0x120] sm:$0xff]  }
  0x3b   : > { %3301 = vmatprep.subr.bf16.mxu1 %v3937_v2  ;;  %3353 = vmatprep.subr.bf16.mxu0 %v3937_v2 }
  0x3d   : > { %3282 = vmatmul.mubr.bf16.vlgmr.msra.gmra.mrb[0].mxu1 %v3788_v10  ;;  %3266 = vmatmul.mubr.bf16.vlgmr.msra.gmra.mrb[0].mxu0 %v3791_v11  ;;  %v628_v10 = vrot.slane %v626_v3, 1  ;;  %v3825_v11 = vld [vmem:[%s3996_s28 + $0xd8] sm:$0xff]  }
  0x3e   : > { %3302 = vmatpush3.bf16.msra.mxu1 %v3789_v12  ;;  %3285 = vmatprep.mubr.msk.bf16.mxu1 %vm3938_vm0, %v3937_v2  ;;  %v624_v12 = vor.u32 %v622_v5, %v620_v62  ;;  %v658_v62 = vshll.u32 %v3832_v50, 16 }
  0x3f   : > { %3303 = vmatprep.subr.bf16.mxu1 %v3937_v2  ;;  %3354 = vmatpush3.bf16.msra.mxu0 %v3793_v13  ;;  %v887_v13 = vrot.slane %v4127_v7, 1 }
  0x40   : > { %3355 = vmatprep.subr.bf16.mxu0 %v3937_v2  ;;  %3269 = vmatprep.mubr.msk.bf16.mxu0 %vm3938_vm0, %v3937_v2  ;;  %v660_v3 = vrot.slane %v658_v62, 1  ;;  %v4270_v62 = vld [vmem:[%s4001_s4 + $0x48] sm:$0xff]  }
  0x42   : > { %3304 = vmatpush3.bf16.msra.mxu1 %v3790_v14  ;;  %v3833_v14 = vld [vmem:[%s3996_s28 + $0x128] sm:$0xff]  }
  0x43   : > { %3305 = vmatprep.subr.bf16.mxu1 %v3937_v2  ;;  %3356 = vmatpush3.bf16.msra.mxu0 %v3795_v15  ;;  %v629_v15 = vsel %vm601_vm2, %v624_v12, %v628_v10  ;;  %v3837_v12 = vld [vmem:[%s4001_s4 + $0x48] ss:$0 sps:$4 sm:$0x11]  }
  0x44   : > { %3357 = vmatprep.subr.bf16.mxu0 %v3937_v2 }
  0x45   : > { %3286 = vmatmul.mubr.bf16.gmra.mrb[4].mxu1 %v3792_v16  ;;  %3270 = vmatmul.mubr.bf16.gmra.mrb[4].mxu0 %v3796_v17  ;;  %v630_v16 = vshrl.u32 %v3821_v58, 16  ;;  %v634_v17 = vshll.u32 %v4127_v7, 16  ;;  %v1682_v58 = vrot.slane %v4196_v53, 2  ;;  %v1079_v7 = vld [vmem:[%s4001_s4 + $0x8] sm:$0xe] }
  0x46   : > { %3306 = vmatpush3.bf16.msra.mxu1 %v3794_v18  ;;  %3289 = vmatprep.mubr.msk.bf16.mxu1 %vm3938_vm0, %v3937_v2  ;;  %v3828_v18 = vld [vmem:[%s3996_s28 + $0xe0] sm:$0xff]  }
  0x47   : > { %3307 = vmatprep.subr.bf16.mxu1 %v3937_v2  ;;  %3358 = vmatpush3.bf16.msra.mxu0 %v3799_v19  ;;  %v888_v19 = vsel %vm879_vm1, %v885_v0, %v887_v13  ;;  %v3835_v0 = vld [vmem:[%s4001_s4 + $0x40] sm:$0xff]  }
  0x48   : > { %3359 = vmatprep.subr.bf16.mxu0 %v3937_v2  ;;  %3273 = vmatprep.mubr.msk.bf16.mxu0 %vm3938_vm0, %v3937_v2  ;;  %v895_v5 = vrot.slane %v3835_v0, 1 }
  0x4a   : > { %3308 = vmatpush3.bf16.msra.mxu1 %v3798_v20  ;;  %v3827_v20 = vld [vmem:[%s4001_s4 + $0x28] sm:$0xff]  }
  0x4b   : > { %3309 = vmatprep.subr.bf16.mxu1 %v3937_v2  ;;  %3360 = vmatpush3.bf16.msra.mxu0 %v3801_v21  ;;  %v3836_v21 = vld [vmem:[%s3996_s28 + $0x130] sm:$0xff]   ;;  %v646_v45 = vshrl.u32 %v3827_v20, 16 }
  0x4c   : > { %3361 = vmatprep.subr.bf16.mxu0 %v3937_v2 }
  0x4d   : > { %3290 = vmatmul.mubr.bf16.gmra.mrb[8].mxu1 %v3797_v22  ;;  %3274 = vmatmul.mubr.bf16.gmra.mrb[8].mxu0 %v3802_v23  ;;  %v632_v22 = vor.u32 %v630_v16, %v628_v10  ;;  %v636_v23 = vrot.slane %v634_v17, 1  ;;  %v666_v10 = vshll.u32 %v3835_v0, 16 }
  0x4e   : > { %3310 = vmatpush3.bf16.msra.mxu1 %v3800_v24  ;;  %3293 = vmatprep.mubr.msk.bf16.mxu1 %vm3938_vm0, %v3937_v2  ;;  %v3831_v24 = vld [vmem:[%s3996_s28 + $0xe8] sm:$0xff]  }
  0x4f   : > { %3311 = vmatprep.subr.bf16.mxu1 %v3937_v2  ;;  %3362 = vmatpush3.bf16.msra.mxu0 %v3804_v25  ;;  %v889_v25 = vrot.slane %v3827_v20, 1  ;;  %v640_v42 = vor.u32 %v638_v28, %v636_v23  ;;  %v668_v17 = vrot.slane %v666_v10, 1 }
  0x50   : > { %3363 = vmatprep.subr.bf16.mxu0 %v3937_v2  ;;  %3277 = vmatprep.mubr.msk.bf16.mxu0 %vm3938_vm0, %v3937_v2 }
  0x52   : > { %3312 = vmatpush3.bf16.msra.mxu1 %v3805_v26  ;;  %v3834_v26 = vld [vmem:[%s3996_s28 + $0xf0] sm:$0xff]  }
  0x53   : > { %3364 = vmatpush3.bf16.msra.mxu0 %v3806_v30  ;;  %3313 = vmatprep.subr.bf16.mxu1 %v3937_v2  ;;  %v637_v30 = vsel %vm601_vm2, %v632_v22, %v636_v23  ;;  %v4237_v23 = vld [vmem:[%s4001_s4 + $0x38] sm:$0xff]  }
  0x54   : > { %3365 = vmatprep.subr.bf16.mxu0 %v3937_v2 }
  0x55   : > { %3294 = vmatmul.mubr.bf16.gmra.mrb[12].mxu1 %v3803_v29  ;;  %3278 = vmatmul.mubr.bf16.gmra.mrb[12].mxu0 %v3808_v31  ;;  %v4160_v29 = vld [vmem:[%s4001_s4 + $0x10] sm:$0xff]   ;;  %v642_v31 = vshll.u32 %v3827_v20, 16 }
  0x56   : > { %3297 = vmatprep.mubr.msk.bf16.mxu1 %vm3938_vm0, %v3937_v2  ;;  %3314 = vmatpush3.bf16.msra.mxu1 %v3807_v34  ;;  %v4168_v34 = vld [vmem:[%s4001_s4 + $0x18] sm:$0xff]   ;;  %v1676_v37 = vrot.slane %v4160_v29, 2  ;;  %v1396_v22 = vshll.u32 %v4160_v29, 16 }
  0x57   : > { %3366 = vmatpush3.bf16.msra.mxu0 %v3810_v35  ;;  %3315 = vmatprep.subr.bf16.mxu1 %v3937_v2  ;;  %v1653_v35 = vld [vmem:[%s4001_s4 + $0x8] sm:$0xc]  ;;  %v1678_v41 = vrot.slane %v4168_v34, 2 }
  0x58   : > { %3367 = vmatprep.subr.bf16.mxu0 %v3937_v2  ;;  %3369 = vmatprep.mubr.msk.bf16.mxu0 %vm3938_vm0, %v3937_v2  ;;  %v2999_v36 = vcombine.low %v1653_v35, %v4165_v33 }
  0x5a   : > { %3316 = vmatpush3.bf16.msra.mxu1 %v3811_v38  ;;  %v890_v38 = vsel %vm879_vm1, %v887_v13, %v889_v25 }
  0x5b   : > { %3368 = vmatpush3.bf16.msra.mxu0 %v3812_v40  ;;  %3405 = vmatprep.subr.bf16.mxu1 %v3937_v2  ;;  %v1675_v40 = vrot.slane %v2999_v36, 2 }
  0x5c   : > { %3457 = vmatprep.subr.bf16.mxu0 %v3937_v2 }
  0x5d   : > { %3298 = vmatmul.mubr.bf16.gmra.mrb[16].mxu1 %v3809_v43  ;;  %v644_v43 = vrot.slane %v642_v31, 1  ;;  %v4185_v46 = vsel %vm1674_vm3, %v1675_v40, %v1676_v37  ;;  %v1402_v40 = vshrl.u32 %v4168_v34, 16 }
  0x5e   : > { %3317 = vmatprep.mubr.msk.bf16.mxu1 %vm3938_vm0, %v3937_v2  ;;  %3370 = vmatmul.mubr.bf16.vlgmr.msra.gmra.mrb[16].mxu0 %v882_v47  ;;  %v4188_v47 = vsel %vm1674_vm3, %v1676_v37, %v1678_v41 }
  0x5f   : > { %3458 = vmatpush3.bf16.msra.mxu0 %v3817_v48  ;;  %3373 = vmatprep.mubr.msk.bf16.mxu0 %vm3938_vm0, %v3937_v2  ;;  %v891_v48 = vrot.slane %v3830_v32, 1  ;;  %v645_v51 = vsel %vm601_vm2, %v640_v42, %v644_v43  ;;  %v648_v56 = vor.u32 %v646_v45, %v644_v43  ;;  %v4252_v42 = vld [vmem:[%s4001_s4 + $0x40] sm:$0xff]  }
  0x60   : > { %3459 = vmatprep.subr.bf16.mxu0 %v3937_v2  ;;  %v1688_v45 = vrot.slane %v4252_v42, 2 }
  0x61   : > { %v892_v55 = vsel %vm879_vm1, %v889_v25, %v891_v48  ;;  %v670_v25 = vshrl.u32 %v3835_v0, 16  ;;  %v1690_v0 = vrot.slane %v4270_v62, 2 }
  0x63   : > { %3460 = vmatpush3.bf16.msra.mxu0 %v3820_v52  ;;  %v650_v52 = vshll.u32 %v3830_v32, 16  ;;  %v672_v36 = vor.u32 %v670_v25, %v668_v17  ;;  %v3851_v25 = vld [vmem:[%s3996_s28 + $0x158] sm:$0xff]  }
  0x64   : > { %3461 = vmatprep.subr.bf16.mxu0 %v3937_v2 }
  0x65   : > { %3318 = vmatmul.mubr.bf16.vlgmr.msra.gmra.mrb[20].mxu1 %v613_v57  ;;  %v652_v57 = vrot.slane %v650_v52, 1 }
  0x66   : > { %3406 = vmatpush3.bf16.msra.mxu1 %v3816_v54  ;;  %3321 = vmatprep.mubr.msk.bf16.mxu1 %vm3938_vm0, %v3937_v2  ;;  %v4199_v54 = vsel %vm1674_vm3, %v1678_v41, %v1680_v49  ;;  %v1405_v41 = vshll.u32 %v4168_v34, 16 }
  0x67   : > { %3374 = vmatmul.mubr.bf16.gmra.mrb[20].mxu0 %v884_v59  ;;  %3407 = vmatprep.subr.bf16.mxu1 %v3937_v2  ;;  %v893_v59 = vrot.slane %v3832_v50, 1 }
  0x68   : > { %3377 = vmatprep.mubr.msk.bf16.mxu0 %vm3938_vm0, %v3937_v2  ;;  %3462 = vmatpush3.bf16.msra.mxu0 %v3823_v60  ;;  %v4209_v60 = vsel %vm1674_vm3, %v1680_v49, %v1682_v58  ;;  %v3843_v49 = vld [vmem:[%s3996_s28 + $0x180] sm:$0xff]  }
  0x69   : > { %3463 = vmatprep.subr.bf16.mxu0 %v3937_v2  ;;  %v896_v13 = vsel %vm879_vm1, %v893_v59, %v895_v5 }
  0x6a   : > { %3408 = vmatpush3.bf16.msra.mxu1 %v3819_v63  ;;  %v653_v63 = vsel %vm601_vm2, %v648_v56, %v652_v57  ;;  %v1164_v56 = vrot.slane %v4160_v29, 1 }
  0x6b   : > { %3409 = vmatprep.subr.bf16.mxu1 %v3937_v2 }
  0x6c   : > { %3464 = vmatpush3.bf16.msra.mxu0 %v3826_v1  ;;  %v894_v1 = vsel %vm879_vm1, %v891_v48, %v893_v59  ;;  %v1411_v59 = vshrl.u32 %v4181_v44, 16 }
  0x6d   : > { %3322 = vmatmul.mubr.bf16.gmra.mrb[24].mxu1 %v621_v4  ;;  %3465 = vmatprep.subr.bf16.mxu0 %v3937_v2  ;;  %v656_v4 = vor.u32 %v654_v61, %v652_v57  ;;  %v1414_v61 = vshll.u32 %v4181_v44, 16 }
  0x6e   : > { %3325 = vmatprep.mubr.msk.bf16.mxu1 %vm3938_vm0, %v3937_v2  ;;  %3410 = vmatpush3.bf16.msra.mxu1 %v3822_v6  ;;  %v4219_v6 = vld [vmem:[%s4001_s4 + $0x30] sm:$0xff]  }
  0x6f   : > { %3378 = vmatmul.mubr.bf16.gmra.mrb[24].mxu0 %v886_v8  ;;  %3411 = vmatprep.subr.bf16.mxu1 %v3937_v2  ;;  %v661_v8 = vsel %vm601_vm2, %v656_v4, %v660_v3  ;;  %v1416_v4 = vrot.slane %v1414_v61, 2 }
  0x70   : > { %3381 = vmatprep.mubr.msk.bf16.mxu0 %vm3938_vm0, %v3937_v2  ;;  %3466 = vmatpush3.bf16.msra.mxu0 %v3829_v9  ;;  %v662_v9 = vshrl.u32 %v3832_v50, 16  ;;  %v1404_v50 = vrot.slane %v1402_v40, 1 }
  0x71   : > { %3467 = vmatprep.subr.bf16.mxu0 %v3937_v2 }
  0x72   : > { %3412 = vmatpush3.bf16.msra.mxu1 %v3825_v11  ;;  %v1684_v11 = vrot.slane %v4219_v6, 2  ;;  %v664_v16 = vor.u32 %v662_v9, %v660_v3  ;;  %v1413_v3 = vrot.slane %v1411_v59, 1  ;;  %v3845_v9 = vld [vmem:[%s3996_s28 + $0x148] sm:$0xff]   ;;  %v1450_v59 = vshll.u32 %v4252_v42, 16 }
  0x73   : > { %3413 = vmatprep.subr.bf16.mxu1 %v3937_v2 }
  0x74   : > { %3468 = vmatpush3.bf16.msra.mxu0 %v3833_v14  ;;  %v2940_v14 = vcombine.low %v1079_v7, %v4165_v33  ;;  %v1398_v33 = vrot.slane %v1396_v22, 2  ;;  %v4279_v7 = vsel %vm1674_vm3, %v1688_v45, %v1690_v0  ;;  %v1417_v10 = vor.u32 %v1416_v4, %v1413_v3 }
  0x75   : > { %3326 = vmatmul.mubr.bf16.gmra.mrb[28].mxu1 %v629_v15  ;;  %3469 = vmatprep.subr.bf16.mxu0 %v3937_v2  ;;  %v4228_v15 = vsel %vm1674_vm3, %v1682_v58, %v1684_v11  ;;  %v3846_v58 = vld [vmem:[%s3996_s28 + $0x188] sm:$0xff]   ;;  %v1456_v3 = vshrl.u32 %v4270_v62, 16  ;;  %v1459_v4 = vshll.u32 %v4270_v62, 16 }
  0x76   : > { %3329 = vmatprep.mubr.msk.bf16.mxu1 %vm3938_vm0, %v3937_v2  ;;  %3414 = vmatpush3.bf16.msra.mxu1 %v3828_v18  ;;  %v897_v18 = vrot.slane %v3837_v12, 1  ;;  %v1385_v20 = vshrl.u32 %v2940_v14, 16 }
  0x77   : > { %3382 = vmatmul.mubr.bf16.gmra.mrb[28].mxu0 %v888_v19  ;;  %3415 = vmatprep.subr.bf16.mxu1 %v3937_v2  ;;  %v1393_v19 = vshrl.u32 %v4160_v29, 16  ;;  %v3842_v29 = vld [vmem:[%s3996_s28 + $0x140] sm:$0xff]  }
  0x78   : > { %3385 = vmatprep.mubr.msk.bf16.mxu0 %vm3938_vm0, %v3937_v2  ;;  %3470 = vmatpush3.bf16.msra.mxu0 %v3836_v21  ;;  %v1388_v21 = vshll.u32 %v2940_v14, 16  ;;  %v898_v28 = vsel %vm879_vm1, %v895_v5, %v897_v18  ;;  %v1387_v31 = vrot.slane %v1385_v20, 1  ;;  %v3849_v5 = vld [vmem:[%s3996_s28 + $0x190] sm:$0xff]  }
  0x79   : > { %3471 = vmatprep.subr.bf16.mxu0 %v3937_v2 }
  0x7a   : > { %3416 = vmatpush3.bf16.msra.mxu1 %v3831_v24  ;;  %v669_v24 = vsel %vm601_vm2, %v664_v16, %v668_v17  ;;  %v1390_v32 = vrot.slane %v1388_v21, 2  ;;  %v3848_v16 = vld [vmem:[%s3996_s28 + $0x150] sm:$0xff]   ;;  %v3855_v21 = vld [vmem:[%s3996_s28 + $0x1a0] sm:$0xff]  }
  0x7b   : > { %3417 = vmatprep.subr.bf16.mxu1 %v3937_v2 }
  0x7c   : > { %3472 = vmatpush3.bf16.msra.mxu0 %v3839_v27  ;;  %v1686_v27 = vrot.slane %v4237_v23, 2 }
  0x7d   : > { %3330 = vmatmul.mubr.bf16.gmra.mrb[32].mxu1 %v637_v30  ;;  %3561 = vmatprep.subr.bf16.mxu0 %v3937_v2  ;;  %v1395_v30 = vrot.slane %v1393_v19, 1 }
  0x7e   : > { %3333 = vmatprep.mubr.msk.bf16.mxu1 %vm3938_vm0, %v3937_v2  ;;  %3418 = vmatpush3.bf16.msra.mxu1 %v3834_v26  ;;  %v674_v26 = vshll.u32 %v3837_v12, 16  ;;  %v4243_v35 = vsel %vm1674_vm3, %v1684_v11, %v1686_v27  ;;  %v4259_v52 = vsel %vm1674_vm3, %v1686_v27, %v1688_v45  ;;  %v1420_v11 = vshrl.u32 %v4196_v53, 16  ;;  %v3866_v45 = vld [vmem:[%s3996_s28 + $0x1b8] sm:$0xff]  }
  0x7f   : > { %3386 = vmatmul.mubr.bf16.gmra.mrb[32].mxu0 %v890_v38  ;;  %3419 = vmatprep.subr.bf16.mxu1 %v3937_v2  ;;  %v1391_v38 = vor.u32 %v1390_v32, %v1387_v31  ;;  %v1423_v12 = vshll.u32 %v4196_v53, 16  ;;  %v1429_v27 = vshrl.u32 %v4219_v6, 16  ;;  %v3854_v31 = vld [vmem:[%s3996_s28 + $0x160] sm:$0xff]  }
  0x80   : > { %3389 = vmatprep.mubr.msk.bf16.mxu0 %vm3938_vm0, %v3937_v2  ;;  %v676_v37 = vrot.slane %v674_v26, 1  ;;  %v1422_v19 = vrot.slane %v1420_v11, 1 }
  0x81   : > { %v1425_v20 = vrot.slane %v1423_v12, 2 }
  0x82   : > { %3420 = vmatpush3.bf16.msra.mxu1 %v3838_v39  ;;  %v1399_v39 = vor.u32 %v1398_v33, %v1395_v30  ;;  %v677_v43 = vsel %vm601_vm2, %v672_v36, %v676_v37  ;;  %v3859_v30 = vld [vmem:[%s3996_s28 + $0x1a8] sm:$0xff]   ;;  %v1431_v33 = vrot.slane %v1429_v27, 1  ;;  %v3862_v37 = vld [vmem:[%s3996_s28 + $0x1b0] sm:$0xff]   ;;  %v4385_v27 = vld [vmem:[%s4001_s4 + $0x18] sm:$0xff]  }
  0x83   : > { %3509 = vmatprep.subr.bf16.mxu1 %v3937_v2  ;;  %v1426_v26 = vor.u32 %v1425_v20, %v1422_v19  ;;  %v1874_v20 = vld [vmem:[%s4001_s4 + $0x10] sm:$0xc] }
  0x84   : > { %v1400_v48 = vsel %vm1383_vm4, %v1391_v38, %v1399_v39  ;;  %v1170_v38 = vrot.slane %v4196_v53, 1 }
  0x85   : > { %3334 = vmatmul.mubr.bf16.gmra.mrb[36].mxu1 %v645_v51  ;;  %v1407_v51 = vrot.slane %v1405_v41, 2  ;;  %v1427_v32 = vsel %vm1383_vm4, %v1417_v10, %v1426_v26  ;;  %v1438_v41 = vshrl.u32 %v4237_v23, 16 }
  0x86   : > { %3337 = vmatprep.mubr.msk.bf16.mxu1 %vm3938_vm0, %v3937_v2 }
  0x87   : > { %3390 = vmatmul.mubr.bf16.gmra.mrb[36].mxu0 %v892_v55  ;;  %v1163_v55 = vrot.slane %v2940_v14, 1  ;;  %v1408_v57 = vor.u32 %v1407_v51, %v1404_v50  ;;  %v4293_v14 = vld [vmem:[%s4001_s4 + $0x50] ss:$0 sps:$4 sm:$0x33]   ;;  %v1440_v50 = vrot.slane %v1438_v41, 1 }
  0x88   : > { %3393 = vmatprep.mubr.msk.bf16.mxu0 %vm3938_vm0, %v3937_v2  ;;  %v1692_v17 = vrot.slane %v4293_v14, 2  ;;  %v1465_v12 = vshrl.u32 %v4293_v14, 16  ;;  %v3877_v41 = vld [vmem:[%s3996_s28 + $0x210] sm:$0xff]  }
  0x89   : > { %v1418_v18 = vsel %vm1383_vm4, %v1408_v57, %v1417_v10  ;;  %v1461_v10 = vrot.slane %v1459_v4, 2 }
  0x8a   : > { %v4303_v22 = vsel %vm1674_vm3, %v1690_v0, %v1692_v17  ;;  %v1174_v0 = vrot.slane %v4237_v23, 1  ;;  %v1467_v17 = vrot.slane %v1465_v12, 1 }
  0x8d   : > { %3338 = vmatmul.mubr.bf16.gmra.mrb[40].mxu1 %v653_v63  ;;  %v1165_v63 = vsel %vm879_vm1, %v1163_v55, %v1164_v56  ;;  %v1172_v55 = vrot.slane %v4219_v6, 1 }
  0x8e   : > { %3341 = vmatprep.mubr.msk.bf16.mxu1 %vm3938_vm0, %v3937_v2 }
  0x8f   : > { %3394 = vmatmul.mubr.bf16.gmra.mrb[40].mxu0 %v894_v1  ;;  %v1409_v1 = vsel %vm1383_vm4, %v1399_v39, %v1408_v57  ;;  %v3857_v39 = vld [vmem:[%s3996_s28 + $0x168] sm:$0xff]   ;;  %v1173_v61 = vsel %vm879_vm1, %v1170_v38, %v1172_v55 }
  0x90   : > { %3397 = vmatprep.mubr.msk.bf16.mxu0 %vm3938_vm0, %v3937_v2 }
  0x95   : > { %3342 = vmatmul.mubr.bf16.gmra.mrb[44].mxu1 %v661_v8  ;;  %v1166_v8 = vrot.slane %v4168_v34, 1 }
  0x96   : > { %3345 = vmatprep.mubr.msk.bf16.mxu1 %vm3938_vm0, %v3937_v2 }
  0x97   : > { %3398 = vmatmul.mubr.bf16.gmra.mrb[44].mxu0 %v896_v13  ;;  %v3852_v13 = vld [vmem:[%s3996_s28 + $0x198] sm:$0xff]   ;;  %v1167_v34 = vsel %vm879_vm1, %v1164_v56, %v1166_v8 }
  0x98   : > { %3401 = vmatprep.mubr.msk.bf16.mxu0 %vm3938_vm0, %v3937_v2  ;;  %v3865_v56 = vld [vmem:[%s3996_s28 + $0x178] sm:$0xff]  }
  0x9d   : > { %3346 = vmatmul.mubr.bf16.gmra.mrb[48].mxu1 %v669_v24  ;;  %v1168_v24 = vrot.slane %v4181_v44, 1 }
  0x9e   : > { %3349 = vmatprep.mubr.msk.bf16.mxu1 %vm3938_vm0, %v3937_v2 }
  0x9f   : > { %3402 = vmatmul.mubr.bf16.gmra.mrb[48].mxu0 %v898_v28  ;;  %v1432_v28 = vshll.u32 %v4219_v6, 16  ;;  %v1169_v44 = vsel %vm879_vm1, %v1166_v8, %v1168_v24  ;;  %v1171_v53 = vsel %vm879_vm1, %v1168_v24, %v1170_v38  ;;  %v3863_v24 = vld [vmem:[%s4001_s4 + $0x50] ss:$0 sps:$4 sm:$0x11]   ;;  %v3870_v38 = vld [vmem:[%s3996_s28 + $0x1c0] sm:$0xff]  }
  0xa0   : > { %3473 = vmatprep.mubr.msk.bf16.mxu0 %vm3938_vm0, %v3937_v2 }
  0xa1   : > { %v1434_v36 = vrot.slane %v1432_v28, 2 }
  0xa3   : > { %v1435_v40 = vor.u32 %v1434_v36, %v1431_v33  ;;  %v4397_v33 = vld [vmem:[%s4001_s4 + $0x20] sm:$0xff]  }
  0xa4   : > { %v1961_v36 = vrot.slane %v4397_v33, 2 }
  0xa5   : > { %3350 = vmatmul.mubr.bf16.gmra.mrb[52].mxu1 %v677_v43  ;;  %v1441_v43 = vshll.u32 %v4237_v23, 16  ;;  %v1176_v23 = vrot.slane %v4252_v42, 1 }
  0xa6   : > { %3421 = vmatprep.mubr.msk.bf16.mxu1 %vm3938_vm0, %v3937_v2 }
  0xa7   : > { %3474 = vmatmul.mubr.bf16.vlgmr.msra.gmra.mrb[52].mxu0 %v1400_v48  ;;  %v3860_v48 = vld [vmem:[%s3996_s28 + $0x170] sm:$0xff]   ;;  %v1443_v51 = vrot.slane %v1441_v43, 2  ;;  %v3873_v43 = vld [vmem:[%s3996_s28 + $0x1c8] sm:$0xff]  }
  0xa8   : > { %3562 = vmatpush3.bf16.msra.mxu0 %v3843_v49  ;;  %3477 = vmatprep.mubr.msk.bf16.mxu0 %vm3938_vm0, %v3937_v2  ;;  %v1436_v49 = vsel %vm1383_vm4, %v1426_v26, %v1435_v40 }
  0xa9   : > { %3563 = vmatprep.subr.bf16.mxu0 %v3937_v2  ;;  %v1444_v57 = vor.u32 %v1443_v51, %v1440_v50  ;;  %v3883_v50 = vld [vmem:[%s3996_s28 + $0x220] sm:$0xff]   ;;  %v3879_v51 = vld [vmem:[%s3996_s28 + $0x1d8] sm:$0xff]  }
  0xab   : > { %v1445_v6 = vsel %vm1383_vm4, %v1435_v40, %v1444_v57  ;;  %v4409_v40 = vld [vmem:[%s4001_s4 + $0x28] sm:$0xff]  }
  0xac   : > { %3564 = vmatpush3.bf16.msra.mxu0 %v3846_v58  ;;  %v1447_v58 = vshrl.u32 %v4252_v42, 16  ;;  %v1178_v42 = vrot.slane %v4270_v62, 1  ;;  %v1180_v62 = vrot.slane %v3863_v24, 1 }
  0xad   : > { %3422 = vmatmul.mubr.bf16.vlgmr.msra.gmra.mrb[56].mxu1 %v1165_v63  ;;  %3565 = vmatprep.subr.bf16.mxu0 %v3937_v2 }
  0xae   : > { %3510 = vmatpush3.bf16.msra.mxu1 %v3842_v29  ;;  %3425 = vmatprep.mubr.msk.bf16.mxu1 %vm3938_vm0, %v3937_v2  ;;  %v1449_v63 = vrot.slane %v1447_v58, 1  ;;  %v1452_v29 = vrot.slane %v1450_v59, 2  ;;  %v4445_v58 = vld [vmem:[%s4001_s4 + $0x38] sm:$0xff]   ;;  %v3890_v59 = vld [vmem:[%s3996_s28 + $0x230] sm:$0xff]  }
  0xaf   : > { %3478 = vmatmul.mubr.bf16.gmra.mrb[56].mxu0 %v1409_v1  ;;  %3511 = vmatprep.subr.bf16.mxu1 %v3937_v2 }
  0xb0   : > { %3481 = vmatprep.mubr.msk.bf16.mxu0 %vm3938_vm0, %v3937_v2  ;;  %3566 = vmatpush3.bf16.msra.mxu0 %v3849_v5  ;;  %v1453_v1 = vor.u32 %v1452_v29, %v1449_v63  ;;  %v1175_v5 = vsel %vm879_vm1, %v1172_v55, %v1174_v0  ;;  %v3893_v63 = vld [vmem:[%s3996_s28 + $0x238] sm:$0xff]  }
  0xb1   : > { %3567 = vmatprep.subr.bf16.mxu0 %v3937_v2 }
  0xb2   : > { %3512 = vmatpush3.bf16.msra.mxu1 %v3845_v9  ;;  %v1454_v8 = vsel %vm1383_vm4, %v1444_v57, %v1453_v1  ;;  %v1458_v9 = vrot.slane %v1456_v3, 1 }
  0xb3   : > { %3513 = vmatprep.subr.bf16.mxu1 %v3937_v2 }
  0xb4   : > { %3568 = vmatpush3.bf16.msra.mxu0 %v3852_v13  ;;  %v1462_v11 = vor.u32 %v1461_v10, %v1458_v9  ;;  %v1468_v13 = vshll.u32 %v4293_v14, 16  ;;  %v4376_v14 = vld [vmem:[%s4001_s4 + $0x14] sm:$0xf] }
  0xb5   : > { %3426 = vmatmul.mubr.bf16.gmra.mrb[60].mxu1 %v1167_v34  ;;  %3569 = vmatprep.subr.bf16.mxu0 %v3937_v2  ;;  %v1177_v34 = vsel %vm879_vm1, %v1174_v0, %v1176_v23  ;;  %v4382_v26 = vcombine.low %v1874_v20, %v4376_v14  ;;  %v4463_v0 = vld [vmem:[%s4001_s4 + $0x40] sm:$0xff]  }
  0xb6   : > { %3429 = vmatprep.mubr.msk.bf16.mxu1 %vm3938_vm0, %v3937_v2  ;;  %3514 = vmatpush3.bf16.msra.mxu1 %v3848_v16  ;;  %v1463_v16 = vsel %vm1383_vm4, %v1453_v1, %v1462_v11  ;;  %v3892_v1 = vld [vmem:[%s3996_s28 + $0x1f8] sm:$0xff]  }
  0xb7   : > { %3482 = vmatmul.mubr.bf16.gmra.mrb[60].mxu0 %v1418_v18  ;;  %3515 = vmatprep.subr.bf16.mxu1 %v3937_v2  ;;  %v1470_v18 = vrot.slane %v1468_v13, 2  ;;  %v1958_v28 = vrot.slane %v4382_v26, 2  ;;  %v4483_v13 = vld [vmem:[%s4001_s4 + $0x48] sm:$0xff]  }
  0xb8   : > { %3485 = vmatprep.mubr.msk.bf16.mxu0 %vm3938_vm0, %v3937_v2  ;;  %3570 = vmatpush3.bf16.msra.mxu0 %v3855_v21  ;;  %v1179_v21 = vsel %vm879_vm1, %v1176_v23, %v1178_v42 }
  0xb9   : > { %3571 = vmatprep.subr.bf16.mxu0 %v3937_v2  ;;  %v1471_v19 = vor.u32 %v1470_v18, %v1467_v17  ;;  %v1971_v17 = vrot.slane %v4483_v13, 2 }
  0xba   : > { %3516 = vmatpush3.bf16.msra.mxu1 %v3851_v25 }
  0xbb   : > { %3517 = vmatprep.subr.bf16.mxu1 %v3937_v2  ;;  %v1472_v25 = vsel %vm1383_vm4, %v1462_v11, %v1471_v19 }
  0xbc   : > { %3572 = vmatpush3.bf16.msra.mxu0 %v3859_v30  ;;  %v1959_v30 = vrot.slane %v4385_v27, 2 }
  0xbd   : > { %3430 = vmatmul.mubr.bf16.gmra.mrb[64].mxu1 %v1169_v44  ;;  %3573 = vmatprep.subr.bf16.mxu0 %v3937_v2  ;;  %v1181_v44 = vsel %vm879_vm1, %v1178_v42, %v1180_v62 }
  0xbe   : > { %3433 = vmatprep.mubr.msk.bf16.mxu1 %vm3938_vm0, %v3937_v2  ;;  %3518 = vmatpush3.bf16.msra.mxu1 %v3854_v31  ;;  %v1960_v31 = vsel %vm1674_vm3, %v1958_v28, %v1959_v30 }
  0xbf   : > { %3486 = vmatmul.mubr.bf16.gmra.mrb[64].mxu0 %v1427_v32  ;;  %3519 = vmatprep.subr.bf16.mxu1 %v3937_v2  ;;  %v3871_v32 = vld [vmem:[%s3996_s28 + $0x200] sm:$0xff]  }
  0xc0   : > { %3489 = vmatprep.mubr.msk.bf16.mxu0 %vm3938_vm0, %v3937_v2  ;;  %3574 = vmatpush3.bf16.msra.mxu0 %v3862_v37  ;;  %v3874_v37 = vld [vmem:[%s3996_s28 + $0x208] sm:$0xff]  }
  0xc1   : > { %3575 = vmatprep.subr.bf16.mxu0 %v3937_v2 }
  0xc2   : > { %3520 = vmatpush3.bf16.msra.mxu1 %v3857_v39  ;;  %v1962_v39 = vsel %vm1674_vm3, %v1959_v30, %v1961_v36 }
  0xc3   : > { %3521 = vmatprep.subr.bf16.mxu1 %v3937_v2 }
  0xc4   : > { %3576 = vmatpush3.bf16.msra.mxu0 %v3866_v45  ;;  %v1963_v45 = vrot.slane %v4409_v40, 2 }
  0xc5   : > { %3434 = vmatmul.mubr.bf16.gmra.mrb[68].mxu1 %v1171_v53  ;;  %3665 = vmatprep.subr.bf16.mxu0 %v3937_v2  ;;  %v3876_v53 = vld [vmem:[%s3996_s28 + $0x1d0] sm:$0xff]  }
  0xc6   : > { %3437 = vmatprep.mubr.msk.bf16.mxu1 %vm3938_vm0, %v3937_v2  ;;  %3522 = vmatpush3.bf16.msra.mxu1 %v3860_v48  ;;  %v1964_v48 = vsel %vm1674_vm3, %v1961_v36, %v1963_v45 }
  0xc7   : > { %3490 = vmatmul.mubr.bf16.gmra.mrb[68].mxu0 %v1436_v49  ;;  %3523 = vmatprep.subr.bf16.mxu1 %v3937_v2  ;;  %v4427_v49 = vld [vmem:[%s4001_s4 + $0x30] sm:$0xff]  }
  0xc8   : > { %3493 = vmatprep.mubr.msk.bf16.mxu0 %vm3938_vm0, %v3937_v2  ;;  %v1965_v55 = vrot.slane %v4427_v49, 2 }
  0xca   : > { %3524 = vmatpush3.bf16.msra.mxu1 %v3865_v56  ;;  %v3882_v56 = vld [vmem:[%s3996_s28 + $0x1e0] sm:$0xff]   ;;  %v1966_v57 = vsel %vm1674_vm3, %v1963_v45, %v1965_v55 }
  0xcb   : > { %3613 = vmatprep.subr.bf16.mxu1 %v3937_v2 }
  0xcd   : > { %3438 = vmatmul.mubr.bf16.gmra.mrb[72].mxu1 %v1173_v61  ;;  %v3885_v61 = vld [vmem:[%s3996_s28 + $0x1e8] sm:$0xff]  }
  0xce   : > { %3441 = vmatprep.mubr.msk.bf16.mxu1 %vm3938_vm0, %v3937_v2 }
  0xcf   : > { %3494 = vmatmul.mubr.bf16.gmra.mrb[72].mxu0 %v1445_v6  ;;  %v1967_v6 = vrot.slane %v4445_v58, 2 }
  0xd0   : > { %3497 = vmatprep.mubr.msk.bf16.mxu0 %vm3938_vm0, %v3937_v2 }
  0xd1   : > { %v1968_v29 = vsel %vm1674_vm3, %v1965_v55, %v1967_v6 }
  0xd5   : > { %3442 = vmatmul.mubr.bf16.gmra.mrb[76].mxu1 %v1175_v5  ;;  %v1969_v5 = vrot.slane %v4463_v0, 2 }
  0xd6   : > { %3445 = vmatprep.mubr.msk.bf16.mxu1 %vm3938_vm0, %v3937_v2 }
  0xd7   : > { %3498 = vmatmul.mubr.bf16.gmra.mrb[76].mxu0 %v1454_v8  ;;  %v1970_v12 = vsel %vm1674_vm3, %v1967_v6, %v1969_v5  ;;  %v1972_v24 = vsel %vm1674_vm3, %v1969_v5, %v1971_v17  ;;  %v2191_v6 = vshll.u32 %v4385_v27, 16 }
  0xd8   : > { %3501 = vmatprep.mubr.msk.bf16.mxu0 %vm3938_vm0, %v3937_v2 }
  0xdd   : > { %3446 = vmatmul.mubr.bf16.gmra.mrb[80].mxu1 %v1177_v34 }
  0xde   : > { %3449 = vmatprep.mubr.msk.bf16.mxu1 %vm3938_vm0, %v3937_v2 }
  0xdf   : > { %3502 = vmatmul.mubr.bf16.gmra.mrb[80].mxu0 %v1463_v16 }
  0xe0   : > { %3505 = vmatprep.mubr.msk.bf16.mxu0 %vm3938_vm0, %v3937_v2 }
  0xe5   : > { %3450 = vmatmul.mubr.bf16.gmra.mrb[84].mxu1 %v1179_v21 }
  0xe6   : > { %3453 = vmatprep.mubr.msk.bf16.mxu1 %vm3938_vm0, %v3937_v2 }
  0xe7   : > { %3506 = vmatmul.mubr.bf16.gmra.mrb[84].mxu0 %v1472_v25  ;;  %v4501_v25 = vld [vmem:[%s4001_s4 + $0x50] sm:$0xff]  }
  0xe8   : > { %3577 = vmatprep.mubr.msk.bf16.mxu0 %vm3938_vm0, %v3937_v2  ;;  %v1973_v30 = vrot.slane %v4501_v25, 2 }
  0xed   : > { %3454 = vmatmul.mubr.bf16.gmra.mrb[88].mxu1 %v1181_v44 }
  0xee   : > { %3525 = vmatprep.mubr.msk.bf16.mxu1 %vm3938_vm0, %v3937_v2 }
  0xef   : > { %3578 = vmatmul.mubr.bf16.vlgmr.msra.gmra.mrb[88].mxu0 %v1960_v31 }
  0xf0   : > { %3666 = vmatpush3.bf16.msra.mxu0 %v3871_v32  ;;  %3581 = vmatprep.mubr.msk.bf16.mxu0 %vm3938_vm0, %v3937_v2 }
  0xf1   : > { %3667 = vmatprep.subr.bf16.mxu0 %v3937_v2 }
  0xf4   : > { %3668 = vmatpush3.bf16.msra.mxu0 %v3874_v37 }
  0xf5   : > { %3526 = vmatmul.mubr.bf16.vlgmr.msra.gmra.mrb[92].mxu1 %v4185_v46  ;;  %3669 = vmatprep.subr.bf16.mxu0 %v3937_v2  ;;  %v3880_v46 = vld [vmem:[%s3996_s28 + $0x218] sm:$0xff]  }
  0xf6   : > { %3614 = vmatpush3.bf16.msra.mxu1 %v3870_v38  ;;  %3529 = vmatprep.mubr.msk.bf16.mxu1 %vm3938_vm0, %v3937_v2  ;;  %v1974_v38 = vsel %vm1674_vm3, %v1971_v17, %v1973_v30  ;;  %v240_v17 = vld [vmem:[#allocation2] sm:$0xff] }
  0xf7   : > { %3582 = vmatmul.mubr.bf16.gmra.mrb[92].mxu0 %v1962_v39  ;;  %3615 = vmatprep.subr.bf16.mxu1 %v3937_v2  ;;  %v3891_v39 = vld [vmem:[%s4001_s4 + $0x58] ss:$0 sps:$4 sm:$0x33]  }
  0xf8   : > { %3585 = vmatprep.mubr.msk.bf16.mxu0 %vm3938_vm0, %v3937_v2  ;;  %3670 = vmatpush3.bf16.msra.mxu0 %v3877_v41  ;;  %v1975_v45 = vrot.slane %v3891_v39, 2 }
  0xf9   : > { %3671 = vmatprep.subr.bf16.mxu0 %v3937_v2 }
  0xfa   : > { %3616 = vmatpush3.bf16.msra.mxu1 %v3873_v43 }
  0xfb   : > { %3617 = vmatprep.subr.bf16.mxu1 %v3937_v2 }
  0xfc   : > { %3672 = vmatpush3.bf16.msra.mxu0 %v3880_v46 }
  0xfd   : > { %3530 = vmatmul.mubr.bf16.gmra.mrb[96].mxu1 %v4188_v47  ;;  %3673 = vmatprep.subr.bf16.mxu0 %v3937_v2  ;;  %v3887_v47 = vld [vmem:[%s3996_s28 + $0x228] sm:$0xff]  }
  0xfe   : > { %3533 = vmatprep.mubr.msk.bf16.mxu1 %vm3938_vm0, %v3937_v2  ;;  %3618 = vmatpush3.bf16.msra.mxu1 %v3876_v53 }
  0xff   : > { %3586 = vmatmul.mubr.bf16.gmra.mrb[96].mxu0 %v1964_v48  ;;  %3619 = vmatprep.subr.bf16.mxu1 %v3937_v2  ;;  %v2448_v48 = vld [vmem:[%s4001_s4 + $0x10] sm:$0x8] }
 0x100   : > { %3589 = vmatprep.mubr.msk.bf16.mxu0 %vm3938_vm0, %v3937_v2  ;;  %3674 = vmatpush3.bf16.msra.mxu0 %v3883_v50 }
 0x101   : > { %3675 = vmatprep.subr.bf16.mxu0 %v3937_v2 }
 0x102   : > { %3620 = vmatpush3.bf16.msra.mxu1 %v3879_v51 }
 0x103   : > { %3621 = vmatprep.subr.bf16.mxu1 %v3937_v2 }
 0x104   : > { %3676 = vmatpush3.bf16.msra.mxu0 %v3887_v47  ;;  %v1976_v47 = vsel %vm1674_vm3, %v1973_v30, %v1975_v45  ;;  %v2200_v30 = vshll.u32 %v4397_v33, 16 }
 0x105   : > { %3534 = vmatmul.mubr.bf16.gmra.mrb[100].mxu1 %v4199_v54  ;;  %3677 = vmatprep.subr.bf16.mxu0 %v3937_v2  ;;  %v3888_v54 = vld [vmem:[%s3996_s28 + $0x1f0] sm:$0xff]  }
 0x106   : > { %3537 = vmatprep.mubr.msk.bf16.mxu1 %vm3938_vm0, %v3937_v2  ;;  %3622 = vmatpush3.bf16.msra.mxu1 %v3882_v56  ;;  %v3083_v56 = vcombine.low %v2448_v48, %v4376_v14  ;;  %v2202_v48 = vrot.slane %v2200_v30, 3 }
 0x107   : > { %3590 = vmatmul.mubr.bf16.gmra.mrb[100].mxu0 %v1966_v57  ;;  %3623 = vmatprep.subr.bf16.mxu1 %v3937_v2  ;;  %v2180_v57 = vshrl.u32 %v4382_v26, 16 }
 0x108   : > { %3593 = vmatprep.mubr.msk.bf16.mxu0 %vm3938_vm0, %v3937_v2  ;;  %3678 = vmatpush3.bf16.msra.mxu0 %v3890_v59  ;;  %v2183_v59 = vshll.u32 %v4382_v26, 16  ;;  %v2470_v14 = vrot.slane %v3083_v56, 3  ;;  %v242_v56 = vld [vmem:[#allocation2 + $0x10] sm:$0xff] }
 0x109   : > { %3679 = vmatprep.subr.bf16.mxu0 %v3937_v2  ;;  %v2182_v26 = vrot.slane %v2180_v57, 2 }
 0x10a   : > { %3624 = vmatpush3.bf16.msra.mxu1 %v3885_v61  ;;  %v2188_v61 = vshrl.u32 %v4385_v27, 16 }
 0x10b   : > { %3625 = vmatprep.subr.bf16.mxu1 %v3937_v2 }
 0x10c   : > { %3680 = vmatpush3.bf16.msra.mxu0 %v3893_v63 }
 0x10d   : > { %3538 = vmatmul.mubr.bf16.gmra.mrb[104].mxu1 %v4209_v60 }
 0x10e   : > { %3541 = vmatprep.mubr.msk.bf16.mxu1 %vm3938_vm0, %v3937_v2  ;;  %3626 = vmatpush3.bf16.msra.mxu1 %v3888_v54 }
 0x10f   : > { %3594 = vmatmul.mubr.bf16.gmra.mrb[104].mxu0 %v1968_v29  ;;  %3627 = vmatprep.subr.bf16.mxu1 %v3937_v2 }
 0x110   : > { %v4470_v3 = vpop.f32.mrb[0].mxu1  ;;  %v4472_v4 = vpop.f32.mrb[0].mxu0  ;;  %3597 = vmatprep.mubr.msk.bf16.mxu0 %vm3938_vm0, %v3937_v2 }
 0x111   : > { %v3283_v8 = vpop.f32.mrb[1].mxu1  ;;  %v3267_v60 = vpop.f32.mrb[1].mxu0 }
 0x112   : > { %v4477_v9 = vpop.f32.mrb[2].mxu1  ;;  %v4479_v10 = vpop.f32.mrb[2].mxu0  ;;  %3628 = vmatpush3.bf16.msra.mxu1 %v3892_v1  ;;  %v2185_v8 = vrot.slane %v2183_v59, 3  ;;  %v2190_v60 = vrot.slane %v2188_v61, 2  ;;  %v243_v61 = vld [vmem:[#allocation2 + $0x18] sm:$0xff] }
 0x113   : > { %v3284_v23 = vpop.f32.mrb[3].mxu1  ;;  %v3268_v11 = vpop.f32.mrb[3].mxu0 }
 0x114   : > { %v2193_v23 = vrot.slane %v2191_v6, 3 }
 0x115   : > { %3542 = vmatmul.mubr.bf16.gmra.mrb[108].mxu1 %v4228_v15 }
 0x116   : > { %3545 = vmatprep.mubr.msk.bf16.mxu1 %vm3938_vm0, %v3937_v2 }
 0x117   : > { %3598 = vmatmul.mubr.bf16.gmra.mrb[108].mxu0 %v1970_v12 }
 0x118   : > { %v4488_v34 = vpop.f32.mrb[4].mxu1  ;;  %v4490_v16 = vpop.f32.mrb[4].mxu0  ;;  %3601 = vmatprep.mubr.msk.bf16.mxu0 %vm3938_vm0, %v3937_v2 }
 0x119   : > { %v3287_v18 = vpop.f32.mrb[5].mxu1  ;;  %v3271_v42 = vpop.f32.mrb[5].mxu0 }
 0x11a   : > { %v4495_v19 = vpop.f32.mrb[6].mxu1  ;;  %v4497_v20 = vpop.f32.mrb[6].mxu0 }
 0x11b   : > { %v3288_v15 = vpop.f32.mrb[7].mxu1  ;;  %v3272_v21 = vpop.f32.mrb[7].mxu0 }
 0x11c   : > { %v241_v15 = vld [vmem:[#allocation2 + $0x8] sm:$0xff]  ;;  %v2194_v21 = vor.u32 %v2193_v23, %v2190_v60 }
 0x11d   : > { %3546 = vmatmul.mubr.bf16.gmra.mrb[112].mxu1 %v4243_v35 }
 0x11e   : > { %3549 = vmatprep.mubr.msk.bf16.mxu1 %vm3938_vm0, %v3937_v2 }
 0x11f   : > { %3602 = vmatmul.mubr.bf16.gmra.mrb[112].mxu0 %v1972_v24  ;;  %v2197_v24 = vshrl.u32 %v4397_v33, 16 }
 0x120   : > { %v4506_v62 = vpop.f32.mrb[8].mxu1  ;;  %v4508_v28 = vpop.f32.mrb[8].mxu0  ;;  %3605 = vmatprep.mubr.msk.bf16.mxu0 %vm3938_vm0, %v3937_v2 }
 0x121   : > { %v3291_v44 = vpop.f32.mrb[9].mxu1  ;;  %v3275_v31 = vpop.f32.mrb[9].mxu0 }
 0x122   : > { %v4513_v32 = vpop.f32.mrb[10].mxu1  ;;  %v4515_v36 = vpop.f32.mrb[10].mxu0  ;;  %v499_v44 = vadd.f32 %v4472_v4, %v240_v17 }
 0x123   : > { %v3292_v35 = vpop.f32.mrb[11].mxu1  ;;  %v3276_v37 = vpop.f32.mrb[11].mxu0 }
 0x124   : > { %v500_v35 = vadd.f32 %v4479_v10, %v241_v15 }
 0x125   : > { %3550 = vmatmul.mubr.bf16.gmra.mrb[116].mxu1 %v4259_v52 }
 0x126   : > { %3553 = vmatprep.mubr.msk.bf16.mxu1 %vm3938_vm0, %v3937_v2 }
 0x127   : > { %3606 = vmatmul.mubr.bf16.gmra.mrb[116].mxu0 %v1974_v38 }
 0x128   : > { %v4522_v41 = vpop.f32.mrb[12].mxu1  ;;  %v4524_v43 = vpop.f32.mrb[12].mxu0  ;;  %3609 = vmatprep.mubr.msk.bf16.mxu0 %vm3938_vm0, %v3937_v2 }
 0x129   : > { %v3295_v46 = vpop.f32.mrb[13].mxu1  ;;  %v3279_v53 = vpop.f32.mrb[13].mxu0 }
 0x12a   : > { %v4529_v50 = vpop.f32.mrb[14].mxu1  ;;  %v4531_v51 = vpop.f32.mrb[14].mxu0  ;;  %v2199_v53 = vrot.slane %v2197_v24, 2  ;;  %v244_v24 = vld [vmem:[#allocation2 + $0x20] sm:$0xff] }
 0x12b   : > { %v3296_v52 = vpop.f32.mrb[15].mxu1  ;;  %v3280_v55 = vpop.f32.mrb[15].mxu0 }
 0x12c   : > { %v2203_v6 = vor.u32 %v2202_v48, %v2199_v53 }
 0x12d   : > { %3554 = vmatmul.mubr.bf16.gmra.mrb[120].mxu1 %v4279_v7  ;;  %v2471_v7 = vrot.slane %v4385_v27, 3  ;;  %v2186_v27 = vor.u32 %v2185_v8, %v2182_v26  ;;  %v502_v26 = vadd.f32 %v4497_v20, %v243_v61  ;;  %v246_v61 = vld [vmem:[#allocation2 + $0x30] sm:$0xff] }
 0x12e   : > { %3557 = vmatprep.mubr.msk.bf16.mxu1 %vm3938_vm0, %v3937_v2 }
 0x12f   : > { %3610 = vmatmul.mubr.bf16.gmra.mrb[120].mxu0 %v1976_v47  ;;  %v2472_v42 = vsel %vm2469_vm5, %v2470_v14, %v2471_v7  ;;  %v2195_v45 = vsel %vm2178_vm6, %v2186_v27, %v2194_v21  ;;  %v2206_v14 = vshrl.u32 %v4409_v40, 16 }
 0x130   : > { %v4542_v63 = vpop.f32.mrb[16].mxu1  ;;  %3681 = vmatprep.mubr.msk.bf16.mxu0 %vm3938_vm0, %v3937_v2 }
 0x131   : > { %v3299_v54 = vpop.f32.mrb[17].mxu1  ;;  %v990_v29 = vpop.f32.mrb[16].mxu0  ;;  %v2208_v17 = vrot.slane %v2206_v14, 2 }
 0x132   : > { %v4547_v1 = vpop.f32.mrb[18].mxu1  ;;  %v3371_v5 = vpop.f32.mrb[17].mxu0  ;;  %v2209_v54 = vshll.u32 %v4409_v40, 16 }
 0x133   : > { %v3300_v11 = vpop.f32.mrb[19].mxu1  ;;  %v993_v12 = vpop.f32.mrb[18].mxu0 }
 0x134   : > { %v3372_v18 = vpop.f32.mrb[19].mxu0  ;;  %v2204_v11 = vsel %vm2178_vm6, %v2194_v21, %v2203_v6 }
 0x135   : > { %3558 = vmatmul.mubr.bf16.gmra.mrb[124].mxu1 %v4303_v22  ;;  %v2473_v22 = vrot.slane %v4397_v33, 3  ;;  %v2211_v18 = vrot.slane %v2209_v54, 3 }
 0x136   : > { %3629 = vmatprep.mubr.msk.bf16.mxu1 %vm3938_vm0, %v3937_v2 }
 0x137   : > { %3682 = vmatmul.mubr.bf16.vlgmr.msra.gmra.mrb[124].mxu0 %v2472_v42  ;;  %v2474_v59 = vsel %vm2469_vm5, %v2471_v7, %v2473_v22  ;;  %v2475_v7 = vrot.slane %v4409_v40, 3  ;;  %v2212_v21 = vor.u32 %v2211_v18, %v2208_v17 }
 0x138   : > { %v769_v31 = vpop.f32.mrb[20].mxu1  ;;  %3685 = vmatprep.mubr.msk.bf16.mxu0 %vm3938_vm0, %v3937_v2 }
 0x139   : > { %v840_v37 = vadd.f32 %v769_v31, %v499_v44  ;;  %v3319_v38 = vpop.f32.mrb[21].mxu1  ;;  %v2476_v44 = vsel %vm2469_vm5, %v2473_v22, %v2475_v7  ;;  %v245_v31 = vld [vmem:[#allocation2 + $0x28] sm:$0xff]  ;;  %v2477_v22 = vrot.slane %v4427_v49, 3 }
 0x13a   : > { %v772_v39 = vpop.f32.mrb[22].mxu1  ;;  %v998_v46 = vpop.f32.mrb[20].mxu0  ;;  %v503_v38 = vadd.f32 %v4508_v28, %v244_v24 }
 0x13b   : > { %v4561_v52 = vadd.f32 %v990_v29, %v840_v37  ;;  %v841_v4 = vadd.f32 %v772_v39, %v500_v35  ;;  %v3320_v55 = vpop.f32.mrb[23].mxu1  ;;  %v3375_v47 = vpop.f32.mrb[21].mxu0  ;;  %v501_v29 = vadd.f32 %v4490_v16, %v242_v56  ;;  %v2215_v35 = vshrl.u32 %v4427_v49, 16 }
 0x13c   : > { %v1001_v57 = vpop.f32.mrb[22].mxu0  ;;  %v2218_v37 = vshll.u32 %v4427_v49, 16  ;;  %v2478_v54 = vsel %vm2469_vm5, %v2475_v7, %v2477_v22  ;;  %v2479_v7 = vrot.slane %v4445_v58, 3 }
 0x13d   : > { %v4564_v33 = vadd.f32 %v993_v12, %v841_v4  ;;  %3630 = vmatmul.mubr.bf16.vlgmr.msra.gmra.mrb[128].mxu1 %v2195_v45  ;;  %v3376_v10 = vpop.f32.mrb[23].mxu0  ;;  %v504_v45 = vadd.f32 %v4515_v36, %v245_v31  ;;  %v2213_v4 = vsel %vm2178_vm6, %v2203_v6, %v2212_v21  ;;  %v2217_v47 = vrot.slane %v2215_v35, 2 }
 0x13e   : > { %3633 = vmatprep.mubr.msk.bf16.mxu1 %vm3938_vm0, %v3937_v2  ;;  %v2220_v56 = vrot.slane %v2218_v37, 3  ;;  %v2480_v35 = vsel %vm2469_vm5, %v2477_v22, %v2479_v7  ;;  %v249_v37 = vld [vmem:[#allocation2 + $0x48] sm:$0xff]  ;;  %v2481_v22 = vrot.slane %v4463_v0, 3 }
 0x13f   : > { %3686 = vmatmul.mubr.bf16.gmra.mrb[128].mxu0 %v2474_v59 }
 0x140   : > { %v777_v5 = vpop.f32.mrb[24].mxu1  ;;  %3689 = vmatprep.mubr.msk.bf16.mxu0 %vm3938_vm0, %v3937_v2  ;;  %v2221_v6 = vor.u32 %v2220_v56, %v2217_v47 }
 0x141   : > { %v842_v8 = vadd.f32 %v777_v5, %v501_v29  ;;  %v3323_v60 = vpop.f32.mrb[25].mxu1  ;;  %v247_v29 = vld [vmem:[#allocation2 + $0x38] sm:$0xff]  ;;  %v2224_v5 = vshrl.u32 %v4445_v58, 16 }
 0x142   : > { %v780_v23 = vpop.f32.mrb[26].mxu1  ;;  %v1006_v12 = vpop.f32.mrb[24].mxu0  ;;  %v2222_v18 = vsel %vm2178_vm6, %v2212_v21, %v2221_v6 }
 0x143   : > { %v4576_v42 = vadd.f32 %v998_v46, %v842_v8  ;;  %v843_v16 = vadd.f32 %v780_v23, %v502_v26  ;;  %v3324_v15 = vpop.f32.mrb[27].mxu1  ;;  %v3379_v27 = vpop.f32.mrb[25].mxu0  ;;  %v2227_v26 = vshll.u32 %v4445_v58, 16  ;;  %v505_v8 = vadd.f32 %v4524_v43, %v246_v61 }
 0x144   : > { %v1009_v30 = vpop.f32.mrb[26].mxu0  ;;  %v506_v23 = vadd.f32 %v4531_v51, %v247_v29  ;;  %v2226_v15 = vrot.slane %v2224_v5, 2  ;;  %v2482_v29 = vsel %vm2469_vm5, %v2479_v7, %v2481_v22  ;;  %v251_v5 = vld [vmem:[#allocation2 + $0x58] sm:$0xff]  ;;  %v2483_v7 = vrot.slane %v4483_v13, 3 }
 0x145   : > { %v4579_v40 = vadd.f32 %v1001_v57, %v843_v16  ;;  %3634 = vmatmul.mubr.bf16.gmra.mrb[132].mxu1 %v2204_v11  ;;  %v3380_v20 = vpop.f32.mrb[27].mxu0  ;;  %v2229_v27 = vrot.slane %v2227_v26, 3  ;;  %v2242_v26 = vshrl.u32 %v4483_v13, 16 }
 0x146   : > { %3637 = vmatprep.mubr.msk.bf16.mxu1 %vm3938_vm0, %v3937_v2  ;;  %v248_v20 = vld [vmem:[#allocation2 + $0x40] sm:$0xff] }
 0x147   : > { %3690 = vmatmul.mubr.bf16.gmra.mrb[132].mxu0 %v2476_v44  ;;  %v2230_v21 = vor.u32 %v2229_v27, %v2226_v15  ;;  %v2244_v27 = vrot.slane %v2242_v26, 2 }
 0x148   : > { %v785_v39 = vpop.f32.mrb[28].mxu1  ;;  %3693 = vmatprep.mubr.msk.bf16.mxu0 %vm3938_vm0, %v3937_v2 }
 0x149   : > { %v844_v46 = vadd.f32 %v785_v39, %v503_v38  ;;  %v3327_v53 = vpop.f32.mrb[29].mxu1  ;;  %v2233_v38 = vshrl.u32 %v4463_v0, 16  ;;  %v2236_v39 = vshll.u32 %v4463_v0, 16  ;;  %v2231_v47 = vsel %vm2178_vm6, %v2221_v6, %v2230_v21 }
 0x14a   : > { %v788_v48 = vpop.f32.mrb[30].mxu1  ;;  %v1014_v55 = vpop.f32.mrb[28].mxu0  ;;  %v508_v53 = vadd.f32 %v4477_v9, %v249_v37  ;;  %v2251_v37 = vshrl.u32 %v4501_v25, 16 }
 0x14b   : > { %v4591_v57 = vadd.f32 %v1006_v12, %v844_v46  ;;  %v845_v28 = vadd.f32 %v788_v48, %v504_v45  ;;  %v3328_v59 = vpop.f32.mrb[31].mxu1  ;;  %v3383_v10 = vpop.f32.mrb[29].mxu0  ;;  %v507_v45 = vadd.f32 %v4470_v3, %v248_v20 }
 0x14c   : > { %v1017_v14 = vpop.f32.mrb[30].mxu0  ;;  %v2238_v59 = vrot.slane %v2236_v39, 3  ;;  %v2254_v39 = vshll.u32 %v4501_v25, 16 }
 0x14d   : > { %v4594_v49 = vadd.f32 %v1009_v30, %v845_v28  ;;  %3638 = vmatmul.mubr.bf16.gmra.mrb[136].mxu1 %v2213_v4  ;;  %v3384_v36 = vpop.f32.mrb[31].mxu0  ;;  %v2235_v28 = vrot.slane %v2233_v38, 2  ;;  %v253_v38 = vld [vmem:[#allocation2 + $0x68] sm:$0xff] }
 0x14e   : > { %3641 = vmatprep.mubr.msk.bf16.mxu1 %vm3938_vm0, %v3937_v2 }
 0x14f   : > { %3694 = vmatmul.mubr.bf16.gmra.mrb[136].mxu0 %v2478_v54  ;;  %v250_v54 = vld [vmem:[#allocation2 + $0x50] sm:$0xff]  ;;  %v2239_v6 = vor.u32 %v2238_v59, %v2235_v28  ;;  %v2256_v59 = vrot.slane %v2254_v39, 3 }
 0x150   : > { %v793_v60 = vpop.f32.mrb[32].mxu1  ;;  %3697 = vmatprep.mubr.msk.bf16.mxu0 %vm3938_vm0, %v3937_v2 }
 0x151   : > { %v846_v11 = vadd.f32 %v793_v60, %v505_v8  ;;  %v3331_v12 = vpop.f32.mrb[33].mxu1  ;;  %v2245_v8 = vshll.u32 %v4483_v13, 16  ;;  %v509_v60 = vadd.f32 %v4488_v34, %v250_v54 }
 0x152   : > { %v796_v17 = vpop.f32.mrb[34].mxu1  ;;  %v1022_v16 = vpop.f32.mrb[32].mxu0 }
 0x153   : > { %v4606_v24 = vadd.f32 %v1014_v55, %v846_v11  ;;  %v847_v43 = vadd.f32 %v796_v17, %v506_v23  ;;  %v3332_v30 = vpop.f32.mrb[35].mxu1  ;;  %v3387_v44 = vpop.f32.mrb[33].mxu0  ;;  %v510_v11 = vadd.f32 %v4495_v19, %v251_v5  ;;  %v255_v5 = vld [vmem:[#allocation2 + $0x78] sm:$0xff] }
 0x154   : > { %v1025_v31 = vpop.f32.mrb[34].mxu0 }
 0x155   : > { %v4609_v58 = vadd.f32 %v1017_v14, %v847_v43  ;;  %3642 = vmatmul.mubr.bf16.gmra.mrb[140].mxu1 %v2222_v18  ;;  %v3388_v51 = vpop.f32.mrb[35].mxu0  ;;  %v2247_v43 = vrot.slane %v2245_v8, 3 }
 0x156   : > { %3645 = vmatprep.mubr.msk.bf16.mxu1 %vm3938_vm0, %v3937_v2  ;;  %v2484_v51 = vsel %vm2469_vm5, %v2481_v22, %v2483_v7  ;;  %v2485_v22 = vrot.slane %v4501_v25, 3 }
 0x157   : > { %3698 = vmatmul.mubr.bf16.gmra.mrb[140].mxu0 %v2480_v35 }
 0x158   : > { %v801_v46 = vpop.f32.mrb[36].mxu1  ;;  %3701 = vmatprep.mubr.msk.bf16.mxu0 %vm3938_vm0, %v3937_v2  ;;  %v2486_v25 = vsel %vm2469_vm5, %v2483_v7, %v2485_v22  ;;  %v514_v7 = vadd.f32 %v4529_v50, %v255_v5 }
 0x159   : > { %v848_v48 = vadd.f32 %v801_v46, %v507_v45  ;;  %v3335_v4 = vpop.f32.mrb[37].mxu1 }
 0x15a   : > { %v804_v55 = vpop.f32.mrb[38].mxu1  ;;  %v1030_v56 = vpop.f32.mrb[36].mxu0 }
 0x15b   : > { %v4621_v10 = vadd.f32 %v1022_v16, %v848_v48  ;;  %v849_v3 = vadd.f32 %v804_v55, %v508_v53  ;;  %v3336_v61 = vpop.f32.mrb[39].mxu1  ;;  %v3391_v14 = vpop.f32.mrb[37].mxu0  ;;  %v2240_v16 = vsel %vm2178_vm6, %v2230_v21, %v2239_v6  ;;  %v2248_v21 = vor.u32 %v2247_v43, %v2244_v27 }
 0x15c   : > { %v1033_v36 = vpop.f32.mrb[38].mxu0  ;;  %v512_v53 = vadd.f32 %v4513_v32, %v253_v38  ;;  %v2253_v55 = vrot.slane %v2251_v37, 2  ;;  %v257_v37 = vld [vmem:[#allocation2 + $0x88] sm:$0xff] }
 0x15d   : > { %v4624_v0 = vadd.f32 %v1025_v31, %v849_v3  ;;  %3646 = vmatmul.mubr.bf16.gmra.mrb[144].mxu1 %v2231_v47  ;;  %v3392_v9 = vpop.f32.mrb[39].mxu0  ;;  %v252_v31 = vld [vmem:[#allocation2 + $0x60] sm:$0xff]  ;;  %v3895_v3 = vld [vmem:[%s4001_s4 + $0x58] ss:$0 sps:$4 sm:$0x77]  }
 0x15e   : > { %3649 = vmatprep.mubr.msk.bf16.mxu1 %vm3938_vm0, %v3937_v2  ;;  %v511_v45 = vadd.f32 %v4506_v62, %v252_v31  ;;  %v2260_v26 = vshrl.u32 %v3895_v3, 16  ;;  %v2263_v8 = vshll.u32 %v3895_v3, 16  ;;  %v256_v31 = vld [vmem:[#allocation2 + $0x80] sm:$0xff] }
 0x15f   : > { %3702 = vmatmul.mubr.bf16.gmra.mrb[144].mxu0 %v2482_v29 }
 0x160   : > { %v809_v23 = vpop.f32.mrb[40].mxu1  ;;  %3705 = vmatprep.mubr.msk.bf16.mxu0 %vm3938_vm0, %v3937_v2  ;;  %v2262_v27 = vrot.slane %v2260_v26, 2  ;;  %v2265_v43 = vrot.slane %v2263_v8, 3 }
 0x161   : > { %v850_v12 = vadd.f32 %v809_v23, %v509_v60  ;;  %v3339_v17 = vpop.f32.mrb[41].mxu1 }
 0x162   : > { %v812_v18 = vpop.f32.mrb[42].mxu1  ;;  %v1038_v15 = vpop.f32.mrb[40].mxu0  ;;  %v2266_v38 = vor.u32 %v2265_v43, %v2262_v27 }
 0x163   : > { %v4636_v30 = vadd.f32 %v1030_v56, %v850_v12  ;;  %v851_v34 = vadd.f32 %v812_v18, %v510_v11  ;;  %v3340_v44 = vpop.f32.mrb[43].mxu1  ;;  %v3395_v20 = vpop.f32.mrb[41].mxu0  ;;  %v2249_v56 = vsel %vm2178_vm6, %v2239_v6, %v2248_v21  ;;  %v2257_v6 = vor.u32 %v2256_v59, %v2253_v55 }
 0x164   : > { %v1041_v35 = vpop.f32.mrb[42].mxu0  ;;  %v2487_v11 = vrot.slane %v3895_v3, 3 }
 0x165   : > { %v4639_v13 = vadd.f32 %v1033_v36, %v851_v34  ;;  %3650 = vmatmul.mubr.bf16.gmra.mrb[148].mxu1 %v2240_v16  ;;  %v3396_v19 = vpop.f32.mrb[43].mxu0  ;;  %v254_v36 = vld [vmem:[#allocation2 + $0x70] sm:$0xff]  ;;  %v2258_v16 = vsel %vm2178_vm6, %v2248_v21, %v2257_v6  ;;  %v515_v21 = vadd.f32 %v4542_v63, %v256_v31 }
 0x166   : > { %3653 = vmatprep.mubr.msk.bf16.mxu1 %vm3938_vm0, %v3937_v2  ;;  %v513_v60 = vadd.f32 %v4522_v41, %v254_v36 }
 0x167   : > { %3706 = vmatmul.mubr.bf16.gmra.mrb[148].mxu0 %v2484_v51  ;;  %v2488_v51 = vsel %vm2469_vm5, %v2485_v22, %v2487_v11  ;;  %v2267_v22 = vsel %vm2178_vm6, %v2257_v6, %v2266_v38 }
 0x168   : > { %v817_v46 = vpop.f32.mrb[44].mxu1  ;;  %3709 = vmatprep.mubr.msk.bf16.mxu0 %vm3938_vm0, %v3937_v2 }
 0x169   : > { %v852_v48 = vadd.f32 %v817_v46, %v511_v45  ;;  %v3343_v4 = vpop.f32.mrb[45].mxu1  ;;  %v516_v45 = vadd.f32 %v4547_v1, %v257_v37 }
 0x16a   : > { %v820_v47 = vpop.f32.mrb[46].mxu1  ;;  %v1046_v28 = vpop.f32.mrb[44].mxu0 }
 0x16b   : > { %v4652_v61 = vadd.f32 %v1038_v15, %v852_v48  ;;  %v853_v62 = vadd.f32 %v820_v47, %v512_v53  ;;  %v3344_v14 = vpop.f32.mrb[47].mxu1  ;;  %v3399_v54 = vpop.f32.mrb[45].mxu0 }
 0x16c   : > { %v1049_v29 = vpop.f32.mrb[46].mxu0 }
 0x16d   : > { %v4655_v9 = vadd.f32 %v1041_v35, %v853_v62  ;;  %3654 = vmatmul.mubr.bf16.gmra.mrb[152].mxu1 %v2249_v56  ;;  %v3400_v32 = vpop.f32.mrb[47].mxu0 }
 0x16e   : > { %3657 = vmatprep.mubr.msk.bf16.mxu1 %vm3938_vm0, %v3937_v2 }
 0x16f   : > { %3710 = vmatmul.mubr.bf16.gmra.mrb[152].mxu0 %v2486_v25 }
 0x170   : > { %v825_v23 = vpop.f32.mrb[48].mxu1  ;;  %3713 = vmatprep.mubr.msk.bf16.mxu0 %vm3938_vm0, %v3937_v2 }
 0x171   : > { %v854_v12 = vadd.f32 %v825_v23, %v513_v60  ;;  %v3347_v17 = vpop.f32.mrb[49].mxu1 }
 0x172   : > { %v828_v18 = vpop.f32.mrb[50].mxu1  ;;  %v1054_v15 = vpop.f32.mrb[48].mxu0 }
 0x173   : > { %v4664_v34 = vadd.f32 %v1046_v28, %v854_v12  ;;  %v855_v44 = vadd.f32 %v828_v18, %v514_v7  ;;  %v3348_v41 = vpop.f32.mrb[51].mxu1  ;;  %v3403_v20 = vpop.f32.mrb[49].mxu0 }
 0x174   : > { %v1057_v35 = vpop.f32.mrb[50].mxu0 }
 0x175   : > { %v4667_v19 = vadd.f32 %v1049_v29, %v855_v44  ;;  %3658 = vmatmul.mubr.bf16.gmra.mrb[156].mxu1 %v2258_v16  ;;  %v3404_v50 = vpop.f32.mrb[51].mxu0 }
 0x176   : > { %3661 = vmatprep.mubr.msk.bf16.mxu1 %vm3938_vm0, %v3937_v2 }
 0x177   : > { %3714 = vmatmul.mubr.bf16.gmra.mrb[156].mxu0 %v2488_v51 }
 0x178   : > { %v833_v39 = vpop.f32.mrb[52].mxu1 }
 0x179   : > { %v856_v46 = vadd.f32 %v833_v39, %v515_v21  ;;  %v3351_v53 = vpop.f32.mrb[53].mxu1 }
 0x17a   : > { %v836_v48 = vpop.f32.mrb[54].mxu1  ;;  %v1564_v4 = vpop.f32.mrb[52].mxu0 }
 0x17b   : > { %v4674_v55 = vadd.f32 %v1054_v15, %v856_v46  ;;  %v857_v47 = vadd.f32 %v836_v48, %v516_v45  ;;  %v3352_v56 = vpop.f32.mrb[55].mxu1  ;;  %v3475_v28 = vpop.f32.mrb[53].mxu0 }
 0x17c   : > { %v1567_v59 = vpop.f32.mrb[54].mxu0 }
 0x17d   : > { %v4676_v2 = vadd.f32 %v1057_v35, %v857_v47  ;;  %3662 = vmatmul.mubr.bf16.gmra.mrb[160].mxu1 %v2267_v22  ;;  %v3476_v63 = vpop.f32.mrb[55].mxu0 }
 0x180   : > { %v1273_v3 = vpop.f32.mrb[56].mxu1 }
 0x181   : > { %v1344_v62 = vadd.f32 %v1273_v3, %v4561_v52  ;;  %v3423_v1 = vpop.f32.mrb[57].mxu1 }
 0x182   : > { %v1276_v14 = vpop.f32.mrb[58].mxu1  ;;  %v1572_v54 = vpop.f32.mrb[56].mxu0 }
 0x183   : > { %v4679_v36 = vadd.f32 %v1564_v4, %v1344_v62  ;;  %v1345_v29 = vadd.f32 %v1276_v14, %v4564_v33  ;;  %v3424_v25 = vpop.f32.mrb[59].mxu1  ;;  %v3479_v32 = vpop.f32.mrb[57].mxu0 }
 0x184   : > { %v1575_v5 = vpop.f32.mrb[58].mxu0 }
 0x185   : > { %v4682_v6 = vadd.f32 %v1567_v59, %v1345_v29  ;;  %v3480_v26 = vpop.f32.mrb[59].mxu0 }
 0x188   : > { %v1281_v8 = vpop.f32.mrb[60].mxu1 }
 0x189   : > { %v1346_v60 = vadd.f32 %v1281_v8, %v4576_v42  ;;  %v3427_v23 = vpop.f32.mrb[61].mxu1 }
 0x18a   : > { %v1284_v11 = vpop.f32.mrb[62].mxu1  ;;  %v1580_v7 = vpop.f32.mrb[60].mxu0 }
 0x18b   : > { %v4685_v52 = vadd.f32 %v1572_v54, %v1346_v60  ;;  %v1347_v12 = vadd.f32 %v1284_v11, %v4579_v40  ;;  %v3428_v17 = vpop.f32.mrb[63].mxu1  ;;  %v3483_v18 = vpop.f32.mrb[61].mxu0 }
 0x18c   : > { %v1583_v16 = vpop.f32.mrb[62].mxu0 }
 0x18d   : > { %v4688_v33 = vadd.f32 %v1575_v5, %v1347_v12  ;;  %v3484_v15 = vpop.f32.mrb[63].mxu0 }
 0x190   : > { %v1289_v27 = vpop.f32.mrb[64].mxu1 }
 0x191   : > { %v1348_v43 = vadd.f32 %v1289_v27, %v4591_v57  ;;  %v3431_v44 = vpop.f32.mrb[65].mxu1 }
 0x192   : > { %v1292_v41 = vpop.f32.mrb[66].mxu1  ;;  %v1588_v20 = vpop.f32.mrb[64].mxu0 }
 0x193   : > { %v4691_v42 = vadd.f32 %v1580_v7, %v1348_v43  ;;  %v1349_v31 = vadd.f32 %v1292_v41, %v4594_v49  ;;  %v3432_v35 = vpop.f32.mrb[67].mxu1  ;;  %v3487_v51 = vpop.f32.mrb[65].mxu0 }
 0x194   : > { %v1591_v50 = vpop.f32.mrb[66].mxu0 }
 0x195   : > { %v4694_v40 = vadd.f32 %v1583_v16, %v1349_v31  ;;  %v3488_v37 = vpop.f32.mrb[67].mxu0 }
 0x198   : > { %v1297_v38 = vpop.f32.mrb[68].mxu1 }
 0x199   : > { %v1350_v21 = vadd.f32 %v1297_v38, %v4606_v24  ;;  %v3435_v39 = vpop.f32.mrb[69].mxu1 }
 0x19a   : > { %v1300_v45 = vpop.f32.mrb[70].mxu1  ;;  %v1596_v46 = vpop.f32.mrb[68].mxu0 }
 0x19b   : > { %v4697_v57 = vadd.f32 %v1588_v20, %v1350_v21  ;;  %v1351_v53 = vadd.f32 %v1300_v45, %v4609_v58  ;;  %v3436_v48 = vpop.f32.mrb[71].mxu1  ;;  %v3491_v22 = vpop.f32.mrb[69].mxu0 }
 0x19c   : > { %v1599_v4 = vpop.f32.mrb[70].mxu0 }
 0x19d   : > { %v4700_v49 = vadd.f32 %v1591_v50, %v1351_v53  ;;  %v3492_v47 = vpop.f32.mrb[71].mxu0 }
 0x1a0   : > { %v1305_v56 = vpop.f32.mrb[72].mxu1 }
 0x1a1   : > { %v1352_v28 = vadd.f32 %v1305_v56, %v4621_v10  ;;  %v3439_v59 = vpop.f32.mrb[73].mxu1 }
 0x1a2   : > { %v1308_v63 = vpop.f32.mrb[74].mxu1  ;;  %v1604_v3 = vpop.f32.mrb[72].mxu0 }
 0x1a3   : > { %v4703_v24 = vadd.f32 %v1596_v46, %v1352_v28  ;;  %v1353_v62 = vadd.f32 %v1308_v63, %v4624_v0  ;;  %v3440_v1 = vpop.f32.mrb[75].mxu1  ;;  %v3495_v14 = vpop.f32.mrb[73].mxu0 }
 0x1a4   : > { %v1607_v54 = vpop.f32.mrb[74].mxu0 }
 0x1a5   : > { %v4706_v58 = vadd.f32 %v1599_v4, %v1353_v62  ;;  %v3496_v29 = vpop.f32.mrb[75].mxu0 }
 0x1a8   : > { %v1313_v25 = vpop.f32.mrb[76].mxu1 }
 0x1a9   : > { %v1354_v32 = vadd.f32 %v1313_v25, %v4636_v30  ;;  %v3443_v5 = vpop.f32.mrb[77].mxu1 }
 0x1aa   : > { %v1316_v26 = vpop.f32.mrb[78].mxu1  ;;  %v1612_v8 = vpop.f32.mrb[76].mxu0 }
 0x1ab   : > { %v4709_v10 = vadd.f32 %v1604_v3, %v1354_v32  ;;  %v1355_v60 = vadd.f32 %v1316_v26, %v4639_v13  ;;  %v3444_v23 = vpop.f32.mrb[79].mxu1  ;;  %v3499_v11 = vpop.f32.mrb[77].mxu0 }
 0x1ac   : > { %v1615_v7 = vpop.f32.mrb[78].mxu0 }
 0x1ad   : > { %v4712_v0 = vadd.f32 %v1607_v54, %v1355_v60  ;;  %v3500_v12 = vpop.f32.mrb[79].mxu0 }
 0x1b0   : > { %v1321_v17 = vpop.f32.mrb[80].mxu1 }
 0x1b1   : > { %v1356_v18 = vadd.f32 %v1321_v17, %v4652_v61  ;;  %v3447_v16 = vpop.f32.mrb[81].mxu1 }
 0x1b2   : > { %v1324_v15 = vpop.f32.mrb[82].mxu1  ;;  %v1620_v27 = vpop.f32.mrb[80].mxu0 }
 0x1b3   : > { %v4715_v30 = vadd.f32 %v1612_v8, %v1356_v18  ;;  %v1357_v43 = vadd.f32 %v1324_v15, %v4655_v9  ;;  %v3448_v44 = vpop.f32.mrb[83].mxu1  ;;  %v3503_v41 = vpop.f32.mrb[81].mxu0 }
 0x1b4   : > { %v1623_v20 = vpop.f32.mrb[82].mxu0 }
 0x1b5   : > { %v4718_v13 = vadd.f32 %v1615_v7, %v1357_v43  ;;  %v3504_v31 = vpop.f32.mrb[83].mxu0 }
 0x1b8   : > { %v1329_v35 = vpop.f32.mrb[84].mxu1 }
 0x1b9   : > { %v1358_v51 = vadd.f32 %v1329_v35, %v4664_v34  ;;  %v3451_v50 = vpop.f32.mrb[85].mxu1 }
 0x1ba   : > { %v1332_v37 = vpop.f32.mrb[86].mxu1  ;;  %v1628_v38 = vpop.f32.mrb[84].mxu0 }
 0x1bb   : > { %v4721_v61 = vadd.f32 %v1620_v27, %v1358_v51  ;;  %v1359_v21 = vadd.f32 %v1332_v37, %v4667_v19  ;;  %v3452_v39 = vpop.f32.mrb[87].mxu1  ;;  %v3507_v45 = vpop.f32.mrb[85].mxu0 }
 0x1bc   : > { %v1631_v46 = vpop.f32.mrb[86].mxu0 }
 0x1bd   : > { %v4724_v9 = vadd.f32 %v1623_v20, %v1359_v21  ;;  %v3508_v53 = vpop.f32.mrb[87].mxu0 }
 0x1c0   : > { %v1337_v48 = vpop.f32.mrb[88].mxu1 }
 0x1c1   : > { %v1360_v22 = vadd.f32 %v1337_v48, %v4674_v55  ;;  %v3455_v4 = vpop.f32.mrb[89].mxu1 }
 0x1c2   : > { %v1340_v47 = vpop.f32.mrb[90].mxu1  ;;  %v2068_v56 = vpop.f32.mrb[88].mxu0 }
 0x1c3   : > { %v4727_v34 = vadd.f32 %v1628_v38, %v1360_v22  ;;  %v1361_v28 = vadd.f32 %v1340_v47, %v4676_v2  ;;  %v3456_v59 = vpop.f32.mrb[91].mxu1  ;;  %v3579_v63 = vpop.f32.mrb[89].mxu0 }
 0x1c4   : > { %v2071_v3 = vpop.f32.mrb[90].mxu0 }
 0x1c5   : > { %v4730_v19 = vadd.f32 %v1631_v46, %v1361_v28  ;;  %v3580_v62 = vpop.f32.mrb[91].mxu0 }
 0x1c8   : > { %v1785_v1 = vpop.f32.mrb[92].mxu1 }
 0x1c9   : > { %v1856_v14 = vadd.f32 %v1785_v1, %v4679_v36  ;;  %v3527_v54 = vpop.f32.mrb[93].mxu1 }
 0x1ca   : > { %v1788_v29 = vpop.f32.mrb[94].mxu1  ;;  %v2076_v25 = vpop.f32.mrb[92].mxu0 }
 0x1cb   : > { %v4733_v55 = vadd.f32 %v2068_v56, %v1856_v14  ;;  %v1857_v32 = vadd.f32 %v1788_v29, %v4682_v6  ;;  %v3528_v5 = vpop.f32.mrb[95].mxu1  ;;  %v3583_v26 = vpop.f32.mrb[93].mxu0 }
 0x1cc   : > { %v2079_v8 = vpop.f32.mrb[94].mxu0 }
 0x1cd   : > { %v4736_v2 = vadd.f32 %v2071_v3, %v1857_v32  ;;  %v3584_v60 = vpop.f32.mrb[95].mxu0 }
 0x1d0   : > { %v1793_v23 = vpop.f32.mrb[96].mxu1 }
 0x1d1   : > { %v1858_v11 = vadd.f32 %v1793_v23, %v4685_v52  ;;  %v3531_v7 = vpop.f32.mrb[97].mxu1 }
 0x1d2   : > { %v1796_v12 = vpop.f32.mrb[98].mxu1  ;;  %v2084_v17 = vpop.f32.mrb[96].mxu0 }
 0x1d3   : > { %v4739_v36 = vadd.f32 %v2076_v25, %v1858_v11  ;;  %v1859_v18 = vadd.f32 %v1796_v12, %v4688_v33  ;;  %v3532_v16 = vpop.f32.mrb[99].mxu1  ;;  %v3587_v15 = vpop.f32.mrb[97].mxu0 }
 0x1d4   : > { %v2087_v27 = vpop.f32.mrb[98].mxu0 }
 0x1d5   : > { %v4742_v6 = vadd.f32 %v2079_v8, %v1859_v18  ;;  %v3588_v43 = vpop.f32.mrb[99].mxu0 }
 0x1d8   : > { %v1801_v44 = vpop.f32.mrb[100].mxu1 }
 0x1d9   : > { %v1860_v41 = vadd.f32 %v1801_v44, %v4691_v42  ;;  %v3535_v20 = vpop.f32.mrb[101].mxu1 }
 0x1da   : > { %v1804_v31 = vpop.f32.mrb[102].mxu1  ;;  %v2092_v35 = vpop.f32.mrb[100].mxu0 }
 0x1db   : > { %v4745_v52 = vadd.f32 %v2084_v17, %v1860_v41  ;;  %v1861_v51 = vadd.f32 %v1804_v31, %v4694_v40  ;;  %v3536_v50 = vpop.f32.mrb[103].mxu1  ;;  %v3591_v37 = vpop.f32.mrb[101].mxu0 }
 0x1dc   : > { %v2095_v38 = vpop.f32.mrb[102].mxu0 }
 0x1dd   : > { %v4748_v33 = vadd.f32 %v2087_v27, %v1861_v51  ;;  %v3592_v21 = vpop.f32.mrb[103].mxu0 }
 0x1e0   : > { %v1809_v39 = vpop.f32.mrb[104].mxu1 }
 0x1e1   : > { %v1862_v45 = vadd.f32 %v1809_v39, %v4697_v57  ;;  %v3539_v46 = vpop.f32.mrb[105].mxu1 }
 0x1e2   : > { %v1812_v53 = vpop.f32.mrb[106].mxu1  ;;  %v2100_v48 = vpop.f32.mrb[104].mxu0 }
 0x1e3   : > { %v4751_v42 = vadd.f32 %v2092_v35, %v1862_v45  ;;  %v1863_v22 = vadd.f32 %v1812_v53, %v4700_v49  ;;  %v3540_v4 = vpop.f32.mrb[107].mxu1  ;;  %v3595_v47 = vpop.f32.mrb[105].mxu0 }
 0x1e4   : > { %v2103_v56 = vpop.f32.mrb[106].mxu0 }
 0x1e5   : > { %v4754_v40 = vadd.f32 %v2095_v38, %v1863_v22  ;;  %v3596_v28 = vpop.f32.mrb[107].mxu0 }
 0x1e8   : > { %v1817_v59 = vpop.f32.mrb[108].mxu1 }
 0x1e9   : > { %v1864_v63 = vadd.f32 %v1817_v59, %v4703_v24  ;;  %v3543_v3 = vpop.f32.mrb[109].mxu1 }
 0x1ea   : > { %v1820_v62 = vpop.f32.mrb[110].mxu1  ;;  %v2108_v1 = vpop.f32.mrb[108].mxu0 }
 0x1eb   : > { %v4757_v57 = vadd.f32 %v2100_v48, %v1864_v63  ;;  %v1865_v14 = vadd.f32 %v1820_v62, %v4706_v58  ;;  %v3544_v54 = vpop.f32.mrb[111].mxu1  ;;  %v3599_v29 = vpop.f32.mrb[109].mxu0 }
 0x1ec   : > { %v2111_v25 = vpop.f32.mrb[110].mxu0 }
 0x1ed   : > { %v4760_v49 = vadd.f32 %v2103_v56, %v1865_v14  ;;  %v3600_v32 = vpop.f32.mrb[111].mxu0 }
 0x1f0   : > { %v1825_v5 = vpop.f32.mrb[112].mxu1 }
 0x1f1   : > { %v1866_v26 = vadd.f32 %v1825_v5, %v4709_v10  ;;  %v3547_v8 = vpop.f32.mrb[113].mxu1 }
 0x1f2   : > { %v1828_v60 = vpop.f32.mrb[114].mxu1  ;;  %v2116_v23 = vpop.f32.mrb[112].mxu0 }
 0x1f3   : > { %v4763_v24 = vadd.f32 %v2108_v1, %v1866_v26  ;;  %v1867_v11 = vadd.f32 %v1828_v60, %v4712_v0  ;;  %v3548_v7 = vpop.f32.mrb[115].mxu1  ;;  %v3603_v12 = vpop.f32.mrb[113].mxu0 }
 0x1f4   : > { %v2119_v17 = vpop.f32.mrb[114].mxu0 }
 0x1f5   : > { %v4766_v58 = vadd.f32 %v2111_v25, %v1867_v11  ;;  %v3604_v18 = vpop.f32.mrb[115].mxu0 }
 0x1f8   : > { %v1833_v16 = vpop.f32.mrb[116].mxu1 }
 0x1f9   : > { %v1868_v15 = vadd.f32 %v1833_v16, %v4715_v30  ;;  %v3551_v27 = vpop.f32.mrb[117].mxu1 }
 0x1fa   : > { %v1836_v43 = vpop.f32.mrb[118].mxu1  ;;  %v2124_v44 = vpop.f32.mrb[116].mxu0 }
 0x1fb   : > { %v4769_v10 = vadd.f32 %v2116_v23, %v1868_v15  ;;  %v1869_v41 = vadd.f32 %v1836_v43, %v4718_v13  ;;  %v3552_v20 = vpop.f32.mrb[119].mxu1  ;;  %v3607_v31 = vpop.f32.mrb[117].mxu0 }
 0x1fc   : > { %v2127_v35 = vpop.f32.mrb[118].mxu0 }
 0x1fd   : > { %v4772_v0 = vadd.f32 %v2119_v17, %v1869_v41  ;;  %v3608_v51 = vpop.f32.mrb[119].mxu0 }
 0x200   : > { %v1841_v50 = vpop.f32.mrb[120].mxu1 }
 0x201   : > { %v1870_v37 = vadd.f32 %v1841_v50, %v4721_v61  ;;  %v3555_v38 = vpop.f32.mrb[121].mxu1 }
 0x202   : > { %v1844_v21 = vpop.f32.mrb[122].mxu1  ;;  %v2132_v39 = vpop.f32.mrb[120].mxu0 }
 0x203   : > { %v4775_v30 = vadd.f32 %v2124_v44, %v1870_v37  ;;  %v1871_v45 = vadd.f32 %v1844_v21, %v4724_v9  ;;  %v3556_v46 = vpop.f32.mrb[123].mxu1  ;;  %v3611_v53 = vpop.f32.mrb[121].mxu0 }
 0x204   : > { %v2135_v48 = vpop.f32.mrb[122].mxu0 }
 0x205   : > { %v4778_v13 = vadd.f32 %v2127_v35, %v1871_v45  ;;  %v3612_v22 = vpop.f32.mrb[123].mxu0 }
 0x208   : > { %v1849_v4 = vpop.f32.mrb[124].mxu1 }
 0x209   : > { %v1872_v47 = vadd.f32 %v1849_v4, %v4727_v34  ;;  %v3559_v56 = vpop.f32.mrb[125].mxu1 }
 0x20a   : > { %v1852_v28 = vpop.f32.mrb[126].mxu1  ;;  %v2580_v59 = vpop.f32.mrb[124].mxu0 }
 0x20b   : > { %v4781_v61 = vadd.f32 %v2132_v39, %v1872_v47  ;;  %v1873_v63 = vadd.f32 %v1852_v28, %v4730_v19  ;;  %v3560_v3 = vpop.f32.mrb[127].mxu1  ;;  %v3683_v62 = vpop.f32.mrb[125].mxu0 }
 0x20c   : > { %v2583_v1 = vpop.f32.mrb[126].mxu0 }
 0x20d   : > { %v4784_v9 = vadd.f32 %v2135_v48, %v1873_v63  ;;  %v3684_v14 = vpop.f32.mrb[127].mxu0 }
 0x210   : > { %v2359_v54 = vpop.f32.mrb[128].mxu1 }
 0x211   : > { %v2430_v29 = vadd.f32 %v2359_v54, %v4733_v55  ;;  %v3631_v25 = vpop.f32.mrb[129].mxu1 }
 0x212   : > { %v2362_v32 = vpop.f32.mrb[130].mxu1  ;;  %v2588_v5 = vpop.f32.mrb[128].mxu0 }
 0x213   : > { %v2651_v34 = vadd.f32 %v2580_v59, %v2430_v29  ;;  %v2431_v26 = vadd.f32 %v2362_v32, %v4736_v2  ;;  %v3632_v8 = vpop.f32.mrb[131].mxu1  ;;  %v3687_v60 = vpop.f32.mrb[129].mxu0 }
 0x214   : > { %v2591_v23 = vpop.f32.mrb[130].mxu0 }
 0x215   : > { %2669 = vst [vmem:[#allocation2] sm:$0xff] %v2651_v34  ;;  %v2652_v19 = vadd.f32 %v2583_v1, %v2431_v26  ;;  %v3688_v11 = vpop.f32.mrb[131].mxu0 }
 0x217   : > { %2670 = vst [vmem:[#allocation2 + $0x8] sm:$0xff] %v2652_v19 }
 0x218   : > { %v2367_v7 = vpop.f32.mrb[132].mxu1 }
 0x219   : > { %v2432_v12 = vadd.f32 %v2367_v7, %v4739_v36  ;;  %v3635_v17 = vpop.f32.mrb[133].mxu1 }
 0x21a   : > { %v2370_v18 = vpop.f32.mrb[134].mxu1  ;;  %v2596_v16 = vpop.f32.mrb[132].mxu0 }
 0x21b   : > { %v2653_v55 = vadd.f32 %v2588_v5, %v2432_v12  ;;  %v2433_v15 = vadd.f32 %v2370_v18, %v4742_v6  ;;  %v3636_v27 = vpop.f32.mrb[135].mxu1  ;;  %v3691_v43 = vpop.f32.mrb[133].mxu0 }
 0x21c   : > { %v2599_v44 = vpop.f32.mrb[134].mxu0 }
 0x21d   : > { %2671 = vst [vmem:[#allocation2 + $0x10] sm:$0xff] %v2653_v55  ;;  %v2654_v2 = vadd.f32 %v2591_v23, %v2433_v15  ;;  %v3692_v41 = vpop.f32.mrb[135].mxu0 }
 0x21f   : > { %2672 = vst [vmem:[#allocation2 + $0x18] sm:$0xff] %v2654_v2 }
 0x220   : > { %v2375_v20 = vpop.f32.mrb[136].mxu1 }
 0x221   : > { %v2434_v31 = vadd.f32 %v2375_v20, %v4745_v52  ;;  %v3639_v35 = vpop.f32.mrb[137].mxu1 }
 0x222   : > { %v2378_v51 = vpop.f32.mrb[138].mxu1  ;;  %v2604_v50 = vpop.f32.mrb[136].mxu0 }
 0x223   : > { %v2655_v36 = vadd.f32 %v2596_v16, %v2434_v31  ;;  %v2435_v37 = vadd.f32 %v2378_v51, %v4748_v33  ;;  %v3640_v38 = vpop.f32.mrb[139].mxu1  ;;  %v3695_v21 = vpop.f32.mrb[137].mxu0 }
 0x224   : > { %v2607_v39 = vpop.f32.mrb[138].mxu0 }
 0x225   : > { %2673 = vst [vmem:[#allocation2 + $0x20] sm:$0xff] %v2655_v36  ;;  %v2656_v6 = vadd.f32 %v2599_v44, %v2435_v37  ;;  %v3696_v45 = vpop.f32.mrb[139].mxu0 }
 0x227   : > { %2674 = vst [vmem:[#allocation2 + $0x28] sm:$0xff] %v2656_v6 }
 0x228   : > { %v2383_v46 = vpop.f32.mrb[140].mxu1 }
 0x229   : > { %v2436_v53 = vadd.f32 %v2383_v46, %v4751_v42  ;;  %v3643_v48 = vpop.f32.mrb[141].mxu1 }
 0x22a   : > { %v2386_v22 = vpop.f32.mrb[142].mxu1  ;;  %v2612_v4 = vpop.f32.mrb[140].mxu0 }
 0x22b   : > { %v2657_v52 = vadd.f32 %v2604_v50, %v2436_v53  ;;  %v2437_v47 = vadd.f32 %v2386_v22, %v4754_v40  ;;  %v3644_v56 = vpop.f32.mrb[143].mxu1  ;;  %v3699_v28 = vpop.f32.mrb[141].mxu0 }
 0x22c   : > { %v2615_v59 = vpop.f32.mrb[142].mxu0  ;;  %v3093_v56 = vld [vmem:[%s4843_s2] ss:$0 sm:$0xff] (!%p3092_p8) }
 0x22d   : > { %2675 = vst [vmem:[#allocation2 + $0x30] sm:$0xff] %v2657_v52  ;;  %v2658_v33 = vadd.f32 %v2607_v39, %v2437_v47  ;;  %v3700_v63 = vpop.f32.mrb[143].mxu0 }
 0x22e   : > { %v2694_v63 = vld [vmem:[#allocation2 + $0x18] sm:$0xff] (!%p3092_p8) }
 0x22f   : > { %2676 = vst [vmem:[#allocation2 + $0x38] sm:$0xff] %v2658_v33  ;;  %v2693_v33 = vld [vmem:[#allocation2 + $0x10] sm:$0xff] (!%p3092_p8) }
 0x230   : > { %v2391_v3 = vpop.f32.mrb[144].mxu1 }
 0x231   : > { %v2438_v62 = vadd.f32 %v2391_v3, %v4757_v57  ;;  %v3647_v1 = vpop.f32.mrb[145].mxu1  ;;  %v2718_v3 = vadd.f32 (!%p3092_p8), %v3093_v56, %v2693_v33 }
 0x232   : > { %v2394_v14 = vpop.f32.mrb[146].mxu1  ;;  %v2620_v54 = vpop.f32.mrb[144].mxu0 }
 0x233   : > { %v2659_v42 = vadd.f32 %v2612_v4, %v2438_v62  ;;  %v2439_v29 = vadd.f32 %v2394_v14, %v4760_v49  ;;  %v3648_v25 = vpop.f32.mrb[147].mxu1  ;;  %v3703_v32 = vpop.f32.mrb[145].mxu0  ;;  %v2719_v62 = vadd.f32 (!%p3092_p8), %v3093_v56, %v2694_v63  ;;  %v2696_v14 = vld [vmem:[#allocation2 + $0x28] sm:$0xff] (!%p3092_p8)  ;;  %2736 = vst [vmem:[%s4006_s7 + $0x10] sm:$0xff] (!%p3092_p8), %v2718_v3 }
 0x234   : > { %v2623_v5 = vpop.f32.mrb[146].mxu0 }
 0x235   : > { %2677 = vst [vmem:[#allocation2 + $0x40] sm:$0xff] %v2659_v42  ;;  %v2660_v40 = vadd.f32 %v2615_v59, %v2439_v29  ;;  %v3704_v34 = vpop.f32.mrb[147].mxu0  ;;  %v2721_v29 = vadd.f32 (!%p3092_p8), %v3093_v56, %v2696_v14  ;;  %2737 = vst [vmem:[%s4006_s7 + $0x18] sm:$0xff] (!%p3092_p8), %v2719_v62 }
 0x236   : > { %v2698_v42 = vld [vmem:[#allocation2 + $0x38] sm:$0xff] (!%p3092_p8) }
 0x237   : > { %2678 = vst [vmem:[#allocation2 + $0x48] sm:$0xff] %v2660_v40  ;;  %v2723_v32 = vadd.f32 (!%p3092_p8), %v3093_v56, %v2698_v42  ;;  %2739 = vst [vmem:[%s4006_s7 + $0x28] sm:$0xff] (!%p3092_p8), %v2721_v29 }
 0x238   : > { %v2399_v26 = vpop.f32.mrb[148].mxu1 }
 0x239   : > { %v2440_v8 = vadd.f32 %v2399_v26, %v4763_v24  ;;  %v3651_v60 = vpop.f32.mrb[149].mxu1  ;;  %2741 = vst [vmem:[%s4006_s7 + $0x38] sm:$0xff] (!%p3092_p8), %v2723_v32 }
 0x23a   : > { %v2402_v23 = vpop.f32.mrb[150].mxu1  ;;  %v2628_v19 = vpop.f32.mrb[148].mxu0 }
 0x23b   : > { %v2661_v57 = vadd.f32 %v2620_v54, %v2440_v8  ;;  %v2441_v11 = vadd.f32 %v2402_v23, %v4766_v58  ;;  %v3652_v7 = vpop.f32.mrb[151].mxu1  ;;  %v3707_v12 = vpop.f32.mrb[149].mxu0  ;;  %v2697_v54 = vld [vmem:[#allocation2 + $0x30] sm:$0xff] (!%p3092_p8) }
 0x23c   : > { %v2631_v17 = vpop.f32.mrb[150].mxu0  ;;  %v2722_v25 = vadd.f32 (!%p3092_p8), %v3093_v56, %v2697_v54 }
 0x23d   : > { %2679 = vst [vmem:[#allocation2 + $0x50] sm:$0xff] %v2661_v57  ;;  %v2662_v49 = vadd.f32 %v2623_v5, %v2441_v11  ;;  %v3708_v18 = vpop.f32.mrb[151].mxu0  ;;  %v2699_v5 = vld [vmem:[#allocation2 + $0x40] sm:$0xff] (!%p3092_p8) }
 0x23e   : > { %v2700_v40 = vld [vmem:[#allocation2 + $0x48] sm:$0xff] (!%p3092_p8)  ;;  %v2724_v26 = vadd.f32 (!%p3092_p8), %v3093_v56, %v2699_v5  ;;  %2740 = vst [vmem:[%s4006_s7 + $0x30] sm:$0xff] (!%p3092_p8), %v2722_v25 }
 0x23f   : > { %2680 = vst [vmem:[#allocation2 + $0x58] sm:$0xff] %v2662_v49  ;;  %v2725_v8 = vadd.f32 (!%p3092_p8), %v3093_v56, %v2700_v40 }
 0x240   : > { %v2407_v16 = vpop.f32.mrb[152].mxu1  ;;  %2742 = vst [vmem:[%s4006_s7 + $0x40] sm:$0xff] (!%p3092_p8), %v2724_v26 }
 0x241   : > { %v2442_v55 = vadd.f32 %v2407_v16, %v4769_v10  ;;  %v3655_v15 = vpop.f32.mrb[153].mxu1  ;;  %2743 = vst [vmem:[%s4006_s7 + $0x48] sm:$0xff] (!%p3092_p8), %v2725_v8 }
 0x242   : > { %v2410_v27 = vpop.f32.mrb[154].mxu1  ;;  %v2636_v43 = vpop.f32.mrb[152].mxu0 }
 0x243   : > { %v2663_v24 = vadd.f32 %v2628_v19, %v2442_v55  ;;  %v2443_v44 = vadd.f32 %v2410_v27, %v4772_v0  ;;  %v3656_v2 = vpop.f32.mrb[155].mxu1  ;;  %v3711_v41 = vpop.f32.mrb[153].mxu0 }
 0x244   : > { %v2639_v20 = vpop.f32.mrb[154].mxu0  ;;  %v2701_v34 = vld [vmem:[#allocation2 + $0x50] sm:$0xff] (!%p3092_p8) }
 0x245   : > { %2681 = vst [vmem:[#allocation2 + $0x60] sm:$0xff] %v2663_v24  ;;  %v2664_v58 = vadd.f32 %v2631_v17, %v2443_v44  ;;  %v3712_v31 = vpop.f32.mrb[155].mxu0  ;;  %v2726_v60 = vadd.f32 (!%p3092_p8), %v3093_v56, %v2701_v34 }
 0x246   : > { %v2702_v23 = vld [vmem:[#allocation2 + $0x58] sm:$0xff] (!%p3092_p8) }
 0x247   : > { %2682 = vst [vmem:[#allocation2 + $0x68] sm:$0xff] %v2664_v58  ;;  %v2727_v11 = vadd.f32 (!%p3092_p8), %v3093_v56, %v2702_v23  ;;  %2744 = vst [vmem:[%s4006_s7 + $0x50] sm:$0xff] (!%p3092_p8), %v2726_v60 }
 0x248   : > { %v2415_v35 = vpop.f32.mrb[156].mxu1 }
 0x249   : > { %v2444_v51 = vadd.f32 %v2415_v35, %v4775_v30  ;;  %v3659_v50 = vpop.f32.mrb[157].mxu1  ;;  %2745 = vst [vmem:[%s4006_s7 + $0x58] sm:$0xff] (!%p3092_p8), %v2727_v11 }
 0x24a   : > { %v2418_v36 = vpop.f32.mrb[158].mxu1  ;;  %v2644_v37 = vpop.f32.mrb[156].mxu0 }
 0x24b   : > { %v2665_v10 = vadd.f32 %v2636_v43, %v2444_v51  ;;  %v2445_v38 = vadd.f32 %v2418_v36, %v4778_v13  ;;  %v3660_v21 = vpop.f32.mrb[159].mxu1  ;;  %v3715_v39 = vpop.f32.mrb[157].mxu0  ;;  %v2691_v13 = vld [vmem:[#allocation2] sm:$0xff] (!%p3092_p8) }
 0x24c   : > { %v2647_v6 = vpop.f32.mrb[158].mxu0  ;;  %v2716_v28 = vadd.f32 (!%p3092_p8), %v3093_v56, %v2691_v13  ;;  %v2703_v19 = vld [vmem:[#allocation2 + $0x60] sm:$0xff] (!%p3092_p8) }
 0x24d   : > { %2683 = vst [vmem:[#allocation2 + $0x70] sm:$0xff] %v2665_v10  ;;  %v2666_v0 = vadd.f32 %v2639_v20, %v2445_v38  ;;  %v3716_v45 = vpop.f32.mrb[159].mxu0  ;;  %v2728_v7 = vadd.f32 (!%p3092_p8), %v3093_v56, %v2703_v19 }
 0x24e   : > { %2734 = vst [vmem:[%s4006_s7] sm:$0xff] (!%p3092_p8), %v2716_v28  ;;  %v2704_v57 = vld [vmem:[#allocation2 + $0x68] sm:$0xff] (!%p3092_p8) }
 0x24f   : > { %2684 = vst [vmem:[#allocation2 + $0x78] sm:$0xff] %v2666_v0  ;;  %v2729_v12 = vadd.f32 (!%p3092_p8), %v3093_v56, %v2704_v57  ;;  %2746 = vst [vmem:[%s4006_s7 + $0x60] sm:$0xff] (!%p3092_p8), %v2728_v7 }
 0x250   : > { %v2423_v46 = vpop.f32.mrb[160].mxu1 }
 0x251   : > { %v2446_v53 = vadd.f32 %v2423_v46, %v4781_v61  ;;  %v3663_v48 = vpop.f32.mrb[161].mxu1  ;;  %2690 = sbr.rel (%p3092_p8) target bundleno = 610 (0x262), region = 40  ;;  %v2692_v61 = vld [vmem:[#allocation2 + $0x8] sm:$0xff] (!%p3092_p8)  ;;  %2747 = vst [vmem:[%s4006_s7 + $0x68] sm:$0xff] (!%p3092_p8), %v2729_v12 }
 0x252   : > { %v2426_v22 = vpop.f32.mrb[162].mxu1  ;;  %v2717_v59 = vadd.f32 (!%p3092_p8), %v3093_v56, %v2692_v61 }
 0x253   : > { %v2667_v4 = vadd.f32 %v2644_v37, %v2446_v53  ;;  %v2447_v30 = vadd.f32 %v2426_v22, %v4784_v9  ;;  %v3664_v52 = vpop.f32.mrb[163].mxu1  ;;  %v2695_v9 = vld [vmem:[#allocation2 + $0x20] sm:$0xff] (!%p3092_p8) }
 0x254   : > { %v2720_v1 = vadd.f32 (!%p3092_p8), %v3093_v56, %v2695_v9  ;;  %2735 = vst [vmem:[%s4006_s7 + $0x8] sm:$0xff] (!%p3092_p8), %v2717_v59  ;;  %v2705_v17 = vld [vmem:[#allocation2 + $0x70] sm:$0xff] (!%p3092_p8) }
 0x255   : > { %2685 = vst [vmem:[#allocation2 + $0x80] sm:$0xff] %v2667_v4  ;;  %v2668_v47 = vadd.f32 %v2647_v6, %v2447_v30  ;;  %v2730_v16 = vadd.f32 (!%p3092_p8), %v3093_v56, %v2705_v17 }
 0x256   : > { %2738 = vst [vmem:[%s4006_s7 + $0x20] sm:$0xff] (!%p3092_p8), %v2720_v1  ;;  %v2706_v49 = vld [vmem:[#allocation2 + $0x78] sm:$0xff] (!%p3092_p8) }
 0x257   : > { %2686 = vst [vmem:[#allocation2 + $0x88] sm:$0xff] %v2668_v47  ;;  %v2731_v55 = vadd.f32 (!%p3092_p8), %v3093_v56, %v2706_v49  ;;  %2748 = vst [vmem:[%s4006_s7 + $0x70] sm:$0xff] (!%p3092_p8), %v2730_v16 }
 0x259   : > { %2749 = vst [vmem:[%s4006_s7 + $0x78] sm:$0xff] %v2731_v55 }
 0x25c   : > { %v2707_v18 = vld [vmem:[#allocation2 + $0x80] sm:$0xff] }
 0x25d   : > { %v2732_v15 = vadd.f32 %v3093_v56, %v2707_v18 }
 0x25e   : > { %v2708_v27 = vld [vmem:[#allocation2 + $0x88] sm:$0xff] }
 0x25f   : > { %v2733_v43 = vadd.f32 %v3093_v56, %v2708_v27  ;;  %2750 = vst [vmem:[%s4006_s7 + $0x80] sm:$0xff] %v2732_v15 }
 0x261   : > { %2751 = vst [vmem:[%s4006_s7 + $0x88] sm:$0xff] %v2733_v43 }
 0x262 PF: > { %s13_s16 = sadd.s32 1, %s3934_s16   ;;  %s4845_s12 = smov %s3926_s14 }
 0x263   : > { %p10_p9 = scmp.ge.s32.totalorder %s13_s16, 26   ;;  %s4846_s13 = smov %s3930_s15 }
 0x264   : > { %s4847_s14 = smov %s4850_s17  ;;  %s4848_s15 = smov %s4854_s18 }
 0x265   :  { %12 = sbr.rel (!%p10_p9) target bundleno = 3 (0x3), region = 81 }

</bundles_post_ra>
